<compile_context>
chip_gen: v7x
topology: tpu7x:2x2x1
jax: 0.10.0
libtpu: 0.0.40
codegen_flags: <defaults>
</compile_context>

<pallas_src>
import functools

import jax
import jax.numpy as jnp
import numpy as np
from jax.experimental import pallas as pl
from jax.experimental.pallas import tpu as pltpu

EPS = 1e-5

_CompilerParamsCls = getattr(pltpu, "CompilerParams", None) or getattr(
    pltpu, "TPUCompilerParams"
)


def _compiler_params():
    # 32 MiB scoped VMEM: >= default on all generations, < v7x's 64 MiB physical.
    return _CompilerParamsCls(
        dimension_semantics=("parallel",),
        vmem_limit_bytes=32 * 1024 * 1024,
    )


def _round_up(x, m):
    return (x + m - 1) // m * m


def _pick_row_tile(m):
    for t in (512, 256, 128, 64, 32, 16, 8):
        if m % t == 0 and m // t >= 2:
            return t
    for t in (512, 256, 128, 64, 32, 16, 8):
        if m % t == 0:
            return t
    return m


# ----------------------------- Pallas kernels ------------------------------


def _make_conv_kernel(fuse_affine_relu, out_padded, compute_dtype):
    """3x3 conv over one reflection-padded image, as 9 shifted matmuls.

    Fused epilogue: per-channel batch-stats partials (sum, centered sum-of-squares).
    If `fuse_affine_relu`, the previous BN's affine + ReLU is applied to the input taps
    (valid because a per-channel elementwise op commutes with reflection padding).
    If `out_padded`, the output is written already reflection-padded (1 pixel).
    """

    def conv_body(xp_ref, s_ref, t_ref, w_ref, b_ref, out_ref, stats_ref):
        Hp, Wp, Cp = xp_ref.shape
        H, W = Hp - 2, Wp - 2
        M = H * W

        acc = jnp.zeros((M, Cp), jnp.float32)
        for kh in range(3):
            for kw in range(3):
                patch = xp_ref[kh:kh + H, kw:kw + W, :]            # (H, W, Cp)
                if s_ref is not None:
                    patch = jnp.maximum(patch * s_ref[...] + t_ref[...], 0.0)
                lhs = patch.reshape(M, Cp).astype(compute_dtype)
                acc = acc + jnp.dot(
                    lhs, w_ref[3 * kh + kw], preferred_element_type=jnp.float32
                )
        y = acc + b_ref[...]                                       # (M, Cp) f32

        # Fused BN-stats epilogue (per-image partials, combined across N outside).
        col_sum = jnp.sum(y, axis=0, keepdims=True)                # (1, Cp)
        col_mean = col_sum * (1.0 / M)
        col_css = jnp.sum((y - col_mean) ** 2, axis=0, keepdims=True)
        stats_ref[0:1, :] = col_sum
        stats_ref[1:2, :] = col_css

        y3 = y.reshape(H, W, Cp)
        if out_padded:
            # Write the conv output with reflection padding of 1 built in,
            # so the next conv kernel can consume it directly.
            out_ref[1:H + 1, 1:W + 1, :] = y3
            out_ref[0:1, 1:W + 1, :] = y3[1:2, :, :]
            out_ref[H + 1:H + 2, 1:W + 1, :] = y3[H - 2:H - 1, :, :]
            out_ref[1:H + 1, 0:1, :] = y3[:, 1:2, :]
            out_ref[1:H + 1, W + 1:W + 2, :] = y3[:, W - 2:W - 1, :]
            out_ref[0:1, 0:1, :] = y3[1:2, 1:2, :]
            out_ref[0:1, W + 1:W + 2, :] = y3[1:2, W - 2:W - 1, :]
            out_ref[H + 1:H + 2, 0:1, :] = y3[H - 2:H - 1, 1:2, :]
            out_ref[H + 1:H + 2, W + 1:W + 2, :] = y3[H - 2:H - 1, W - 2:W - 1, :]
        else:
            out_ref[...] = y3

    if fuse_affine_relu:
        def kernel(xp_ref, s_ref, t_ref, w_ref, b_ref, out_ref, stats_ref):
            conv_body(xp_ref, s_ref, t_ref, w_ref, b_ref, out_ref, stats_ref)
    else:
        def kernel(xp_ref, w_ref, b_ref, out_ref, stats_ref):
            conv_body(xp_ref, None, None, w_ref, b_ref, out_ref, stats_ref)
    return kernel


def _bn_residual_kernel(y_ref, s_ref, t_ref, x_ref, o_ref):
    # o = x + (y * scale + shift)   (BN2 affine fused into the residual add)
    o_ref[...] = x_ref[...] + y_ref[...] * s_ref[...] + t_ref[...]


# ----------------------------- pallas_call wrappers -------------------------


def _conv3x3(xp, w9, b, scale=None, shift=None, *, out_padded, compute_dtype):
    """Gridded over N (one padded image per step). Returns (conv output, stats)."""
    N, Hp, Wp, Cp = xp.shape
    H, W = Hp - 2, Wp - 2
    out_hw = (Hp, Wp) if out_padded else (H, W)

    kernel = _make_conv_kernel(scale is not None, out_padded, compute_dtype)

    img_spec = pl.BlockSpec((None, Hp, Wp, Cp), lambda n: (n, 0, 0, 0))
    vec_spec = pl.BlockSpec((1, Cp), lambda n: (0, 0))
    w_spec = pl.BlockSpec((9, Cp, Cp), lambda n: (0, 0, 0))

    in_specs = [img_spec]
    args = [xp]
    if scale is not None:
        in_specs += [vec_spec, vec_spec]
        args += [scale, shift]
    in_specs += [w_spec, vec_spec]
    args += [w9, b]

    out_specs = (
        pl.BlockSpec((None,) + out_hw + (Cp,), lambda n: (n, 0, 0, 0)),
        pl.BlockSpec((None, 2, Cp), lambda n: (n, 0, 0)),
    )
    out_shape = (
        jax.ShapeDtypeStruct((N,) + out_hw + (Cp,), jnp.float32),
        jax.ShapeDtypeStruct((N, 2, Cp), jnp.float32),
    )
    return pl.pallas_call(
        kernel,
        grid=(N,),
        in_specs=in_specs,
        out_specs=out_specs,
        out_shape=out_shape,
        compiler_params=_compiler_params(),
    )(*args)


def _bn_residual(y2d, scale, shift, x2d):
    """out = x + y*scale + shift, gridded over lane-dense row tiles of M."""
    M, Cp = y2d.shape
    tm = _pick_row_tile(M)
    row_spec = pl.BlockSpec((tm, Cp), lambda i: (i, 0))
    vec_spec = pl.BlockSpec((1, Cp), lambda i: (0, 0))
    return pl.pallas_call(
        _bn_residual_kernel,
        grid=(M // tm,),
        in_specs=[row_spec, vec_spec, vec_spec, row_spec],
        out_specs=row_spec,
        out_shape=jax.ShapeDtypeStruct((M, Cp), jnp.float32),
        compiler_params=_compiler_params(),
    )(y2d, scale, shift, x2d)


# ------------------------------- glue (JAX) --------------------------------


def _prep_conv_params(w_oihw, bias, Cp, compute_dtype):
    C = w_oihw.shape[0]
    pad = Cp - C
    w = jnp.pad(w_oihw, ((0, pad), (0, pad), (0, 0), (0, 0)))
    # (Cout, Cin, kh, kw) -> (kh, kw, Cin, Cout) -> (9, Cp, Cp)
    w9 = jnp.transpose(w, (2, 3, 1, 0)).reshape(9, Cp, Cp).astype(compute_dtype)
    b2d = jnp.pad(bias, (0, pad)).reshape(1, Cp).astype(jnp.float32)
    return w9, b2d


def _bn_scale_shift(stats, gamma_p, beta_p, n_per_image):
    """Combine per-image (sum, centered-SS) partials -> BN scale/shift, (1, Cp)."""
    n_imgs = stats.shape[0]
    total = n_imgs * n_per_image
    sums = stats[:, 0, :]                                   # (N, Cp)
    css = stats[:, 1, :]                                    # (N, Cp)
    mean = jnp.sum(sums, axis=0) / total                    # (Cp,)
    mean_i = sums / n_per_image
    var = (jnp.sum(css, axis=0)
           + n_per_image * jnp.sum((mean_i - mean[None, :]) ** 2, axis=0)) / total
    scale = gamma_p / jnp.sqrt(var + EPS)
    shift = beta_p - mean * scale
    return (scale.reshape(1, -1).astype(jnp.float32),
            shift.reshape(1, -1).astype(jnp.float32))


@functools.partial(jax.jit, static_argnames=("compute_dtype",))
def resnet_block(x_nchw, params, compute_dtype=jnp.float32):
    """ResnetBlock forward. Input/output layout: NCHW (PyTorch convention)."""
    x = x_nchw.astype(jnp.float32)
    N, C, H, W = x.shape
    Cp = max(128, _round_up(C, 128))                         # lane-dense channels

    x_nhwc = jnp.transpose(x, (0, 2, 3, 1))                  # NCHW -> NHWC (boundary)
    x_pc = jnp.pad(x_nhwc, ((0, 0), (0, 0), (0, 0), (0, Cp - C)))
    xp = jnp.pad(x_pc, ((0, 0), (1, 1), (1, 1), (0, 0)), mode="reflect")

    w1, b1 = _prep_conv_params(params["w1"], params["b1"], Cp, compute_dtype)
    w2, b2 = _prep_conv_params(params["w2"], params["b2"], Cp, compute_dtype)
    g1 = jnp.pad(params["g1"], (0, Cp - C))
    be1 = jnp.pad(params["be1"], (0, Cp - C))
    g2 = jnp.pad(params["g2"], (0, Cp - C))
    be2 = jnp.pad(params["be2"], (0, Cp - C))

    # conv1 (+ fused BN1 stats); output written reflection-padded for conv2.
    y1p, stats1 = _conv3x3(xp, w1, b1, out_padded=True, compute_dtype=compute_dtype)
    s1, t1 = _bn_scale_shift(stats1, g1, be1, H * W)

    # conv2 with BN1 affine + ReLU fused into its input path (+ fused BN2 stats).
    y2, stats2 = _conv3x3(y1p, w2, b2, scale=s1, shift=t1,
                          out_padded=False, compute_dtype=compute_dtype)
    s2, t2 = _bn_scale_shift(stats2, g2, be2, H * W)

    # BN2 affine + residual add, tiled over M rows.
    out2d = _bn_residual(y2.reshape(N * H * W, Cp), s2, t2,
                         x_pc.reshape(N * H * W, Cp))

    out = out2d.reshape(N, H, W, Cp)[..., :C]
    return jnp.transpose(out, (0, 3, 1, 2))                  # back to NCHW (boundary)
    # TODO(synk): BatchNorm running-mean/var buffer updates (training side effect)
    # are not modeled; they do not affect the forward output.


# ------------------------- pure-JAX reference check -------------------------


def _ref_forward(x_nchw, params):
    def conv(x, w, b):
        xp = jnp.pad(x, ((0, 0), (0, 0), (1, 1), (1, 1)), mode="reflect")
        y = jax.lax.conv_general_dilated(
            xp, w, (1, 1), "VALID",
            dimension_numbers=("NCHW", "OIHW", "NCHW"))
        return y + b[None, :, None, None]

    def bn(y, g, b):
        m = jnp.mean(y, axis=(0, 2, 3), keepdims=True)
        v = jnp.mean((y - m) ** 2, axis=(0, 2, 3), keepdims=True)
        return (y - m) / jnp.sqrt(v + EPS) * g[None, :, None, None] + b[None, :, None, None]

    h = jax.nn.relu(bn(conv(x_nchw, params["w1"], params["b1"]),
                       params["g1"], params["be1"]))
    h = bn(conv(h, params["w2"], params["b2"]), params["g2"], params["be2"])
    return x_nchw + h


# --------------------------------- main -------------------------------------


def _init_params(key, dim):
    ks = jax.random.split(key, 8)
    return {
        "w1": 0.1 * jax.random.normal(ks[0], (dim, dim, 3, 3), jnp.float32),
        "b1": 0.1 * jax.random.normal(ks[1], (dim,), jnp.float32),
        "g1": 1.0 + 0.1 * jax.random.normal(ks[2], (dim,), jnp.float32),
        "be1": 0.1 * jax.random.normal(ks[3], (dim,), jnp.float32),
        "w2": 0.1 * jax.random.normal(ks[4], (dim, dim, 3, 3), jnp.float32),
        "b2": 0.1 * jax.random.normal(ks[5], (dim,), jnp.float32),
        "g2": 1.0 + 0.1 * jax.random.normal(ks[6], (dim,), jnp.float32),
        "be2": 0.1 * jax.random.normal(ks[7], (dim,), jnp.float32),
    }


if __name__ == "__main__":
    key = jax.random.PRNGKey(0)
    k_x, k_p = jax.random.split(key)

    N, C, H, W = 2, 4, 16, 16
    x = jax.random.normal(k_x, (N, C, H, W), jnp.float32)     # NCHW, like PyTorch
    params = _init_params(k_p, C)

    ref = jax.block_until_ready(_ref_forward(x, params))

    # f32 path: exact-parity check.
    out = jax.block_until_ready(resnet_block(x, params))
    assert out.shape == (N, C, H, W)
    np.testing.assert_allclose(np.asarray(out), np.asarray(ref), rtol=1e-4, atol=1e-4)

    # bf16 MXU-input path (v6e/v7x optimization, f32 accumulation): loose sanity check.
    out_bf16 = jax.block_until_ready(
        resnet_block(x, params, compute_dtype=jnp.bfloat16))
    np.testing.assert_allclose(np.asarray(out_bf16), np.asarray(ref),
                               rtol=1e-1, atol=1e-1)

    print("KERNEL_OK")
</pallas_src>

<mosaic_0001>
module attributes {stable_mosaic.version = 11 : i64} {
  func.func @kernel(%arg0: i32, %arg1: memref<1x18x18x128xf32, #tpu.memory_space<vmem>>, %arg2: memref<9x128x128xf32, #tpu.memory_space<vmem>>, %arg3: memref<1x128xf32, #tpu.memory_space<vmem>>, %arg4: memref<1x18x18x128xf32, #tpu.memory_space<vmem>>, %arg5: memref<1x2x128xf32, #tpu.memory_space<vmem>>) attributes {dimension_semantics = [#tpu.dimension_semantics<parallel>], iteration_bounds = array<i64: 2>, scalar_prefetch = 0 : i64, scratch_operands = 0 : i64, tpu.core_type = #tpu.core_type<tc>, window_params = [{transform_indices = @transform_0, window_bounds = array<i64: 1, 18, 18, 128>}, {pipeline_mode = #tpu.pipeline_mode<synchronous>, transform_indices = @transform_1, window_bounds = array<i64: 9, 128, 128>}, {pipeline_mode = #tpu.pipeline_mode<synchronous>, transform_indices = @transform_2, window_bounds = array<i64: 1, 128>}, {transform_indices = @transform_3, window_bounds = array<i64: 1, 18, 18, 128>}, {transform_indices = @transform_4, window_bounds = array<i64: 1, 2, 128>}]} {
    %cst = arith.constant 0.000000e+00 : f32
    %0 = vector.broadcast %cst : f32 to vector<256x128xf32>
    %c0 = arith.constant 0 : index
    %c0_0 = arith.constant 0 : index
    %c0_1 = arith.constant 0 : index
    %c0_2 = arith.constant 0 : index
    %1 = vector.load %arg1[%c0, %c0_0, %c0_1, %c0_2] : memref<1x18x18x128xf32, #tpu.memory_space<vmem>>, vector<1x16x16x128xf32>
    %2 = vector.shape_cast %1 : vector<1x16x16x128xf32> to vector<16x16x128xf32>
    %3 = vector.shape_cast %2 : vector<16x16x128xf32> to vector<256x128xf32>
    %c0_3 = arith.constant 0 : index
    %c0_4 = arith.constant 0 : index
    %c0_5 = arith.constant 0 : index
    %4 = vector.load %arg2[%c0_3, %c0_4, %c0_5] : memref<9x128x128xf32, #tpu.memory_space<vmem>>, vector<1x128x128xf32>
    %5 = vector.shape_cast %4 : vector<1x128x128xf32> to vector<128x128xf32>
    %cst_6 = arith.constant dense<0.000000e+00> : vector<256x128xf32>
    %6 = tpu.matmul %3, %5, %cst_6 {dimension_numbers = #tpu.dot_dimension_numbers<[1], [0], [0], [1], [0, 0, 1, 1], [], []>} : vector<256x128xf32>, vector<128x128xf32>, vector<256x128xf32> -> vector<256x128xf32>
    %7 = arith.addf %0, %6 : vector<256x128xf32>
    %c0_7 = arith.constant 0 : index
    %c0_8 = arith.constant 0 : index
    %c1 = arith.constant 1 : index
    %c0_9 = arith.constant 0 : index
    %8 = vector.load %arg1[%c0_7, %c0_8, %c1, %c0_9] : memref<1x18x18x128xf32, #tpu.memory_space<vmem>>, vector<1x16x16x128xf32>
    %9 = vector.shape_cast %8 : vector<1x16x16x128xf32> to vector<16x16x128xf32>
    %10 = vector.shape_cast %9 : vector<16x16x128xf32> to vector<256x128xf32>
    %c1_10 = arith.constant 1 : index
    %c0_11 = arith.constant 0 : index
    %c0_12 = arith.constant 0 : index
    %11 = vector.load %arg2[%c1_10, %c0_11, %c0_12] : memref<9x128x128xf32, #tpu.memory_space<vmem>>, vector<1x128x128xf32>
    %12 = vector.shape_cast %11 : vector<1x128x128xf32> to vector<128x128xf32>
    %cst_13 = arith.constant dense<0.000000e+00> : vector<256x128xf32>
    %13 = tpu.matmul %10, %12, %cst_13 {dimension_numbers = #tpu.dot_dimension_numbers<[1], [0], [0], [1], [0, 0, 1, 1], [], []>} : vector<256x128xf32>, vector<128x128xf32>, vector<256x128xf32> -> vector<256x128xf32>
    %14 = arith.addf %7, %13 : vector<256x128xf32>
    %c0_14 = arith.constant 0 : index
    %c0_15 = arith.constant 0 : index
    %c2 = arith.constant 2 : index
    %c0_16 = arith.constant 0 : index
    %15 = vector.load %arg1[%c0_14, %c0_15, %c2, %c0_16] : memref<1x18x18x128xf32, #tpu.memory_space<vmem>>, vector<1x16x16x128xf32>
    %16 = vector.shape_cast %15 : vector<1x16x16x128xf32> to vector<16x16x128xf32>
    %17 = vector.shape_cast %16 : vector<16x16x128xf32> to vector<256x128xf32>
    %c2_17 = arith.constant 2 : index
    %c0_18 = arith.constant 0 : index
    %c0_19 = arith.constant 0 : index
    %18 = vector.load %arg2[%c2_17, %c0_18, %c0_19] : memref<9x128x128xf32, #tpu.memory_space<vmem>>, vector<1x128x128xf32>
    %19 = vector.shape_cast %18 : vector<1x128x128xf32> to vector<128x128xf32>
    %cst_20 = arith.constant dense<0.000000e+00> : vector<256x128xf32>
    %20 = tpu.matmul %17, %19, %cst_20 {dimension_numbers = #tpu.dot_dimension_numbers<[1], [0], [0], [1], [0, 0, 1, 1], [], []>} : vector<256x128xf32>, vector<128x128xf32>, vector<256x128xf32> -> vector<256x128xf32>
    %21 = arith.addf %14, %20 : vector<256x128xf32>
    %c0_21 = arith.constant 0 : index
    %c1_22 = arith.constant 1 : index
    %c0_23 = arith.constant 0 : index
    %c0_24 = arith.constant 0 : index
    %22 = vector.load %arg1[%c0_21, %c1_22, %c0_23, %c0_24] : memref<1x18x18x128xf32, #tpu.memory_space<vmem>>, vector<1x16x16x128xf32>
    %23 = vector.shape_cast %22 : vector<1x16x16x128xf32> to vector<16x16x128xf32>
    %24 = vector.shape_cast %23 : vector<16x16x128xf32> to vector<256x128xf32>
    %c3 = arith.constant 3 : index
    %c0_25 = arith.constant 0 : index
    %c0_26 = arith.constant 0 : index
    %25 = vector.load %arg2[%c3, %c0_25, %c0_26] : memref<9x128x128xf32, #tpu.memory_space<vmem>>, vector<1x128x128xf32>
    %26 = vector.shape_cast %25 : vector<1x128x128xf32> to vector<128x128xf32>
    %cst_27 = arith.constant dense<0.000000e+00> : vector<256x128xf32>
    %27 = tpu.matmul %24, %26, %cst_27 {dimension_numbers = #tpu.dot_dimension_numbers<[1], [0], [0], [1], [0, 0, 1, 1], [], []>} : vector<256x128xf32>, vector<128x128xf32>, vector<256x128xf32> -> vector<256x128xf32>
    %28 = arith.addf %21, %27 : vector<256x128xf32>
    %c0_28 = arith.constant 0 : index
    %c1_29 = arith.constant 1 : index
    %c1_30 = arith.constant 1 : index
    %c0_31 = arith.constant 0 : index
    %29 = vector.load %arg1[%c0_28, %c1_29, %c1_30, %c0_31] : memref<1x18x18x128xf32, #tpu.memory_space<vmem>>, vector<1x16x16x128xf32>
    %30 = vector.shape_cast %29 : vector<1x16x16x128xf32> to vector<16x16x128xf32>
    %31 = vector.shape_cast %30 : vector<16x16x128xf32> to vector<256x128xf32>
    %c4 = arith.constant 4 : index
    %c0_32 = arith.constant 0 : index
    %c0_33 = arith.constant 0 : index
    %32 = vector.load %arg2[%c4, %c0_32, %c0_33] : memref<9x128x128xf32, #tpu.memory_space<vmem>>, vector<1x128x128xf32>
    %33 = vector.shape_cast %32 : vector<1x128x128xf32> to vector<128x128xf32>
    %cst_34 = arith.constant dense<0.000000e+00> : vector<256x128xf32>
    %34 = tpu.matmul %31, %33, %cst_34 {dimension_numbers = #tpu.dot_dimension_numbers<[1], [0], [0], [1], [0, 0, 1, 1], [], []>} : vector<256x128xf32>, vector<128x128xf32>, vector<256x128xf32> -> vector<256x128xf32>
    %35 = arith.addf %28, %34 : vector<256x128xf32>
    %c0_35 = arith.constant 0 : index
    %c1_36 = arith.constant 1 : index
    %c2_37 = arith.constant 2 : index
    %c0_38 = arith.constant 0 : index
    %36 = vector.load %arg1[%c0_35, %c1_36, %c2_37, %c0_38] : memref<1x18x18x128xf32, #tpu.memory_space<vmem>>, vector<1x16x16x128xf32>
    %37 = vector.shape_cast %36 : vector<1x16x16x128xf32> to vector<16x16x128xf32>
    %38 = vector.shape_cast %37 : vector<16x16x128xf32> to vector<256x128xf32>
    %c5 = arith.constant 5 : index
    %c0_39 = arith.constant 0 : index
    %c0_40 = arith.constant 0 : index
    %39 = vector.load %arg2[%c5, %c0_39, %c0_40] : memref<9x128x128xf32, #tpu.memory_space<vmem>>, vector<1x128x128xf32>
    %40 = vector.shape_cast %39 : vector<1x128x128xf32> to vector<128x128xf32>
    %cst_41 = arith.constant dense<0.000000e+00> : vector<256x128xf32>
    %41 = tpu.matmul %38, %40, %cst_41 {dimension_numbers = #tpu.dot_dimension_numbers<[1], [0], [0], [1], [0, 0, 1, 1], [], []>} : vector<256x128xf32>, vector<128x128xf32>, vector<256x128xf32> -> vector<256x128xf32>
    %42 = arith.addf %35, %41 : vector<256x128xf32>
    %c0_42 = arith.constant 0 : index
    %c2_43 = arith.constant 2 : index
    %c0_44 = arith.constant 0 : index
    %c0_45 = arith.constant 0 : index
    %43 = vector.load %arg1[%c0_42, %c2_43, %c0_44, %c0_45] : memref<1x18x18x128xf32, #tpu.memory_space<vmem>>, vector<1x16x16x128xf32>
    %44 = vector.shape_cast %43 : vector<1x16x16x128xf32> to vector<16x16x128xf32>
    %45 = vector.shape_cast %44 : vector<16x16x128xf32> to vector<256x128xf32>
    %c6 = arith.constant 6 : index
    %c0_46 = arith.constant 0 : index
    %c0_47 = arith.constant 0 : index
    %46 = vector.load %arg2[%c6, %c0_46, %c0_47] : memref<9x128x128xf32, #tpu.memory_space<vmem>>, vector<1x128x128xf32>
    %47 = vector.shape_cast %46 : vector<1x128x128xf32> to vector<128x128xf32>
    %cst_48 = arith.constant dense<0.000000e+00> : vector<256x128xf32>
    %48 = tpu.matmul %45, %47, %cst_48 {dimension_numbers = #tpu.dot_dimension_numbers<[1], [0], [0], [1], [0, 0, 1, 1], [], []>} : vector<256x128xf32>, vector<128x128xf32>, vector<256x128xf32> -> vector<256x128xf32>
    %49 = arith.addf %42, %48 : vector<256x128xf32>
    %c0_49 = arith.constant 0 : index
    %c2_50 = arith.constant 2 : index
    %c1_51 = arith.constant 1 : index
    %c0_52 = arith.constant 0 : index
    %50 = vector.load %arg1[%c0_49, %c2_50, %c1_51, %c0_52] : memref<1x18x18x128xf32, #tpu.memory_space<vmem>>, vector<1x16x16x128xf32>
    %51 = vector.shape_cast %50 : vector<1x16x16x128xf32> to vector<16x16x128xf32>
    %52 = vector.shape_cast %51 : vector<16x16x128xf32> to vector<256x128xf32>
    %c7 = arith.constant 7 : index
    %c0_53 = arith.constant 0 : index
    %c0_54 = arith.constant 0 : index
    %53 = vector.load %arg2[%c7, %c0_53, %c0_54] : memref<9x128x128xf32, #tpu.memory_space<vmem>>, vector<1x128x128xf32>
    %54 = vector.shape_cast %53 : vector<1x128x128xf32> to vector<128x128xf32>
    %cst_55 = arith.constant dense<0.000000e+00> : vector<256x128xf32>
    %55 = tpu.matmul %52, %54, %cst_55 {dimension_numbers = #tpu.dot_dimension_numbers<[1], [0], [0], [1], [0, 0, 1, 1], [], []>} : vector<256x128xf32>, vector<128x128xf32>, vector<256x128xf32> -> vector<256x128xf32>
    %56 = arith.addf %49, %55 : vector<256x128xf32>
    %c0_56 = arith.constant 0 : index
    %c2_57 = arith.constant 2 : index
    %c2_58 = arith.constant 2 : index
    %c0_59 = arith.constant 0 : index
    %57 = vector.load %arg1[%c0_56, %c2_57, %c2_58, %c0_59] : memref<1x18x18x128xf32, #tpu.memory_space<vmem>>, vector<1x16x16x128xf32>
    %58 = vector.shape_cast %57 : vector<1x16x16x128xf32> to vector<16x16x128xf32>
    %59 = vector.shape_cast %58 : vector<16x16x128xf32> to vector<256x128xf32>
    %c8 = arith.constant 8 : index
    %c0_60 = arith.constant 0 : index
    %c0_61 = arith.constant 0 : index
    %60 = vector.load %arg2[%c8, %c0_60, %c0_61] : memref<9x128x128xf32, #tpu.memory_space<vmem>>, vector<1x128x128xf32>
    %61 = vector.shape_cast %60 : vector<1x128x128xf32> to vector<128x128xf32>
    %cst_62 = arith.constant dense<0.000000e+00> : vector<256x128xf32>
    %62 = tpu.matmul %59, %61, %cst_62 {dimension_numbers = #tpu.dot_dimension_numbers<[1], [0], [0], [1], [0, 0, 1, 1], [], []>} : vector<256x128xf32>, vector<128x128xf32>, vector<256x128xf32> -> vector<256x128xf32>
    %63 = arith.addf %56, %62 : vector<256x128xf32>
    %c0_63 = arith.constant 0 : index
    %c0_64 = arith.constant 0 : index
    %64 = vector.load %arg3[%c0_63, %c0_64] : memref<1x128xf32, #tpu.memory_space<vmem>>, vector<1x128xf32>
    %65 = vector.broadcast %64 : vector<1x128xf32> to vector<256x128xf32>
    %66 = arith.addf %63, %65 : vector<256x128xf32>
    %cst_65 = arith.constant dense<0.000000e+00> : vector<128xf32>
    %67 = vector.multi_reduction <add>, %66, %cst_65 [0] : vector<256x128xf32> to vector<128xf32>
    %68 = vector.shape_cast %67 : vector<128xf32> to vector<1x128xf32>
    %cst_66 = arith.constant 3.906250e-03 : f32
    %69 = vector.broadcast %cst_66 : f32 to vector<1x128xf32>
    %70 = arith.mulf %68, %69 : vector<1x128xf32>
    %71 = vector.broadcast %70 : vector<1x128xf32> to vector<256x128xf32>
    %72 = arith.subf %66, %71 : vector<256x128xf32>
    %73 = arith.mulf %72, %72 : vector<256x128xf32>
    %cst_67 = arith.constant dense<0.000000e+00> : vector<128xf32>
    %74 = vector.multi_reduction <add>, %73, %cst_67 [0] : vector<256x128xf32> to vector<128xf32>
    %75 = vector.shape_cast %74 : vector<128xf32> to vector<1x128xf32>
    %c0_68 = arith.constant 0 : index
    %c0_69 = arith.constant 0 : index
    %c0_70 = arith.constant 0 : index
    %76 = vector.load %arg5[%c0_68, %c0_69, %c0_70] : memref<1x2x128xf32, #tpu.memory_space<vmem>>, vector<1x1x128xf32>
    %77 = vector.shape_cast %76 : vector<1x1x128xf32> to vector<1x128xf32>
    %78 = vector.shape_cast %68 : vector<1x128xf32> to vector<1x1x128xf32>
    tpu.vector_store %arg5[%c0_68, %c0_69, %c0_70], %78 {strides = array<i32>} : memref<1x2x128xf32, #tpu.memory_space<vmem>>, vector<1x1x128xf32>,
    %c0_71 = arith.constant 0 : index
    %c1_72 = arith.constant 1 : index
    %c0_73 = arith.constant 0 : index
    %79 = vector.load %arg5[%c0_71, %c1_72, %c0_73] : memref<1x2x128xf32, #tpu.memory_space<vmem>>, vector<1x1x128xf32>
    %80 = vector.shape_cast %79 : vector<1x1x128xf32> to vector<1x128xf32>
    %81 = vector.shape_cast %75 : vector<1x128xf32> to vector<1x1x128xf32>
    tpu.vector_store %arg5[%c0_71, %c1_72, %c0_73], %81 {strides = array<i32>} : memref<1x2x128xf32, #tpu.memory_space<vmem>>, vector<1x1x128xf32>,
    %82 = vector.shape_cast %66 : vector<256x128xf32> to vector<16x16x128xf32>
    %c0_74 = arith.constant 0 : index
    %c1_75 = arith.constant 1 : index
    %c1_76 = arith.constant 1 : index
    %c0_77 = arith.constant 0 : index
    %83 = vector.load %arg4[%c0_74, %c1_75, %c1_76, %c0_77] : memref<1x18x18x128xf32, #tpu.memory_space<vmem>>, vector<1x16x16x128xf32>
    %84 = vector.shape_cast %83 : vector<1x16x16x128xf32> to vector<16x16x128xf32>
    %85 = vector.shape_cast %82 : vector<16x16x128xf32> to vector<1x16x16x128xf32>
    tpu.vector_store %arg4[%c0_74, %c1_75, %c1_76, %c0_77], %85 {strides = array<i32>} : memref<1x18x18x128xf32, #tpu.memory_space<vmem>>, vector<1x16x16x128xf32>,
    %86 = vector.extract_strided_slice %82 {offsets = [1, 0, 0], sizes = [1, 16, 128], strides = [1, 1, 1]} : vector<16x16x128xf32> to vector<1x16x128xf32>
    %c0_78 = arith.constant 0 : index
    %c0_79 = arith.constant 0 : index
    %c1_80 = arith.constant 1 : index
    %c0_81 = arith.constant 0 : index
    %87 = vector.load %arg4[%c0_78, %c0_79, %c1_80, %c0_81] : memref<1x18x18x128xf32, #tpu.memory_space<vmem>>, vector<1x1x16x128xf32>
    %88 = vector.shape_cast %87 : vector<1x1x16x128xf32> to vector<1x16x128xf32>
    %89 = vector.shape_cast %86 : vector<1x16x128xf32> to vector<1x1x16x128xf32>
    tpu.vector_store %arg4[%c0_78, %c0_79, %c1_80, %c0_81], %89 {strides = array<i32>} : memref<1x18x18x128xf32, #tpu.memory_space<vmem>>, vector<1x1x16x128xf32>,
    %90 = vector.extract_strided_slice %82 {offsets = [14, 0, 0], sizes = [1, 16, 128], strides = [1, 1, 1]} : vector<16x16x128xf32> to vector<1x16x128xf32>
    %c0_82 = arith.constant 0 : index
    %c17 = arith.constant 17 : index
    %c1_83 = arith.constant 1 : index
    %c0_84 = arith.constant 0 : index
    %91 = vector.load %arg4[%c0_82, %c17, %c1_83, %c0_84] : memref<1x18x18x128xf32, #tpu.memory_space<vmem>>, vector<1x1x16x128xf32>
    %92 = vector.shape_cast %91 : vector<1x1x16x128xf32> to vector<1x16x128xf32>
    %93 = vector.shape_cast %90 : vector<1x16x128xf32> to vector<1x1x16x128xf32>
    tpu.vector_store %arg4[%c0_82, %c17, %c1_83, %c0_84], %93 {strides = array<i32>} : memref<1x18x18x128xf32, #tpu.memory_space<vmem>>, vector<1x1x16x128xf32>,
    %94 = vector.extract_strided_slice %82 {offsets = [0, 1, 0], sizes = [16, 1, 128], strides = [1, 1, 1]} : vector<16x16x128xf32> to vector<16x1x128xf32>
    %c0_85 = arith.constant 0 : index
    %c1_86 = arith.constant 1 : index
    %c0_87 = arith.constant 0 : index
    %c0_88 = arith.constant 0 : index
    %95 = vector.load %arg4[%c0_85, %c1_86, %c0_87, %c0_88] : memref<1x18x18x128xf32, #tpu.memory_space<vmem>>, vector<1x16x1x128xf32>
    %96 = vector.shape_cast %95 : vector<1x16x1x128xf32> to vector<16x1x128xf32>
    %97 = vector.shape_cast %94 : vector<16x1x128xf32> to vector<1x16x1x128xf32>
    tpu.vector_store %arg4[%c0_85, %c1_86, %c0_87, %c0_88], %97 {strides = array<i32>} : memref<1x18x18x128xf32, #tpu.memory_space<vmem>>, vector<1x16x1x128xf32>,
    %98 = vector.extract_strided_slice %82 {offsets = [0, 14, 0], sizes = [16, 1, 128], strides = [1, 1, 1]} : vector<16x16x128xf32> to vector<16x1x128xf32>
    %c0_89 = arith.constant 0 : index
    %c1_90 = arith.constant 1 : index
    %c17_91 = arith.constant 17 : index
    %c0_92 = arith.constant 0 : index
    %99 = vector.load %arg4[%c0_89, %c1_90, %c17_91, %c0_92] : memref<1x18x18x128xf32, #tpu.memory_space<vmem>>, vector<1x16x1x128xf32>
    %100 = vector.shape_cast %99 : vector<1x16x1x128xf32> to vector<16x1x128xf32>
    %101 = vector.shape_cast %98 : vector<16x1x128xf32> to vector<1x16x1x128xf32>
    tpu.vector_store %arg4[%c0_89, %c1_90, %c17_91, %c0_92], %101 {strides = array<i32>} : memref<1x18x18x128xf32, #tpu.memory_space<vmem>>, vector<1x16x1x128xf32>,
    %102 = vector.extract_strided_slice %82 {offsets = [1, 1, 0], sizes = [1, 1, 128], strides = [1, 1, 1]} : vector<16x16x128xf32> to vector<1x1x128xf32>
    %c0_93 = arith.constant 0 : index
    %c0_94 = arith.constant 0 : index
    %c0_95 = arith.constant 0 : index
    %c0_96 = arith.constant 0 : index
    %103 = vector.load %arg4[%c0_93, %c0_94, %c0_95, %c0_96] : memref<1x18x18x128xf32, #tpu.memory_space<vmem>>, vector<1x1x1x128xf32>
    %104 = vector.shape_cast %103 : vector<1x1x1x128xf32> to vector<1x1x128xf32>
    %105 = vector.shape_cast %102 : vector<1x1x128xf32> to vector<1x1x1x128xf32>
    tpu.vector_store %arg4[%c0_93, %c0_94, %c0_95, %c0_96], %105 {strides = array<i32>} : memref<1x18x18x128xf32, #tpu.memory_space<vmem>>, vector<1x1x1x128xf32>,
    %106 = vector.extract_strided_slice %82 {offsets = [1, 14, 0], sizes = [1, 1, 128], strides = [1, 1, 1]} : vector<16x16x128xf32> to vector<1x1x128xf32>
    %c0_97 = arith.constant 0 : index
    %c0_98 = arith.constant 0 : index
    %c17_99 = arith.constant 17 : index
    %c0_100 = arith.constant 0 : index
    %107 = vector.load %arg4[%c0_97, %c0_98, %c17_99, %c0_100] : memref<1x18x18x128xf32, #tpu.memory_space<vmem>>, vector<1x1x1x128xf32>
    %108 = vector.shape_cast %107 : vector<1x1x1x128xf32> to vector<1x1x128xf32>
    %109 = vector.shape_cast %106 : vector<1x1x128xf32> to vector<1x1x1x128xf32>
    tpu.vector_store %arg4[%c0_97, %c0_98, %c17_99, %c0_100], %109 {strides = array<i32>} : memref<1x18x18x128xf32, #tpu.memory_space<vmem>>, vector<1x1x1x128xf32>,
    %110 = vector.extract_strided_slice %82 {offsets = [14, 1, 0], sizes = [1, 1, 128], strides = [1, 1, 1]} : vector<16x16x128xf32> to vector<1x1x128xf32>
    %c0_101 = arith.constant 0 : index
    %c17_102 = arith.constant 17 : index
    %c0_103 = arith.constant 0 : index
    %c0_104 = arith.constant 0 : index
    %111 = vector.load %arg4[%c0_101, %c17_102, %c0_103, %c0_104] : memref<1x18x18x128xf32, #tpu.memory_space<vmem>>, vector<1x1x1x128xf32>
    %112 = vector.shape_cast %111 : vector<1x1x1x128xf32> to vector<1x1x128xf32>
    %113 = vector.shape_cast %110 : vector<1x1x128xf32> to vector<1x1x1x128xf32>
    tpu.vector_store %arg4[%c0_101, %c17_102, %c0_103, %c0_104], %113 {strides = array<i32>} : memref<1x18x18x128xf32, #tpu.memory_space<vmem>>, vector<1x1x1x128xf32>,
    %114 = vector.extract_strided_slice %82 {offsets = [14, 14, 0], sizes = [1, 1, 128], strides = [1, 1, 1]} : vector<16x16x128xf32> to vector<1x1x128xf32>
    %c0_105 = arith.constant 0 : index
    %c17_106 = arith.constant 17 : index
    %c17_107 = arith.constant 17 : index
    %c0_108 = arith.constant 0 : index
    %115 = vector.load %arg4[%c0_105, %c17_106, %c17_107, %c0_108] : memref<1x18x18x128xf32, #tpu.memory_space<vmem>>, vector<1x1x1x128xf32>
    %116 = vector.shape_cast %115 : vector<1x1x1x128xf32> to vector<1x1x128xf32>
    %117 = vector.shape_cast %114 : vector<1x1x128xf32> to vector<1x1x1x128xf32>
    tpu.vector_store %arg4[%c0_105, %c17_106, %c17_107, %c0_108], %117 {strides = array<i32>} : memref<1x18x18x128xf32, #tpu.memory_space<vmem>>, vector<1x1x1x128xf32>,
    return
  }
  func.func @transform_0(%arg0: i32) -> (i32, i32, i32, i32) {
    %c0_i32 = arith.constant 0 : i32
    %c0_i32_0 = arith.constant 0 : i32
    %c0_i32_1 = arith.constant 0 : i32
    %c0_i32_2 = arith.constant 0 : i32
    return %arg0, %c0_i32, %c0_i32_0, %c0_i32_1 : i32, i32, i32, i32
  }
  func.func @transform_1(%arg0: i32) -> (i32, i32, i32) {
    %c0_i32 = arith.constant 0 : i32
    %c0_i32_0 = arith.constant 0 : i32
    %c0_i32_1 = arith.constant 0 : i32
    %c0_i32_2 = arith.constant 0 : i32
    return %c0_i32, %c0_i32_0, %c0_i32_1 : i32, i32, i32
  }
  func.func @transform_2(%arg0: i32) -> (i32, i32) {
    %c0_i32 = arith.constant 0 : i32
    %c0_i32_0 = arith.constant 0 : i32
    %c0_i32_1 = arith.constant 0 : i32
    return %c0_i32, %c0_i32_0 : i32, i32
  }
  func.func @transform_3(%arg0: i32) -> (i32, i32, i32, i32) {
    %c0_i32 = arith.constant 0 : i32
    %c0_i32_0 = arith.constant 0 : i32
    %c0_i32_1 = arith.constant 0 : i32
    %c0_i32_2 = arith.constant 0 : i32
    return %arg0, %c0_i32, %c0_i32_0, %c0_i32_1 : i32, i32, i32, i32
  }
  func.func @transform_4(%arg0: i32) -> (i32, i32, i32) {
    %c0_i32 = arith.constant 0 : i32
    %c0_i32_0 = arith.constant 0 : i32
    %c0_i32_1 = arith.constant 0 : i32
    return %arg0, %c0_i32, %c0_i32_0 : i32, i32, i32
  }
}

module attributes {stable_mosaic.version = 11 : i64} {
  func.func @_bn_residual_kernel(%arg0: i32, %arg1: memref<256x128xf32, #tpu.memory_space<vmem>>, %arg2: memref<1x128xf32, #tpu.memory_space<vmem>>, %arg3: memref<1x128xf32, #tpu.memory_space<vmem>>, %arg4: memref<256x128xf32, #tpu.memory_space<vmem>>, %arg5: memref<256x128xf32, #tpu.memory_space<vmem>>) attributes {dimension_semantics = [#tpu.dimension_semantics<parallel>], iteration_bounds = array<i64: 2>, scalar_prefetch = 0 : i64, scratch_operands = 0 : i64, tpu.core_type = #tpu.core_type<tc>, window_params = [{transform_indices = @transform_0, window_bounds = array<i64: 256, 128>}, {pipeline_mode = #tpu.pipeline_mode<synchronous>, transform_indices = @transform_1, window_bounds = array<i64: 1, 128>}, {pipeline_mode = #tpu.pipeline_mode<synchronous>, transform_indices = @transform_2, window_bounds = array<i64: 1, 128>}, {transform_indices = @transform_3, window_bounds = array<i64: 256, 128>}, {transform_indices = @transform_4, window_bounds = array<i64: 256, 128>}]} {
    %c0 = arith.constant 0 : index
    %c0_0 = arith.constant 0 : index
    %0 = vector.load %arg4[%c0, %c0_0] : memref<256x128xf32, #tpu.memory_space<vmem>>, vector<256x128xf32>
    %c0_1 = arith.constant 0 : index
    %c0_2 = arith.constant 0 : index
    %1 = vector.load %arg1[%c0_1, %c0_2] : memref<256x128xf32, #tpu.memory_space<vmem>>, vector<256x128xf32>
    %c0_3 = arith.constant 0 : index
    %c0_4 = arith.constant 0 : index
    %2 = vector.load %arg2[%c0_3, %c0_4] : memref<1x128xf32, #tpu.memory_space<vmem>>, vector<1x128xf32>
    %3 = vector.broadcast %2 : vector<1x128xf32> to vector<256x128xf32>
    %4 = arith.mulf %1, %3 : vector<256x128xf32>
    %5 = arith.addf %0, %4 : vector<256x128xf32>
    %c0_5 = arith.constant 0 : index
    %c0_6 = arith.constant 0 : index
    %6 = vector.load %arg3[%c0_5, %c0_6] : memref<1x128xf32, #tpu.memory_space<vmem>>, vector<1x128xf32>
    %7 = vector.broadcast %6 : vector<1x128xf32> to vector<256x128xf32>
    %8 = arith.addf %5, %7 : vector<256x128xf32>
    %c0_7 = arith.constant 0 : index
    %c0_8 = arith.constant 0 : index
    %9 = vector.load %arg5[%c0_7, %c0_8] : memref<256x128xf32, #tpu.memory_space<vmem>>, vector<256x128xf32>
    tpu.vector_store %arg5[%c0_7, %c0_8], %8 {strides = array<i32>} : memref<256x128xf32, #tpu.memory_space<vmem>>, vector<256x128xf32>,
    return
  }
  func.func @transform_0(%arg0: i32) -> (i32, i32) {
    %c0_i32 = arith.constant 0 : i32
    %c0_i32_0 = arith.constant 0 : i32
    return %arg0, %c0_i32 : i32, i32
  }
  func.func @transform_1(%arg0: i32) -> (i32, i32) {
    %c0_i32 = arith.constant 0 : i32
    %c0_i32_0 = arith.constant 0 : i32
    %c0_i32_1 = arith.constant 0 : i32
    return %c0_i32, %c0_i32_0 : i32, i32
  }
  func.func @transform_2(%arg0: i32) -> (i32, i32) {
    %c0_i32 = arith.constant 0 : i32
    %c0_i32_0 = arith.constant 0 : i32
    %c0_i32_1 = arith.constant 0 : i32
    return %c0_i32, %c0_i32_0 : i32, i32
  }
  func.func @transform_3(%arg0: i32) -> (i32, i32) {
    %c0_i32 = arith.constant 0 : i32
    %c0_i32_0 = arith.constant 0 : i32
    return %arg0, %c0_i32 : i32, i32
  }
  func.func @transform_4(%arg0: i32) -> (i32, i32) {
    %c0_i32 = arith.constant 0 : i32
    %c0_i32_0 = arith.constant 0 : i32
    return %arg0, %c0_i32 : i32, i32
  }
}

module attributes {stable_mosaic.version = 11 : i64} {
  func.func @kernel(%arg0: i32, %arg1: memref<1x18x18x128xf32, #tpu.memory_space<vmem>>, %arg2: memref<1x128xf32, #tpu.memory_space<vmem>>, %arg3: memref<1x128xf32, #tpu.memory_space<vmem>>, %arg4: memref<9x128x128xf32, #tpu.memory_space<vmem>>, %arg5: memref<1x128xf32, #tpu.memory_space<vmem>>, %arg6: memref<1x16x16x128xf32, #tpu.memory_space<vmem>>, %arg7: memref<1x2x128xf32, #tpu.memory_space<vmem>>) attributes {dimension_semantics = [#tpu.dimension_semantics<parallel>], iteration_bounds = array<i64: 2>, scalar_prefetch = 0 : i64, scratch_operands = 0 : i64, tpu.core_type = #tpu.core_type<tc>, window_params = [{transform_indices = @transform_0, window_bounds = array<i64: 1, 18, 18, 128>}, {pipeline_mode = #tpu.pipeline_mode<synchronous>, transform_indices = @transform_1, window_bounds = array<i64: 1, 128>}, {pipeline_mode = #tpu.pipeline_mode<synchronous>, transform_indices = @transform_2, window_bounds = array<i64: 1, 128>}, {pipeline_mode = #tpu.pipeline_mode<synchronous>, transform_indices = @transform_3, window_bounds = array<i64: 9, 128, 128>}, {pipeline_mode = #tpu.pipeline_mode<synchronous>, transform_indices = @transform_4, window_bounds = array<i64: 1, 128>}, {transform_indices = @transform_5, window_bounds = array<i64: 1, 16, 16, 128>}, {transform_indices = @transform_6, window_bounds = array<i64: 1, 2, 128>}]} {
    %cst = arith.constant 0.000000e+00 : f32
    %0 = vector.broadcast %cst : f32 to vector<256x128xf32>
    %c0 = arith.constant 0 : index
    %c0_0 = arith.constant 0 : index
    %c0_1 = arith.constant 0 : index
    %c0_2 = arith.constant 0 : index
    %1 = vector.load %arg1[%c0, %c0_0, %c0_1, %c0_2] : memref<1x18x18x128xf32, #tpu.memory_space<vmem>>, vector<1x16x16x128xf32>
    %2 = vector.shape_cast %1 : vector<1x16x16x128xf32> to vector<16x16x128xf32>
    %c0_3 = arith.constant 0 : index
    %c0_4 = arith.constant 0 : index
    %3 = vector.load %arg2[%c0_3, %c0_4] : memref<1x128xf32, #tpu.memory_space<vmem>>, vector<1x128xf32>
    %4 = vector.shape_cast %3 : vector<1x128xf32> to vector<1x1x128xf32>
    %5 = vector.broadcast %4 : vector<1x1x128xf32> to vector<16x16x128xf32>
    %6 = arith.mulf %2, %5 : vector<16x16x128xf32>
    %c0_5 = arith.constant 0 : index
    %c0_6 = arith.constant 0 : index
    %7 = vector.load %arg3[%c0_5, %c0_6] : memref<1x128xf32, #tpu.memory_space<vmem>>, vector<1x128xf32>
    %8 = vector.shape_cast %7 : vector<1x128xf32> to vector<1x1x128xf32>
    %9 = vector.broadcast %8 : vector<1x1x128xf32> to vector<16x16x128xf32>
    %10 = arith.addf %6, %9 : vector<16x16x128xf32>
    %cst_7 = arith.constant 0.000000e+00 : f32
    %11 = vector.broadcast %cst_7 : f32 to vector<16x16x128xf32>
    %12 = arith.maximumf %10, %11 : vector<16x16x128xf32>
    %13 = vector.shape_cast %12 : vector<16x16x128xf32> to vector<256x128xf32>
    %c0_8 = arith.constant 0 : index
    %c0_9 = arith.constant 0 : index
    %c0_10 = arith.constant 0 : index
    %14 = vector.load %arg4[%c0_8, %c0_9, %c0_10] : memref<9x128x128xf32, #tpu.memory_space<vmem>>, vector<1x128x128xf32>
    %15 = vector.shape_cast %14 : vector<1x128x128xf32> to vector<128x128xf32>
    %cst_11 = arith.constant dense<0.000000e+00> : vector<256x128xf32>
    %16 = tpu.matmul %13, %15, %cst_11 {dimension_numbers = #tpu.dot_dimension_numbers<[1], [0], [0], [1], [0, 0, 1, 1], [], []>} : vector<256x128xf32>, vector<128x128xf32>, vector<256x128xf32> -> vector<256x128xf32>
    %17 = arith.addf %0, %16 : vector<256x128xf32>
    %c0_12 = arith.constant 0 : index
    %c0_13 = arith.constant 0 : index
    %c1 = arith.constant 1 : index
    %c0_14 = arith.constant 0 : index
    %18 = vector.load %arg1[%c0_12, %c0_13, %c1, %c0_14] : memref<1x18x18x128xf32, #tpu.memory_space<vmem>>, vector<1x16x16x128xf32>
    %19 = vector.shape_cast %18 : vector<1x16x16x128xf32> to vector<16x16x128xf32>
    %c0_15 = arith.constant 0 : index
    %c0_16 = arith.constant 0 : index
    %20 = vector.load %arg2[%c0_15, %c0_16] : memref<1x128xf32, #tpu.memory_space<vmem>>, vector<1x128xf32>
    %21 = vector.shape_cast %20 : vector<1x128xf32> to vector<1x1x128xf32>
    %22 = vector.broadcast %21 : vector<1x1x128xf32> to vector<16x16x128xf32>
    %23 = arith.mulf %19, %22 : vector<16x16x128xf32>
    %c0_17 = arith.constant 0 : index
    %c0_18 = arith.constant 0 : index
    %24 = vector.load %arg3[%c0_17, %c0_18] : memref<1x128xf32, #tpu.memory_space<vmem>>, vector<1x128xf32>
    %25 = vector.shape_cast %24 : vector<1x128xf32> to vector<1x1x128xf32>
    %26 = vector.broadcast %25 : vector<1x1x128xf32> to vector<16x16x128xf32>
    %27 = arith.addf %23, %26 : vector<16x16x128xf32>
    %cst_19 = arith.constant 0.000000e+00 : f32
    %28 = vector.broadcast %cst_19 : f32 to vector<16x16x128xf32>
    %29 = arith.maximumf %27, %28 : vector<16x16x128xf32>
    %30 = vector.shape_cast %29 : vector<16x16x128xf32> to vector<256x128xf32>
    %c1_20 = arith.constant 1 : index
    %c0_21 = arith.constant 0 : index
    %c0_22 = arith.constant 0 : index
    %31 = vector.load %arg4[%c1_20, %c0_21, %c0_22] : memref<9x128x128xf32, #tpu.memory_space<vmem>>, vector<1x128x128xf32>
    %32 = vector.shape_cast %31 : vector<1x128x128xf32> to vector<128x128xf32>
    %cst_23 = arith.constant dense<0.000000e+00> : vector<256x128xf32>
    %33 = tpu.matmul %30, %32, %cst_23 {dimension_numbers = #tpu.dot_dimension_numbers<[1], [0], [0], [1], [0, 0, 1, 1], [], []>} : vector<256x128xf32>, vector<128x128xf32>, vector<256x128xf32> -> vector<256x128xf32>
    %34 = arith.addf %17, %33 : vector<256x128xf32>
    %c0_24 = arith.constant 0 : index
    %c0_25 = arith.constant 0 : index
    %c2 = arith.constant 2 : index
    %c0_26 = arith.constant 0 : index
    %35 = vector.load %arg1[%c0_24, %c0_25, %c2, %c0_26] : memref<1x18x18x128xf32, #tpu.memory_space<vmem>>, vector<1x16x16x128xf32>
    %36 = vector.shape_cast %35 : vector<1x16x16x128xf32> to vector<16x16x128xf32>
    %c0_27 = arith.constant 0 : index
    %c0_28 = arith.constant 0 : index
    %37 = vector.load %arg2[%c0_27, %c0_28] : memref<1x128xf32, #tpu.memory_space<vmem>>, vector<1x128xf32>
    %38 = vector.shape_cast %37 : vector<1x128xf32> to vector<1x1x128xf32>
    %39 = vector.broadcast %38 : vector<1x1x128xf32> to vector<16x16x128xf32>
    %40 = arith.mulf %36, %39 : vector<16x16x128xf32>
    %c0_29 = arith.constant 0 : index
    %c0_30 = arith.constant 0 : index
    %41 = vector.load %arg3[%c0_29, %c0_30] : memref<1x128xf32, #tpu.memory_space<vmem>>, vector<1x128xf32>
    %42 = vector.shape_cast %41 : vector<1x128xf32> to vector<1x1x128xf32>
    %43 = vector.broadcast %42 : vector<1x1x128xf32> to vector<16x16x128xf32>
    %44 = arith.addf %40, %43 : vector<16x16x128xf32>
    %cst_31 = arith.constant 0.000000e+00 : f32
    %45 = vector.broadcast %cst_31 : f32 to vector<16x16x128xf32>
    %46 = arith.maximumf %44, %45 : vector<16x16x128xf32>
    %47 = vector.shape_cast %46 : vector<16x16x128xf32> to vector<256x128xf32>
    %c2_32 = arith.constant 2 : index
    %c0_33 = arith.constant 0 : index
    %c0_34 = arith.constant 0 : index
    %48 = vector.load %arg4[%c2_32, %c0_33, %c0_34] : memref<9x128x128xf32, #tpu.memory_space<vmem>>, vector<1x128x128xf32>
    %49 = vector.shape_cast %48 : vector<1x128x128xf32> to vector<128x128xf32>
    %cst_35 = arith.constant dense<0.000000e+00> : vector<256x128xf32>
    %50 = tpu.matmul %47, %49, %cst_35 {dimension_numbers = #tpu.dot_dimension_numbers<[1], [0], [0], [1], [0, 0, 1, 1], [], []>} : vector<256x128xf32>, vector<128x128xf32>, vector<256x128xf32> -> vector<256x128xf32>
    %51 = arith.addf %34, %50 : vector<256x128xf32>
    %c0_36 = arith.constant 0 : index
    %c1_37 = arith.constant 1 : index
    %c0_38 = arith.constant 0 : index
    %c0_39 = arith.constant 0 : index
    %52 = vector.load %arg1[%c0_36, %c1_37, %c0_38, %c0_39] : memref<1x18x18x128xf32, #tpu.memory_space<vmem>>, vector<1x16x16x128xf32>
    %53 = vector.shape_cast %52 : vector<1x16x16x128xf32> to vector<16x16x128xf32>
    %c0_40 = arith.constant 0 : index
    %c0_41 = arith.constant 0 : index
    %54 = vector.load %arg2[%c0_40, %c0_41] : memref<1x128xf32, #tpu.memory_space<vmem>>, vector<1x128xf32>
    %55 = vector.shape_cast %54 : vector<1x128xf32> to vector<1x1x128xf32>
    %56 = vector.broadcast %55 : vector<1x1x128xf32> to vector<16x16x128xf32>
    %57 = arith.mulf %53, %56 : vector<16x16x128xf32>
    %c0_42 = arith.constant 0 : index
    %c0_43 = arith.constant 0 : index
    %58 = vector.load %arg3[%c0_42, %c0_43] : memref<1x128xf32, #tpu.memory_space<vmem>>, vector<1x128xf32>
    %59 = vector.shape_cast %58 : vector<1x128xf32> to vector<1x1x128xf32>
    %60 = vector.broadcast %59 : vector<1x1x128xf32> to vector<16x16x128xf32>
    %61 = arith.addf %57, %60 : vector<16x16x128xf32>
    %cst_44 = arith.constant 0.000000e+00 : f32
    %62 = vector.broadcast %cst_44 : f32 to vector<16x16x128xf32>
    %63 = arith.maximumf %61, %62 : vector<16x16x128xf32>
    %64 = vector.shape_cast %63 : vector<16x16x128xf32> to vector<256x128xf32>
    %c3 = arith.constant 3 : index
    %c0_45 = arith.constant 0 : index
    %c0_46 = arith.constant 0 : index
    %65 = vector.load %arg4[%c3, %c0_45, %c0_46] : memref<9x128x128xf32, #tpu.memory_space<vmem>>, vector<1x128x128xf32>
    %66 = vector.shape_cast %65 : vector<1x128x128xf32> to vector<128x128xf32>
    %cst_47 = arith.constant dense<0.000000e+00> : vector<256x128xf32>
    %67 = tpu.matmul %64, %66, %cst_47 {dimension_numbers = #tpu.dot_dimension_numbers<[1], [0], [0], [1], [0, 0, 1, 1], [], []>} : vector<256x128xf32>, vector<128x128xf32>, vector<256x128xf32> -> vector<256x128xf32>
    %68 = arith.addf %51, %67 : vector<256x128xf32>
    %c0_48 = arith.constant 0 : index
    %c1_49 = arith.constant 1 : index
    %c1_50 = arith.constant 1 : index
    %c0_51 = arith.constant 0 : index
    %69 = vector.load %arg1[%c0_48, %c1_49, %c1_50, %c0_51] : memref<1x18x18x128xf32, #tpu.memory_space<vmem>>, vector<1x16x16x128xf32>
    %70 = vector.shape_cast %69 : vector<1x16x16x128xf32> to vector<16x16x128xf32>
    %c0_52 = arith.constant 0 : index
    %c0_53 = arith.constant 0 : index
    %71 = vector.load %arg2[%c0_52, %c0_53] : memref<1x128xf32, #tpu.memory_space<vmem>>, vector<1x128xf32>
    %72 = vector.shape_cast %71 : vector<1x128xf32> to vector<1x1x128xf32>
    %73 = vector.broadcast %72 : vector<1x1x128xf32> to vector<16x16x128xf32>
    %74 = arith.mulf %70, %73 : vector<16x16x128xf32>
    %c0_54 = arith.constant 0 : index
    %c0_55 = arith.constant 0 : index
    %75 = vector.load %arg3[%c0_54, %c0_55] : memref<1x128xf32, #tpu.memory_space<vmem>>, vector<1x128xf32>
    %76 = vector.shape_cast %75 : vector<1x128xf32> to vector<1x1x128xf32>
    %77 = vector.broadcast %76 : vector<1x1x128xf32> to vector<16x16x128xf32>
    %78 = arith.addf %74, %77 : vector<16x16x128xf32>
    %cst_56 = arith.constant 0.000000e+00 : f32
    %79 = vector.broadcast %cst_56 : f32 to vector<16x16x128xf32>
    %80 = arith.maximumf %78, %79 : vector<16x16x128xf32>
    %81 = vector.shape_cast %80 : vector<16x16x128xf32> to vector<256x128xf32>
    %c4 = arith.constant 4 : index
    %c0_57 = arith.constant 0 : index
    %c0_58 = arith.constant 0 : index
    %82 = vector.load %arg4[%c4, %c0_57, %c0_58] : memref<9x128x128xf32, #tpu.memory_space<vmem>>, vector<1x128x128xf32>
    %83 = vector.shape_cast %82 : vector<1x128x128xf32> to vector<128x128xf32>
    %cst_59 = arith.constant dense<0.000000e+00> : vector<256x128xf32>
    %84 = tpu.matmul %81, %83, %cst_59 {dimension_numbers = #tpu.dot_dimension_numbers<[1], [0], [0], [1], [0, 0, 1, 1], [], []>} : vector<256x128xf32>, vector<128x128xf32>, vector<256x128xf32> -> vector<256x128xf32>
    %85 = arith.addf %68, %84 : vector<256x128xf32>
    %c0_60 = arith.constant 0 : index
    %c1_61 = arith.constant 1 : index
    %c2_62 = arith.constant 2 : index
    %c0_63 = arith.constant 0 : index
    %86 = vector.load %arg1[%c0_60, %c1_61, %c2_62, %c0_63] : memref<1x18x18x128xf32, #tpu.memory_space<vmem>>, vector<1x16x16x128xf32>
    %87 = vector.shape_cast %86 : vector<1x16x16x128xf32> to vector<16x16x128xf32>
    %c0_64 = arith.constant 0 : index
    %c0_65 = arith.constant 0 : index
    %88 = vector.load %arg2[%c0_64, %c0_65] : memref<1x128xf32, #tpu.memory_space<vmem>>, vector<1x128xf32>
    %89 = vector.shape_cast %88 : vector<1x128xf32> to vector<1x1x128xf32>
    %90 = vector.broadcast %89 : vector<1x1x128xf32> to vector<16x16x128xf32>
    %91 = arith.mulf %87, %90 : vector<16x16x128xf32>
    %c0_66 = arith.constant 0 : index
    %c0_67 = arith.constant 0 : index
    %92 = vector.load %arg3[%c0_66, %c0_67] : memref<1x128xf32, #tpu.memory_space<vmem>>, vector<1x128xf32>
    %93 = vector.shape_cast %92 : vector<1x128xf32> to vector<1x1x128xf32>
    %94 = vector.broadcast %93 : vector<1x1x128xf32> to vector<16x16x128xf32>
    %95 = arith.addf %91, %94 : vector<16x16x128xf32>
    %cst_68 = arith.constant 0.000000e+00 : f32
    %96 = vector.broadcast %cst_68 : f32 to vector<16x16x128xf32>
    %97 = arith.maximumf %95, %96 : vector<16x16x128xf32>
    %98 = vector.shape_cast %97 : vector<16x16x128xf32> to vector<256x128xf32>
    %c5 = arith.constant 5 : index
    %c0_69 = arith.constant 0 : index
    %c0_70 = arith.constant 0 : index
    %99 = vector.load %arg4[%c5, %c0_69, %c0_70] : memref<9x128x128xf32, #tpu.memory_space<vmem>>, vector<1x128x128xf32>
    %100 = vector.shape_cast %99 : vector<1x128x128xf32> to vector<128x128xf32>
    %cst_71 = arith.constant dense<0.000000e+00> : vector<256x128xf32>
    %101 = tpu.matmul %98, %100, %cst_71 {dimension_numbers = #tpu.dot_dimension_numbers<[1], [0], [0], [1], [0, 0, 1, 1], [], []>} : vector<256x128xf32>, vector<128x128xf32>, vector<256x128xf32> -> vector<256x128xf32>
    %102 = arith.addf %85, %101 : vector<256x128xf32>
    %c0_72 = arith.constant 0 : index
    %c2_73 = arith.constant 2 : index
    %c0_74 = arith.constant 0 : index
    %c0_75 = arith.constant 0 : index
    %103 = vector.load %arg1[%c0_72, %c2_73, %c0_74, %c0_75] : memref<1x18x18x128xf32, #tpu.memory_space<vmem>>, vector<1x16x16x128xf32>
    %104 = vector.shape_cast %103 : vector<1x16x16x128xf32> to vector<16x16x128xf32>
    %c0_76 = arith.constant 0 : index
    %c0_77 = arith.constant 0 : index
    %105 = vector.load %arg2[%c0_76, %c0_77] : memref<1x128xf32, #tpu.memory_space<vmem>>, vector<1x128xf32>
    %106 = vector.shape_cast %105 : vector<1x128xf32> to vector<1x1x128xf32>
    %107 = vector.broadcast %106 : vector<1x1x128xf32> to vector<16x16x128xf32>
    %108 = arith.mulf %104, %107 : vector<16x16x128xf32>
    %c0_78 = arith.constant 0 : index
    %c0_79 = arith.constant 0 : index
    %109 = vector.load %arg3[%c0_78, %c0_79] : memref<1x128xf32, #tpu.memory_space<vmem>>, vector<1x128xf32>
    %110 = vector.shape_cast %109 : vector<1x128xf32> to vector<1x1x128xf32>
    %111 = vector.broadcast %110 : vector<1x1x128xf32> to vector<16x16x128xf32>
    %112 = arith.addf %108, %111 : vector<16x16x128xf32>
    %cst_80 = arith.constant 0.000000e+00 : f32
    %113 = vector.broadcast %cst_80 : f32 to vector<16x16x128xf32>
    %114 = arith.maximumf %112, %113 : vector<16x16x128xf32>
    %115 = vector.shape_cast %114 : vector<16x16x128xf32> to vector<256x128xf32>
    %c6 = arith.constant 6 : index
    %c0_81 = arith.constant 0 : index
    %c0_82 = arith.constant 0 : index
    %116 = vector.load %arg4[%c6, %c0_81, %c0_82] : memref<9x128x128xf32, #tpu.memory_space<vmem>>, vector<1x128x128xf32>
    %117 = vector.shape_cast %116 : vector<1x128x128xf32> to vector<128x128xf32>
    %cst_83 = arith.constant dense<0.000000e+00> : vector<256x128xf32>
    %118 = tpu.matmul %115, %117, %cst_83 {dimension_numbers = #tpu.dot_dimension_numbers<[1], [0], [0], [1], [0, 0, 1, 1], [], []>} : vector<256x128xf32>, vector<128x128xf32>, vector<256x128xf32> -> vector<256x128xf32>
    %119 = arith.addf %102, %118 : vector<256x128xf32>
    %c0_84 = arith.constant 0 : index
    %c2_85 = arith.constant 2 : index
    %c1_86 = arith.constant 1 : index
    %c0_87 = arith.constant 0 : index
    %120 = vector.load %arg1[%c0_84, %c2_85, %c1_86, %c0_87] : memref<1x18x18x128xf32, #tpu.memory_space<vmem>>, vector<1x16x16x128xf32>
    %121 = vector.shape_cast %120 : vector<1x16x16x128xf32> to vector<16x16x128xf32>
    %c0_88 = arith.constant 0 : index
    %c0_89 = arith.constant 0 : index
    %122 = vector.load %arg2[%c0_88, %c0_89] : memref<1x128xf32, #tpu.memory_space<vmem>>, vector<1x128xf32>
    %123 = vector.shape_cast %122 : vector<1x128xf32> to vector<1x1x128xf32>
    %124 = vector.broadcast %123 : vector<1x1x128xf32> to vector<16x16x128xf32>
    %125 = arith.mulf %121, %124 : vector<16x16x128xf32>
    %c0_90 = arith.constant 0 : index
    %c0_91 = arith.constant 0 : index
    %126 = vector.load %arg3[%c0_90, %c0_91] : memref<1x128xf32, #tpu.memory_space<vmem>>, vector<1x128xf32>
    %127 = vector.shape_cast %126 : vector<1x128xf32> to vector<1x1x128xf32>
    %128 = vector.broadcast %127 : vector<1x1x128xf32> to vector<16x16x128xf32>
    %129 = arith.addf %125, %128 : vector<16x16x128xf32>
    %cst_92 = arith.constant 0.000000e+00 : f32
    %130 = vector.broadcast %cst_92 : f32 to vector<16x16x128xf32>
    %131 = arith.maximumf %129, %130 : vector<16x16x128xf32>
    %132 = vector.shape_cast %131 : vector<16x16x128xf32> to vector<256x128xf32>
    %c7 = arith.constant 7 : index
    %c0_93 = arith.constant 0 : index
    %c0_94 = arith.constant 0 : index
    %133 = vector.load %arg4[%c7, %c0_93, %c0_94] : memref<9x128x128xf32, #tpu.memory_space<vmem>>, vector<1x128x128xf32>
    %134 = vector.shape_cast %133 : vector<1x128x128xf32> to vector<128x128xf32>
    %cst_95 = arith.constant dense<0.000000e+00> : vector<256x128xf32>
    %135 = tpu.matmul %132, %134, %cst_95 {dimension_numbers = #tpu.dot_dimension_numbers<[1], [0], [0], [1], [0, 0, 1, 1], [], []>} : vector<256x128xf32>, vector<128x128xf32>, vector<256x128xf32> -> vector<256x128xf32>
    %136 = arith.addf %119, %135 : vector<256x128xf32>
    %c0_96 = arith.constant 0 : index
    %c2_97 = arith.constant 2 : index
    %c2_98 = arith.constant 2 : index
    %c0_99 = arith.constant 0 : index
    %137 = vector.load %arg1[%c0_96, %c2_97, %c2_98, %c0_99] : memref<1x18x18x128xf32, #tpu.memory_space<vmem>>, vector<1x16x16x128xf32>
    %138 = vector.shape_cast %137 : vector<1x16x16x128xf32> to vector<16x16x128xf32>
    %c0_100 = arith.constant 0 : index
    %c0_101 = arith.constant 0 : index
    %139 = vector.load %arg2[%c0_100, %c0_101] : memref<1x128xf32, #tpu.memory_space<vmem>>, vector<1x128xf32>
    %140 = vector.shape_cast %139 : vector<1x128xf32> to vector<1x1x128xf32>
    %141 = vector.broadcast %140 : vector<1x1x128xf32> to vector<16x16x128xf32>
    %142 = arith.mulf %138, %141 : vector<16x16x128xf32>
    %c0_102 = arith.constant 0 : index
    %c0_103 = arith.constant 0 : index
    %143 = vector.load %arg3[%c0_102, %c0_103] : memref<1x128xf32, #tpu.memory_space<vmem>>, vector<1x128xf32>
    %144 = vector.shape_cast %143 : vector<1x128xf32> to vector<1x1x128xf32>
    %145 = vector.broadcast %144 : vector<1x1x128xf32> to vector<16x16x128xf32>
    %146 = arith.addf %142, %145 : vector<16x16x128xf32>
    %cst_104 = arith.constant 0.000000e+00 : f32
    %147 = vector.broadcast %cst_104 : f32 to vector<16x16x128xf32>
    %148 = arith.maximumf %146, %147 : vector<16x16x128xf32>
    %149 = vector.shape_cast %148 : vector<16x16x128xf32> to vector<256x128xf32>
    %c8 = arith.constant 8 : index
    %c0_105 = arith.constant 0 : index
    %c0_106 = arith.constant 0 : index
    %150 = vector.load %arg4[%c8, %c0_105, %c0_106] : memref<9x128x128xf32, #tpu.memory_space<vmem>>, vector<1x128x128xf32>
    %151 = vector.shape_cast %150 : vector<1x128x128xf32> to vector<128x128xf32>
    %cst_107 = arith.constant dense<0.000000e+00> : vector<256x128xf32>
    %152 = tpu.matmul %149, %151, %cst_107 {dimension_numbers = #tpu.dot_dimension_numbers<[1], [0], [0], [1], [0, 0, 1, 1], [], []>} : vector<256x128xf32>, vector<128x128xf32>, vector<256x128xf32> -> vector<256x128xf32>
    %153 = arith.addf %136, %152 : vector<256x128xf32>
    %c0_108 = arith.constant 0 : index
    %c0_109 = arith.constant 0 : index
    %154 = vector.load %arg5[%c0_108, %c0_109] : memref<1x128xf32, #tpu.memory_space<vmem>>, vector<1x128xf32>
    %155 = vector.broadcast %154 : vector<1x128xf32> to vector<256x128xf32>
    %156 = arith.addf %153, %155 : vector<256x128xf32>
    %cst_110 = arith.constant dense<0.000000e+00> : vector<128xf32>
    %157 = vector.multi_reduction <add>, %156, %cst_110 [0] : vector<256x128xf32> to vector<128xf32>
    %158 = vector.shape_cast %157 : vector<128xf32> to vector<1x128xf32>
    %cst_111 = arith.constant 3.906250e-03 : f32
    %159 = vector.broadcast %cst_111 : f32 to vector<1x128xf32>
    %160 = arith.mulf %158, %159 : vector<1x128xf32>
    %161 = vector.broadcast %160 : vector<1x128xf32> to vector<256x128xf32>
    %162 = arith.subf %156, %161 : vector<256x128xf32>
    %163 = arith.mulf %162, %162 : vector<256x128xf32>
    %cst_112 = arith.constant dense<0.000000e+00> : vector<128xf32>
    %164 = vector.multi_reduction <add>, %163, %cst_112 [0] : vector<256x128xf32> to vector<128xf32>
    %165 = vector.shape_cast %164 : vector<128xf32> to vector<1x128xf32>
    %c0_113 = arith.constant 0 : index
    %c0_114 = arith.constant 0 : index
    %c0_115 = arith.constant 0 : index
    %166 = vector.load %arg7[%c0_113, %c0_114, %c0_115] : memref<1x2x128xf32, #tpu.memory_space<vmem>>, vector<1x1x128xf32>
    %167 = vector.shape_cast %166 : vector<1x1x128xf32> to vector<1x128xf32>
    %168 = vector.shape_cast %158 : vector<1x128xf32> to vector<1x1x128xf32>
    tpu.vector_store %arg7[%c0_113, %c0_114, %c0_115], %168 {strides = array<i32>} : memref<1x2x128xf32, #tpu.memory_space<vmem>>, vector<1x1x128xf32>,
    %c0_116 = arith.constant 0 : index
    %c1_117 = arith.constant 1 : index
    %c0_118 = arith.constant 0 : index
    %169 = vector.load %arg7[%c0_116, %c1_117, %c0_118] : memref<1x2x128xf32, #tpu.memory_space<vmem>>, vector<1x1x128xf32>
    %170 = vector.shape_cast %169 : vector<1x1x128xf32> to vector<1x128xf32>
    %171 = vector.shape_cast %165 : vector<1x128xf32> to vector<1x1x128xf32>
    tpu.vector_store %arg7[%c0_116, %c1_117, %c0_118], %171 {strides = array<i32>} : memref<1x2x128xf32, #tpu.memory_space<vmem>>, vector<1x1x128xf32>,
    %172 = vector.shape_cast %156 : vector<256x128xf32> to vector<16x16x128xf32>
    %c0_119 = arith.constant 0 : index
    %c0_120 = arith.constant 0 : index
    %c0_121 = arith.constant 0 : index
    %c0_122 = arith.constant 0 : index
    %173 = vector.load %arg6[%c0_119, %c0_120, %c0_121, %c0_122] : memref<1x16x16x128xf32, #tpu.memory_space<vmem>>, vector<1x16x16x128xf32>
    %174 = vector.shape_cast %173 : vector<1x16x16x128xf32> to vector<16x16x128xf32>
    %175 = vector.shape_cast %172 : vector<16x16x128xf32> to vector<1x16x16x128xf32>
    tpu.vector_store %arg6[%c0_119, %c0_120, %c0_121, %c0_122], %175 {strides = array<i32>} : memref<1x16x16x128xf32, #tpu.memory_space<vmem>>, vector<1x16x16x128xf32>,
    return
  }
  func.func @transform_0(%arg0: i32) -> (i32, i32, i32, i32) {
    %c0_i32 = arith.constant 0 : i32
    %c0_i32_0 = arith.constant 0 : i32
    %c0_i32_1 = arith.constant 0 : i32
    %c0_i32_2 = arith.constant 0 : i32
    return %arg0, %c0_i32, %c0_i32_0, %c0_i32_1 : i32, i32, i32, i32
  }
  func.func @transform_1(%arg0: i32) -> (i32, i32) {
    %c0_i32 = arith.constant 0 : i32
    %c0_i32_0 = arith.constant 0 : i32
    %c0_i32_1 = arith.constant 0 : i32
    return %c0_i32, %c0_i32_0 : i32, i32
  }
  func.func @transform_2(%arg0: i32) -> (i32, i32) {
    %c0_i32 = arith.constant 0 : i32
    %c0_i32_0 = arith.constant 0 : i32
    %c0_i32_1 = arith.constant 0 : i32
    return %c0_i32, %c0_i32_0 : i32, i32
  }
  func.func @transform_3(%arg0: i32) -> (i32, i32, i32) {
    %c0_i32 = arith.constant 0 : i32
    %c0_i32_0 = arith.constant 0 : i32
    %c0_i32_1 = arith.constant 0 : i32
    %c0_i32_2 = arith.constant 0 : i32
    return %c0_i32, %c0_i32_0, %c0_i32_1 : i32, i32, i32
  }
  func.func @transform_4(%arg0: i32) -> (i32, i32) {
    %c0_i32 = arith.constant 0 : i32
    %c0_i32_0 = arith.constant 0 : i32
    %c0_i32_1 = arith.constant 0 : i32
    return %c0_i32, %c0_i32_0 : i32, i32
  }
  func.func @transform_5(%arg0: i32) -> (i32, i32, i32, i32) {
    %c0_i32 = arith.constant 0 : i32
    %c0_i32_0 = arith.constant 0 : i32
    %c0_i32_1 = arith.constant 0 : i32
    %c0_i32_2 = arith.constant 0 : i32
    return %arg0, %c0_i32, %c0_i32_0, %c0_i32_1 : i32, i32, i32, i32
  }
  func.func @transform_6(%arg0: i32) -> (i32, i32, i32) {
    %c0_i32 = arith.constant 0 : i32
    %c0_i32_0 = arith.constant 0 : i32
    %c0_i32_1 = arith.constant 0 : i32
    return %arg0, %c0_i32, %c0_i32_0 : i32, i32, i32
  }
}

</mosaic_0001>

<bundles_post_ra>
// kernel: resnet_block.5
= control target key start
LH: loop header
LB: loop body
LE: loop exit
PB: predicated region body
PF: predicated region fallthrough
CT: control target
= control target key end

     0   :  { %s553_s15 = smov 0   ;;  %s749_s0 = inlined_call_operand.vmem [shape: f32[512,128], index: 0, kind: input, shape index: {}]   ;;  %s750_s1 = inlined_call_operand.vmem [shape: f32[1,128], index: 1, kind: input, shape index: {}]   ;;  %s751_s2 = inlined_call_operand.vmem [shape: f32[1,128], index: 2, kind: input, shape index: {}]   ;;  %s752_s3 = inlined_call_operand.vmem [shape: f32[512,128], index: 3, kind: input, shape index: {}]   ;;  %s753_s4 = inlined_call_operand.vmem [shape: f32[512,128], index: 4, kind: output, shape index: {}]  }
   0x1 LB: > { %s497_s16 = sadd.s32 4294967295, %s526_s15   ;;  %p501_p0 = scmp.ge.s32.totalorder %s526_s15, 1  ;;  %s526_s15 = sphi %s553_s15, %s14_s15  }
   0x2   : > { %p174_p1 = scmp.lt.s32.totalorder %s526_s15, 3 }
   0x4   : > { %p175_p2 = pnand %p501_p0, %p174_p1 }
   0x5   : > { %s502_s17 = sshll.u32 (!%p175_p2), %s497_s16, 5  ;;  %v564_v0 = vld [vmem:[%s750_s1] ss:$0 sm:$0xff] (!%p175_p2) }
   0x6   : > { %178 = sbr.rel (%p175_p2) target bundleno = 50 (0x32), region = 36  ;;  %p206_p3 = scmp.lt.s32.totalorder (!%p175_p2), %s502_s17, 63  ;;  %v581_v3 = vld [vmem:[%s751_s2] ss:$0 sm:$0xff] (!%p175_p2) }
   0xd   : > { %s755_s17 = smov (!%p206_p3, %s502_s17), 63 }
   0xe   : > { %s503_s18 = sshll.u32 %s755_s17, 3 }
   0xf   : > { %s569_s23 = scalar_lea.vmem %s749_s0, %s503_s18  ;;  %s574_s26 = scalar_lea.vmem %s752_s3, %s503_s18 }
  0x10   : > { %v223_v1 = vld [vmem:[%s574_s26] sm:$0xff]  ;;  %v224_v4 = vld [vmem:[%s574_s26 + $0x8] sm:$0xff]  ;;  %v225_v7 = vld [vmem:[%s574_s26 + $0x10] sm:$0xff]  ;;  %s600_s5 = scalar_lea.vmem %s753_s4, %s503_s18 }
  0x11   : > { %v255_v2 = vld [vmem:[%s569_s23] sm:$0xff]  ;;  %v256_v6 = vld [vmem:[%s569_s23 + $0x8] sm:$0xff]  ;;  %v257_v8 = vld [vmem:[%s569_s23 + $0x10] sm:$0xff] }
  0x12   : > { %v294_v5 = vmul.f32 %v564_v0, %v255_v2  ;;  %v295_v9 = vmul.f32 %v564_v0, %v256_v6  ;;  %v296_v10 = vmul.f32 %v564_v0, %v257_v8  ;;  %v226_v11 = vld [vmem:[%s574_s26 + $0x18] sm:$0xff]  ;;  %v227_v13 = vld [vmem:[%s574_s26 + $0x20] sm:$0xff]  ;;  %v228_v17 = vld [vmem:[%s574_s26 + $0x28] sm:$0xff] }
  0x13   : > { %v258_v12 = vld [vmem:[%s569_s23 + $0x18] sm:$0xff]  ;;  %v259_v16 = vld [vmem:[%s569_s23 + $0x20] sm:$0xff]  ;;  %v260_v18 = vld [vmem:[%s569_s23 + $0x28] sm:$0xff] }
  0x14   : > { %v326_v14 = vadd.f32 %v294_v5, %v223_v1  ;;  %v297_v15 = vmul.f32 %v564_v0, %v258_v12  ;;  %v327_v19 = vadd.f32 %v295_v9, %v224_v4  ;;  %v328_v20 = vadd.f32 %v296_v10, %v225_v7  ;;  %v229_v23 = vld [vmem:[%s574_s26 + $0x30] sm:$0xff]  ;;  %v230_v28 = vld [vmem:[%s574_s26 + $0x38] sm:$0xff]  ;;  %v263_v30 = vld [vmem:[%s569_s23 + $0x40] sm:$0xff] }
  0x15   : > { %v298_v21 = vmul.f32 %v564_v0, %v259_v16  ;;  %v299_v22 = vmul.f32 %v564_v0, %v260_v18  ;;  %v261_v24 = vld [vmem:[%s569_s23 + $0x30] sm:$0xff]  ;;  %v262_v29 = vld [vmem:[%s569_s23 + $0x38] sm:$0xff]  ;;  %v231_v35 = vld [vmem:[%s574_s26 + $0x40] sm:$0xff]  ;;  %v302_v41 = vmul.f32 %v564_v0, %v263_v30 }
  0x16   : > { %v365_v25 = vadd.f32 %v581_v3, %v326_v14  ;;  %v329_v26 = vadd.f32 %v297_v15, %v226_v11  ;;  %v300_v27 = vmul.f32 %v564_v0, %v261_v24  ;;  %v366_v31 = vadd.f32 %v581_v3, %v327_v19  ;;  %v232_v36 = vld [vmem:[%s574_s26 + $0x48] sm:$0xff]  ;;  %v233_v42 = vld [vmem:[%s574_s26 + $0x50] sm:$0xff]  ;;  %v266_v44 = vld [vmem:[%s569_s23 + $0x58] sm:$0xff] }
  0x17   : > { %v367_v32 = vadd.f32 %v581_v3, %v328_v20  ;;  %v330_v33 = vadd.f32 %v298_v21, %v227_v13  ;;  %v331_v34 = vadd.f32 %v299_v22, %v228_v17  ;;  %v264_v37 = vld [vmem:[%s569_s23 + $0x48] sm:$0xff]  ;;  %v301_v40 = vmul.f32 %v564_v0, %v262_v29  ;;  %v265_v43 = vld [vmem:[%s569_s23 + $0x50] sm:$0xff]  ;;  %v234_v49 = vld [vmem:[%s574_s26 + $0x58] sm:$0xff] }
  0x18   : > { %397 = vst [vmem:[%s600_s5] sm:$0xff] %v365_v25  ;;  %v368_v38 = vadd.f32 %v581_v3, %v329_v26  ;;  %v332_v39 = vadd.f32 %v300_v27, %v229_v23  ;;  %398 = vst [vmem:[%s600_s5 + $0x8] sm:$0xff] %v366_v31  ;;  %v303_v47 = vmul.f32 %v564_v0, %v264_v37  ;;  %v235_v50 = vld [vmem:[%s574_s26 + $0x60] sm:$0xff]  ;;  %v236_v56 = vld [vmem:[%s574_s26 + $0x68] sm:$0xff] }
  0x19   : > { %399 = vst [vmem:[%s600_s5 + $0x10] sm:$0xff] %v367_v32  ;;  %v369_v45 = vadd.f32 %v581_v3, %v330_v33  ;;  %v370_v46 = vadd.f32 %v581_v3, %v331_v34  ;;  %v304_v48 = vmul.f32 %v564_v0, %v265_v43  ;;  %v267_v51 = vld [vmem:[%s569_s23 + $0x60] sm:$0xff]  ;;  %v333_v53 = vadd.f32 %v301_v40, %v230_v28  ;;  %v268_v57 = vld [vmem:[%s569_s23 + $0x68] sm:$0xff]  ;;  %v269_v58 = vld [vmem:[%s569_s23 + $0x70] sm:$0xff] }
  0x1a   : > { %400 = vst [vmem:[%s600_s5 + $0x18] sm:$0xff] %v368_v38  ;;  %v371_v52 = vadd.f32 %v581_v3, %v332_v39  ;;  %v334_v54 = vadd.f32 %v302_v41, %v231_v35  ;;  %v305_v55 = vmul.f32 %v564_v0, %v266_v44  ;;  %v335_v59 = vadd.f32 %v303_v47, %v232_v36  ;;  %v237_v63 = vld [vmem:[%s574_s26 + $0x70] sm:$0xff]  ;;  %v270_v1 = vld [vmem:[%s569_s23 + $0x78] sm:$0xff]  ;;  %v271_v8 = vld [vmem:[%s569_s23 + $0x80] sm:$0xff] }
  0x1b   : > { %401 = vst [vmem:[%s600_s5 + $0x20] sm:$0xff] %v369_v45  ;;  %402 = vst [vmem:[%s600_s5 + $0x28] sm:$0xff] %v370_v46  ;;  %v336_v60 = vadd.f32 %v304_v48, %v233_v42  ;;  %v306_v61 = vmul.f32 %v564_v0, %v267_v51  ;;  %v307_v62 = vmul.f32 %v564_v0, %v268_v57  ;;  %v238_v7 = vld [vmem:[%s574_s26 + $0x78] sm:$0xff]  ;;  %v272_v9 = vld [vmem:[%s569_s23 + $0x88] sm:$0xff] }
  0x1c   : > { %403 = vst [vmem:[%s600_s5 + $0x30] sm:$0xff] %v371_v52  ;;  %v372_v2 = vadd.f32 %v581_v3, %v333_v53  ;;  %v373_v4 = vadd.f32 %v581_v3, %v334_v54  ;;  %v337_v5 = vadd.f32 %v305_v55, %v234_v49  ;;  %v308_v6 = vmul.f32 %v564_v0, %v269_v58  ;;  %v239_v14 = vld [vmem:[%s574_s26 + $0x80] sm:$0xff]  ;;  %v240_v15 = vld [vmem:[%s574_s26 + $0x88] sm:$0xff]  ;;  %v273_v16 = vld [vmem:[%s569_s23 + $0x90] sm:$0xff] }
  0x1d   : > { %v374_v10 = vadd.f32 %v581_v3, %v335_v59  ;;  %v375_v11 = vadd.f32 %v581_v3, %v336_v60  ;;  %v338_v12 = vadd.f32 %v306_v61, %v235_v50  ;;  %v339_v13 = vadd.f32 %v307_v62, %v236_v56  ;;  %v241_v21 = vld [vmem:[%s574_s26 + $0x90] sm:$0xff]  ;;  %v274_v22 = vld [vmem:[%s569_s23 + $0x98] sm:$0xff]  ;;  %v275_v23 = vld [vmem:[%s569_s23 + $0xa0] sm:$0xff] }
  0x1e   : > { %404 = vst [vmem:[%s600_s5 + $0x38] sm:$0xff] %v372_v2  ;;  %405 = vst [vmem:[%s600_s5 + $0x40] sm:$0xff] %v373_v4  ;;  %v376_v17 = vadd.f32 %v581_v3, %v337_v5  ;;  %v340_v18 = vadd.f32 %v308_v6, %v237_v63  ;;  %v309_v19 = vmul.f32 %v564_v0, %v270_v1  ;;  %v242_v28 = vld [vmem:[%s574_s26 + $0x98] sm:$0xff]  ;;  %v276_v29 = vld [vmem:[%s569_s23 + $0xa8] sm:$0xff] }
  0x1f   : > { %v310_v20 = vmul.f32 %v564_v0, %v271_v8  ;;  %406 = vst [vmem:[%s600_s5 + $0x48] sm:$0xff] %v374_v10  ;;  %407 = vst [vmem:[%s600_s5 + $0x50] sm:$0xff] %v375_v11  ;;  %v377_v24 = vadd.f32 %v581_v3, %v338_v12  ;;  %v378_v25 = vadd.f32 %v581_v3, %v339_v13  ;;  %v243_v34 = vld [vmem:[%s574_s26 + $0xa0] sm:$0xff]  ;;  %v244_v35 = vld [vmem:[%s574_s26 + $0xa8] sm:$0xff] }
  0x20   : > { %v311_v26 = vmul.f32 %v564_v0, %v272_v9  ;;  %v312_v27 = vmul.f32 %v564_v0, %v273_v16  ;;  %408 = vst [vmem:[%s600_s5 + $0x58] sm:$0xff] %v376_v17  ;;  %v379_v30 = vadd.f32 %v581_v3, %v340_v18  ;;  %v341_v31 = vadd.f32 %v309_v19, %v238_v7  ;;  %v277_v36 = vld [vmem:[%s569_s23 + $0xb0] sm:$0xff]  ;;  %v278_v42 = vld [vmem:[%s569_s23 + $0xb8] sm:$0xff]  ;;  %v279_v43 = vld [vmem:[%s569_s23 + $0xc0] sm:$0xff] }
  0x21   : > { %v342_v32 = vadd.f32 %v310_v20, %v239_v14  ;;  %v313_v33 = vmul.f32 %v564_v0, %v274_v22  ;;  %409 = vst [vmem:[%s600_s5 + $0x60] sm:$0xff] %v377_v24  ;;  %410 = vst [vmem:[%s600_s5 + $0x68] sm:$0xff] %v378_v25  ;;  %v314_v39 = vmul.f32 %v564_v0, %v275_v23  ;;  %v245_v41 = vld [vmem:[%s574_s26 + $0xb0] sm:$0xff]  ;;  %v246_v48 = vld [vmem:[%s574_s26 + $0xb8] sm:$0xff] }
  0x22   : > { %v343_v37 = vadd.f32 %v311_v26, %v240_v15  ;;  %v344_v38 = vadd.f32 %v312_v27, %v241_v21  ;;  %v315_v40 = vmul.f32 %v564_v0, %v276_v29  ;;  %411 = vst [vmem:[%s600_s5 + $0x70] sm:$0xff] %v379_v30  ;;  %v380_v44 = vadd.f32 %v581_v3, %v341_v31  ;;  %v280_v49 = vld [vmem:[%s569_s23 + $0xc8] sm:$0xff]  ;;  %v281_v50 = vld [vmem:[%s569_s23 + $0xd0] sm:$0xff]  ;;  %v247_v55 = vld [vmem:[%s574_s26 + $0xc0] sm:$0xff] }
  0x23   : > { %v381_v45 = vadd.f32 %v581_v3, %v342_v32  ;;  %v345_v46 = vadd.f32 %v313_v33, %v242_v28  ;;  %v316_v47 = vmul.f32 %v564_v0, %v277_v36  ;;  %v346_v53 = vadd.f32 %v314_v39, %v243_v34  ;;  %v248_v56 = vld [vmem:[%s574_s26 + $0xc8] sm:$0xff]  ;;  %v282_v57 = vld [vmem:[%s569_s23 + $0xd8] sm:$0xff]  ;;  %v249_v62 = vld [vmem:[%s574_s26 + $0xd0] sm:$0xff] }
  0x24   : > { %v382_v51 = vadd.f32 %v581_v3, %v343_v37  ;;  %v383_v52 = vadd.f32 %v581_v3, %v344_v38  ;;  %v347_v54 = vadd.f32 %v315_v40, %v244_v35  ;;  %412 = vst [vmem:[%s600_s5 + $0x78] sm:$0xff] %v380_v44  ;;  %v317_v60 = vmul.f32 %v564_v0, %v278_v42  ;;  %v283_v63 = vld [vmem:[%s569_s23 + $0xe0] sm:$0xff]  ;;  %v284_v1 = vld [vmem:[%s569_s23 + $0xe8] sm:$0xff]  ;;  %v250_v7 = vld [vmem:[%s574_s26 + $0xd8] sm:$0xff] }
  0x25   : > { %413 = vst [vmem:[%s600_s5 + $0x80] sm:$0xff] %v381_v45  ;;  %v384_v58 = vadd.f32 %v581_v3, %v345_v46  ;;  %v348_v59 = vadd.f32 %v316_v47, %v245_v41  ;;  %v318_v61 = vmul.f32 %v564_v0, %v279_v43  ;;  %v385_v2 = vadd.f32 %v581_v3, %v346_v53  ;;  %v285_v8 = vld [vmem:[%s569_s23 + $0xf0] sm:$0xff]  ;;  %v251_v13 = vld [vmem:[%s574_s26 + $0xe0] sm:$0xff]  ;;  %v252_v14 = vld [vmem:[%s574_s26 + $0xe8] sm:$0xff] }
  0x26   : > { %414 = vst [vmem:[%s600_s5 + $0x88] sm:$0xff] %v382_v51  ;;  %415 = vst [vmem:[%s600_s5 + $0x90] sm:$0xff] %v383_v52  ;;  %v386_v4 = vadd.f32 %v581_v3, %v347_v54  ;;  %v319_v5 = vmul.f32 %v564_v0, %v280_v49  ;;  %v320_v6 = vmul.f32 %v564_v0, %v281_v50  ;;  %v253_v19 = vld [vmem:[%s574_s26 + $0xf0] sm:$0xff]  ;;  %v286_v20 = vld [vmem:[%s569_s23 + $0xf8] sm:$0xff] }
  0x27   : > { %416 = vst [vmem:[%s600_s5 + $0x98] sm:$0xff] %v384_v58  ;;  %v387_v9 = vadd.f32 %v581_v3, %v348_v59  ;;  %v349_v10 = vadd.f32 %v317_v60, %v246_v48  ;;  %v350_v11 = vadd.f32 %v318_v61, %v247_v55  ;;  %v321_v12 = vmul.f32 %v564_v0, %v282_v57  ;;  %v254_v29 = vld [vmem:[%s574_s26 + $0xf8] sm:$0xff] }
  0x28   : > { %417 = vst [vmem:[%s600_s5 + $0xa0] sm:$0xff] %v385_v2  ;;  %418 = vst [vmem:[%s600_s5 + $0xa8] sm:$0xff] %v386_v4  ;;  %v351_v15 = vadd.f32 %v319_v5, %v248_v56  ;;  %v352_v16 = vadd.f32 %v320_v6, %v249_v62  ;;  %v322_v17 = vmul.f32 %v564_v0, %v283_v63 }
  0x29   : > { %v323_v18 = vmul.f32 %v564_v0, %v284_v1  ;;  %419 = vst [vmem:[%s600_s5 + $0xb0] sm:$0xff] %v387_v9  ;;  %v388_v21 = vadd.f32 %v581_v3, %v349_v10  ;;  %v389_v22 = vadd.f32 %v581_v3, %v350_v11  ;;  %v353_v23 = vadd.f32 %v321_v12, %v250_v7 }
  0x2a   : > { %v324_v24 = vmul.f32 %v564_v0, %v285_v8  ;;  %v390_v25 = vadd.f32 %v581_v3, %v351_v15  ;;  %v391_v26 = vadd.f32 %v581_v3, %v352_v16  ;;  %v354_v27 = vadd.f32 %v322_v17, %v251_v13 }
  0x2b   : > { %v355_v28 = vadd.f32 %v323_v18, %v252_v14  ;;  %420 = vst [vmem:[%s600_s5 + $0xb8] sm:$0xff] %v388_v21  ;;  %421 = vst [vmem:[%s600_s5 + $0xc0] sm:$0xff] %v389_v22  ;;  %v392_v30 = vadd.f32 %v581_v3, %v353_v23  ;;  %v325_v32 = vmul.f32 %v564_v0, %v286_v20 }
  0x2c   : > { %v356_v31 = vadd.f32 %v324_v24, %v253_v19  ;;  %422 = vst [vmem:[%s600_s5 + $0xc8] sm:$0xff] %v390_v25  ;;  %423 = vst [vmem:[%s600_s5 + $0xd0] sm:$0xff] %v391_v26  ;;  %v393_v33 = vadd.f32 %v581_v3, %v354_v27 }
  0x2d   : > { %v394_v34 = vadd.f32 %v581_v3, %v355_v28  ;;  %424 = vst [vmem:[%s600_s5 + $0xd8] sm:$0xff] %v392_v30  ;;  %v357_v36 = vadd.f32 %v325_v32, %v254_v29 }
  0x2e   : > { %v395_v35 = vadd.f32 %v581_v3, %v356_v31  ;;  %425 = vst [vmem:[%s600_s5 + $0xe0] sm:$0xff] %v393_v33 }
  0x2f   : > { %426 = vst [vmem:[%s600_s5 + $0xe8] sm:$0xff] %v394_v34  ;;  %v396_v37 = vadd.f32 %v581_v3, %v357_v36 }
  0x30   : > { %427 = vst [vmem:[%s600_s5 + $0xf0] sm:$0xff] %v395_v35 }
  0x31   : > { %428 = vst [vmem:[%s600_s5 + $0xf8] sm:$0xff] %v396_v37 }
  0x32 PF: > { %s14_s15 = sadd.s32 1, %s526_s15  }
  0x33   : > { %p11_p4 = scmp.ge.s32.totalorder %s14_s15, 4  }
  0x35   :  { %13 = sbr.rel (!%p11_p4) target bundleno = 1 (0x1), region = 69 }

// kernel: resnet_block.3
= control target key start
LH: loop header
LB: loop body
LE: loop exit
PB: predicated region body
PF: predicated region fallthrough
CT: control target
= control target key end

     0   :  { %s5393_s15 = smov 0   ;;  %s6778_s0 = inlined_call_operand.vmem [shape: f32[2,18,18,128], index: 0, kind: input, shape index: {}]   ;;  %s6779_s1 = inlined_call_operand.vmem [shape: f32[9,128,128], index: 1, kind: input, shape index: {}]   ;;  %s6780_s2 = inlined_call_operand.vmem [shape: f32[1,128], index: 2, kind: input, shape index: {}]   ;;  %s6781_s3 = inlined_call_operand.vmem [shape: f32[2,18,18,128], index: 3, kind: output, shape index: {0}]   ;;  %s6782_s4 = inlined_call_operand.vmem [shape: f32[2,2,128], index: 4, kind: output, shape index: {1}]  }
   0x1 LB: > { %s3240_s16 = sadd.s32 4294967295, %s5366_s15   ;;  %p3244_p0 = scmp.ge.s32.totalorder %s5366_s15, 1  ;;  %s5366_s15 = sphi %s5393_s15, %s15_s15  }
   0x2   : > { %p165_p1 = scmp.lt.s32.totalorder %s5366_s15, 3 }
   0x4   : > { %p166_p2 = pnand %p3244_p0, %p165_p1 }
   0x6   : > { %169 = sbr.rel (%p166_p2) target bundleno = 653 (0x28d), region = 32 }
   0xd   : > { %v3248_v0 = vld [vmem:[%s6779_s1 + $0x80] sm:$0xff]  ;;  %v3249_v1 = vld [vmem:[%s6779_s1 + $0x88] sm:$0xff]  ;;  %p195_p3 = scmp.lt.s32.totalorder %s3240_s16, 1  ;;  %v3250_v5 = vld [vmem:[%s6779_s1 + $0x90] sm:$0xff] }
   0xe   : > { %v3360_v2 = vld [vmem:[%s6779_s1 + $0x200] sm:$0xff]  ;;  %v4791_v3 = vpack.c.bf16 %v3249_v1, %v3248_v0  ;;  %v3361_v4 = vld [vmem:[%s6779_s1 + $0x208] sm:$0xff]  ;;  %v3251_v6 = vld [vmem:[%s6779_s1 + $0x98] sm:$0xff] }
   0xf   : > { %v5419_v7 = vpack.c.bf16 %v3361_v4, %v3360_v2  ;;  %v4795_v8 = vpack.c.bf16 %v3251_v6, %v3250_v5  ;;  %v3362_v9 = vld [vmem:[%s6779_s1 + $0x210] sm:$0xff]  ;;  %v3363_v10 = vld [vmem:[%s6779_s1 + $0x218] sm:$0xff]  ;;  %v3252_v11 = vld [vmem:[%s6779_s1 + $0xa0] sm:$0xff]  ;;  %s6884_s16 = smov (!%p195_p3, %s3240_s16), 1 }
  0x10   : > { %4792 = vmatprep.subr.bf16.mxu1 %v4791_v3  ;;  %v5432_v12 = vpack.c.bf16 %v3363_v10, %v3362_v9  ;;  %v3253_v13 = vld [vmem:[%s6779_s1 + $0xa8] sm:$0xff]  ;;  %v3364_v14 = vld [vmem:[%s6779_s1 + $0x220] sm:$0xff]  ;;  %s5351_s17 = smul.u32 432, %s6884_s16  ;;  %v3254_v18 = vld [vmem:[%s6779_s1 + $0xb0] sm:$0xff] }
  0x11   : > { %v3365_v15 = vld [vmem:[%s6779_s1 + $0x228] sm:$0xff]  ;;  %4920 = vmatprep.subr.bf16.mxu0 %v5419_v7  ;;  %4794 = vmatpush3.bf16.msra.mxu1 %v4791_v3  ;;  %v4799_v16 = vpack.c.bf16 %v3253_v13, %v3252_v11  ;;  %v3255_v19 = vld [vmem:[%s6779_s1 + $0xb8] sm:$0xff]  ;;  %v3366_v20 = vld [vmem:[%s6779_s1 + $0x230] sm:$0xff] }
  0x12   : > { %6821 = vst [vmem:[#allocation2_spill] sm:$0xff] %v5432_v12  ;;  %4922 = vmatpush3.bf16.msra.mxu0 %v5419_v7  ;;  %4796 = vmatprep.subr.bf16.mxu1 %v4795_v8  ;;  %v5447_v17 = vpack.c.bf16 %v3365_v15, %v3364_v14  ;;  %v3367_v21 = vld [vmem:[%s6779_s1 + $0x238] sm:$0xff]  ;;  %s5466_s28 = scalar_lea.vmem %s6778_s0, %s5351_s17  ;;  %v4803_v22 = vpack.c.bf16 %v3255_v19, %v3254_v18  ;;  %v3256_v24 = vld [vmem:[%s6779_s1 + $0xc0] sm:$0xff]  ;;  %v3257_v25 = vld [vmem:[%s6779_s1 + $0xc8] sm:$0xff]  ;;  %s6451_s23 = scalar_lea.vmem %s6781_s3, %s5351_s17 }
  0x13   : > { %4924 = vmatprep.subr.bf16.mxu0 %v5432_v12  ;;  %v5470_v23 = vpack.c.bf16 %v3367_v21, %v3366_v20  ;;  %v257_v26 = vld [vmem:[%s5466_s28 + $0x1] sm:$0xff]  ;;  %v5486_v29 = vld [vmem:[%s5466_s28 + $0x19] sm:$0xff]  ;;  %v4807_v30 = vpack.c.bf16 %v3257_v25, %v3256_v24  ;;  %v3258_v32 = vld [vmem:[%s6779_s1 + $0xd0] sm:$0xff]  ;;  %s3247_s17 = sshll.u32 %s6884_s16, 1 }
  0x14   : > { %6822 = vst [vmem:[#allocation3_spill] sm:$0xff] %v5447_v17  ;;  %v3368_v27 = vld [vmem:[%s6779_s1 + $0x240] sm:$0xff]  ;;  %v3369_v28 = vld [vmem:[%s6779_s1 + $0x248] sm:$0xff]  ;;  %4103 = vmatprep.mubr.f32.mxu1 %v257_v26  ;;  %4423 = vmatprep.mubr.f32.mxu0 %v5486_v29  ;;  %v3259_v33 = vld [vmem:[%s6779_s1 + $0xd8] sm:$0xff]  ;;  %s6711_s26 = scalar_lea.vmem %s6782_s4, %s3247_s17 }
  0x15   : > { %4798 = vmatpush3.bf16.msra.mxu1 %v4795_v8  ;;  %6823 = vst [vmem:[#allocation4_spill] sm:$0xff] %v5470_v23  ;;  %v5491_v31 = vpack.c.bf16 %v3369_v28, %v3368_v27  ;;  %v3370_v34 = vld [vmem:[%s6779_s1 + $0x250] sm:$0xff]  ;;  %v3371_v35 = vld [vmem:[%s6779_s1 + $0x258] sm:$0xff]  ;;  %v4811_v36 = vpack.c.bf16 %v3259_v33, %v3258_v32  ;;  %v3260_v38 = vld [vmem:[%s6779_s1 + $0xe0] sm:$0xff] }
  0x16   : > { %4926 = vmatpush3.bf16.msra.mxu0 %v5432_v12  ;;  %4800 = vmatprep.subr.bf16.mxu1 %v4799_v16  ;;  %v5507_v37 = vpack.c.bf16 %v3371_v35, %v3370_v34  ;;  %v3261_v39 = vld [vmem:[%s6779_s1 + $0xe8] sm:$0xff]  ;;  %v3372_v40 = vld [vmem:[%s6779_s1 + $0x260] sm:$0xff]  ;;  %v3262_v44 = vld [vmem:[%s6779_s1 + $0xf0] sm:$0xff] }
  0x17   : > { %4928 = vmatprep.subr.bf16.mxu0 %v5447_v17  ;;  %6824 = vst [vmem:[#allocation5_spill] sm:$0xff] %v5491_v31  ;;  %v3373_v41 = vld [vmem:[%s6779_s1 + $0x268] sm:$0xff]  ;;  %v4815_v42 = vpack.c.bf16 %v3261_v39, %v3260_v38  ;;  %v3263_v45 = vld [vmem:[%s6779_s1 + $0xf8] sm:$0xff]  ;;  %v3374_v46 = vld [vmem:[%s6779_s1 + $0x270] sm:$0xff] }
  0x18   : > { %6825 = vst [vmem:[#allocation6_spill] sm:$0xff] %v5507_v37  ;;  %v5523_v43 = vpack.c.bf16 %v3373_v41, %v3372_v40  ;;  %v3375_v47 = vld [vmem:[%s6779_s1 + $0x278] sm:$0xff]  ;;  %v4819_v48 = vpack.c.bf16 %v3263_v45, %v3262_v44  ;;  %v241_v50 = vld [vmem:[%s6779_s1] sm:$0xff]  ;;  %v242_v51 = vld [vmem:[%s6779_s1 + $0x8] sm:$0xff] }
  0x19   : > { %4802 = vmatpush3.bf16.msra.mxu1 %v4799_v16  ;;  %v5539_v49 = vpack.c.bf16 %v3375_v47, %v3374_v46  ;;  %v3408_v52 = vld [vmem:[%s6779_s1 + $0x280] sm:$0xff]  ;;  %v3409_v53 = vld [vmem:[%s6779_s1 + $0x288] sm:$0xff]  ;;  %v4823_v54 = vpack.c.bf16 %v242_v51, %v241_v50  ;;  %v3410_v56 = vld [vmem:[%s6779_s1 + $0x290] sm:$0xff] }
  0x1a   : > { %4930 = vmatpush3.bf16.msra.mxu0 %v5447_v17  ;;  %4804 = vmatprep.subr.bf16.mxu1 %v4803_v22  ;;  %6826 = vst [vmem:[#allocation7_spill] sm:$0xff] %v5523_v43  ;;  %v4951_v55 = vpack.c.bf16 %v3409_v53, %v3408_v52  ;;  %v3411_v57 = vld [vmem:[%s6779_s1 + $0x298] sm:$0xff]  ;;  %v258_v58 = vld [vmem:[%s5466_s28 + $0x9] sm:$0xff]  ;;  %v3329_v61 = vld [vmem:[%s5466_s28 + $0x21] sm:$0xff] }
  0x1b   : > { %4932 = vmatprep.subr.bf16.mxu0 %v5470_v23  ;;  %6827 = vst [vmem:[#allocation8_spill] sm:$0xff] %v5539_v49  ;;  %v243_v59 = vld [vmem:[%s6779_s1 + $0x10] sm:$0xff]  ;;  %v244_v60 = vld [vmem:[%s6779_s1 + $0x18] sm:$0xff]  ;;  %v4955_v62 = vpack.c.bf16 %v3411_v57, %v3410_v56  ;;  %v3412_v1 = vld [vmem:[%s6779_s1 + $0x2a0] sm:$0xff] }
  0x1c   : > { %v3330_v63 = vld [vmem:[%s5466_s28 + $0x31] sm:$0xff]  ;;  %v4827_v0 = vpack.c.bf16 %v244_v60, %v243_v59  ;;  %v3413_v2 = vld [vmem:[%s6779_s1 + $0x2a8] sm:$0xff]  ;;  %v245_v3 = vld [vmem:[%s6779_s1 + $0x20] sm:$0xff] }
  0x1d   : > { %4806 = vmatpush3.bf16.msra.mxu1 %v4803_v22  ;;  %v246_v4 = vld [vmem:[%s6779_s1 + $0x28] sm:$0xff]  ;;  %v3331_v5 = vld [vmem:[%s5466_s28 + $0x39] sm:$0xff]  ;;  %v4959_v8 = vpack.c.bf16 %v3413_v2, %v3412_v1  ;;  %v3414_v9 = vld [vmem:[%s6779_s1 + $0x2b0] sm:$0xff] }
  0x1e   : > { %4934 = vmatpush3.bf16.msra.mxu0 %v5470_v23  ;;  %4808 = vmatprep.subr.bf16.mxu1 %v4807_v30  ;;  %v3332_v6 = vld [vmem:[%s5466_s28 + $0x49] sm:$0xff]  ;;  %v3415_v10 = vld [vmem:[%s6779_s1 + $0x2b8] sm:$0xff]  ;;  %v4831_v11 = vpack.c.bf16 %v246_v4, %v245_v3  ;;  %v3334_v16 = vld [vmem:[%s5466_s28 + $0x61] sm:$0xff] }
  0x1f   : > { %4936 = vmatprep.subr.bf16.mxu0 %v5491_v31  ;;  %v247_v13 = vld [vmem:[%s6779_s1 + $0x30] sm:$0xff]  ;;  %v248_v14 = vld [vmem:[%s6779_s1 + $0x38] sm:$0xff]  ;;  %v4963_v18 = vpack.c.bf16 %v3415_v10, %v3414_v9  ;;  %v3416_v19 = vld [vmem:[%s6779_s1 + $0x2c0] sm:$0xff] }
  0x20   : > { %v3333_v15 = vld [vmem:[%s5466_s28 + $0x51] sm:$0xff]  ;;  %v3417_v20 = vld [vmem:[%s6779_s1 + $0x2c8] sm:$0xff]  ;;  %v4835_v21 = vpack.c.bf16 %v248_v14, %v247_v13  ;;  %v249_v22 = vld [vmem:[%s6779_s1 + $0x40] sm:$0xff] }
  0x21   : > { %4810 = vmatpush3.bf16.msra.mxu1 %v4807_v30  ;;  %v250_v24 = vld [vmem:[%s6779_s1 + $0x48] sm:$0xff]  ;;  %v3336_v26 = vld [vmem:[%s5466_s28 + $0x79] sm:$0xff]  ;;  %v4967_v27 = vpack.c.bf16 %v3417_v20, %v3416_v19  ;;  %v3418_v28 = vld [vmem:[%s6779_s1 + $0x2d0] sm:$0xff] }
  0x22   : > { %4938 = vmatpush3.bf16.msra.mxu0 %v5491_v31  ;;  %4812 = vmatprep.subr.bf16.mxu1 %v4811_v36  ;;  %v3335_v25 = vld [vmem:[%s5466_s28 + $0x69] sm:$0xff]  ;;  %v4839_v30 = vpack.c.bf16 %v250_v24, %v249_v22  ;;  %v252_v33 = vld [vmem:[%s6779_s1 + $0x58] sm:$0xff]  ;;  %v3337_v34 = vld [vmem:[%s5466_s28 + $0x81] sm:$0xff] }
  0x23   : > { %4940 = vmatprep.subr.bf16.mxu0 %v5507_v37  ;;  %v251_v32 = vld [vmem:[%s6779_s1 + $0x50] sm:$0xff]  ;;  %v3420_v38 = vld [vmem:[%s6779_s1 + $0x2e0] sm:$0xff]  ;;  %v3421_v39 = vld [vmem:[%s6779_s1 + $0x2e8] sm:$0xff] }
  0x24   : > { %v5628_v35 = vld [vmem:[%s5466_s28 + $0x91] sm:$0xff]  ;;  %v4843_v40 = vpack.c.bf16 %v252_v33, %v251_v32  ;;  %v253_v41 = vld [vmem:[%s6779_s1 + $0x60] sm:$0xff]  ;;  %v3340_v45 = vld [vmem:[%s5466_s28 + $0xa9] sm:$0xff]  ;;  %v4975_v46 = vpack.c.bf16 %v3421_v39, %v3420_v38 }
  0x25   : > { %4814 = vmatpush3.bf16.msra.mxu1 %v4811_v36  ;;  %v3339_v44 = vld [vmem:[%s5466_s28 + $0x99] sm:$0xff]  ;;  %v3422_v47 = vld [vmem:[%s6779_s1 + $0x2f0] sm:$0xff]  ;;  %v3457_v57 = vld [vmem:[%s6779_s1 + $0x308] sm:$0xff] }
  0x26   : > { %4942 = vmatpush3.bf16.msra.mxu0 %v5507_v37  ;;  %4816 = vmatprep.subr.bf16.mxu1 %v4815_v42  ;;  %v255_v51 = vld [vmem:[%s6779_s1 + $0x70] sm:$0xff]  ;;  %v256_v52 = vld [vmem:[%s6779_s1 + $0x78] sm:$0xff]  ;;  %v3456_v56 = vld [vmem:[%s6779_s1 + $0x300] sm:$0xff] }
  0x27   : > { %4944 = vmatprep.subr.bf16.mxu0 %v5523_v43  ;;  %v3341_v53 = vld [vmem:[%s5466_s28 + $0xb1] sm:$0xff]  ;;  %v3264_v59 = vld [vmem:[%s6779_s1 + $0x100] sm:$0xff]  ;;  %v3265_v60 = vld [vmem:[%s6779_s1 + $0x108] sm:$0xff] }
  0x28   : > { %v3459_v1 = vld [vmem:[%s6779_s1 + $0x318] sm:$0xff]  ;;  %v5687_v2 = vpack.c.bf16 %v3265_v60, %v3264_v59  ;;  %v5693_v3 = vld [vmem:[%s5466_s28 + $0x22] sm:$0xff]  ;;  %v5722_v14 = vld [vmem:[%s5466_s28 + $0x4a] sm:$0xff] }
  0x29   : > { %4818 = vmatpush3.bf16.msra.mxu1 %v4815_v42  ;;  %v254_v42 = vld [vmem:[%s6779_s1 + $0x68] sm:$0xff]  ;;  %v5696_v4 = vld [vmem:[%s5466_s28 + $0xd9] sm:$0xff]  ;;  %v5719_v13 = vld [vmem:[%s5466_s28 + $0xf1] sm:$0xff] }
  0x2a   : > { %4946 = vmatpush3.bf16.msra.mxu0 %v5523_v43  ;;  %4820 = vmatprep.subr.bf16.mxu1 %v4819_v48  ;;  %v4847_v50 = vpack.c.bf16 %v254_v42, %v253_v41  ;;  %v3461_v9 = vld [vmem:[%s6779_s1 + $0x328] sm:$0xff]  ;;  %v5734_v19 = vld [vmem:[%s5466_s28 + $0xf9] sm:$0xff]  ;;  %v3466_v33 = vld [vmem:[%s6779_s1 + $0x350] sm:$0xff] }
  0x2b   : > { %4948 = vmatprep.subr.bf16.mxu0 %v5539_v49  ;;  %v5712_v10 = vld [vmem:[%s5466_s28 + $0xe1] sm:$0xff]  ;;  %v5738_v20 = vld [vmem:[%s5466_s28 + $0x52] sm:$0xff] }
  0x2c   : > { %v5744_v22 = vld [vmem:[%s5466_s28 + $0x62] sm:$0xff]  ;;  %v5785_v39 = vld [vmem:[%s5466_s28 + $0x139] sm:$0xff] }
  0x2d   : > { %4822 = vmatpush3.bf16.msra.mxu1 %v4819_v48  ;;  %v3423_v48 = vld [vmem:[%s6779_s1 + $0x2f8] sm:$0xff]  ;;  %v5782_v38 = vld [vmem:[%s5466_s28 + $0x82] sm:$0xff]  ;;  %6832 = vst [vmem:[#allocation13_spill] sm:$0xff] %v5785_v39 }
  0x2e   : > { %4950 = vmatpush3.bf16.msra.mxu0 %v5539_v49  ;;  %4824 = vmatprep.subr.bf16.mxu1 %v4823_v54  ;;  %v3468_v42 = vld [vmem:[%s6779_s1 + $0x360] sm:$0xff]  ;;  %v3505_v60 = vld [vmem:[%s6779_s1 + $0x388] sm:$0xff]  ;;  %v3275_v49 = vld [vmem:[%s6779_s1 + $0x158] sm:$0xff] }
  0x2f   : > { %4952 = vmatprep.subr.bf16.mxu0 %v4951_v55  ;;  %v3504_v59 = vld [vmem:[%s6779_s1 + $0x380] sm:$0xff]  ;;  %v5962_v43 = vld [vmem:[%s5466_s28 + $0x152] sm:$0xff]  ;;  %v3313_v17 = vld [vmem:[%s6779_s1 + $0x188] sm:$0xff] }
  0x30   : > { %4104 = vmatmul.mubr.f32.vlgmr.msra.gmra.mrb[0].mxu1 %v258_v58  ;;  %v4851_v58 = vpack.c.bf16 %v256_v52, %v255_v51  ;;  %v3470_v51 = vld [vmem:[%s6779_s1 + $0x370] sm:$0xff]  ;;  %v3471_v52 = vld [vmem:[%s6779_s1 + $0x378] sm:$0xff]  ;;  %v3276_v37 = vld [vmem:[%s6779_s1 + $0x160] sm:$0xff] }
  0x31   : > { %4424 = vmatmul.mubr.f32.vlgmr.msra.gmra.mrb[0].mxu0 %v3329_v61  ;;  %4826 = vmatpush3.bf16.msra.mxu1 %v4823_v54  ;;  %v5660_v54 = vld [vmem:[%s5466_s28 + $0xc1] sm:$0xff]  ;;  %v3507_v12 = vld [vmem:[%s6779_s1 + $0x398] sm:$0xff] }
  0x32   : > { %4954 = vmatpush3.bf16.msra.mxu0 %v4951_v55  ;;  %4106 = vmatprep.mubr.f32.mxu1 %v5486_v29  ;;  %v3419_v29 = vld [vmem:[%s6779_s1 + $0x2d8] sm:$0xff]  ;;  %v4979_v55 = vpack.c.bf16 %v3423_v48, %v3422_v47  ;;  %v5810_v48 = vld [vmem:[%s5466_s28 + $0xaa] sm:$0xff]  ;;  %v3406_v23 = vld [vmem:[%s5466_s28 + $0x182] sm:$0xff] }
  0x33   : > { %4426 = vmatprep.mubr.f32.mxu0 %v3330_v63  ;;  %4956 = vmatprep.subr.bf16.mxu0 %v4955_v62  ;;  %v4971_v36 = vpack.c.bf16 %v3419_v29, %v3418_v28  ;;  %v5760_v28 = vld [vmem:[%s5466_s28 + $0x6a] sm:$0xff]  ;;  %v5763_v29 = vld [vmem:[%s5466_s28 + $0x121] sm:$0xff] }
  0x34   : > { %4107 = vmatmul.mubr.f32.gmra.mrb[2].mxu1 %v3329_v61  ;;  %4828 = vmatprep.subr.bf16.mxu1 %v4827_v0  ;;  %v5676_v61 = vld [vmem:[%s5466_s28 + $0xc9] sm:$0xff]  ;;  %6830 = vst [vmem:[#allocation11_spill] sm:$0xff] %v5763_v29  ;;  %v5807_v47 = vld [vmem:[%s5466_s28 + $0x151] sm:$0xff] }
  0x35   : > { %4427 = vmatmul.mubr.f32.gmra.mrb[2].mxu0 %v3331_v5  ;;  %4109 = vmatprep.mubr.f32.mxu1 %v3330_v63  ;;  %v4983_v63 = vpack.c.bf16 %v3457_v57, %v3456_v56  ;;  %6834 = vst [vmem:[#allocation15_spill] sm:$0xff] %v5807_v47  ;;  %v5829_v56 = vld [vmem:[%s5466_s28 + $0x169] sm:$0xff] }
  0x36   : > { %4958 = vmatpush3.bf16.msra.mxu0 %v4955_v62  ;;  %4429 = vmatprep.mubr.f32.mxu0 %v3332_v6  ;;  %v5679_v62 = vld [vmem:[%s5466_s28 + $0x1a] sm:$0xff]  ;;  %6836 = vst [vmem:[#allocation17_spill] sm:$0xff] %v5829_v56  ;;  %v5832_v57 = vld [vmem:[%s5466_s28 + $0xc2] sm:$0xff] }
  0x37   : > { %4960 = vmatprep.subr.bf16.mxu0 %v4959_v8  ;;  %4830 = vmatpush3.bf16.msra.mxu1 %v4827_v0  ;;  %v3458_v0 = vld [vmem:[%s6779_s1 + $0x310] sm:$0xff] }
  0x38   : > { %4110 = vmatmul.mubr.f32.gmra.mrb[4].mxu1 %v3331_v5  ;;  %4832 = vmatprep.subr.bf16.mxu1 %v4831_v11  ;;  %v5699_v5 = vld [vmem:[%s5466_s28 + $0x32] sm:$0xff] }
  0x39   : > { %4430 = vmatmul.mubr.f32.gmra.mrb[4].mxu0 %v3333_v15  ;;  %4112 = vmatprep.mubr.f32.mxu1 %v3332_v6  ;;  %v4987_v6 = vpack.c.bf16 %v3459_v1, %v3458_v0  ;;  %v5848_v0 = vld [vmem:[%s5466_s28 + $0xca] sm:$0xff]  ;;  %v209_v1 = vld [vmem:[%s5466_s28] sm:$0xff] }
  0x3a   : > { %4962 = vmatpush3.bf16.msra.mxu0 %v4959_v8  ;;  %4432 = vmatprep.mubr.f32.mxu0 %v3334_v16  ;;  %v3460_v8 = vld [vmem:[%s6779_s1 + $0x320] sm:$0xff] }
  0x3b   : > { %4964 = vmatprep.subr.bf16.mxu0 %v4963_v18  ;;  %4834 = vmatpush3.bf16.msra.mxu1 %v4831_v11  ;;  %v5716_v11 = vld [vmem:[%s5466_s28 + $0x3a] sm:$0xff] }
  0x3c   : > { %4113 = vmatmul.mubr.f32.gmra.mrb[6].mxu1 %v3333_v15  ;;  %4836 = vmatprep.subr.bf16.mxu1 %v4835_v21  ;;  %v4991_v15 = vpack.c.bf16 %v3461_v9, %v3460_v8  ;;  %v5854_v8 = vpack.c.bf16 %v3505_v60, %v3504_v59  ;;  %v3266_v9 = vld [vmem:[%s6779_s1 + $0x110] sm:$0xff]  ;;  %v5915_v59 = vld [vmem:[%s5466_s28 + $0x48] sm:$0xff] }
  0x3d   : > { %4433 = vmatmul.mubr.f32.gmra.mrb[6].mxu0 %v3335_v25  ;;  %4115 = vmatprep.mubr.f32.mxu1 %v3334_v16  ;;  %v3462_v16 = vld [vmem:[%s6779_s1 + $0x330] sm:$0xff]  ;;  %6840 = vst [vmem:[#allocation21_spill] sm:$0xff] %v5915_v59  ;;  %v5918_v60 = vld [vmem:[%s5466_s28 + $0x122] sm:$0xff] }
  0x3e   : > { %4966 = vmatpush3.bf16.msra.mxu0 %v4963_v18  ;;  %4435 = vmatprep.mubr.f32.mxu0 %v3336_v26  ;;  %v3463_v18 = vld [vmem:[%s6779_s1 + $0x338] sm:$0xff] }
  0x3f   : > { %4968 = vmatprep.subr.bf16.mxu0 %v4967_v27  ;;  %4838 = vmatpush3.bf16.msra.mxu1 %v4835_v21  ;;  %v5741_v21 = vld [vmem:[%s5466_s28 + $0x109] sm:$0xff]  ;;  %v4995_v24 = vpack.c.bf16 %v3463_v18, %v3462_v16 }
  0x40   : > { %4116 = vmatmul.mubr.f32.gmra.mrb[8].mxu1 %v3335_v25  ;;  %4840 = vmatprep.subr.bf16.mxu1 %v4839_v30  ;;  %6828 = vst [vmem:[#allocation9_spill] sm:$0xff] %v5741_v21  ;;  %v3464_v25 = vld [vmem:[%s6779_s1 + $0x340] sm:$0xff]  ;;  %v210_v16 = vld [vmem:[%s5466_s28 + $0x8] sm:$0xff] }
  0x41   : > { %4436 = vmatmul.mubr.f32.gmra.mrb[8].mxu0 %v3337_v34  ;;  %4118 = vmatprep.mubr.f32.mxu1 %v3336_v26  ;;  %v3465_v26 = vld [vmem:[%s6779_s1 + $0x348] sm:$0xff] }
  0x42   : > { %4970 = vmatpush3.bf16.msra.mxu0 %v4967_v27  ;;  %4438 = vmatprep.mubr.f32.mxu0 %v5628_v35  ;;  %v5756_v27 = vld [vmem:[%s5466_s28 + $0x111] sm:$0xff]  ;;  %v4999_v32 = vpack.c.bf16 %v3465_v26, %v3464_v25  ;;  %v5867_v18 = vld [vmem:[%s5466_s28 + $0xe2] sm:$0xff] }
  0x43   : > { %4972 = vmatprep.subr.bf16.mxu0 %v4971_v36  ;;  %4842 = vmatpush3.bf16.msra.mxu1 %v4839_v30  ;;  %6829 = vst [vmem:[#allocation10_spill] sm:$0xff] %v5756_v27  ;;  %v5766_v30 = vld [vmem:[%s5466_s28 + $0x7a] sm:$0xff]  ;;  %v5873_v25 = vld [vmem:[%s5466_s28 + $0xf2] sm:$0xff] }
  0x44   : > { %4119 = vmatmul.mubr.f32.gmra.mrb[10].mxu1 %v3337_v34  ;;  %4844 = vmatprep.subr.bf16.mxu1 %v4843_v40  ;;  %v3467_v34 = vld [vmem:[%s6779_s1 + $0x358] sm:$0xff] }
  0x45   : > { %4439 = vmatmul.mubr.f32.gmra.mrb[10].mxu0 %v3339_v44  ;;  %4121 = vmatprep.mubr.f32.mxu1 %v5628_v35  ;;  %v5003_v41 = vpack.c.bf16 %v3467_v34, %v3466_v33  ;;  %v3269_v33 = vld [vmem:[%s6779_s1 + $0x128] sm:$0xff]  ;;  %v5885_v34 = vld [vmem:[%s5466_s28 + $0x20] sm:$0xff] }
  0x46   : > { %4974 = vmatpush3.bf16.msra.mxu0 %v4971_v36  ;;  %4441 = vmatprep.mubr.f32.mxu0 %v3340_v45  ;;  %v5778_v36 = vld [vmem:[%s5466_s28 + $0x129] sm:$0xff] }
  0x47   : > { %4976 = vmatprep.subr.bf16.mxu0 %v4975_v46  ;;  %4846 = vmatpush3.bf16.msra.mxu1 %v4843_v40  ;;  %6831 = vst [vmem:[#allocation12_spill] sm:$0xff] %v5778_v36  ;;  %v5788_v40 = vld [vmem:[%s5466_s28 + $0x92] sm:$0xff] }
  0x48   : > { %4122 = vmatmul.mubr.f32.gmra.mrb[12].mxu1 %v3339_v44  ;;  %4848 = vmatprep.subr.bf16.mxu1 %v4847_v50  ;;  %v3469_v44 = vld [vmem:[%s6779_s1 + $0x368] sm:$0xff] }
  0x49   : > { %4442 = vmatmul.mubr.f32.gmra.mrb[12].mxu0 %v3341_v53  ;;  %4124 = vmatprep.mubr.f32.mxu1 %v3340_v45  ;;  %v5800_v45 = vld [vmem:[%s5466_s28 + $0x141] sm:$0xff] }
  0x4a   : > { %4978 = vmatpush3.bf16.msra.mxu0 %v4975_v46  ;;  %4444 = vmatprep.mubr.f32.mxu0 %v5660_v54  ;;  %6833 = vst [vmem:[#allocation14_spill] sm:$0xff] %v5800_v45  ;;  %v5804_v46 = vld [vmem:[%s5466_s28 + $0x9a] sm:$0xff] }
  0x4b   : > { %4980 = vmatprep.subr.bf16.mxu0 %v4979_v55  ;;  %4850 = vmatpush3.bf16.msra.mxu1 %v4847_v50  ;;  %v5007_v50 = vpack.c.bf16 %v3469_v44, %v3468_v42  ;;  %v5893_v42 = vld [vmem:[%s5466_s28 + $0x30] sm:$0xff] }
  0x4c   : > { %4125 = vmatmul.mubr.f32.gmra.mrb[14].mxu1 %v3341_v53  ;;  %4852 = vmatprep.subr.bf16.mxu1 %v4851_v58  ;;  %v5822_v53 = vld [vmem:[%s5466_s28 + $0x159] sm:$0xff]  ;;  %6838 = vst [vmem:[#allocation19_spill] sm:$0xff] %v5893_v42  ;;  %v5896_v44 = vld [vmem:[%s5466_s28 + $0x10a] sm:$0xff] }
  0x4d   : > { %4445 = vmatmul.mubr.f32.gmra.mrb[14].mxu0 %v5676_v61  ;;  %4127 = vmatprep.mubr.f32.mxu1 %v5660_v54  ;;  %6835 = vst [vmem:[#allocation16_spill] sm:$0xff] %v5822_v53 }
  0x4e   : > { %4982 = vmatpush3.bf16.msra.mxu0 %v4979_v55  ;;  %4503 = vmatprep.mubr.f32.mxu0 %v5679_v62  ;;  %v5826_v55 = vld [vmem:[%s5466_s28 + $0xb2] sm:$0xff] }
  0x4f   : > { %4984 = vmatprep.subr.bf16.mxu0 %v4983_v63  ;;  %4854 = vmatpush3.bf16.msra.mxu1 %v4851_v58  ;;  %v5011_v58 = vpack.c.bf16 %v3471_v52, %v3470_v51  ;;  %v3271_v51 = vld [vmem:[%s6779_s1 + $0x138] sm:$0xff] }
  0x50   : > { %4128 = vmatmul.mubr.f32.gmra.mrb[16].mxu1 %v5676_v61  ;;  %4856 = vmatprep.subr.bf16.mxu1 %v5687_v2  ;;  %v5908_v52 = vld [vmem:[%s5466_s28 + $0x38] sm:$0xff] }
  0x51   : > { %4504 = vmatmul.mubr.f32.vlgmr.msra.gmra.mrb[0].mxu0 %v5693_v3  ;;  %4130 = vmatprep.mubr.f32.mxu1 %v5696_v4  ;;  %6839 = vst [vmem:[#allocation20_spill] sm:$0xff] %v5908_v52 }
  0x52   : > { %4986 = vmatpush3.bf16.msra.mxu0 %v4983_v63  ;;  %4506 = vmatprep.mubr.f32.mxu0 %v5699_v5  ;;  %v5844_v63 = vld [vmem:[%s5466_s28 + $0x171] sm:$0xff] }
  0x53   : > { %4988 = vmatprep.subr.bf16.mxu0 %v4987_v6  ;;  %6837 = vst [vmem:[#allocation18_spill] sm:$0xff] %v5844_v63 }
  0x54   : > { %4131 = vmatmul.mubr.f32.gmra.mrb[18].mxu1 %v5712_v10 }
  0x55   : > { %4507 = vmatmul.mubr.f32.gmra.mrb[2].mxu0 %v5716_v11  ;;  %4133 = vmatprep.mubr.f32.mxu1 %v5719_v13 }
  0x56   : > { %4509 = vmatprep.mubr.f32.mxu0 %v5722_v14  ;;  %4990 = vmatpush3.bf16.msra.mxu0 %v4987_v6  ;;  %v5852_v6 = vld [vmem:[%s5466_s28 + $0xda] sm:$0xff] }
  0x57   : > { %4992 = vmatprep.subr.bf16.mxu0 %v4991_v15 }
  0x58   : > { %4134 = vmatmul.mubr.f32.gmra.mrb[20].mxu1 %v5734_v19 }
  0x59   : > { %4510 = vmatmul.mubr.f32.gmra.mrb[4].mxu0 %v5738_v20  ;;  %4136 = vmatprep.mubr.f32.mxu1 %v5741_v21  ;;  %v3511_v21 = vld [vmem:[%s6779_s1 + $0x3b8] sm:$0xff] }
  0x5a   : > { %4512 = vmatprep.mubr.f32.mxu0 %v5744_v22  ;;  %4994 = vmatpush3.bf16.msra.mxu0 %v4991_v15  ;;  %v3267_v15 = vld [vmem:[%s6779_s1 + $0x118] sm:$0xff] }
  0x5b   : > { %4996 = vmatprep.subr.bf16.mxu0 %v4995_v24  ;;  %v4859_v26 = vpack.c.bf16 %v3267_v15, %v3266_v9  ;;  %v3272_v9 = vld [vmem:[%s6779_s1 + $0x140] sm:$0xff]  ;;  %v3273_v15 = vld [vmem:[%s6779_s1 + $0x148] sm:$0xff] }
  0x5c   : > { %4137 = vmatmul.mubr.f32.gmra.mrb[22].mxu1 %v5756_v27  ;;  %v3506_v27 = vld [vmem:[%s6779_s1 + $0x390] sm:$0xff] }
  0x5d   : > { %4513 = vmatmul.mubr.f32.gmra.mrb[6].mxu0 %v5760_v28  ;;  %4139 = vmatprep.mubr.f32.mxu1 %v5763_v29 }
  0x5e   : > { %4515 = vmatprep.mubr.f32.mxu0 %v5766_v30  ;;  %4998 = vmatpush3.bf16.msra.mxu0 %v4995_v24  ;;  %v5870_v24 = vld [vmem:[%s5466_s28 + $0x18] sm:$0xff] }
  0x5f   : > { %5000 = vmatprep.subr.bf16.mxu0 %v4999_v32 }
  0x60   : > { %4140 = vmatmul.mubr.f32.gmra.mrb[24].mxu1 %v5778_v36  ;;  %v3312_v36 = vld [vmem:[%s6779_s1 + $0x180] sm:$0xff] }
  0x61   : > { %4516 = vmatmul.mubr.f32.gmra.mrb[8].mxu0 %v5782_v38  ;;  %4142 = vmatprep.mubr.f32.mxu1 %v5785_v39  ;;  %v6022_v29 = vpack.c.bf16 %v3313_v17, %v3312_v36  ;;  %v6037_v17 = vld [vmem:[%s5466_s28 + $0xd8] sm:$0xff]  ;;  %v3508_v36 = vld [vmem:[%s6779_s1 + $0x3a0] sm:$0xff] }
  0x62   : > { %4518 = vmatprep.mubr.f32.mxu0 %v5788_v40  ;;  %5002 = vmatpush3.bf16.msra.mxu0 %v4999_v32  ;;  %v3268_v32 = vld [vmem:[%s6779_s1 + $0x120] sm:$0xff] }
  0x63   : > { %5004 = vmatprep.subr.bf16.mxu0 %v5003_v41 }
  0x64   : > { %4143 = vmatmul.mubr.f32.gmra.mrb[26].mxu1 %v5800_v45  ;;  %v3279_v45 = vld [vmem:[%s6779_s1 + $0x178] sm:$0xff] }
  0x65   : > { %4519 = vmatmul.mubr.f32.gmra.mrb[10].mxu0 %v5804_v46  ;;  %4145 = vmatprep.mubr.f32.mxu1 %v5807_v47  ;;  %v3278_v47 = vld [vmem:[%s6779_s1 + $0x170] sm:$0xff] }
  0x66   : > { %4521 = vmatprep.mubr.f32.mxu0 %v5810_v48  ;;  %5006 = vmatpush3.bf16.msra.mxu0 %v5003_v41  ;;  %v5890_v41 = vld [vmem:[%s5466_s28 + $0xfa] sm:$0xff]  ;;  %v4883_v39 = vpack.c.bf16 %v3279_v45, %v3278_v47  ;;  %v3407_v45 = vld [vmem:[%s5466_s28 + $0x18a] sm:$0xff] }
  0x67   : > { %5008 = vmatprep.subr.bf16.mxu0 %v5007_v50  ;;  %v6020_v47 = vld [vmem:[%s5466_s28 + $0xc0] sm:$0xff] }
  0x68   : > { %4146 = vmatmul.mubr.f32.gmra.mrb[28].mxu1 %v5822_v53  ;;  %v5984_v53 = vld [vmem:[%s5466_s28 + $0x16a] sm:$0xff]  ;;  %6850 = vst [vmem:[#allocation31_spill] sm:$0xff] %v6020_v47 }
  0x69   : > { %4522 = vmatmul.mubr.f32.gmra.mrb[12].mxu0 %v5826_v55  ;;  %4148 = vmatprep.mubr.f32.mxu1 %v5829_v56  ;;  %v3277_v56 = vld [vmem:[%s6779_s1 + $0x168] sm:$0xff] }
  0x6a   : > { %4524 = vmatprep.mubr.f32.mxu0 %v5832_v57  ;;  %5010 = vmatpush3.bf16.msra.mxu0 %v5007_v50  ;;  %v4863_v50 = vpack.c.bf16 %v3269_v33, %v3268_v32  ;;  %v5937_v32 = vld [vmem:[%s5466_s28 + $0x60] sm:$0xff]  ;;  %v4879_v31 = vpack.c.bf16 %v3277_v56, %v3276_v37  ;;  %v6000_v37 = vld [vmem:[%s5466_s28 + $0x172] sm:$0xff]  ;;  %v6003_v56 = vld [vmem:[%s5466_s28 + $0xa8] sm:$0xff] }
  0x6b   : > { %5012 = vmatprep.subr.bf16.mxu0 %v5011_v58  ;;  %6842 = vst [vmem:[#allocation23_spill] sm:$0xff] %v5937_v32  ;;  %v5940_v33 = vld [vmem:[%s5466_s28 + $0x13a] sm:$0xff]  ;;  %6848 = vst [vmem:[#allocation29_spill] sm:$0xff] %v6003_v56 }
  0x6c   : > { %4149 = vmatmul.mubr.f32.gmra.mrb[30].mxu1 %v5844_v63 }
  0x6d   : > { %4525 = vmatmul.mubr.f32.gmra.mrb[14].mxu0 %v5848_v0  ;;  %4183 = vmatprep.mubr.f32.mxu1 %v209_v1 }
  0x6e   : > { %4527 = vmatprep.mubr.f32.mxu0 %v5852_v6  ;;  %5014 = vmatpush3.bf16.msra.mxu0 %v5011_v58  ;;  %v5912_v58 = vld [vmem:[%s5466_s28 + $0x112] sm:$0xff] }
  0x6f   : > { %5016 = vmatprep.subr.bf16.mxu0 %v5854_v8 }
  0x70   : > { %4184 = vmatmul.mubr.f32.vlgmr.msra.gmra.mrb[0].mxu1 %v210_v16  ;;  %v5930_v16 = vld [vmem:[%s5466_s28 + $0x50] sm:$0xff] }
  0x71   : > { %4528 = vmatmul.mubr.f32.gmra.mrb[16].mxu0 %v5867_v18  ;;  %4858 = vmatpush3.bf16.msra.mxu1 %v5687_v2  ;;  %v3270_v2 = vld [vmem:[%s6779_s1 + $0x130] sm:$0xff]  ;;  %6841 = vst [vmem:[#allocation22_spill] sm:$0xff] %v5930_v16 }
  0x72   : > { %4186 = vmatprep.mubr.f32.mxu1 %v5870_v24  ;;  %4530 = vmatprep.mubr.f32.mxu0 %v5873_v25  ;;  %v4867_v1 = vpack.c.bf16 %v3271_v51, %v3270_v2  ;;  %v4871_v2 = vpack.c.bf16 %v3273_v15, %v3272_v9  ;;  %v3274_v51 = vld [vmem:[%s6779_s1 + $0x150] sm:$0xff]  ;;  %v5956_v9 = vld [vmem:[%s5466_s28 + $0x142] sm:$0xff]  ;;  %v5959_v15 = vld [vmem:[%s5466_s28 + $0x78] sm:$0xff] }
  0x73   : > { %4860 = vmatprep.subr.bf16.mxu1 %v4859_v26  ;;  %6844 = vst [vmem:[#allocation25_spill] sm:$0xff] %v5959_v15  ;;  %v4875_v63 = vpack.c.bf16 %v3275_v49, %v3274_v51  ;;  %v5978_v49 = vld [vmem:[%s5466_s28 + $0x15a] sm:$0xff]  ;;  %v5981_v51 = vld [vmem:[%s5466_s28 + $0x90] sm:$0xff] }
  0x74   : > { %4187 = vmatmul.mubr.f32.gmra.mrb[2].mxu1 %v5885_v34  ;;  %6846 = vst [vmem:[#allocation27_spill] sm:$0xff] %v5981_v51 }
  0x75   : > { %4531 = vmatmul.mubr.f32.gmra.mrb[18].mxu0 %v5890_v41  ;;  %4189 = vmatprep.mubr.f32.mxu1 %v5893_v42 }
  0x76   : > { %4533 = vmatprep.mubr.f32.mxu0 %v5896_v44  ;;  %4862 = vmatpush3.bf16.msra.mxu1 %v4859_v26  ;;  %v5934_v26 = vld [vmem:[%s5466_s28 + $0x12a] sm:$0xff] }
  0x77   : > { %4864 = vmatprep.subr.bf16.mxu1 %v4863_v50 }
  0x78   : > { %4190 = vmatmul.mubr.f32.gmra.mrb[4].mxu1 %v5908_v52 }
  0x79   : > { %4534 = vmatmul.mubr.f32.gmra.mrb[20].mxu0 %v5912_v58  ;;  %4192 = vmatprep.mubr.f32.mxu1 %v5915_v59 }
  0x7a   : > { %4536 = vmatprep.mubr.f32.mxu0 %v5918_v60  ;;  %4866 = vmatpush3.bf16.msra.mxu1 %v4863_v50  ;;  %v5952_v50 = vld [vmem:[%s5466_s28 + $0x68] sm:$0xff] }
  0x7b   : > { %4868 = vmatprep.subr.bf16.mxu1 %v4867_v1  ;;  %6843 = vst [vmem:[#allocation24_spill] sm:$0xff] %v5952_v50 }
  0x7c   : > { %4193 = vmatmul.mubr.f32.gmra.mrb[6].mxu1 %v5930_v16 }
  0x7d   : > { %4537 = vmatmul.mubr.f32.gmra.mrb[22].mxu0 %v5934_v26  ;;  %4195 = vmatprep.mubr.f32.mxu1 %v5937_v32 }
  0x7e   : > { %4539 = vmatprep.mubr.f32.mxu0 %v5940_v33  ;;  %4870 = vmatpush3.bf16.msra.mxu1 %v4867_v1  ;;  %v5974_v1 = vld [vmem:[%s5466_s28 + $0x80] sm:$0xff] }
  0x7f   : > { %4872 = vmatprep.subr.bf16.mxu1 %v4871_v2  ;;  %6845 = vst [vmem:[#allocation26_spill] sm:$0xff] %v5974_v1 }
  0x80   : > { %4196 = vmatmul.mubr.f32.gmra.mrb[8].mxu1 %v5952_v50 }
  0x81   : > { %4540 = vmatmul.mubr.f32.gmra.mrb[24].mxu0 %v5956_v9  ;;  %4198 = vmatprep.mubr.f32.mxu1 %v5959_v15 }
  0x82   : > { %4542 = vmatprep.mubr.f32.mxu0 %v5962_v43  ;;  %4874 = vmatpush3.bf16.msra.mxu1 %v4871_v2  ;;  %v5996_v2 = vld [vmem:[%s5466_s28 + $0x98] sm:$0xff] }
  0x83   : > { %4876 = vmatprep.subr.bf16.mxu1 %v4875_v63  ;;  %6847 = vst [vmem:[#allocation28_spill] sm:$0xff] %v5996_v2 }
  0x84   : > { %4199 = vmatmul.mubr.f32.gmra.mrb[10].mxu1 %v5974_v1 }
  0x85   : > { %4543 = vmatmul.mubr.f32.gmra.mrb[26].mxu0 %v5978_v49  ;;  %4201 = vmatprep.mubr.f32.mxu1 %v5981_v51 }
  0x86   : > { %4545 = vmatprep.mubr.f32.mxu0 %v5984_v53  ;;  %4878 = vmatpush3.bf16.msra.mxu1 %v4875_v63  ;;  %v6016_v63 = vld [vmem:[%s5466_s28 + $0xb0] sm:$0xff] }
  0x87   : > { %4880 = vmatprep.subr.bf16.mxu1 %v4879_v31  ;;  %6849 = vst [vmem:[#allocation30_spill] sm:$0xff] %v6016_v63 }
  0x88   : > { %4202 = vmatmul.mubr.f32.gmra.mrb[12].mxu1 %v5996_v2 }
  0x89   : > { %4546 = vmatmul.mubr.f32.gmra.mrb[28].mxu0 %v6000_v37  ;;  %4204 = vmatprep.mubr.f32.mxu1 %v6003_v56 }
  0x8a   : > { %4548 = vmatprep.mubr.f32.mxu0 %v3406_v23  ;;  %4882 = vmatpush3.bf16.msra.mxu1 %v4879_v31  ;;  %v6033_v23 = vld [vmem:[%s5466_s28 + $0xc8] sm:$0xff]  ;;  %v5019_v31 = vpack.c.bf16 %v3507_v12, %v3506_v27  ;;  %v6055_v12 = vld [vmem:[%s5466_s28 + $0xf0] sm:$0xff] }
  0x8b   : > { %4884 = vmatprep.subr.bf16.mxu1 %v4883_v39  ;;  %6851 = vst [vmem:[#allocation32_spill] sm:$0xff] %v6033_v23 }
  0x8c   : > { %4205 = vmatmul.mubr.f32.gmra.mrb[14].mxu1 %v6016_v63 }
  0x8d   : > { %4549 = vmatmul.mubr.f32.gmra.mrb[30].mxu0 %v3407_v45  ;;  %4207 = vmatprep.mubr.f32.mxu1 %v6020_v47  ;;  %v3509_v45 = vld [vmem:[%s6779_s1 + $0x3a8] sm:$0xff] }
  0x8e   : > { %4583 = vmatprep.mubr.f32.mxu0 %v5893_v42  ;;  %4886 = vmatpush3.bf16.msra.mxu1 %v4883_v39  ;;  %v6050_v39 = vld [vmem:[%s5466_s28 + $0xe0] sm:$0xff]  ;;  %v5023_v27 = vpack.c.bf16 %v3509_v45, %v3508_v36  ;;  %v6071_v36 = vld [vmem:[%s5466_s28 + $0x108] sm:$0xff] }
  0x8f   : > { %4888 = vmatprep.subr.bf16.mxu1 %v6022_v29  ;;  %v757_v42 = vld [vmem:[%s5466_s28 + $0xa] sm:$0xff] }
  0x90   : > { %4208 = vmatmul.mubr.f32.gmra.mrb[16].mxu1 %v6033_v23 }
  0x91   : > { %4584 = vmatmul.mubr.f32.vlgmr.msra.gmra.mrb[0].mxu0 %v5908_v52  ;;  %4210 = vmatprep.mubr.f32.mxu1 %v6037_v17  ;;  %v3510_v52 = vld [vmem:[%s6779_s1 + $0x3b0] sm:$0xff] }
  0x92   : > { %5018 = vmatpush3.bf16.msra.mxu0 %v5854_v8  ;;  %4586 = vmatprep.mubr.f32.mxu0 %v5915_v59  ;;  %v6067_v8 = vld [vmem:[%s5466_s28 + $0xf8] sm:$0xff]  ;;  %v5027_v45 = vpack.c.bf16 %v3511_v21, %v3510_v52  ;;  %v3512_v59 = vld [vmem:[%s6779_s1 + $0x3c0] sm:$0xff] }
  0x93   : > { %5020 = vmatprep.subr.bf16.mxu0 %v5019_v31  ;;  %v6087_v21 = vld [vmem:[%s5466_s28 + $0x120] sm:$0xff] }
  0x94   : > { %4211 = vmatmul.mubr.f32.gmra.mrb[18].mxu1 %v6050_v39 }
  0x95   : > { %4587 = vmatmul.mubr.f32.gmra.mrb[2].mxu0 %v5930_v16  ;;  %4213 = vmatprep.mubr.f32.mxu1 %v6055_v12  ;;  %v3513_v16 = vld [vmem:[%s6779_s1 + $0x3c8] sm:$0xff] }
  0x96   : > { %4589 = vmatprep.mubr.f32.mxu0 %v5937_v32  ;;  %5022 = vmatpush3.bf16.msra.mxu0 %v5019_v31  ;;  %v6083_v31 = vld [vmem:[%s5466_s28 + $0x110] sm:$0xff]  ;;  %v5031_v52 = vpack.c.bf16 %v3513_v16, %v3512_v59  ;;  %v6103_v59 = vld [vmem:[%s5466_s28 + $0x138] sm:$0xff] }
  0x97   : > { %5024 = vmatprep.subr.bf16.mxu0 %v5023_v27  ;;  %v3514_v32 = vld [vmem:[%s6779_s1 + $0x3d0] sm:$0xff] }
  0x98   : > { %4214 = vmatmul.mubr.f32.gmra.mrb[20].mxu1 %v6067_v8 }
  0x99   : > { %4590 = vmatmul.mubr.f32.gmra.mrb[4].mxu0 %v5952_v50  ;;  %4216 = vmatprep.mubr.f32.mxu1 %v6071_v36  ;;  %v3515_v50 = vld [vmem:[%s6779_s1 + $0x3d8] sm:$0xff] }
  0x9a   : > { %4592 = vmatprep.mubr.f32.mxu0 %v5959_v15  ;;  %5026 = vmatpush3.bf16.msra.mxu0 %v5023_v27  ;;  %v6099_v15 = vld [vmem:[%s5466_s28 + $0x128] sm:$0xff]  ;;  %v5035_v16 = vpack.c.bf16 %v3515_v50, %v3514_v32  ;;  %v3516_v27 = vld [vmem:[%s6779_s1 + $0x3e0] sm:$0xff]  ;;  %v6119_v32 = vld [vmem:[%s5466_s28 + $0x150] sm:$0xff] }
  0x9b   : > { %5028 = vmatprep.subr.bf16.mxu0 %v5027_v45 }
  0x9c   : > { %4217 = vmatmul.mubr.f32.gmra.mrb[22].mxu1 %v6083_v31 }
  0x9d   : > { %4593 = vmatmul.mubr.f32.gmra.mrb[6].mxu0 %v5974_v1  ;;  %4219 = vmatprep.mubr.f32.mxu1 %v6087_v21  ;;  %v3517_v1 = vld [vmem:[%s6779_s1 + $0x3e8] sm:$0xff] }
  0x9e   : > { %4595 = vmatprep.mubr.f32.mxu0 %v5981_v51  ;;  %5030 = vmatpush3.bf16.msra.mxu0 %v5027_v45  ;;  %v6115_v51 = vld [vmem:[%s5466_s28 + $0x140] sm:$0xff]  ;;  %v5039_v50 = vpack.c.bf16 %v3517_v1, %v3516_v27  ;;  %v3518_v45 = vld [vmem:[%s6779_s1 + $0x3f0] sm:$0xff]  ;;  %v6135_v1 = vld [vmem:[%s5466_s28 + $0x168] sm:$0xff] }
  0x9f   : > { %5032 = vmatprep.subr.bf16.mxu0 %v5031_v52  ;;  %v3552_v27 = vld [vmem:[%s6779_s1 + $0x400] sm:$0xff] }
  0xa0   : > { %4220 = vmatmul.mubr.f32.gmra.mrb[24].mxu1 %v6099_v15 }
  0xa1   : > { %4596 = vmatmul.mubr.f32.gmra.mrb[8].mxu0 %v5996_v2  ;;  %4222 = vmatprep.mubr.f32.mxu1 %v6103_v59  ;;  %v3519_v2 = vld [vmem:[%s6779_s1 + $0x3f8] sm:$0xff] }
  0xa2   : > { %4598 = vmatprep.mubr.f32.mxu0 %v6003_v56  ;;  %5034 = vmatpush3.bf16.msra.mxu0 %v5031_v52  ;;  %v6131_v56 = vld [vmem:[%s5466_s28 + $0x158] sm:$0xff]  ;;  %v5043_v52 = vpack.c.bf16 %v3519_v2, %v3518_v45  ;;  %v756_v2 = vld [vmem:[%s5466_s28 + $0x2] sm:$0xff]  ;;  %v3314_v45 = vld [vmem:[%s6779_s1 + $0x190] sm:$0xff] }
  0xa3   : > { %5036 = vmatprep.subr.bf16.mxu0 %v5035_v16 }
  0xa4   : > { %4223 = vmatmul.mubr.f32.gmra.mrb[26].mxu1 %v6115_v51 }
  0xa5   : > { %4599 = vmatmul.mubr.f32.gmra.mrb[10].mxu0 %v6016_v63  ;;  %4225 = vmatprep.mubr.f32.mxu1 %v6119_v32  ;;  %v3553_v63 = vld [vmem:[%s6779_s1 + $0x408] sm:$0xff] }
  0xa6   : > { %4601 = vmatprep.mubr.f32.mxu0 %v6020_v47  ;;  %5038 = vmatpush3.bf16.msra.mxu0 %v5035_v16  ;;  %v6147_v47 = vld [vmem:[%s5466_s28 + $0x170] sm:$0xff]  ;;  %v6151_v16 = vpack.c.bf16 %v3553_v63, %v3552_v27  ;;  %v3316_v63 = vld [vmem:[%s6779_s1 + $0x1a0] sm:$0xff]  ;;  %v3317_v27 = vld [vmem:[%s6779_s1 + $0x1a8] sm:$0xff] }
  0xa7   : > { %5040 = vmatprep.subr.bf16.mxu0 %v5039_v50 }
  0xa8   : > { %4226 = vmatmul.mubr.f32.gmra.mrb[28].mxu1 %v6131_v56 }
  0xa9   : > { %4602 = vmatmul.mubr.f32.gmra.mrb[12].mxu0 %v6033_v23  ;;  %4228 = vmatprep.mubr.f32.mxu1 %v6135_v1  ;;  %v3315_v23 = vld [vmem:[%s6779_s1 + $0x198] sm:$0xff] }
  0xaa   : > { %4604 = vmatprep.mubr.f32.mxu0 %v6037_v17  ;;  %5042 = vmatpush3.bf16.msra.mxu0 %v5039_v50  ;;  %v4891_v50 = vpack.c.bf16 %v3315_v23, %v3314_v45  ;;  %v4895_v23 = vpack.c.bf16 %v3317_v27, %v3316_v63  ;;  %v3325_v45 = vld [vmem:[%s6779_s1 + $0x1e8] sm:$0xff]  ;;  %v3327_v63 = vld [vmem:[%s6779_s1 + $0x1f8] sm:$0xff] }
  0xab   : > { %5044 = vmatprep.subr.bf16.mxu0 %v5043_v52  ;;  %v3454_v27 = vld [vmem:[%s5466_s28 + $0x198] sm:$0xff] }
  0xac   : > { %4229 = vmatmul.mubr.f32.gmra.mrb[30].mxu1 %v6147_v47 }
  0xad   : > { %4605 = vmatmul.mubr.f32.gmra.mrb[14].mxu0 %v6050_v39  ;;  %4263 = vmatprep.mubr.f32.mxu1 %v756_v2  ;;  %v3323_v2 = vld [vmem:[%s6779_s1 + $0x1d8] sm:$0xff] }
  0xae   : > { %4607 = vmatprep.mubr.f32.mxu0 %v6055_v12  ;;  %5046 = vmatpush3.bf16.msra.mxu0 %v5043_v52  ;;  %v3319_v52 = vld [vmem:[%s6779_s1 + $0x1b8] sm:$0xff] }
  0xaf   : > { %5048 = vmatprep.subr.bf16.mxu0 %v6151_v16 }
  0xb0   : > { %4264 = vmatmul.mubr.f32.vlgmr.msra.gmra.mrb[0].mxu1 %v757_v42  ;;  %v3318_v42 = vld [vmem:[%s6779_s1 + $0x1b0] sm:$0xff] }
  0xb1   : > { %4608 = vmatmul.mubr.f32.gmra.mrb[16].mxu0 %v6067_v8  ;;  %4890 = vmatpush3.bf16.msra.mxu1 %v6022_v29  ;;  %v3321_v29 = vld [vmem:[%s6779_s1 + $0x1c8] sm:$0xff] }
  0xb2   : > { %4266 = vmatprep.mubr.f32.mxu1 %v5679_v62  ;;  %4610 = vmatprep.mubr.f32.mxu0 %v6071_v36  ;;  %v4899_v62 = vpack.c.bf16 %v3319_v52, %v3318_v42  ;;  %v3554_v42 = vld [vmem:[%s6779_s1 + $0x410] sm:$0xff] }
  0xb3   : > { %4892 = vmatprep.subr.bf16.mxu1 %v4891_v50  ;;  %v3474_v52 = vld [vmem:[%s5466_s28 + $0x49] sm:$0xff] }
  0xb4   : > { %4267 = vmatmul.mubr.f32.gmra.mrb[2].mxu1 %v5693_v3  ;;  %v3320_v3 = vld [vmem:[%s6779_s1 + $0x1c0] sm:$0xff] }
  0xb5   : > { %4611 = vmatmul.mubr.f32.gmra.mrb[18].mxu0 %v6083_v31  ;;  %4269 = vmatprep.mubr.f32.mxu1 %v5699_v5  ;;  %v4903_v5 = vpack.c.bf16 %v3321_v29, %v3320_v3  ;;  %v3557_v3 = vld [vmem:[%s6779_s1 + $0x428] sm:$0xff] }
  0xb6   : > { %4613 = vmatprep.mubr.f32.mxu0 %v6087_v21  ;;  %4894 = vmatpush3.bf16.msra.mxu1 %v4891_v50  ;;  %v3326_v50 = vld [vmem:[%s6779_s1 + $0x1f0] sm:$0xff]  ;;  %v3476_v29 = vld [vmem:[%s5466_s28 + $0x61] sm:$0xff] }
  0xb7   : > { %4896 = vmatprep.subr.bf16.mxu1 %v4895_v23 }
  0xb8   : > { %4270 = vmatmul.mubr.f32.gmra.mrb[4].mxu1 %v5716_v11  ;;  %v3322_v11 = vld [vmem:[%s6779_s1 + $0x1d0] sm:$0xff] }
  0xb9   : > { %4614 = vmatmul.mubr.f32.gmra.mrb[20].mxu0 %v6099_v15  ;;  %4272 = vmatprep.mubr.f32.mxu1 %v5722_v14  ;;  %v4907_v14 = vpack.c.bf16 %v3323_v2, %v3322_v11  ;;  %v3559_v11 = vld [vmem:[%s6779_s1 + $0x438] sm:$0xff] }
  0xba   : > { %4616 = vmatprep.mubr.f32.mxu0 %v6103_v59  ;;  %4898 = vmatpush3.bf16.msra.mxu1 %v4895_v23  ;;  %v3455_v23 = vld [vmem:[%s5466_s28 + $0x1a0] sm:$0xff] }
  0xbb   : > { %4900 = vmatprep.subr.bf16.mxu1 %v4899_v62 }
  0xbc   : > { %4273 = vmatmul.mubr.f32.gmra.mrb[6].mxu1 %v5738_v20  ;;  %v3324_v20 = vld [vmem:[%s6779_s1 + $0x1e0] sm:$0xff] }
  0xbd   : > { %4617 = vmatmul.mubr.f32.gmra.mrb[22].mxu0 %v6115_v51  ;;  %4275 = vmatprep.mubr.f32.mxu1 %v5744_v22  ;;  %v6215_v22 = vld [vmem:[%s5466_s28 + $0x180] sm:$0xff] }
  0xbe   : > { %4619 = vmatprep.mubr.f32.mxu0 %v6119_v32  ;;  %4902 = vmatpush3.bf16.msra.mxu1 %v4899_v62 }
  0xbf   : > { %4904 = vmatprep.subr.bf16.mxu1 %v4903_v5 }
  0xc0   : > { %4276 = vmatmul.mubr.f32.gmra.mrb[8].mxu1 %v5760_v28  ;;  %v4911_v28 = vpack.c.bf16 %v3325_v45, %v3324_v20  ;;  %v3563_v45 = vld [vmem:[%s6779_s1 + $0x458] sm:$0xff] }
  0xc1   : > { %4620 = vmatmul.mubr.f32.gmra.mrb[24].mxu0 %v6131_v56  ;;  %4278 = vmatprep.mubr.f32.mxu1 %v5766_v30  ;;  %v6228_v30 = vld [vmem:[%s5466_s28 + $0x188] sm:$0xff] }
  0xc2   : > { %4622 = vmatprep.mubr.f32.mxu0 %v6135_v1  ;;  %4906 = vmatpush3.bf16.msra.mxu1 %v4903_v5  ;;  %v3558_v5 = vld [vmem:[%s6779_s1 + $0x430] sm:$0xff] }
  0xc3   : > { %4908 = vmatprep.subr.bf16.mxu1 %v4907_v14  ;;  %v5059_v2 = vpack.c.bf16 %v3559_v11, %v3558_v5  ;;  %v6352_v5 = vld [vmem:[%s5466_s28 + $0x189] sm:$0xff]  ;;  %v3502_v11 = vld [vmem:[%s5466_s28 + $0x199] sm:$0xff] }
  0xc4   : > { %4279 = vmatmul.mubr.f32.gmra.mrb[10].mxu1 %v5782_v38  ;;  %v4915_v38 = vpack.c.bf16 %v3327_v63, %v3326_v50  ;;  %v3565_v63 = vld [vmem:[%s6779_s1 + $0x468] sm:$0xff] }
  0xc5   : > { %4623 = vmatmul.mubr.f32.gmra.mrb[26].mxu0 %v6147_v47  ;;  %4281 = vmatprep.mubr.f32.mxu1 %v5788_v40  ;;  %v3472_v40 = vld [vmem:[%s5466_s28 + $0x31] sm:$0xff] }
  0xc6   : > { %4625 = vmatprep.mubr.f32.mxu0 %v6215_v22  ;;  %4910 = vmatpush3.bf16.msra.mxu1 %v4907_v14  ;;  %v3561_v14 = vld [vmem:[%s6779_s1 + $0x448] sm:$0xff] }
  0xc7   : > { %4912 = vmatprep.subr.bf16.mxu1 %v4911_v28 }
  0xc8   : > { %4282 = vmatmul.mubr.f32.gmra.mrb[12].mxu1 %v5804_v46  ;;  %v3555_v46 = vld [vmem:[%s6779_s1 + $0x418] sm:$0xff] }
  0xc9   : > { %4626 = vmatmul.mubr.f32.gmra.mrb[28].mxu0 %v6228_v30  ;;  %4284 = vmatprep.mubr.f32.mxu1 %v5810_v48  ;;  %v3473_v48 = vld [vmem:[%s5466_s28 + $0x39] sm:$0xff]  ;;  %v5051_v62 = vpack.c.bf16 %v3555_v46, %v3554_v42 }
  0xca   : > { %4628 = vmatprep.mubr.f32.mxu0 %v3454_v27  ;;  %4914 = vmatpush3.bf16.msra.mxu1 %v4911_v28  ;;  %v3482_v28 = vld [vmem:[%s5466_s28 + $0xa9] sm:$0xff]  ;;  %v3567_v27 = vld [vmem:[%s6779_s1 + $0x478] sm:$0xff]  ;;  %v6870_v46 = vld [vmem:[#allocation26_spill] sm:$0xff] }
  0xcb   : > { %4916 = vmatprep.subr.bf16.mxu1 %v4915_v38  ;;  %v6869_v42 = vld [vmem:[#allocation5_spill] sm:$0xff] }
  0xcc   : > { %4285 = vmatmul.mubr.f32.gmra.mrb[14].mxu1 %v5826_v55  ;;  %v3556_v55 = vld [vmem:[%s6779_s1 + $0x420] sm:$0xff] }
  0xcd   : > { %4629 = vmatmul.mubr.f32.gmra.mrb[30].mxu0 %v3455_v23  ;;  %4287 = vmatprep.mubr.f32.mxu1 %v5832_v57  ;;  %v3475_v57 = vld [vmem:[%s5466_s28 + $0x51] sm:$0xff] }
  0xce   : > { %4663 = vmatprep.mubr.f32.mxu0 %v3472_v40  ;;  %4918 = vmatpush3.bf16.msra.mxu1 %v4915_v38  ;;  %v6866_v38 = vld [vmem:[#allocation14_spill] sm:$0xff]  ;;  %v6867_v23 = vld [vmem:[#allocation25_spill] sm:$0xff]  ;;  %v6868_v40 = vld [vmem:[#allocation15_spill] sm:$0xff] }
  0xcf   : > { %5079 = vmatprep.subr.bf16.mxu1 %v5419_v7 }
  0xd0   : > { %4288 = vmatmul.mubr.f32.gmra.mrb[16].mxu1 %v5848_v0  ;;  %v5055_v0 = vpack.c.bf16 %v3557_v3, %v3556_v55  ;;  %v6344_v55 = vld [vmem:[%s5466_s28 + $0x181] sm:$0xff] }
  0xd1   : > { %4664 = vmatmul.mubr.f32.vlgmr.msra.gmra.mrb[0].mxu0 %v3473_v48  ;;  %4290 = vmatprep.mubr.f32.mxu1 %v5852_v6  ;;  %v3477_v6 = vld [vmem:[%s5466_s28 + $0x69] sm:$0xff]  ;;  %v6874_v3 = vld [vmem:[#allocation6_spill] sm:$0xff] }
  0xd2   : > { %5050 = vmatpush3.bf16.msra.mxu0 %v6151_v16  ;;  %4666 = vmatprep.mubr.f32.mxu0 %v3474_v52  ;;  %v3478_v16 = vld [vmem:[%s5466_s28 + $0x79] sm:$0xff]  ;;  %v6871_v48 = vld [vmem:[#allocation16_spill] sm:$0xff]  ;;  %v6872_v52 = vld [vmem:[#allocation27_spill] sm:$0xff] }
  0xd3   : > { %5052 = vmatprep.subr.bf16.mxu0 %v5051_v62 }
  0xd4   : > { %4291 = vmatmul.mubr.f32.gmra.mrb[18].mxu1 %v5867_v18  ;;  %v3560_v18 = vld [vmem:[%s6779_s1 + $0x440] sm:$0xff] }
  0xd5   : > { %4667 = vmatmul.mubr.f32.gmra.mrb[2].mxu0 %v3475_v57  ;;  %4293 = vmatprep.mubr.f32.mxu1 %v5873_v25  ;;  %v3479_v25 = vld [vmem:[%s5466_s28 + $0x81] sm:$0xff]  ;;  %v5063_v20 = vpack.c.bf16 %v3561_v14, %v3560_v18  ;;  %v6875_v57 = vld [vmem:[#allocation28_spill] sm:$0xff] }
  0xd6   : > { %4669 = vmatprep.mubr.f32.mxu0 %v3476_v29  ;;  %5054 = vmatpush3.bf16.msra.mxu0 %v5051_v62  ;;  %v6873_v62 = vld [vmem:[#allocation17_spill] sm:$0xff]  ;;  %v6876_v29 = vld [vmem:[#allocation18_spill] sm:$0xff] }
  0xd7   : > { %5056 = vmatprep.subr.bf16.mxu0 %v5055_v0  ;;  %v3503_v18 = vld [vmem:[%s5466_s28 + $0x1a1] sm:$0xff]  ;;  %v3520_v14 = vld [vmem:[%s5466_s28 + $0x32] sm:$0xff] }
  0xd8   : > { %4294 = vmatmul.mubr.f32.gmra.mrb[20].mxu1 %v5890_v41  ;;  %v3562_v41 = vld [vmem:[%s6779_s1 + $0x450] sm:$0xff] }
  0xd9   : > { %4670 = vmatmul.mubr.f32.gmra.mrb[4].mxu0 %v3477_v6  ;;  %4296 = vmatprep.mubr.f32.mxu1 %v5896_v44  ;;  %v3481_v44 = vld [vmem:[%s5466_s28 + $0x99] sm:$0xff]  ;;  %v5067_v50 = vpack.c.bf16 %v3563_v45, %v3562_v41  ;;  %v6878_v6 = vld [vmem:[#allocation7_spill] sm:$0xff] }
  0xda   : > { %4672 = vmatprep.mubr.f32.mxu0 %v3478_v16  ;;  %5058 = vmatpush3.bf16.msra.mxu0 %v5055_v0  ;;  %v6877_v0 = vld [vmem:[#allocation29_spill] sm:$0xff]  ;;  %v6879_v16 = vld [vmem:[#allocation30_spill] sm:$0xff]  ;;  %v3522_v45 = vld [vmem:[%s5466_s28 + $0x4a] sm:$0xff] }
  0xdb   : > { %5060 = vmatprep.subr.bf16.mxu0 %v5059_v2  ;;  %v3521_v41 = vld [vmem:[%s5466_s28 + $0x3a] sm:$0xff] }
  0xdc   : > { %4297 = vmatmul.mubr.f32.gmra.mrb[22].mxu1 %v5912_v58  ;;  %v3564_v58 = vld [vmem:[%s6779_s1 + $0x460] sm:$0xff] }
  0xdd   : > { %4673 = vmatmul.mubr.f32.gmra.mrb[6].mxu0 %v3479_v25  ;;  %4299 = vmatprep.mubr.f32.mxu1 %v5918_v60  ;;  %v5071_v60 = vpack.c.bf16 %v3565_v63, %v3564_v58  ;;  %v6881_v25 = vld [vmem:[#allocation8_spill] sm:$0xff]  ;;  %v3537_v58 = vld [vmem:[%s5466_s28 + $0xfa] sm:$0xff] }
  0xde   : > { %4675 = vmatprep.mubr.f32.mxu0 %v5628_v35  ;;  %5062 = vmatpush3.bf16.msra.mxu0 %v5059_v2  ;;  %v3483_v35 = vld [vmem:[%s5466_s28 + $0xb1] sm:$0xff]  ;;  %v6880_v2 = vld [vmem:[#allocation31_spill] sm:$0xff]  ;;  %v3347_v63 = vld [vmem:[%s5466_s28 + $0xf9] sm:$0xff] }
  0xdf   : > { %5064 = vmatprep.subr.bf16.mxu0 %v5063_v20 }
  0xe0   : > { %4300 = vmatmul.mubr.f32.gmra.mrb[24].mxu1 %v5934_v26  ;;  %v3566_v26 = vld [vmem:[%s6779_s1 + $0x470] sm:$0xff] }
  0xe1   : > { %4676 = vmatmul.mubr.f32.gmra.mrb[8].mxu0 %v3481_v44  ;;  %4302 = vmatprep.mubr.f32.mxu1 %v5940_v33  ;;  %v5075_v33 = vpack.c.bf16 %v3567_v27, %v3566_v26  ;;  %v3523_v44 = vld [vmem:[%s5466_s28 + $0x52] sm:$0xff]  ;;  %v3541_v27 = vld [vmem:[%s5466_s28 + $0x12a] sm:$0xff] }
  0xe2   : > { %4678 = vmatprep.mubr.f32.mxu0 %v3482_v28  ;;  %5066 = vmatpush3.bf16.msra.mxu0 %v5063_v20  ;;  %v6882_v20 = vld [vmem:[#allocation32_spill] sm:$0xff]  ;;  %v3524_v28 = vld [vmem:[%s5466_s28 + $0x62] sm:$0xff] }
  0xe3   : > { %5068 = vmatprep.subr.bf16.mxu0 %v5067_v50  ;;  %v3349_v26 = vld [vmem:[%s5466_s28 + $0x111] sm:$0xff] }
  0xe4   : > { %4303 = vmatmul.mubr.f32.gmra.mrb[26].mxu1 %v5956_v9  ;;  %v6863_v9 = vld [vmem:[#allocation13_spill] sm:$0xff] }
  0xe5   : > { %4679 = vmatmul.mubr.f32.gmra.mrb[10].mxu0 %v3483_v35  ;;  %4305 = vmatprep.mubr.f32.mxu1 %v5962_v43  ;;  %v6852_v43 = vld [vmem:[#allocation19_spill] sm:$0xff]  ;;  %v3539_v35 = vld [vmem:[%s5466_s28 + $0x112] sm:$0xff] }
  0xe6   : > { %4681 = vmatprep.mubr.f32.mxu0 %v5660_v54  ;;  %5070 = vmatpush3.bf16.msra.mxu0 %v5067_v50  ;;  %v6853_v54 = vld [vmem:[#allocation9_spill] sm:$0xff] }
  0xe7   : > { %5072 = vmatprep.subr.bf16.mxu0 %v5071_v60  ;;  %v3526_v50 = vld [vmem:[%s5466_s28 + $0x7a] sm:$0xff] }
  0xe8   : > { %4306 = vmatmul.mubr.f32.gmra.mrb[28].mxu1 %v5978_v49  ;;  %v6864_v49 = vld [vmem:[#allocation4_spill] sm:$0xff] }
  0xe9   : > { %4682 = vmatmul.mubr.f32.gmra.mrb[12].mxu0 %v5676_v61  ;;  %4308 = vmatprep.mubr.f32.mxu1 %v5984_v53  ;;  %v6854_v61 = vld [vmem:[#allocation2_spill] sm:$0xff]  ;;  %v6857_v53 = vld [vmem:[#allocation21_spill] sm:$0xff] }
  0xea   : > { %4684 = vmatprep.mubr.f32.mxu0 %v5696_v4  ;;  %5074 = vmatpush3.bf16.msra.mxu0 %v5071_v60  ;;  %v6855_v4 = vld [vmem:[#allocation20_spill] sm:$0xff]  ;;  %v3540_v60 = vld [vmem:[%s5466_s28 + $0x122] sm:$0xff] }
  0xeb   : > { %5076 = vmatprep.subr.bf16.mxu0 %v5075_v33 }
  0xec   : > { %4309 = vmatmul.mubr.f32.gmra.mrb[30].mxu1 %v6000_v37  ;;  %v6865_v37 = vld [vmem:[#allocation24_spill] sm:$0xff] }
  0xed   : > { %4685 = vmatmul.mubr.f32.gmra.mrb[14].mxu0 %v5712_v10  ;;  %4343 = vmatprep.mubr.f32.mxu1 %v5870_v24  ;;  %v6856_v10 = vld [vmem:[#allocation10_spill] sm:$0xff]  ;;  %v6859_v24 = vld [vmem:[#allocation3_spill] sm:$0xff] }
  0xee   : > { %4687 = vmatprep.mubr.f32.mxu0 %v5719_v13  ;;  %5078 = vmatpush3.bf16.msra.mxu0 %v5075_v33  ;;  %v6858_v13 = vld [vmem:[#allocation11_spill] sm:$0xff] }
  0xef   : > { %v3350_v33 = vld [vmem:[%s5466_s28 + $0x121] sm:$0xff] }
  0xf0   : > { %4344 = vmatmul.mubr.f32.vlgmr.msra.gmra.mrb[0].mxu1 %v5885_v34  ;;  %v6862_v34 = vld [vmem:[#allocation23_spill] sm:$0xff] }
  0xf1   : > { %4688 = vmatmul.mubr.f32.gmra.mrb[16].mxu0 %v5734_v19  ;;  %5087 = vmatpush3.bf16.msra.mxu1 %v5419_v7  ;;  %v6860_v19 = vld [vmem:[#allocation22_spill] sm:$0xff]  ;;  %v6861_v7 = vld [vmem:[#allocation12_spill] sm:$0xff] }
  0xf2   : > { %4346 = vmatprep.mubr.f32.mxu1 %v6852_v43  ;;  %4690 = vmatprep.mubr.f32.mxu0 %v6853_v54  ;;  %v3542_v43 = vld [vmem:[%s5466_s28 + $0x13a] sm:$0xff]  ;;  %v3351_v54 = vld [vmem:[%s5466_s28 + $0x129] sm:$0xff] }
  0xf3   : > { %5080 = vmatprep.subr.bf16.mxu1 %v6854_v61 }
  0xf4   : > { %4347 = vmatmul.mubr.f32.gmra.mrb[2].mxu1 %v6855_v4  ;;  %v3352_v4 = vld [vmem:[%s5466_s28 + $0x139] sm:$0xff] }
  0xf5   : > { %4691 = vmatmul.mubr.f32.gmra.mrb[18].mxu0 %v6856_v10  ;;  %4349 = vmatprep.mubr.f32.mxu1 %v6857_v53  ;;  %v3544_v10 = vld [vmem:[%s5466_s28 + $0x152] sm:$0xff]  ;;  %v3353_v53 = vld [vmem:[%s5466_s28 + $0x141] sm:$0xff] }
  0xf6   : > { %4693 = vmatprep.mubr.f32.mxu0 %v6858_v13  ;;  %5088 = vmatpush3.bf16.msra.mxu1 %v6854_v61  ;;  %v3543_v61 = vld [vmem:[%s5466_s28 + $0x142] sm:$0xff]  ;;  %v3545_v13 = vld [vmem:[%s5466_s28 + $0x15a] sm:$0xff] }
  0xf7   : > { %5081 = vmatprep.subr.bf16.mxu1 %v6859_v24 }
  0xf8   : > { %4350 = vmatmul.mubr.f32.gmra.mrb[4].mxu1 %v6860_v19  ;;  %v3546_v19 = vld [vmem:[%s5466_s28 + $0x16a] sm:$0xff] }
  0xf9   : > { %4694 = vmatmul.mubr.f32.gmra.mrb[20].mxu0 %v6861_v7  ;;  %4352 = vmatprep.mubr.f32.mxu1 %v6862_v34  ;;  %v3355_v7 = vld [vmem:[%s5466_s28 + $0x159] sm:$0xff] }
  0xfa   : > { %4696 = vmatprep.mubr.f32.mxu0 %v6863_v9  ;;  %5089 = vmatpush3.bf16.msra.mxu1 %v6859_v24  ;;  %v3354_v24 = vld [vmem:[%s5466_s28 + $0x151] sm:$0xff]  ;;  %v3356_v9 = vld [vmem:[%s5466_s28 + $0x169] sm:$0xff] }
  0xfb   : > { %5082 = vmatprep.subr.bf16.mxu1 %v6864_v49  ;;  %v3547_v34 = vld [vmem:[%s5466_s28 + $0x172] sm:$0xff] }
  0xfc   : > { %4353 = vmatmul.mubr.f32.gmra.mrb[6].mxu1 %v6865_v37  ;;  %v3357_v37 = vld [vmem:[%s5466_s28 + $0x171] sm:$0xff] }
  0xfd   : > { %4697 = vmatmul.mubr.f32.gmra.mrb[22].mxu0 %v6866_v38  ;;  %4355 = vmatprep.mubr.f32.mxu1 %v6867_v23  ;;  %v3549_v38 = vld [vmem:[%s5466_s28 + $0x18a] sm:$0xff]  ;;  %v3550_v23 = vld [vmem:[%s5466_s28 + $0x19a] sm:$0xff] }
  0xfe   : > { %4699 = vmatprep.mubr.f32.mxu0 %v6868_v40  ;;  %5090 = vmatpush3.bf16.msra.mxu1 %v6864_v49  ;;  %v3548_v49 = vld [vmem:[%s5466_s28 + $0x182] sm:$0xff] }
  0xff   : > { %5083 = vmatprep.subr.bf16.mxu1 %v6869_v42  ;;  %v3551_v40 = vld [vmem:[%s5466_s28 + $0x1a2] sm:$0xff] }
 0x100   : > { %4356 = vmatmul.mubr.f32.gmra.mrb[8].mxu1 %v6870_v46 }
 0x101   : > { %4700 = vmatmul.mubr.f32.gmra.mrb[24].mxu0 %v6871_v48  ;;  %4358 = vmatprep.mubr.f32.mxu1 %v6872_v52 }
 0x102   : > { %4702 = vmatprep.mubr.f32.mxu0 %v6873_v62  ;;  %5091 = vmatpush3.bf16.msra.mxu1 %v6869_v42 }
 0x103   : > { %5084 = vmatprep.subr.bf16.mxu1 %v6874_v3 }
 0x104   : > { %4359 = vmatmul.mubr.f32.gmra.mrb[10].mxu1 %v6875_v57 }
 0x105   : > { %4703 = vmatmul.mubr.f32.gmra.mrb[26].mxu0 %v6876_v29  ;;  %4361 = vmatprep.mubr.f32.mxu1 %v6877_v0 }
 0x106   : > { %4705 = vmatprep.mubr.f32.mxu0 %v6344_v55  ;;  %5092 = vmatpush3.bf16.msra.mxu1 %v6874_v3 }
 0x107   : > { %5085 = vmatprep.subr.bf16.mxu1 %v6878_v6 }
 0x108   : > { %4362 = vmatmul.mubr.f32.gmra.mrb[12].mxu1 %v6879_v16 }
 0x109   : > { %4706 = vmatmul.mubr.f32.gmra.mrb[28].mxu0 %v6352_v5  ;;  %4364 = vmatprep.mubr.f32.mxu1 %v6880_v2 }
 0x10a   : > { %4708 = vmatprep.mubr.f32.mxu0 %v3502_v11  ;;  %5093 = vmatpush3.bf16.msra.mxu1 %v6878_v6 }
 0x10b   : > { %5086 = vmatprep.subr.bf16.mxu1 %v6881_v25 }
 0x10c   : > { %4365 = vmatmul.mubr.f32.gmra.mrb[14].mxu1 %v6882_v20 }
 0x10d   : > { %4709 = vmatmul.mubr.f32.gmra.mrb[30].mxu0 %v3503_v18  ;;  %4367 = vmatprep.mubr.f32.mxu1 %v6037_v17  ;;  %v3525_v17 = vld [vmem:[%s5466_s28 + $0x6a] sm:$0xff] }
 0x10e   : > { %4743 = vmatprep.mubr.f32.mxu0 %v3520_v14  ;;  %5094 = vmatpush3.bf16.msra.mxu1 %v6881_v25  ;;  %v6444_v25 = vld [vmem:[%s6780_s2] ss:$0 sm:$0xff] }
 0x110   : > { %4368 = vmatmul.mubr.f32.gmra.mrb[16].mxu1 %v6050_v39  ;;  %v3527_v39 = vld [vmem:[%s5466_s28 + $0x82] sm:$0xff] }
 0x111   : > { %4744 = vmatmul.mubr.f32.vlgmr.msra.gmra.mrb[0].mxu0 %v3521_v41  ;;  %4370 = vmatprep.mubr.f32.mxu1 %v6055_v12  ;;  %v3528_v12 = vld [vmem:[%s5466_s28 + $0x92] sm:$0xff] }
 0x112   : > { %4746 = vmatprep.mubr.f32.mxu0 %v3522_v45 }
 0x114   : > { %4371 = vmatmul.mubr.f32.gmra.mrb[18].mxu1 %v6067_v8  ;;  %v3529_v8 = vld [vmem:[%s5466_s28 + $0x9a] sm:$0xff] }
 0x115   : > { %4747 = vmatmul.mubr.f32.gmra.mrb[2].mxu0 %v3523_v44  ;;  %4373 = vmatprep.mubr.f32.mxu1 %v6071_v36  ;;  %v3530_v36 = vld [vmem:[%s5466_s28 + $0xaa] sm:$0xff] }
 0x116   : > { %4749 = vmatprep.mubr.f32.mxu0 %v3524_v28 }
 0x118   : > { %4374 = vmatmul.mubr.f32.gmra.mrb[20].mxu1 %v6083_v31  ;;  %v3531_v31 = vld [vmem:[%s5466_s28 + $0xb2] sm:$0xff] }
 0x119   : > { %4750 = vmatmul.mubr.f32.gmra.mrb[4].mxu0 %v3525_v17  ;;  %4376 = vmatprep.mubr.f32.mxu1 %v6087_v21  ;;  %v3532_v21 = vld [vmem:[%s5466_s28 + $0xc2] sm:$0xff] }
 0x11a   : > { %4752 = vmatprep.mubr.f32.mxu0 %v3526_v50 }
 0x11c   : > { %4377 = vmatmul.mubr.f32.gmra.mrb[22].mxu1 %v6099_v15  ;;  %v3533_v15 = vld [vmem:[%s5466_s28 + $0xca] sm:$0xff] }
 0x11d   : > { %4753 = vmatmul.mubr.f32.gmra.mrb[6].mxu0 %v3527_v39  ;;  %4379 = vmatprep.mubr.f32.mxu1 %v6103_v59  ;;  %v3535_v59 = vld [vmem:[%s5466_s28 + $0xe2] sm:$0xff] }
 0x11e   : > { %4755 = vmatprep.mubr.f32.mxu0 %v3528_v12 }
 0x120   : > { %4380 = vmatmul.mubr.f32.gmra.mrb[24].mxu1 %v6115_v51  ;;  %v3534_v51 = vld [vmem:[%s5466_s28 + $0xda] sm:$0xff] }
 0x121   : > { %4756 = vmatmul.mubr.f32.gmra.mrb[8].mxu0 %v3529_v8  ;;  %4382 = vmatprep.mubr.f32.mxu1 %v6119_v32  ;;  %v3536_v32 = vld [vmem:[%s5466_s28 + $0xf2] sm:$0xff] }
 0x122   : > { %4758 = vmatprep.mubr.f32.mxu0 %v3530_v36 }
 0x124   : > { %4383 = vmatmul.mubr.f32.gmra.mrb[26].mxu1 %v6131_v56  ;;  %v3344_v56 = vld [vmem:[%s5466_s28 + $0xd9] sm:$0xff] }
 0x125   : > { %4759 = vmatmul.mubr.f32.gmra.mrb[10].mxu0 %v3531_v31  ;;  %4385 = vmatprep.mubr.f32.mxu1 %v6135_v1  ;;  %v3345_v1 = vld [vmem:[%s5466_s28 + $0xe1] sm:$0xff] }
 0x126   : > { %4761 = vmatprep.mubr.f32.mxu0 %v3532_v21 }
 0x128   : > { %4386 = vmatmul.mubr.f32.gmra.mrb[28].mxu1 %v6147_v47  ;;  %v3346_v47 = vld [vmem:[%s5466_s28 + $0xf1] sm:$0xff] }
 0x129   : > { %4762 = vmatmul.mubr.f32.gmra.mrb[12].mxu0 %v3533_v15  ;;  %4388 = vmatprep.mubr.f32.mxu1 %v6215_v22  ;;  %v3538_v22 = vld [vmem:[%s5466_s28 + $0x10a] sm:$0xff] }
 0x12a   : > { %4764 = vmatprep.mubr.f32.mxu0 %v3534_v51 }
 0x12c   : > { %4389 = vmatmul.mubr.f32.gmra.mrb[30].mxu1 %v6228_v30  ;;  %v3348_v30 = vld [vmem:[%s5466_s28 + $0x109] sm:$0xff] }
 0x12d   : > { %4765 = vmatmul.mubr.f32.gmra.mrb[14].mxu0 %v3535_v59  ;;  %4447 = vmatprep.mubr.f32.mxu1 %v3344_v56 }
 0x12e   : > { %4767 = vmatprep.mubr.f32.mxu0 %v3536_v32 }
 0x130   : > { %4448 = vmatmul.mubr.f32.vlgmr.msra.gmra.mrb[16].mxu1 %v3345_v1 }
 0x131   : > { %4768 = vmatmul.mubr.f32.gmra.mrb[16].mxu0 %v3537_v58  ;;  %4450 = vmatprep.mubr.f32.mxu1 %v3346_v47 }
 0x132   : > { %4770 = vmatprep.mubr.f32.mxu0 %v3538_v22 }
 0x134   : > { %4451 = vmatmul.mubr.f32.gmra.mrb[18].mxu1 %v3347_v63 }
 0x135   : > { %4771 = vmatmul.mubr.f32.gmra.mrb[18].mxu0 %v3539_v35  ;;  %4453 = vmatprep.mubr.f32.mxu1 %v3348_v30 }
 0x136   : > { %4773 = vmatprep.mubr.f32.mxu0 %v3540_v60 }
 0x138   : > { %4454 = vmatmul.mubr.f32.gmra.mrb[20].mxu1 %v3349_v26 }
 0x139   : > { %4774 = vmatmul.mubr.f32.gmra.mrb[20].mxu0 %v3541_v27  ;;  %4456 = vmatprep.mubr.f32.mxu1 %v3350_v33 }
 0x13a   : > { %4776 = vmatprep.mubr.f32.mxu0 %v3542_v43 }
 0x13c   : > { %4457 = vmatmul.mubr.f32.gmra.mrb[22].mxu1 %v3351_v54 }
 0x13d   : > { %4777 = vmatmul.mubr.f32.gmra.mrb[22].mxu0 %v3543_v61  ;;  %4459 = vmatprep.mubr.f32.mxu1 %v3352_v4 }
 0x13e   : > { %4779 = vmatprep.mubr.f32.mxu0 %v3544_v10 }
 0x140   : > { %4460 = vmatmul.mubr.f32.gmra.mrb[24].mxu1 %v3353_v53 }
 0x141   : > { %4780 = vmatmul.mubr.f32.gmra.mrb[24].mxu0 %v3545_v13  ;;  %4462 = vmatprep.mubr.f32.mxu1 %v3354_v24 }
 0x142   : > { %4782 = vmatprep.mubr.f32.mxu0 %v3546_v19 }
 0x144   : > { %4463 = vmatmul.mubr.f32.gmra.mrb[26].mxu1 %v3355_v7 }
 0x145   : > { %4783 = vmatmul.mubr.f32.gmra.mrb[26].mxu0 %v3547_v34  ;;  %4465 = vmatprep.mubr.f32.mxu1 %v3356_v9 }
 0x146   : > { %4785 = vmatprep.mubr.f32.mxu0 %v3548_v49 }
 0x148   : > { %4466 = vmatmul.mubr.f32.gmra.mrb[28].mxu1 %v3357_v37 }
 0x149   : > { %4786 = vmatmul.mubr.f32.gmra.mrb[28].mxu0 %v3549_v38  ;;  %4468 = vmatprep.mubr.f32.mxu1 %v6344_v55 }
 0x14a   : > { %4788 = vmatprep.mubr.f32.mxu0 %v3550_v23 }
 0x14c   : > { %4469 = vmatmul.mubr.f32.gmra.mrb[30].mxu1 %v6352_v5 }
 0x14d   : > { %4789 = vmatmul.mubr.f32.gmra.mrb[30].mxu0 %v3551_v40 }
 0x1c3   : > { %v4345_v42 = vpop.f32.mrb[0].mxu1 }
 0x1c4   : > { %v1178_v46 = vpop.f32.mrb[1].mxu1 }
 0x1c7   : > { %v4348_v48 = vpop.f32.mrb[2].mxu1 }
 0x1c8   : > { %v1188_v52 = vpop.f32.mrb[3].mxu1 }
 0x1cb   : > { %v4351_v62 = vpop.f32.mrb[4].mxu1 }
 0x1cc   : > { %v1198_v3 = vpop.f32.mrb[5].mxu1 }
 0x1cf   : > { %v4354_v57 = vpop.f32.mrb[6].mxu1 }
 0x1d0   : > { %v1208_v29 = vpop.f32.mrb[7].mxu1 }
 0x1d3   : > { %v4357_v0 = vpop.f32.mrb[8].mxu1 }
 0x1d4   : > { %v1218_v11 = vpop.f32.mrb[9].mxu1 }
 0x1d7   : > { %v6429_v6 = vpop.f32.mrb[10].mxu1 }
 0x1d8   : > { %v6431_v16 = vpop.f32.mrb[11].mxu1 }
 0x1db   : > { %v6433_v55 = vpop.f32.mrb[12].mxu1 }
 0x1dc   : > { %v6435_v2 = vpop.f32.mrb[13].mxu1 }
 0x1df   : > { %v6437_v5 = vpop.f32.mrb[14].mxu1 }
 0x1e0   : > { %v6439_v18 = vpop.f32.mrb[15].mxu1 }
 0x1e4   : > { %v4745_v14 = vpop.f32.mrb[0].mxu0 }
 0x1e5   : > { %v5095_v20 = vadd.f32 %v4745_v14, %v4345_v42  ;;  %v2709_v41 = vpop.f32.mrb[1].mxu0 }
 0x1e6   : > { %v5096_v45 = vadd.f32 %v2709_v41, %v1178_v46 }
 0x1e7   : > { %v6454_v44 = vadd.f32 %v5095_v20, %v6444_v25 }
 0x1e8   : > { %v6457_v28 = vadd.f32 %v5096_v45, %v6444_v25  ;;  %v4748_v17 = vpop.f32.mrb[2].mxu0 }
 0x1e9   : > { %3570 = vst [vmem:[%s6451_s23 + $0x21] sm:$0xff] %v6454_v44  ;;  %3619 = vst [vmem:[%s6451_s23 + $0x23] sm:$0x40] %v6454_v44  ;;  %v5097_v50 = vadd.f32 %v4748_v17, %v4348_v48  ;;  %v2719_v39 = vpop.f32.mrb[3].mxu0 }
 0x1ea   : > { %3569 = vst [vmem:[%s6451_s23 + $0x19] sm:$0xff] %v6457_v28  ;;  %3603 = vst [vmem:[%s6451_s23 + $0x17] sm:$0x2] %v6457_v28  ;;  %v5098_v12 = vadd.f32 %v2719_v39, %v1188_v52  ;;  %v2939_v36 = vadd.f32 %v6454_v44, %v6457_v28 }
 0x1eb   : > { %v6468_v8 = vadd.f32 %v5097_v50, %v6444_v25 }
 0x1ec   : > { %v6473_v31 = vadd.f32 %v5098_v12, %v6444_v25  ;;  %v4751_v21 = vpop.f32.mrb[4].mxu0 }
 0x1ed   : > { %3572 = vst [vmem:[%s6451_s23 + $0x39] sm:$0xff] %v6468_v8  ;;  %3114 = vst [vmem:[%s6451_s23 + $0x9] sm:$0xff] %v6468_v8  ;;  %v5099_v15 = vadd.f32 %v4751_v21, %v4351_v62  ;;  %v2729_v51 = vpop.f32.mrb[5].mxu0 }
 0x1ee   : > { %3620 = vst [vmem:[%s6451_s23 + $0x3b] sm:$0x40] %v6468_v8  ;;  %3151 = vst [vmem:[%s6451_s23 + $0xb] sm:$0x40] %v6468_v8  ;;  %v5100_v59 = vadd.f32 %v2729_v51, %v1198_v3  ;;  %v2940_v56 = vadd.f32 %v2939_v36, %v6473_v31 }
 0x1ef   : > { %3571 = vst [vmem:[%s6451_s23 + $0x31] sm:$0xff] %v6473_v31  ;;  %3113 = vst [vmem:[%s6451_s23 + $0x1] sm:$0xff] %v6473_v31  ;;  %v6493_v32 = vadd.f32 %v5099_v15, %v6444_v25 }
 0x1f0   : > { %3604 = vst [vmem:[%s6451_s23 + $0x2f] sm:$0x2] %v6473_v31  ;;  %3150 = vst [vmem:[%s6451_s23 - $0x1] sm:$0x2] %v6473_v31  ;;  %v6496_v1 = vadd.f32 %v5100_v59, %v6444_v25  ;;  %v2941_v58 = vadd.f32 %v2940_v56, %v6468_v8  ;;  %v4754_v47 = vpop.f32.mrb[6].mxu0 }
 0x1f1   : > { %3574 = vst [vmem:[%s6451_s23 + $0x51] sm:$0xff] %v6493_v32  ;;  %3621 = vst [vmem:[%s6451_s23 + $0x53] sm:$0x40] %v6493_v32  ;;  %v5101_v22 = vadd.f32 %v4754_v47, %v4354_v57  ;;  %v2739_v63 = vpop.f32.mrb[7].mxu0 }
 0x1f2   : > { %v2942_v35 = vadd.f32 %v2941_v58, %v6496_v1  ;;  %3573 = vst [vmem:[%s6451_s23 + $0x49] sm:$0xff] %v6496_v1  ;;  %3605 = vst [vmem:[%s6451_s23 + $0x47] sm:$0x2] %v6496_v1  ;;  %v5102_v30 = vadd.f32 %v2739_v63, %v1208_v29 }
 0x1f3   : > { %v6509_v60 = vadd.f32 %v5101_v22, %v6444_v25 }
 0x1f4   : > { %v6512_v26 = vadd.f32 %v5102_v30, %v6444_v25  ;;  %v2943_v27 = vadd.f32 %v2942_v35, %v6493_v32  ;;  %v4757_v33 = vpop.f32.mrb[8].mxu0 }
 0x1f5   : > { %3576 = vst [vmem:[%s6451_s23 + $0x69] sm:$0xff] %v6509_v60  ;;  %3622 = vst [vmem:[%s6451_s23 + $0x6b] sm:$0x40] %v6509_v60  ;;  %v5103_v43 = vadd.f32 %v4757_v33, %v4357_v0  ;;  %v2749_v54 = vpop.f32.mrb[9].mxu0 }
 0x1f6   : > { %v2944_v61 = vadd.f32 %v2943_v27, %v6512_v26  ;;  %3575 = vst [vmem:[%s6451_s23 + $0x61] sm:$0xff] %v6512_v26  ;;  %3606 = vst [vmem:[%s6451_s23 + $0x5f] sm:$0x2] %v6512_v26  ;;  %v5104_v4 = vadd.f32 %v2749_v54, %v1218_v11 }
 0x1f7   : > { %v6525_v10 = vadd.f32 %v5103_v43, %v6444_v25 }
 0x1f8   : > { %v6528_v53 = vadd.f32 %v5104_v4, %v6444_v25  ;;  %v2945_v13 = vadd.f32 %v2944_v61, %v6509_v60  ;;  %v4760_v24 = vpop.f32.mrb[10].mxu0 }
 0x1f9   : > { %3578 = vst [vmem:[%s6451_s23 + $0x81] sm:$0xff] %v6525_v10  ;;  %3623 = vst [vmem:[%s6451_s23 + $0x83] sm:$0x40] %v6525_v10  ;;  %v5105_v19 = vadd.f32 %v4760_v24, %v6429_v6  ;;  %v2759_v7 = vpop.f32.mrb[11].mxu0 }
 0x1fa   : > { %v2946_v34 = vadd.f32 %v2945_v13, %v6528_v53  ;;  %3577 = vst [vmem:[%s6451_s23 + $0x79] sm:$0xff] %v6528_v53  ;;  %3607 = vst [vmem:[%s6451_s23 + $0x77] sm:$0x2] %v6528_v53  ;;  %v5106_v9 = vadd.f32 %v2759_v7, %v6431_v16 }
 0x1fb   : > { %v6543_v49 = vadd.f32 %v5105_v19, %v6444_v25 }
 0x1fc   : > { %v6546_v37 = vadd.f32 %v5106_v9, %v6444_v25  ;;  %v2947_v38 = vadd.f32 %v2946_v34, %v6525_v10  ;;  %v4763_v23 = vpop.f32.mrb[12].mxu0 }
 0x1fd   : > { %3580 = vst [vmem:[%s6451_s23 + $0x99] sm:$0xff] %v6543_v49  ;;  %3624 = vst [vmem:[%s6451_s23 + $0x9b] sm:$0x40] %v6543_v49  ;;  %v5107_v40 = vadd.f32 %v4763_v23, %v6433_v55  ;;  %v2769_v42 = vpop.f32.mrb[13].mxu0 }
 0x1fe   : > { %v2948_v46 = vadd.f32 %v2947_v38, %v6546_v37  ;;  %3579 = vst [vmem:[%s6451_s23 + $0x91] sm:$0xff] %v6546_v37  ;;  %3608 = vst [vmem:[%s6451_s23 + $0x8f] sm:$0x2] %v6546_v37  ;;  %v5108_v48 = vadd.f32 %v2769_v42, %v6435_v2 }
 0x1ff   : > { %v6561_v52 = vadd.f32 %v5107_v40, %v6444_v25 }
 0x200   : > { %v6564_v62 = vadd.f32 %v5108_v48, %v6444_v25  ;;  %v2949_v3 = vadd.f32 %v2948_v46, %v6543_v49  ;;  %v4766_v57 = vpop.f32.mrb[14].mxu0 }
 0x201   : > { %3582 = vst [vmem:[%s6451_s23 + $0xb1] sm:$0xff] %v6561_v52  ;;  %3625 = vst [vmem:[%s6451_s23 + $0xb3] sm:$0x40] %v6561_v52  ;;  %v5109_v29 = vadd.f32 %v4766_v57, %v6437_v5  ;;  %v2779_v0 = vpop.f32.mrb[15].mxu0 }
 0x202   : > { %v2950_v11 = vadd.f32 %v2949_v3, %v6564_v62  ;;  %3581 = vst [vmem:[%s6451_s23 + $0xa9] sm:$0xff] %v6564_v62  ;;  %3609 = vst [vmem:[%s6451_s23 + $0xa7] sm:$0x2] %v6564_v62  ;;  %v5110_v6 = vadd.f32 %v2779_v0, %v6439_v18 }
 0x203   : > { %v6579_v16 = vadd.f32 %v5109_v29, %v6444_v25  ;;  %v4449_v55 = vpop.f32.mrb[16].mxu1 }
 0x204   : > { %v6582_v2 = vadd.f32 %v5110_v6, %v6444_v25  ;;  %v2951_v5 = vadd.f32 %v2950_v11, %v6561_v52  ;;  %v4769_v14 = vpop.f32.mrb[16].mxu0  ;;  %v1564_v20 = vpop.f32.mrb[17].mxu1 }
 0x205   : > { %3584 = vst [vmem:[%s6451_s23 + $0xc9] sm:$0xff] %v6579_v16  ;;  %3626 = vst [vmem:[%s6451_s23 + $0xcb] sm:$0x40] %v6579_v16  ;;  %v5111_v41 = vadd.f32 %v4769_v14, %v4449_v55  ;;  %v2789_v45 = vpop.f32.mrb[17].mxu0 }
 0x206   : > { %v2952_v18 = vadd.f32 %v2951_v5, %v6582_v2  ;;  %3583 = vst [vmem:[%s6451_s23 + $0xc1] sm:$0xff] %v6582_v2  ;;  %3610 = vst [vmem:[%s6451_s23 + $0xbf] sm:$0x2] %v6582_v2  ;;  %v5112_v17 = vadd.f32 %v2789_v45, %v1564_v20 }
 0x207   : > { %v6595_v50 = vadd.f32 %v5111_v41, %v6444_v25  ;;  %v4452_v39 = vpop.f32.mrb[18].mxu1 }
 0x208   : > { %v6598_v12 = vadd.f32 %v5112_v17, %v6444_v25  ;;  %v2953_v36 = vadd.f32 %v2952_v18, %v6579_v16  ;;  %v4772_v21 = vpop.f32.mrb[18].mxu0  ;;  %v1574_v15 = vpop.f32.mrb[19].mxu1 }
 0x209   : > { %3586 = vst [vmem:[%s6451_s23 + $0xe1] sm:$0xff] %v6595_v50  ;;  %3627 = vst [vmem:[%s6451_s23 + $0xe3] sm:$0x40] %v6595_v50  ;;  %v5113_v51 = vadd.f32 %v4772_v21, %v4452_v39  ;;  %v2799_v59 = vpop.f32.mrb[19].mxu0 }
 0x20a   : > { %v2954_v56 = vadd.f32 %v2953_v36, %v6598_v12  ;;  %3585 = vst [vmem:[%s6451_s23 + $0xd9] sm:$0xff] %v6598_v12  ;;  %3611 = vst [vmem:[%s6451_s23 + $0xd7] sm:$0x2] %v6598_v12  ;;  %v5114_v58 = vadd.f32 %v2799_v59, %v1574_v15 }
 0x20b   : > { %v6611_v47 = vadd.f32 %v5113_v51, %v6444_v25  ;;  %v4455_v22 = vpop.f32.mrb[20].mxu1 }
 0x20c   : > { %v6614_v63 = vadd.f32 %v5114_v58, %v6444_v25  ;;  %v2955_v35 = vadd.f32 %v2954_v56, %v6595_v50  ;;  %v4775_v30 = vpop.f32.mrb[20].mxu0  ;;  %v1584_v27 = vpop.f32.mrb[21].mxu1 }
 0x20d   : > { %3588 = vst [vmem:[%s6451_s23 + $0xf9] sm:$0xff] %v6611_v47  ;;  %3628 = vst [vmem:[%s6451_s23 + $0xfb] sm:$0x40] %v6611_v47  ;;  %v5115_v33 = vadd.f32 %v4775_v30, %v4455_v22  ;;  %v2809_v43 = vpop.f32.mrb[21].mxu0 }
 0x20e   : > { %v2956_v54 = vadd.f32 %v2955_v35, %v6614_v63  ;;  %3587 = vst [vmem:[%s6451_s23 + $0xf1] sm:$0xff] %v6614_v63  ;;  %3612 = vst [vmem:[%s6451_s23 + $0xef] sm:$0x2] %v6614_v63  ;;  %v5116_v61 = vadd.f32 %v2809_v43, %v1584_v27 }
 0x20f   : > { %v6627_v4 = vadd.f32 %v5115_v33, %v6444_v25  ;;  %v4458_v13 = vpop.f32.mrb[22].mxu1 }
 0x210   : > { %v6630_v24 = vadd.f32 %v5116_v61, %v6444_v25  ;;  %v2957_v19 = vadd.f32 %v2956_v54, %v6611_v47  ;;  %v4778_v7 = vpop.f32.mrb[22].mxu0  ;;  %v1594_v34 = vpop.f32.mrb[23].mxu1 }
 0x211   : > { %3590 = vst [vmem:[%s6451_s23 + $0x111] sm:$0xff] %v6627_v4  ;;  %3629 = vst [vmem:[%s6451_s23 + $0x113] sm:$0x40] %v6627_v4  ;;  %v5117_v9 = vadd.f32 %v4778_v7, %v4458_v13  ;;  %v2819_v38 = vpop.f32.mrb[23].mxu0 }
 0x212   : > { %v2958_v23 = vadd.f32 %v2957_v19, %v6630_v24  ;;  %3589 = vst [vmem:[%s6451_s23 + $0x109] sm:$0xff] %v6630_v24  ;;  %3613 = vst [vmem:[%s6451_s23 + $0x107] sm:$0x2] %v6630_v24  ;;  %v5118_v40 = vadd.f32 %v2819_v38, %v1594_v34 }
 0x213   : > { %v6643_v42 = vadd.f32 %v5117_v9, %v6444_v25  ;;  %v4461_v46 = vpop.f32.mrb[24].mxu1 }
 0x214   : > { %v6646_v48 = vadd.f32 %v5118_v40, %v6444_v25  ;;  %v2959_v3 = vadd.f32 %v2958_v23, %v6627_v4  ;;  %v4781_v57 = vpop.f32.mrb[24].mxu0  ;;  %v1604_v29 = vpop.f32.mrb[25].mxu1 }
 0x215   : > { %3592 = vst [vmem:[%s6451_s23 + $0x129] sm:$0xff] %v6643_v42  ;;  %3630 = vst [vmem:[%s6451_s23 + $0x12b] sm:$0x40] %v6643_v42  ;;  %v5119_v0 = vadd.f32 %v4781_v57, %v4461_v46  ;;  %v2829_v11 = vpop.f32.mrb[25].mxu0 }
 0x216   : > { %v2960_v6 = vadd.f32 %v2959_v3, %v6646_v48  ;;  %3591 = vst [vmem:[%s6451_s23 + $0x121] sm:$0xff] %v6646_v48  ;;  %3614 = vst [vmem:[%s6451_s23 + $0x11f] sm:$0x2] %v6646_v48  ;;  %v5120_v55 = vadd.f32 %v2829_v11, %v1604_v29 }
 0x217   : > { %v6659_v5 = vadd.f32 %v5119_v0, %v6444_v25  ;;  %v4464_v14 = vpop.f32.mrb[26].mxu1 }
 0x218   : > { %v6662_v20 = vadd.f32 %v5120_v55, %v6444_v25  ;;  %v2961_v41 = vadd.f32 %v2960_v6, %v6643_v42  ;;  %v4784_v45 = vpop.f32.mrb[26].mxu0  ;;  %v1614_v18 = vpop.f32.mrb[27].mxu1 }
 0x219   : > { %3594 = vst [vmem:[%s6451_s23 + $0x141] sm:$0xff] %v6659_v5  ;;  %3631 = vst [vmem:[%s6451_s23 + $0x143] sm:$0x40] %v6659_v5  ;;  %v5121_v17 = vadd.f32 %v4784_v45, %v4464_v14  ;;  %v2839_v39 = vpop.f32.mrb[27].mxu0 }
 0x21a   : > { %v2962_v36 = vadd.f32 %v2961_v41, %v6662_v20  ;;  %3593 = vst [vmem:[%s6451_s23 + $0x139] sm:$0xff] %v6662_v20  ;;  %3615 = vst [vmem:[%s6451_s23 + $0x137] sm:$0x2] %v6662_v20  ;;  %v5122_v21 = vadd.f32 %v2839_v39, %v1614_v18 }
 0x21b   : > { %v6675_v15 = vadd.f32 %v5121_v17, %v6444_v25  ;;  %v4467_v51 = vpop.f32.mrb[28].mxu1 }
 0x21c   : > { %v6678_v59 = vadd.f32 %v5122_v21, %v6444_v25  ;;  %v2963_v56 = vadd.f32 %v2962_v36, %v6659_v5  ;;  %v4787_v58 = vpop.f32.mrb[28].mxu0  ;;  %v1624_v22 = vpop.f32.mrb[29].mxu1 }
 0x21d   : > { %3596 = vst [vmem:[%s6451_s23 + $0x159] sm:$0xff] %v6675_v15  ;;  %3632 = vst [vmem:[%s6451_s23 + $0x15b] sm:$0x40] %v6675_v15  ;;  %v5123_v35 = vadd.f32 %v4787_v58, %v4467_v51  ;;  %v2849_v30 = vpop.f32.mrb[29].mxu0 }
 0x21e   : > { %v2964_v27 = vadd.f32 %v2963_v56, %v6678_v59  ;;  %3595 = vst [vmem:[%s6451_s23 + $0x151] sm:$0xff] %v6678_v59  ;;  %3616 = vst [vmem:[%s6451_s23 + $0x14f] sm:$0x2] %v6678_v59  ;;  %v5124_v33 = vadd.f32 %v2849_v30, %v1624_v22 }
 0x21f   : > { %v2936_v43 = vadd.f32 %v5123_v35, %v6444_v25  ;;  %v4470_v54 = vpop.f32.mrb[30].mxu1 }
 0x220   : > { %v2965_v61 = vadd.f32 %v2964_v27, %v6675_v15  ;;  %v2935_v13 = vadd.f32 %v5124_v33, %v6444_v25  ;;  %v4790_v19 = vpop.f32.mrb[30].mxu0  ;;  %v1634_v7 = vpop.f32.mrb[31].mxu1 }
 0x221   : > { %3598 = vst [vmem:[%s6451_s23 + $0x171] sm:$0xff] %v2936_v43  ;;  %3602 = vst [vmem:[%s6451_s23 + $0x1a1] sm:$0xff] %v2936_v43  ;;  %v5125_v34 = vadd.f32 %v4790_v19, %v4470_v54  ;;  %v2859_v9 = vpop.f32.mrb[31].mxu0 }
 0x222   : > { %3633 = vst [vmem:[%s6451_s23 + $0x173] sm:$0x40] %v2936_v43  ;;  %3636 = vst [vmem:[%s6451_s23 + $0x1a3] sm:$0x40] %v2936_v43  ;;  %v5126_v38 = vadd.f32 %v2859_v9, %v1634_v7  ;;  %v2966_v23 = vadd.f32 %v2965_v61, %v2935_v13 }
 0x223   : > { %3597 = vst [vmem:[%s6451_s23 + $0x169] sm:$0xff] %v2935_v13  ;;  %3601 = vst [vmem:[%s6451_s23 + $0x199] sm:$0xff] %v2935_v13  ;;  %v2938_v40 = vadd.f32 %v5125_v34, %v6444_v25 }
 0x224   : > { %3617 = vst [vmem:[%s6451_s23 + $0x167] sm:$0x2] %v2935_v13  ;;  %3635 = vst [vmem:[%s6451_s23 + $0x197] sm:$0x2] %v2935_v13  ;;  %v2937_v46 = vadd.f32 %v5126_v38, %v6444_v25  ;;  %v2967_v3 = vadd.f32 %v2966_v23, %v2936_v43 }
 0x225   : > { %3600 = vst [vmem:[%s6451_s23 + $0x189] sm:$0xff] %v2938_v40  ;;  %3634 = vst [vmem:[%s6451_s23 + $0x18b] sm:$0x40] %v2938_v40 }
 0x226   : > { %v2968_v57 = vadd.f32 %v2967_v3, %v2937_v46  ;;  %3599 = vst [vmem:[%s6451_s23 + $0x181] sm:$0xff] %v2937_v46  ;;  %3618 = vst [vmem:[%s6451_s23 + $0x17f] sm:$0x2] %v2937_v46 }
 0x228   : > { %v2969_v29 = vadd.f32 %v2968_v57, %v2938_v40 }
 0x22a   : > { %v2970_v0 = vrot.slane %v2969_v29, 4 }
 0x22c   : > { %v2971_v11 = vadd.f32 %v2970_v0, %v2969_v29 }
 0x22e   : > { %v2972_v6 = vrot.slane %v2971_v11, 2 }
 0x230   : > { %v2973_v55 = vadd.f32 %v2972_v6, %v2971_v11 }
 0x232   : > { %v2974_v14 = vrot.slane %v2973_v55, 1 }
 0x234   : > { %v2975_v25 = vadd.f32 %v2974_v14, %v2973_v55 }
 0x236   : > { %v2976_v41 = vmul.f32 0.00390625, %v2975_v25  ;;  %3078 = vst [vmem:[%s6711_s26] sm:$0x1] %v2975_v25 }
 0x238   : > { %v2985_v45 = vsub.f32 %v6528_v53, %v2976_v41  ;;  %v2987_v18 = vsub.f32 %v6546_v37, %v2976_v41  ;;  %v2988_v17 = vsub.f32 %v6543_v49, %v2976_v41  ;;  %v2989_v39 = vsub.f32 %v6564_v62, %v2976_v41 }
 0x239   : > { %v2990_v36 = vsub.f32 %v6561_v52, %v2976_v41  ;;  %v2991_v21 = vsub.f32 %v6582_v2, %v2976_v41  ;;  %v2992_v51 = vsub.f32 %v6579_v16, %v2976_v41  ;;  %v2993_v56 = vsub.f32 %v6598_v12, %v2976_v41 }
 0x23a   : > { %v2994_v58 = vsub.f32 %v6595_v50, %v2976_v41  ;;  %v2995_v22 = vsub.f32 %v6614_v63, %v2976_v41  ;;  %v2996_v53 = vsub.f32 %v6611_v47, %v2976_v41  ;;  %v2997_v37 = vsub.f32 %v6630_v24, %v2976_v41 }
 0x23b   : > { %v2998_v49 = vsub.f32 %v6627_v4, %v2976_v41  ;;  %v2999_v62 = vsub.f32 %v6646_v48, %v2976_v41  ;;  %v3000_v52 = vsub.f32 %v6643_v42, %v2976_v41  ;;  %v6730_v2 = vsub.f32 %v6662_v20, %v2976_v41 }
 0x23c   : > { %v6733_v16 = vsub.f32 %v6659_v5, %v2976_v41  ;;  %v6736_v50 = vsub.f32 %v6678_v59, %v2976_v41  ;;  %v6739_v12 = vsub.f32 %v6675_v15, %v2976_v41  ;;  %v6741_v47 = vsub.f32 %v2935_v13, %v2976_v41 }
 0x23d   : > { %v6743_v63 = vsub.f32 %v2936_v43, %v2976_v41  ;;  %v6745_v4 = vsub.f32 %v2937_v46, %v2976_v41  ;;  %v6747_v24 = vsub.f32 %v2938_v40, %v2976_v41  ;;  %v2977_v42 = vsub.f32 %v6457_v28, %v2976_v41 }
 0x23e   : > { %v2978_v48 = vsub.f32 %v6454_v44, %v2976_v41  ;;  %v2979_v5 = vsub.f32 %v6473_v31, %v2976_v41  ;;  %v2980_v35 = vsub.f32 %v6468_v8, %v2976_v41  ;;  %v2981_v15 = vsub.f32 %v6496_v1, %v2976_v41 }
 0x23f   : > { %v3009_v20 = vmul.f32 %v2977_v42, %v2977_v42  ;;  %v2982_v33 = vsub.f32 %v6493_v32, %v2976_v41  ;;  %v2983_v61 = vsub.f32 %v6512_v26, %v2976_v41  ;;  %v2984_v44 = vsub.f32 %v6509_v60, %v2976_v41 }
 0x240   : > { %v3010_v59 = vmul.f32 %v2978_v48, %v2978_v48  ;;  %v3011_v30 = vmul.f32 %v2979_v5, %v2979_v5  ;;  %v3012_v43 = vmul.f32 %v2980_v35, %v2980_v35  ;;  %v3013_v13 = vmul.f32 %v2981_v15, %v2981_v15 }
 0x241   : > { %v3014_v19 = vmul.f32 %v2982_v33, %v2982_v33  ;;  %v3015_v7 = vmul.f32 %v2983_v61, %v2983_v61  ;;  %v2986_v8 = vsub.f32 %v6525_v10, %v2976_v41  ;;  %v3016_v9 = vmul.f32 %v2984_v44, %v2984_v44 }
 0x242   : > { %v3041_v27 = vadd.f32 %v3010_v59, %v3009_v20  ;;  %v3017_v38 = vmul.f32 %v2985_v45, %v2985_v45  ;;  %v3019_v46 = vmul.f32 %v2987_v18, %v2987_v18  ;;  %v3020_v57 = vmul.f32 %v2988_v17, %v2988_v17 }
 0x243   : > { %v3018_v40 = vmul.f32 %v2986_v8, %v2986_v8  ;;  %v3021_v29 = vmul.f32 %v2989_v39, %v2989_v39  ;;  %v3022_v11 = vmul.f32 %v2990_v36, %v2990_v36  ;;  %v3023_v6 = vmul.f32 %v2991_v21, %v2991_v21 }
 0x244   : > { %v3042_v54 = vadd.f32 %v3041_v27, %v3011_v30  ;;  %v3024_v14 = vmul.f32 %v2992_v51, %v2992_v51  ;;  %v3025_v42 = vmul.f32 %v2993_v56, %v2993_v56  ;;  %v3026_v41 = vmul.f32 %v2994_v58, %v2994_v58 }
 0x245   : > { %v3027_v45 = vmul.f32 %v2995_v22, %v2995_v22  ;;  %v3028_v20 = vmul.f32 %v2996_v53, %v2996_v53  ;;  %v3029_v18 = vmul.f32 %v2997_v37, %v2997_v37  ;;  %v3030_v17 = vmul.f32 %v2998_v49, %v2998_v49 }
 0x246   : > { %v3043_v28 = vadd.f32 %v3042_v54, %v3012_v43  ;;  %v3031_v39 = vmul.f32 %v2999_v62, %v2999_v62  ;;  %v3032_v36 = vmul.f32 %v3000_v52, %v3000_v52  ;;  %v3033_v21 = vmul.f32 %v6730_v2, %v6730_v2 }
 0x247   : > { %v3034_v56 = vmul.f32 %v6733_v16, %v6733_v16  ;;  %v3035_v22 = vmul.f32 %v6736_v50, %v6736_v50  ;;  %v3036_v37 = vmul.f32 %v6739_v12, %v6739_v12  ;;  %v3037_v62 = vmul.f32 %v6741_v47, %v6741_v47 }
 0x248   : > { %v3044_v31 = vadd.f32 %v3043_v28, %v3013_v13  ;;  %v3038_v2 = vmul.f32 %v6743_v63, %v6743_v63  ;;  %v3039_v16 = vmul.f32 %v6745_v4, %v6745_v4  ;;  %v3040_v50 = vmul.f32 %v6747_v24, %v6747_v24 }
 0x24a   : > { %v3045_v34 = vadd.f32 %v3044_v31, %v3014_v19 }
 0x24c   : > { %v3046_v1 = vadd.f32 %v3045_v34, %v3015_v7 }
 0x24e   : > { %v3047_v23 = vadd.f32 %v3046_v1, %v3016_v9 }
 0x250   : > { %v3048_v32 = vadd.f32 %v3047_v23, %v3017_v38 }
 0x252   : > { %v3049_v3 = vadd.f32 %v3048_v32, %v3018_v40 }
 0x254   : > { %v3050_v26 = vadd.f32 %v3049_v3, %v3019_v46 }
 0x256   : > { %v3051_v0 = vadd.f32 %v3050_v26, %v3020_v57 }
 0x258   : > { %v3052_v60 = vadd.f32 %v3051_v0, %v3021_v29 }
 0x25a   : > { %v3053_v55 = vadd.f32 %v3052_v60, %v3022_v11 }
 0x25c   : > { %v3054_v25 = vadd.f32 %v3053_v55, %v3023_v6 }
 0x25e   : > { %v3055_v10 = vadd.f32 %v3054_v25, %v3024_v14 }
 0x260   : > { %v3056_v48 = vadd.f32 %v3055_v10, %v3025_v42 }
 0x262   : > { %v3057_v5 = vadd.f32 %v3056_v48, %v3026_v41 }
 0x264   : > { %v3058_v59 = vadd.f32 %v3057_v5, %v3027_v45 }
 0x266   : > { %v3059_v35 = vadd.f32 %v3058_v59, %v3028_v20 }
 0x268   : > { %v3060_v15 = vadd.f32 %v3059_v35, %v3029_v18 }
 0x26a   : > { %v3061_v30 = vadd.f32 %v3060_v15, %v3030_v17 }
 0x26c   : > { %v3062_v27 = vadd.f32 %v3061_v30, %v3031_v39 }
 0x26e   : > { %v3063_v51 = vadd.f32 %v3062_v27, %v3032_v36 }
 0x270   : > { %v3064_v58 = vadd.f32 %v3063_v51, %v3033_v21 }
 0x272   : > { %v3065_v53 = vadd.f32 %v3064_v58, %v3034_v56 }
 0x274   : > { %v3066_v49 = vadd.f32 %v3065_v53, %v3035_v22 }
 0x276   : > { %v3067_v52 = vadd.f32 %v3066_v49, %v3036_v37 }
 0x278   : > { %v3068_v33 = vadd.f32 %v3067_v52, %v3037_v62 }
 0x27a   : > { %v3069_v43 = vadd.f32 %v3068_v33, %v3038_v2 }
 0x27c   : > { %v3070_v54 = vadd.f32 %v3069_v43, %v3039_v16 }
 0x27e   : > { %v3071_v61 = vadd.f32 %v3070_v54, %v3040_v50 }
 0x280   : > { %v3072_v12 = vrot.slane %v3071_v61, 4 }
 0x282   : > { %v3073_v13 = vadd.f32 %v3072_v12, %v3071_v61 }
 0x284   : > { %v3074_v28 = vrot.slane %v3073_v13, 2 }
 0x286   : > { %v3075_v44 = vadd.f32 %v3074_v28, %v3073_v13 }
 0x288   : > { %v3076_v19 = vrot.slane %v3075_v44, 1 }
 0x28a   : > { %v3077_v47 = vadd.f32 %v3076_v19, %v3075_v44 }
 0x28c   : > { %3079 = vst [vmem:[%s6711_s26 + $0x1] sm:$0x1] %v3077_v47 }
 0x28d PF: > { %s15_s15 = sadd.s32 1, %s5366_s15  }
 0x28e   : > { %p12_p4 = scmp.ge.s32.totalorder %s15_s15, 4  }
 0x290   :  { %14 = sbr.rel (!%p12_p4) target bundleno = 1 (0x1), region = 86 }

// kernel: resnet_block.4
= control target key start
LH: loop header
LB: loop body
LE: loop exit
PB: predicated region body
PF: predicated region fallthrough
CT: control target
= control target key end

     0   :  { %s6237_s21 = smov 0   ;;  %s8103_s0 = inlined_call_operand.vmem [shape: f32[2,18,18,128], index: 0, kind: input, shape index: {}]   ;;  %s8104_s1 = inlined_call_operand.vmem [shape: f32[1,128], index: 1, kind: input, shape index: {}]   ;;  %s8105_s2 = inlined_call_operand.vmem [shape: f32[1,128], index: 2, kind: input, shape index: {}]   ;;  %s8106_s3 = inlined_call_operand.vmem [shape: f32[9,128,128], index: 3, kind: input, shape index: {}]   ;;  %s8107_s4 = inlined_call_operand.vmem [shape: f32[1,128], index: 4, kind: input, shape index: {}]   ;;  %s8108_s5 = inlined_call_operand.vmem [shape: f32[2,16,16,128], index: 5, kind: output, shape index: {0}]   ;;  %s8109_s6 = inlined_call_operand.vmem [shape: f32[2,2,128], index: 6, kind: output, shape index: {1}]  }
   0x1 LB: > { %s4130_s22 = sadd.s32 4294967295, %s6200_s21   ;;  %p4134_p0 = scmp.ge.s32.totalorder %s6200_s21, 1  ;;  %s6200_s21 = sphi %s6237_s21, %s17_s21  }
   0x2   : > { %p215_p1 = scmp.lt.s32.totalorder %s6200_s21, 3 }
   0x4   : > { %p216_p2 = pnand %p4134_p0, %p215_p1 }
   0x5   : > { %v4141_v0 = vld [vmem:[%s8106_s3 + $0x80] sm:$0xff] (!%p216_p2)  ;;  %v4142_v1 = vld [vmem:[%s8106_s3 + $0x88] sm:$0xff] (!%p216_p2)  ;;  %p249_p3 = scmp.lt.s32.totalorder (!%p216_p2), %s4130_s22, 1  ;;  %v4143_v5 = vld [vmem:[%s8106_s3 + $0x90] sm:$0xff] (!%p216_p2) }
   0x6   : > { %219 = sbr.rel (%p216_p2) target bundleno = 645 (0x285), region = 40  ;;  %v4253_v2 = vld [vmem:[%s8106_s3 + $0x200] sm:$0xff] (!%p216_p2)  ;;  %v5617_v3 = vpack.c.bf16 (!%p216_p2), %v4142_v1, %v4141_v0  ;;  %v4254_v4 = vld [vmem:[%s8106_s3 + $0x208] sm:$0xff] (!%p216_p2)  ;;  %v4144_v6 = vld [vmem:[%s8106_s3 + $0x98] sm:$0xff] (!%p216_p2) }
   0x7   : > { %v6263_v7 = vpack.c.bf16 (!%p216_p2), %v4254_v4, %v4253_v2  ;;  %v5621_v8 = vpack.c.bf16 (!%p216_p2), %v4144_v6, %v4143_v5  ;;  %v4255_v9 = vld [vmem:[%s8106_s3 + $0x210] sm:$0xff] (!%p216_p2)  ;;  %v4256_v10 = vld [vmem:[%s8106_s3 + $0x218] sm:$0xff] (!%p216_p2)  ;;  %v4145_v11 = vld [vmem:[%s8106_s3 + $0xa0] sm:$0xff] (!%p216_p2) }
   0x8   : > { %5618 = vmatprep.subr.bf16.mxu1 (!%p216_p2), %v5617_v3  ;;  %v6276_v12 = vpack.c.bf16 (!%p216_p2), %v4256_v10, %v4255_v9  ;;  %v4146_v13 = vld [vmem:[%s8106_s3 + $0xa8] sm:$0xff] (!%p216_p2)  ;;  %v4257_v14 = vld [vmem:[%s8106_s3 + $0x220] sm:$0xff] (!%p216_p2)  ;;  %v4147_v18 = vld [vmem:[%s8106_s3 + $0xb0] sm:$0xff] (!%p216_p2) }
   0x9   : > { %v4258_v15 = vld [vmem:[%s8106_s3 + $0x228] sm:$0xff] (!%p216_p2)  ;;  %5746 = vmatprep.subr.bf16.mxu0 (!%p216_p2), %v6263_v7  ;;  %5620 = vmatpush3.bf16.msra.mxu1 (!%p216_p2), %v5617_v3  ;;  %v5625_v16 = vpack.c.bf16 (!%p216_p2), %v4146_v13, %v4145_v11  ;;  %v4148_v19 = vld [vmem:[%s8106_s3 + $0xb8] sm:$0xff] (!%p216_p2)  ;;  %v4259_v20 = vld [vmem:[%s8106_s3 + $0x230] sm:$0xff] (!%p216_p2) }
   0xa   : > { %5748 = vmatpush3.bf16.msra.mxu0 (!%p216_p2), %v6263_v7  ;;  %5622 = vmatprep.subr.bf16.mxu1 (!%p216_p2), %v5621_v8  ;;  %v6291_v17 = vpack.c.bf16 (!%p216_p2), %v4258_v15, %v4257_v14  ;;  %v4260_v21 = vld [vmem:[%s8106_s3 + $0x238] sm:$0xff] (!%p216_p2)  ;;  %v5629_v22 = vpack.c.bf16 (!%p216_p2), %v4148_v19, %v4147_v18  ;;  %v4149_v23 = vld [vmem:[%s8106_s3 + $0xc0] sm:$0xff] (!%p216_p2)  ;;  %v4150_v24 = vld [vmem:[%s8106_s3 + $0xc8] sm:$0xff] (!%p216_p2) }
   0xb   : > { %5750 = vmatprep.subr.bf16.mxu0 (!%p216_p2), %v6276_v12  ;;  %v6318_v25 = vpack.c.bf16 (!%p216_p2), %v4260_v21, %v4259_v20  ;;  %v4261_v26 = vld [vmem:[%s8106_s3 + $0x240] sm:$0xff] (!%p216_p2)  ;;  %v4262_v27 = vld [vmem:[%s8106_s3 + $0x248] sm:$0xff] (!%p216_p2)  ;;  %v5633_v34 = vpack.c.bf16 (!%p216_p2), %v4150_v24, %v4149_v23  ;;  %v4151_v36 = vld [vmem:[%s8106_s3 + $0xd0] sm:$0xff] (!%p216_p2) }
   0xc   : > { %v6329_v28 = vld [vmem:[%s8104_s1] ss:$0 sm:$0xff] (!%p216_p2)  ;;  %v6342_v35 = vpack.c.bf16 (!%p216_p2), %v4262_v27, %v4261_v26  ;;  %v4152_v37 = vld [vmem:[%s8106_s3 + $0xd8] sm:$0xff] (!%p216_p2)  ;;  %v4263_v40 = vld [vmem:[%s8106_s3 + $0x250] sm:$0xff] (!%p216_p2) }
   0xd   : > { %s8129_s22 = smov (!%p249_p3, %s4130_s22), 1  ;;  %5624 = vmatpush3.bf16.msra.mxu1 %v5621_v8  ;;  %v6334_v29 = vld [vmem:[%s8105_s2] ss:$0 sm:$0xff]  ;;  %v4264_v41 = vld [vmem:[%s8106_s3 + $0x258] sm:$0xff]  ;;  %v5637_v44 = vpack.c.bf16 %v4152_v37, %v4151_v36  ;;  %v4154_v47 = vld [vmem:[%s8106_s3 + $0xe8] sm:$0xff] }
   0xe   : > { %s6177_s25 = smul.u32 432, %s8129_s22  ;;  %5752 = vmatpush3.bf16.msra.mxu0 %v6276_v12  ;;  %5626 = vmatprep.subr.bf16.mxu1 %v5625_v16  ;;  %v6363_v45 = vpack.c.bf16 %v4264_v41, %v4263_v40  ;;  %v4153_v46 = vld [vmem:[%s8106_s3 + $0xe0] sm:$0xff]  ;;  %v4266_v49 = vld [vmem:[%s8106_s3 + $0x268] sm:$0xff]  ;;  %v4155_v54 = vld [vmem:[%s8106_s3 + $0xf0] sm:$0xff]  ;;  %s4138_s17 = sshll.u32 %s8129_s22, 1 }
   0xf   : > { %5754 = vmatprep.subr.bf16.mxu0 %v6291_v17  ;;  %v4265_v48 = vld [vmem:[%s8106_s3 + $0x260] sm:$0xff]  ;;  %v5641_v51 = vpack.c.bf16 %v4154_v47, %v4153_v46  ;;  %v4156_v55 = vld [vmem:[%s8106_s3 + $0xf8] sm:$0xff]  ;;  %v4267_v56 = vld [vmem:[%s8106_s3 + $0x270] sm:$0xff]  ;;  %s8038_s20 = scalar_lea.vmem %s8109_s6, %s4138_s17 }
  0x10   : > { %s6308_s12 = scalar_lea.vmem %s8103_s0, %s6177_s25  ;;  %v6383_v53 = vpack.c.bf16 %v4266_v49, %v4265_v48  ;;  %v4268_v57 = vld [vmem:[%s8106_s3 + $0x278] sm:$0xff]  ;;  %v5645_v61 = vpack.c.bf16 %v4156_v55, %v4155_v54  ;;  %v405_v0 = vld [vmem:[%s8106_s3] sm:$0xff]  ;;  %v406_v1 = vld [vmem:[%s8106_s3 + $0x8] sm:$0xff] }
  0x11   : > { %v421_v30 = vld [vmem:[%s6308_s12 + $0x1] sm:$0xff]  ;;  %v4221_v31 = vld [vmem:[%s6308_s12 + $0x19] sm:$0xff]  ;;  %5628 = vmatpush3.bf16.msra.mxu1 %v5625_v16  ;;  %v422_v50 = vld [vmem:[%s6308_s12 + $0x9] sm:$0xff]  ;;  %v6403_v63 = vpack.c.bf16 %v4268_v57, %v4267_v56  ;;  %v5649_v11 = vpack.c.bf16 %v406_v1, %v405_v0 }
  0x12   : > { %v453_v32 = vmul.f32 %v6329_v28, %v421_v30  ;;  %v1853_v33 = vmul.f32 %v4221_v31, %v6329_v28  ;;  %5756 = vmatpush3.bf16.msra.mxu0 %v6291_v17  ;;  %5630 = vmatprep.subr.bf16.mxu1 %v5629_v22  ;;  %v4222_v52 = vld [vmem:[%s6308_s12 + $0x21] sm:$0xff]  ;;  %v454_v58 = vmul.f32 %v6329_v28, %v422_v50  ;;  %v4223_v59 = vld [vmem:[%s6308_s12 + $0x31] sm:$0xff]  ;;  %v4224_v62 = vld [vmem:[%s6308_s12 + $0x39] sm:$0xff] }
  0x13   : > { %5758 = vmatprep.subr.bf16.mxu0 %v6318_v25  ;;  %v1854_v60 = vmul.f32 %v4222_v52, %v6329_v28  ;;  %v1855_v2 = vmul.f32 %v4223_v59, %v6329_v28  ;;  %v4225_v3 = vld [vmem:[%s6308_s12 + $0x49] sm:$0xff]  ;;  %v4301_v5 = vld [vmem:[%s8106_s3 + $0x280] sm:$0xff]  ;;  %v1856_v9 = vmul.f32 %v4224_v62, %v6329_v28  ;;  %v4226_v10 = vld [vmem:[%s6308_s12 + $0x51] sm:$0xff] }
  0x14   : > { %v485_v38 = vadd.f32 %v6334_v29, %v453_v32  ;;  %v6352_v39 = vadd.f32 %v6334_v29, %v1853_v33  ;;  %v486_v4 = vadd.f32 %v6334_v29, %v454_v58  ;;  %v4302_v6 = vld [vmem:[%s8106_s3 + $0x288] sm:$0xff]  ;;  %v1857_v13 = vmul.f32 %v4225_v3, %v6329_v28  ;;  %v4303_v19 = vld [vmem:[%s8106_s3 + $0x290] sm:$0xff]  ;;  %v4304_v20 = vld [vmem:[%s8106_s3 + $0x298] sm:$0xff] }
  0x15   : > { %5632 = vmatpush3.bf16.msra.mxu1 %v5629_v22  ;;  %v1886_v8 = vadd.f32 %v6334_v29, %v1854_v60  ;;  %v5777_v14 = vpack.c.bf16 %v4302_v6, %v4301_v5  ;;  %v1887_v15 = vadd.f32 %v6334_v29, %v1855_v2  ;;  %v4227_v16 = vld [vmem:[%s6308_s12 + $0x61] sm:$0xff]  ;;  %v1858_v21 = vmul.f32 %v4226_v10, %v6329_v28  ;;  %v407_v24 = vld [vmem:[%s8106_s3 + $0x10] sm:$0xff]  ;;  %v408_v26 = vld [vmem:[%s8106_s3 + $0x18] sm:$0xff] }
  0x16   : > { %v517_v42 = vmax.f32 %v485_v38, 0.0  ;;  %v1917_v43 = vmax.f32 %v6352_v39, 0.0  ;;  %5760 = vmatpush3.bf16.msra.mxu0 %v6318_v25  ;;  %5634 = vmatprep.subr.bf16.mxu1 %v5633_v34  ;;  %v518_v18 = vmax.f32 %v486_v4, 0.0  ;;  %v1888_v23 = vadd.f32 %v6334_v29, %v1856_v9  ;;  %v4228_v27 = vld [vmem:[%s6308_s12 + $0x69] sm:$0xff]  ;;  %v4305_v38 = vld [vmem:[%s8106_s3 + $0x2a0] sm:$0xff]  ;;  %v4231_v52 = vld [vmem:[%s6308_s12 + $0x91] sm:$0xff] }
  0x17   : > { %5762 = vmatprep.subr.bf16.mxu0 %v6342_v35  ;;  %v1918_v22 = vmax.f32 %v1886_v8, 0.0  ;;  %v1889_v30 = vadd.f32 %v6334_v29, %v1857_v13  ;;  %v1859_v31 = vmul.f32 %v4227_v16, %v6329_v28  ;;  %v1919_v32 = vmax.f32 %v1887_v15, 0.0  ;;  %v4306_v40 = vld [vmem:[%s8106_s3 + $0x2a8] sm:$0xff]  ;;  %v4307_v39 = vld [vmem:[%s8106_s3 + $0x2b0] sm:$0xff]  ;;  %v4232_v58 = vld [vmem:[%s6308_s12 + $0x99] sm:$0xff] }
  0x18   : > { %4929 = vmatprep.mubr.f32.mxu1 %v517_v42  ;;  %5249 = vmatprep.mubr.f32.mxu0 %v1917_v43  ;;  %v5781_v33 = vpack.c.bf16 %v4304_v20, %v4303_v19  ;;  %v5653_v36 = vpack.c.bf16 %v408_v26, %v407_v24  ;;  %v6448_v37 = vadd.f32 %v6334_v29, %v1858_v21  ;;  %v1920_v42 = vmax.f32 %v1888_v23, 0.0  ;;  %v410_v46 = vld [vmem:[%s8106_s3 + $0x28] sm:$0xff]  ;;  %v411_v59 = vld [vmem:[%s8106_s3 + $0x30] sm:$0xff]  ;;  %v412_v60 = vld [vmem:[%s8106_s3 + $0x38] sm:$0xff] }
  0x19   : > { %5636 = vmatpush3.bf16.msra.mxu1 %v5633_v34  ;;  %v4229_v34 = vld [vmem:[%s6308_s12 + $0x79] sm:$0xff]  ;;  %v1860_v41 = vmul.f32 %v4228_v27, %v6329_v28  ;;  %v1921_v47 = vmax.f32 %v1889_v30, 0.0  ;;  %v1891_v48 = vadd.f32 %v6334_v29, %v1859_v31  ;;  %v4230_v50 = vld [vmem:[%s6308_s12 + $0x81] sm:$0xff]  ;;  %v1863_v0 = vmul.f32 %v4231_v52, %v6329_v28  ;;  %v4233_v2 = vld [vmem:[%s6308_s12 + $0xa9] sm:$0xff] }
  0x1a   : > { %5764 = vmatpush3.bf16.msra.mxu0 %v6342_v35  ;;  %5638 = vmatprep.subr.bf16.mxu1 %v5637_v44  ;;  %v1861_v49 = vmul.f32 %v4229_v34, %v6329_v28  ;;  %v1922_v54 = vmax.f32 %v6448_v37, 0.0  ;;  %v1862_v57 = vmul.f32 %v4230_v50, %v6329_v28  ;;  %v4309_v4 = vld [vmem:[%s8106_s3 + $0x2c0] sm:$0xff]  ;;  %v4310_v5 = vld [vmem:[%s8106_s3 + $0x2c8] sm:$0xff]  ;;  %v1864_v6 = vmul.f32 %v4232_v58, %v6329_v28  ;;  %v4234_v10 = vld [vmem:[%s6308_s12 + $0xb1] sm:$0xff] }
  0x1b   : > { %5766 = vmatprep.subr.bf16.mxu0 %v6363_v45  ;;  %v6471_v55 = vadd.f32 %v6334_v29, %v1860_v41  ;;  %v5661_v8 = vpack.c.bf16 %v412_v60, %v411_v59  ;;  %v414_v13 = vld [vmem:[%s8106_s3 + $0x48] sm:$0xff]  ;;  %v1895_v15 = vadd.f32 %v6334_v29, %v1863_v0  ;;  %v1865_v16 = vmul.f32 %v4233_v2, %v6329_v28  ;;  %v4311_v21 = vld [vmem:[%s8106_s3 + $0x2d0] sm:$0xff]  ;;  %v416_v30 = vld [vmem:[%s8106_s3 + $0x58] sm:$0xff] }
  0x1c   : > { %v1893_v62 = vadd.f32 %v6334_v29, %v1861_v49  ;;  %v1894_v9 = vadd.f32 %v6334_v29, %v1862_v57  ;;  %v4235_v19 = vld [vmem:[%s6308_s12 + $0xc1] sm:$0xff]  ;;  %v6510_v20 = vadd.f32 %v6334_v29, %v1864_v6  ;;  %v1866_v23 = vmul.f32 %v4234_v10, %v6329_v28  ;;  %v415_v27 = vld [vmem:[%s8106_s3 + $0x50] sm:$0xff]  ;;  %v4316_v57 = vld [vmem:[%s8106_s3 + $0x2f8] sm:$0xff] }
  0x1d   : > { %5640 = vmatpush3.bf16.msra.mxu1 %v5637_v44  ;;  %v409_v44 = vld [vmem:[%s8106_s3 + $0x20] sm:$0xff]  ;;  %v1924_v3 = vmax.f32 %v6471_v55, 0.0  ;;  %v1927_v31 = vmax.f32 %v1895_v15, 0.0  ;;  %v4236_v34 = vld [vmem:[%s6308_s12 + $0xc9] sm:$0xff]  ;;  %v420_v15 = vld [vmem:[%s8106_s3 + $0x78] sm:$0xff] }
  0x1e   : > { %5768 = vmatpush3.bf16.msra.mxu0 %v6363_v45  ;;  %5642 = vmatprep.subr.bf16.mxu1 %v5641_v51  ;;  %v5657_v56 = vpack.c.bf16 %v410_v46, %v409_v44  ;;  %v1926_v26 = vmax.f32 %v1894_v9, 0.0  ;;  %v4269_v37 = vld [vmem:[%s6308_s12 + $0x1a] sm:$0xff]  ;;  %v5669_v44 = vpack.c.bf16 %v416_v30, %v415_v27  ;;  %v1868_v46 = vmul.f32 %v4236_v34, %v6329_v28  ;;  %v418_v49 = vld [vmem:[%s8106_s3 + $0x68] sm:$0xff] }
  0x1f   : > { %5770 = vmatprep.subr.bf16.mxu0 %v6383_v53  ;;  %v4313_v41 = vld [vmem:[%s8106_s3 + $0x2e0] sm:$0xff]  ;;  %v2255_v52 = vmul.f32 %v4269_v37, %v6329_v28  ;;  %v4350_v10 = vld [vmem:[%s8106_s3 + $0x308] sm:$0xff]  ;;  %v4351_v37 = vld [vmem:[%s8106_s3 + $0x310] sm:$0xff] }
  0x20   : > { %v6565_v60 = vadd.f32 %v6334_v29, %v1868_v46  ;;  %v4272_v0 = vld [vmem:[%s6308_s12 + $0x3a] sm:$0xff]  ;;  %v4275_v30 = vld [vmem:[%s6308_s12 + $0x62] sm:$0xff] }
  0x21   : > { %5644 = vmatpush3.bf16.msra.mxu1 %v5641_v51  ;;  %v5785_v51 = vpack.c.bf16 %v4306_v40, %v4305_v38  ;;  %v1928_v38 = vmax.f32 %v6510_v20, 0.0  ;;  %v6533_v40 = vadd.f32 %v6334_v29, %v1866_v23  ;;  %v2287_v2 = vadd.f32 %v6334_v29, %v2255_v52  ;;  %v4349_v6 = vld [vmem:[%s8106_s3 + $0x300] sm:$0xff] }
  0x22   : > { %5772 = vmatpush3.bf16.msra.mxu0 %v6383_v53  ;;  %5646 = vmatprep.subr.bf16.mxu1 %v5645_v61  ;;  %v442_v20 = vld [vmem:[%s6308_s12 + $0xf9] sm:$0xff]  ;;  %v5809_v27 = vpack.c.bf16 %v4350_v10, %v4349_v6 }
  0x23   : > { %5774 = vmatprep.subr.bf16.mxu0 %v6403_v63 }
  0x25   : > { %5648 = vmatpush3.bf16.msra.mxu1 %v5645_v61  ;;  %v1923_v61 = vmax.f32 %v1891_v48, 0.0  ;;  %v417_v48 = vld [vmem:[%s8106_s3 + $0x60] sm:$0xff] }
  0x26   : > { %5776 = vmatpush3.bf16.msra.mxu0 %v6403_v63  ;;  %5650 = vmatprep.subr.bf16.mxu1 %v5649_v11  ;;  %v5673_v59 = vpack.c.bf16 %v418_v49, %v417_v48 }
  0x27   : > { %5778 = vmatprep.subr.bf16.mxu0 %v5777_v14 }
  0x28   : > { %4930 = vmatmul.mubr.f32.vlgmr.msra.gmra.mrb[0].mxu1 %v518_v18  ;;  %v5793_v18 = vpack.c.bf16 %v4310_v5, %v4309_v4  ;;  %v441_v4 = vld [vmem:[%s6308_s12 + $0xf1] sm:$0xff] }
  0x29   : > { %5250 = vmatmul.mubr.f32.vlgmr.msra.gmra.mrb[0].mxu0 %v1918_v22  ;;  %5652 = vmatpush3.bf16.msra.mxu1 %v5649_v11  ;;  %v413_v11 = vld [vmem:[%s8106_s3 + $0x40] sm:$0xff] }
  0x2a   : > { %5780 = vmatpush3.bf16.msra.mxu0 %v5777_v14  ;;  %4932 = vmatprep.mubr.f32.mxu1 %v1917_v43  ;;  %v4308_v43 = vld [vmem:[%s8106_s3 + $0x2b8] sm:$0xff]  ;;  %v1925_v14 = vmax.f32 %v1893_v62, 0.0  ;;  %v5665_v24 = vpack.c.bf16 %v414_v13, %v413_v11  ;;  %v440_v62 = vld [vmem:[%s6308_s12 + $0xe1] sm:$0xff]  ;;  %v2258_v13 = vmul.f32 %v4272_v0, %v6329_v28 }
  0x2b   : > { %5252 = vmatprep.mubr.f32.mxu0 %v1919_v32  ;;  %5782 = vmatprep.subr.bf16.mxu0 %v5781_v33  ;;  %v5789_v1 = vpack.c.bf16 %v4308_v43, %v4307_v39  ;;  %v4271_v39 = vld [vmem:[%s6308_s12 + $0x32] sm:$0xff]  ;;  %v1930_v43 = vmax.f32 %v6533_v40, 0.0  ;;  %v472_v11 = vmul.f32 %v6329_v28, %v440_v62 }
  0x2c   : > { %4933 = vmatmul.mubr.f32.gmra.mrb[2].mxu1 %v1918_v22  ;;  %5654 = vmatprep.subr.bf16.mxu1 %v5653_v36  ;;  %v4312_v22 = vld [vmem:[%s8106_s3 + $0x2d8] sm:$0xff]  ;;  %v2290_v34 = vadd.f32 %v6334_v29, %v2258_v13 }
  0x2d   : > { %5253 = vmatmul.mubr.f32.gmra.mrb[2].mxu0 %v1920_v42  ;;  %4935 = vmatprep.mubr.f32.mxu1 %v1919_v32  ;;  %v6526_v32 = vadd.f32 %v6334_v29, %v1865_v16  ;;  %v1932_v16 = vmax.f32 %v6565_v60, 0.0  ;;  %v444_v40 = vld [vmem:[%s6308_s12 + $0x111] sm:$0xff]  ;;  %v4353_v60 = vld [vmem:[%s8106_s3 + $0x320] sm:$0xff] }
  0x2e   : > { %5784 = vmatpush3.bf16.msra.mxu0 %v5781_v33  ;;  %5255 = vmatprep.mubr.f32.mxu0 %v1921_v47  ;;  %v1867_v33 = vmul.f32 %v4235_v19, %v6329_v28  ;;  %v473_v19 = vmul.f32 %v6329_v28, %v441_v4  ;;  %v4278_v4 = vld [vmem:[%s6308_s12 + $0x82] sm:$0xff] }
  0x2f   : > { %5786 = vmatprep.subr.bf16.mxu0 %v5785_v51  ;;  %5656 = vmatpush3.bf16.msra.mxu1 %v5653_v36  ;;  %v5797_v36 = vpack.c.bf16 %v4312_v22, %v4311_v21  ;;  %v1929_v50 = vmax.f32 %v6526_v32, 0.0  ;;  %v2319_v21 = vmax.f32 %v2287_v2, 0.0 }
  0x30   : > { %4936 = vmatmul.mubr.f32.gmra.mrb[4].mxu1 %v1920_v42  ;;  %5658 = vmatprep.subr.bf16.mxu1 %v5657_v56  ;;  %v4314_v42 = vld [vmem:[%s8106_s3 + $0x2e8] sm:$0xff] }
  0x31   : > { %5256 = vmatmul.mubr.f32.gmra.mrb[4].mxu0 %v1922_v54  ;;  %4938 = vmatprep.mubr.f32.mxu1 %v1921_v47  ;;  %v4270_v47 = vld [vmem:[%s6308_s12 + $0x22] sm:$0xff]  ;;  %v5801_v55 = vpack.c.bf16 %v4314_v42, %v4313_v41  ;;  %v505_v42 = vadd.f32 %v6334_v29, %v473_v19  ;;  %v2264_v19 = vmul.f32 %v4278_v4, %v6329_v28 }
  0x32   : > { %5788 = vmatpush3.bf16.msra.mxu0 %v5785_v51  ;;  %5258 = vmatprep.mubr.f32.mxu0 %v1923_v61  ;;  %v6551_v51 = vadd.f32 %v6334_v29, %v1867_v33  ;;  %v2256_v58 = vmul.f32 %v4270_v47, %v6329_v28  ;;  %v504_v33 = vadd.f32 %v6334_v29, %v472_v11  ;;  %v4276_v47 = vld [vmem:[%s6308_s12 + $0x6a] sm:$0xff] }
  0x33   : > { %5790 = vmatprep.subr.bf16.mxu0 %v5789_v1  ;;  %5660 = vmatpush3.bf16.msra.mxu1 %v5657_v56  ;;  %v4315_v56 = vld [vmem:[%s8106_s3 + $0x2f0] sm:$0xff]  ;;  %v537_v62 = vmax.f32 %v505_v42, 0.0  ;;  %v2296_v42 = vadd.f32 %v6334_v29, %v2264_v19 }
  0x34   : > { %4939 = vmatmul.mubr.f32.gmra.mrb[6].mxu1 %v1922_v54  ;;  %5662 = vmatprep.subr.bf16.mxu1 %v5661_v8  ;;  %v439_v54 = vld [vmem:[%s6308_s12 + $0xd9] sm:$0xff]  ;;  %v5805_v5 = vpack.c.bf16 %v4316_v57, %v4315_v56  ;;  %v2288_v9 = vadd.f32 %v6334_v29, %v2256_v58  ;;  %v536_v56 = vmax.f32 %v504_v33, 0.0  ;;  %v2322_v57 = vmax.f32 %v2290_v34, 0.0  ;;  %v449_v34 = vld [vmem:[%s6308_s12 + $0x151] sm:$0xff] }
  0x35   : > { %5259 = vmatmul.mubr.f32.gmra.mrb[6].mxu0 %v1924_v3  ;;  %4941 = vmatprep.mubr.f32.mxu1 %v1923_v61  ;;  %v471_v61 = vmul.f32 %v6329_v28, %v439_v54  ;;  %v476_v54 = vmul.f32 %v6329_v28, %v444_v40  ;;  %v4280_v33 = vld [vmem:[%s6308_s12 + $0x9a] sm:$0xff] }
  0x36   : > { %5792 = vmatpush3.bf16.msra.mxu0 %v5789_v1  ;;  %5261 = vmatprep.mubr.f32.mxu0 %v1925_v14  ;;  %v1931_v1 = vmax.f32 %v6551_v51, 0.0  ;;  %v2320_v32 = vmax.f32 %v2288_v9, 0.0  ;;  %v445_v51 = vld [vmem:[%s6308_s12 + $0x121] sm:$0xff]  ;;  %v447_v9 = vld [vmem:[%s6308_s12 + $0x139] sm:$0xff] }
  0x37   : > { %5794 = vmatprep.subr.bf16.mxu0 %v5793_v18  ;;  %5664 = vmatpush3.bf16.msra.mxu1 %v5661_v8  ;;  %v4273_v8 = vld [vmem:[%s6308_s12 + $0x4a] sm:$0xff]  ;;  %v477_v2 = vmul.f32 %v6329_v28, %v445_v51  ;;  %v508_v11 = vadd.f32 %v6334_v29, %v476_v54  ;;  %v2266_v51 = vmul.f32 %v4280_v33, %v6329_v28  ;;  %v4282_v54 = vld [vmem:[%s6308_s12 + $0xb2] sm:$0xff] }
  0x38   : > { %4942 = vmatmul.mubr.f32.gmra.mrb[8].mxu1 %v1924_v3  ;;  %5666 = vmatprep.subr.bf16.mxu1 %v5665_v24  ;;  %v2257_v3 = vmul.f32 %v4271_v39, %v6329_v28  ;;  %v2259_v23 = vmul.f32 %v4273_v8, %v6329_v28  ;;  %v4157_v39 = vld [vmem:[%s8106_s3 + $0x100] sm:$0xff]  ;;  %v264_v33 = vld [vmem:[%s6308_s12 + $0x8] sm:$0xff] }
  0x39   : > { %5262 = vmatmul.mubr.f32.gmra.mrb[8].mxu0 %v1926_v26  ;;  %4944 = vmatprep.mubr.f32.mxu1 %v1925_v14  ;;  %v419_v14 = vld [vmem:[%s8106_s3 + $0x70] sm:$0xff]  ;;  %v2298_v4 = vadd.f32 %v6334_v29, %v2266_v51 }
  0x3a   : > { %5796 = vmatpush3.bf16.msra.mxu0 %v5793_v18  ;;  %5264 = vmatprep.mubr.f32.mxu0 %v1927_v31  ;;  %v503_v18 = vadd.f32 %v6334_v29, %v471_v61  ;;  %v2289_v22 = vadd.f32 %v6334_v29, %v2257_v3  ;;  %v2291_v49 = vadd.f32 %v6334_v29, %v2259_v23  ;;  %v4354_v61 = vld [vmem:[%s8106_s3 + $0x328] sm:$0xff]  ;;  %v4363_v51 = vld [vmem:[%s8106_s3 + $0x370] sm:$0xff] }
  0x3b   : > { %5798 = vmatprep.subr.bf16.mxu0 %v5797_v36  ;;  %5668 = vmatpush3.bf16.msra.mxu1 %v5665_v24  ;;  %v4274_v24 = vld [vmem:[%s6308_s12 + $0x52] sm:$0xff]  ;;  %v446_v3 = vld [vmem:[%s6308_s12 + $0x129] sm:$0xff]  ;;  %v5817_v13 = vpack.c.bf16 %v4354_v61, %v4353_v60  ;;  %v2328_v61 = vmax.f32 %v2296_v42, 0.0 }
  0x3c   : > { %4945 = vmatmul.mubr.f32.gmra.mrb[10].mxu1 %v1926_v26  ;;  %5670 = vmatprep.subr.bf16.mxu1 %v5669_v44  ;;  %v443_v26 = vld [vmem:[%s6308_s12 + $0x109] sm:$0xff]  ;;  %v535_v41 = vmax.f32 %v503_v18, 0.0  ;;  %v2321_v48 = vmax.f32 %v2289_v22, 0.0  ;;  %v478_v18 = vmul.f32 %v6329_v28, %v446_v3  ;;  %v4287_v42 = vld [vmem:[%s6308_s12 + $0xf2] sm:$0xff] }
  0x3d   : > { %5265 = vmatmul.mubr.f32.gmra.mrb[10].mxu0 %v1928_v38  ;;  %4947 = vmatprep.mubr.f32.mxu1 %v1927_v31  ;;  %v5677_v31 = vpack.c.bf16 %v420_v15, %v419_v14  ;;  %v475_v46 = vmul.f32 %v6329_v28, %v443_v26  ;;  %v4279_v14 = vld [vmem:[%s6308_s12 + $0x92] sm:$0xff]  ;;  %v479_v26 = vmul.f32 %v6329_v28, %v447_v9  ;;  %v4284_v9 = vld [vmem:[%s6308_s12 + $0xca] sm:$0xff] }
  0x3e   : > { %5800 = vmatpush3.bf16.msra.mxu0 %v5797_v36  ;;  %5267 = vmatprep.mubr.f32.mxu0 %v1929_v50  ;;  %v474_v36 = vmul.f32 %v6329_v28, %v442_v20  ;;  %v4355_v20 = vld [vmem:[%s8106_s3 + $0x330] sm:$0xff] }
  0x3f   : > { %5802 = vmatprep.subr.bf16.mxu0 %v5801_v55  ;;  %5672 = vmatpush3.bf16.msra.mxu1 %v5669_v44  ;;  %v2260_v44 = vmul.f32 %v4274_v24, %v6329_v28  ;;  %v509_v24 = vadd.f32 %v6334_v29, %v477_v2  ;;  %v4360_v2 = vld [vmem:[%s8106_s3 + $0x358] sm:$0xff] }
  0x40   : > { %4948 = vmatmul.mubr.f32.gmra.mrb[12].mxu1 %v1928_v38  ;;  %5674 = vmatprep.subr.bf16.mxu1 %v5673_v59  ;;  %v4352_v38 = vld [vmem:[%s8106_s3 + $0x318] sm:$0xff]  ;;  %v506_v58 = vadd.f32 %v6334_v29, %v474_v36  ;;  %v540_v36 = vmax.f32 %v508_v11, 0.0 }
  0x41   : > { %5268 = vmatmul.mubr.f32.gmra.mrb[12].mxu0 %v1930_v43  ;;  %4950 = vmatprep.mubr.f32.mxu1 %v1929_v50  ;;  %v2261_v50 = vmul.f32 %v4275_v30, %v6329_v28  ;;  %v5813_v52 = vpack.c.bf16 %v4352_v38, %v4351_v37  ;;  %v2292_v0 = vadd.f32 %v6334_v29, %v2260_v44  ;;  %v4281_v37 = vld [vmem:[%s6308_s12 + $0xaa] sm:$0xff] }
  0x42   : > { %5804 = vmatpush3.bf16.msra.mxu0 %v5801_v55  ;;  %5270 = vmatprep.mubr.f32.mxu0 %v1931_v1  ;;  %v4277_v55 = vld [vmem:[%s6308_s12 + $0x7a] sm:$0xff]  ;;  %v538_v15 = vmax.f32 %v506_v58, 0.0  ;;  %v4283_v58 = vld [vmem:[%s6308_s12 + $0xc2] sm:$0xff] }
  0x43   : > { %5806 = vmatprep.subr.bf16.mxu0 %v5805_v5  ;;  %5676 = vmatpush3.bf16.msra.mxu1 %v5673_v59  ;;  %v2262_v59 = vmul.f32 %v4276_v47, %v6329_v28  ;;  %v2293_v6 = vadd.f32 %v6334_v29, %v2261_v50  ;;  %v2263_v8 = vmul.f32 %v4277_v55, %v6329_v28  ;;  %v2324_v22 = vmax.f32 %v2292_v0, 0.0  ;;  %v4357_v47 = vld [vmem:[%s8106_s3 + $0x340] sm:$0xff] }
  0x44   : > { %4951 = vmatmul.mubr.f32.gmra.mrb[14].mxu1 %v1930_v43  ;;  %5678 = vmatprep.subr.bf16.mxu1 %v5677_v31  ;;  %v4158_v43 = vld [vmem:[%s8106_s3 + $0x108] sm:$0xff]  ;;  %v511_v50 = vadd.f32 %v6334_v29, %v479_v26  ;;  %v2268_v0 = vmul.f32 %v4282_v54, %v6329_v28 }
  0x45   : > { %5271 = vmatmul.mubr.f32.gmra.mrb[14].mxu0 %v1932_v16  ;;  %4953 = vmatprep.mubr.f32.mxu1 %v1931_v1  ;;  %v507_v1 = vadd.f32 %v6334_v29, %v475_v46  ;;  %v6640_v10 = vpack.c.bf16 %v4158_v43, %v4157_v39  ;;  %v2325_v30 = vmax.f32 %v2293_v6, 0.0  ;;  %v450_v46 = vld [vmem:[%s6308_s12 + $0x159] sm:$0xff]  ;;  %v2267_v43 = vmul.f32 %v4281_v37, %v6329_v28  ;;  %v4362_v26 = vld [vmem:[%s8106_s3 + $0x368] sm:$0xff] }
  0x46   : > { %5808 = vmatpush3.bf16.msra.mxu0 %v5805_v5  ;;  %5329 = vmatprep.mubr.f32.mxu0 %v2319_v21  ;;  %v2323_v5 = vmax.f32 %v2291_v49, 0.0  ;;  %v4356_v21 = vld [vmem:[%s8106_s3 + $0x338] sm:$0xff]  ;;  %v541_v49 = vmax.f32 %v509_v24, 0.0  ;;  %v543_v3 = vmax.f32 %v511_v50, 0.0  ;;  %v4361_v24 = vld [vmem:[%s8106_s3 + $0x360] sm:$0xff] }
  0x47   : > { %5810 = vmatprep.subr.bf16.mxu0 %v5809_v27  ;;  %5680 = vmatpush3.bf16.msra.mxu1 %v5677_v31  ;;  %v539_v23 = vmax.f32 %v507_v1, 0.0  ;;  %v2295_v31 = vadd.f32 %v6334_v29, %v2263_v8  ;;  %v5821_v38 = vpack.c.bf16 %v4356_v21, %v4355_v20  ;;  %v4359_v1 = vld [vmem:[%s8106_s3 + $0x350] sm:$0xff]  ;;  %v2300_v21 = vadd.f32 %v6334_v29, %v2268_v0  ;;  %v266_v50 = vld [vmem:[%s6308_s12 + $0x20] sm:$0xff] }
  0x48   : > { %4954 = vmatmul.mubr.f32.gmra.mrb[16].mxu1 %v1932_v16  ;;  %v2294_v16 = vadd.f32 %v6334_v29, %v2262_v59  ;;  %5682 = vmatprep.subr.bf16.mxu1 %v6640_v10  ;;  %v452_v8 = vld [vmem:[%s6308_s12 + $0x171] sm:$0xff]  ;;  %v5829_v19 = vpack.c.bf16 %v4360_v2, %v4359_v1 }
  0x49   : > { %5330 = vmatmul.mubr.f32.vlgmr.msra.gmra.mrb[0].mxu0 %v2320_v32  ;;  %4956 = vmatprep.mubr.f32.mxu1 %v535_v41  ;;  %v2265_v32 = vmul.f32 %v4279_v14, %v6329_v28  ;;  %v510_v41 = vadd.f32 %v6334_v29, %v478_v18  ;;  %v2327_v55 = vmax.f32 %v2295_v31, 0.0  ;;  %v2269_v14 = vmul.f32 %v4283_v58, %v6329_v28  ;;  %v4285_v18 = vld [vmem:[%s6308_s12 + $0xda] sm:$0xff] }
  0x4a   : > { %5812 = vmatpush3.bf16.msra.mxu0 %v5809_v27  ;;  %5332 = vmatprep.mubr.f32.mxu0 %v2321_v48  ;;  %v448_v27 = vld [vmem:[%s6308_s12 + $0x141] sm:$0xff]  ;;  %v2326_v40 = vmax.f32 %v2294_v16, 0.0  ;;  %v2271_v37 = vmul.f32 %v4285_v18, %v6329_v28 }
  0x4b   : > { %5814 = vmatprep.subr.bf16.mxu0 %v5813_v52  ;;  %v480_v44 = vmul.f32 %v6329_v28, %v448_v27  ;;  %v4358_v48 = vld [vmem:[%s8106_s3 + $0x348] sm:$0xff]  ;;  %v2297_v39 = vadd.f32 %v6334_v29, %v2265_v32  ;;  %v542_v60 = vmax.f32 %v510_v41, 0.0  ;;  %v2330_v27 = vmax.f32 %v2298_v4, 0.0 }
  0x4c   : > { %4957 = vmatmul.mubr.f32.gmra.mrb[18].mxu1 %v536_v56  ;;  %v451_v56 = vld [vmem:[%s6308_s12 + $0x169] sm:$0xff]  ;;  %v5825_v59 = vpack.c.bf16 %v4358_v48, %v4357_v47  ;;  %v2303_v58 = vadd.f32 %v6334_v29, %v2271_v37 }
  0x4d   : > { %5333 = vmatmul.mubr.f32.gmra.mrb[2].mxu0 %v2322_v57  ;;  %4959 = vmatprep.mubr.f32.mxu1 %v537_v62  ;;  %v482_v57 = vmul.f32 %v6329_v28, %v450_v46  ;;  %v512_v62 = vadd.f32 %v6334_v29, %v480_v44  ;;  %v483_v6 = vmul.f32 %v6329_v28, %v451_v56  ;;  %v2329_v11 = vmax.f32 %v2297_v39, 0.0  ;;  %v4288_v56 = vld [vmem:[%s6308_s12 + $0xfa] sm:$0xff]  ;;  %v269_v18 = vld [vmem:[%s6308_s12 + $0x48] sm:$0xff] }
  0x4e   : > { %5335 = vmatprep.mubr.f32.mxu0 %v2323_v5  ;;  %5816 = vmatpush3.bf16.msra.mxu0 %v5813_v52  ;;  %v481_v52 = vmul.f32 %v6329_v28, %v449_v34  ;;  %v5833_v44 = vpack.c.bf16 %v4362_v26, %v4361_v24  ;;  %v2332_v46 = vmax.f32 %v2300_v21, 0.0  ;;  %v2274_v4 = vmul.f32 %v4288_v56, %v6329_v28  ;;  %v4397_v21 = vld [vmem:[%s8106_s3 + $0x380] sm:$0xff] }
  0x4f   : > { %5818 = vmatprep.subr.bf16.mxu0 %v5817_v13  ;;  %v514_v16 = vadd.f32 %v6334_v29, %v482_v57  ;;  %v544_v20 = vmax.f32 %v512_v62, 0.0  ;;  %v515_v31 = vadd.f32 %v6334_v29, %v483_v6  ;;  %v4289_v62 = vld [vmem:[%s6308_s12 + $0x10a] sm:$0xff] }
  0x50   : > { %4960 = vmatmul.mubr.f32.gmra.mrb[20].mxu1 %v538_v15  ;;  %v513_v5 = vadd.f32 %v6334_v29, %v481_v52  ;;  %v263_v15 = vld [vmem:[%s6308_s12] sm:$0xff]  ;;  %v4364_v52 = vld [vmem:[%s8106_s3 + $0x378] sm:$0xff]  ;;  %v2306_v24 = vadd.f32 %v6334_v29, %v2274_v4 }
  0x51   : > { %5336 = vmatmul.mubr.f32.gmra.mrb[4].mxu0 %v2324_v22  ;;  %4962 = vmatprep.mubr.f32.mxu1 %v539_v23  ;;  %v484_v22 = vmul.f32 %v6329_v28, %v452_v8  ;;  %v2270_v23 = vmul.f32 %v4284_v9, %v6329_v28  ;;  %v302_v32 = vmul.f32 %v6329_v28, %v263_v15  ;;  %v546_v41 = vmax.f32 %v514_v16, 0.0  ;;  %v4295_v4 = vld [vmem:[%s6308_s12 + $0x152] sm:$0xff] }
  0x52   : > { %5338 = vmatprep.mubr.f32.mxu0 %v2325_v30  ;;  %5820 = vmatpush3.bf16.msra.mxu0 %v5817_v13  ;;  %v2299_v13 = vadd.f32 %v6334_v29, %v2267_v43  ;;  %v545_v30 = vmax.f32 %v513_v5, 0.0  ;;  %v547_v54 = vmax.f32 %v515_v31, 0.0  ;;  %v5837_v0 = vpack.c.bf16 %v4364_v52, %v4363_v51 }
  0x53   : > { %5822 = vmatprep.subr.bf16.mxu0 %v5821_v38  ;;  %v516_v47 = vadd.f32 %v6334_v29, %v484_v22  ;;  %v2302_v48 = vadd.f32 %v6334_v29, %v2270_v23  ;;  %v2275_v16 = vmul.f32 %v4289_v62, %v6329_v28  ;;  %v4398_v22 = vld [vmem:[%s8106_s3 + $0x388] sm:$0xff] }
  0x54   : > { %4963 = vmatmul.mubr.f32.gmra.mrb[22].mxu1 %v540_v36  ;;  %v2331_v34 = vmax.f32 %v2299_v13, 0.0  ;;  %v2301_v36 = vadd.f32 %v6334_v29, %v2269_v14  ;;  %v4290_v13 = vld [vmem:[%s6308_s12 + $0x112] sm:$0xff]  ;;  %v2335_v14 = vmax.f32 %v2303_v58, 0.0 }
  0x55   : > { %5339 = vmatmul.mubr.f32.gmra.mrb[6].mxu0 %v2326_v40  ;;  %4965 = vmatprep.mubr.f32.mxu1 %v541_v49  ;;  %v265_v40 = vld [vmem:[%s6308_s12 + $0x18] sm:$0xff]  ;;  %v303_v49 = vmul.f32 %v6329_v28, %v264_v33  ;;  %v548_v1 = vmax.f32 %v516_v47, 0.0  ;;  %v2334_v2 = vmax.f32 %v2302_v48, 0.0  ;;  %v2276_v31 = vmul.f32 %v4290_v13, %v6329_v28  ;;  %v4163_v13 = vld [vmem:[%s8106_s3 + $0x130] sm:$0xff] }
  0x56   : > { %5341 = vmatprep.mubr.f32.mxu0 %v2327_v55  ;;  %5824 = vmatpush3.bf16.msra.mxu0 %v5821_v38  ;;  %v4286_v38 = vld [vmem:[%s6308_s12 + $0xe2] sm:$0xff]  ;;  %v341_v55 = vadd.f32 %v6334_v29, %v302_v32  ;;  %v304_v43 = vmul.f32 %v6329_v28, %v265_v40  ;;  %v2333_v57 = vmax.f32 %v2301_v36, 0.0  ;;  %v6777_v36 = vld [vmem:[%s8104_s1] ss:$0 sm:$0xff] }
  0x57   : > { %5826 = vmatprep.subr.bf16.mxu0 %v5825_v59  ;;  %v2272_v39 = vmul.f32 %v4286_v38, %v6329_v28  ;;  %v308_v37 = vmul.f32 %v6777_v36, %v269_v18 }
  0x58   : > { %4966 = vmatmul.mubr.f32.gmra.mrb[24].mxu1 %v542_v60  ;;  %v6733_v60 = vld [vmem:[%s6308_s12 + $0x30] sm:$0xff]  ;;  %v373_v5 = vmax.f32 %v341_v55, 0.0  ;;  %v343_v8 = vadd.f32 %v6334_v29, %v304_v43  ;;  %v272_v55 = vld [vmem:[%s6308_s12 + $0x68] sm:$0xff] }
  0x59   : > { %5342 = vmatmul.mubr.f32.gmra.mrb[8].mxu0 %v2328_v61  ;;  %4968 = vmatprep.mubr.f32.mxu1 %v543_v3  ;;  %v305_v61 = vmul.f32 %v6329_v28, %v266_v50  ;;  %v342_v3 = vadd.f32 %v6334_v29, %v303_v49  ;;  %v2304_v6 = vadd.f32 %v6334_v29, %v2272_v39  ;;  %v4293_v49 = vld [vmem:[%s6308_s12 + $0x13a] sm:$0xff]  ;;  %v2338_v50 = vmax.f32 %v2306_v24, 0.0  ;;  %v4162_v43 = vld [vmem:[%s8106_s3 + $0x128] sm:$0xff] }
  0x5a   : > { %5344 = vmatprep.mubr.f32.mxu0 %v2329_v11  ;;  %5828 = vmatpush3.bf16.msra.mxu0 %v5825_v59  ;;  %v2273_v59 = vmul.f32 %v4287_v42, %v6329_v28  ;;  %v306_v9 = vmul.f32 %v6329_v28, %v6733_v60  ;;  %v6744_v11 = vld [vmem:[%s6308_s12 + $0x38] sm:$0xff]  ;;  %v375_v33 = vmax.f32 %v343_v8, 0.0  ;;  %v4292_v42 = vld [vmem:[%s6308_s12 + $0x12a] sm:$0xff]  ;;  %v4161_v39 = vld [vmem:[%s8106_s3 + $0x120] sm:$0xff]  ;;  %v2281_v24 = vmul.f32 %v6777_v36, %v4295_v4 }
  0x5b   : > { %5830 = vmatprep.subr.bf16.mxu0 %v5829_v19  ;;  %v374_v23 = vmax.f32 %v342_v3, 0.0  ;;  %v307_v26 = vmul.f32 %v6329_v28, %v6744_v11  ;;  %v2336_v32 = vmax.f32 %v2304_v6, 0.0  ;;  %v270_v28 = vld [vmem:[%s6308_s12 + $0x50] sm:$0xff]  ;;  %v2278_v58 = vmul.f32 %v6777_v36, %v4292_v42 }
  0x5c   : > { %4969 = vmatmul.mubr.f32.gmra.mrb[26].mxu1 %v544_v20  ;;  %v2305_v15 = vadd.f32 %v6334_v29, %v2273_v59  ;;  %v4291_v20 = vld [vmem:[%s6308_s12 + $0x122] sm:$0xff]  ;;  %v5689_v3 = vpack.c.bf16 %v4162_v43, %v4161_v39  ;;  %v4300_v4 = vld [vmem:[%s6308_s12 + $0x18a] sm:$0xff] }
  0x5d   : > { %5345 = vmatmul.mubr.f32.gmra.mrb[10].mxu0 %v2330_v27  ;;  %4971 = vmatprep.mubr.f32.mxu1 %v545_v30  ;;  %v4159_v27 = vld [vmem:[%s8106_s3 + $0x110] sm:$0xff]  ;;  %v4160_v30 = vld [vmem:[%s8106_s3 + $0x118] sm:$0xff] }
  0x5e   : > { %5347 = vmatprep.mubr.f32.mxu0 %v2331_v34  ;;  %5832 = vmatpush3.bf16.msra.mxu0 %v5829_v19  ;;  %v344_v19 = vadd.f32 %v6334_v29, %v305_v61  ;;  %v6771_v29 = vld [vmem:[%s8105_s2] ss:$0 sm:$0xff]  ;;  %v2337_v38 = vmax.f32 %v2305_v15, 0.0  ;;  %v5685_v48 = vpack.c.bf16 %v4160_v30, %v4159_v27  ;;  %v4294_v61 = vld [vmem:[%s6308_s12 + $0x142] sm:$0xff]  ;;  %v4297_v30 = vld [vmem:[%s6308_s12 + $0x16a] sm:$0xff] }
  0x5f   : > { %5834 = vmatprep.subr.bf16.mxu0 %v5833_v44  ;;  %v345_v34 = vadd.f32 %v6771_v29, %v306_v9  ;;  %v2307_v40 = vadd.f32 %v6771_v29, %v2275_v16  ;;  %v346_v51 = vadd.f32 %v6771_v29, %v307_v26  ;;  %v2308_v52 = vadd.f32 %v6771_v29, %v2276_v31  ;;  %v275_v26 = vld [vmem:[%s6308_s12 + $0x90] sm:$0xff] }
  0x60   : > { %4972 = vmatmul.mubr.f32.gmra.mrb[28].mxu1 %v546_v41  ;;  %v2277_v41 = vmul.f32 %v6777_v36, %v4291_v20  ;;  %v376_v47 = vmax.f32 %v344_v19, 0.0  ;;  %v2280_v9 = vmul.f32 %v6777_v36, %v4294_v61  ;;  %v2310_v16 = vadd.f32 %v6771_v29, %v2278_v58  ;;  %v274_v20 = vld [vmem:[%s6308_s12 + $0x80] sm:$0xff]  ;;  %v278_v61 = vld [vmem:[%s6308_s12 + $0xb0] sm:$0xff] }
  0x61   : > { %5348 = vmatmul.mubr.f32.gmra.mrb[12].mxu0 %v2332_v46  ;;  %4974 = vmatprep.mubr.f32.mxu1 %v547_v54  ;;  %v6785_v46 = vpack.c.bf16 %v4398_v22, %v4397_v21  ;;  %v309_v54 = vmul.f32 %v6777_v36, %v270_v28  ;;  %v377_v56 = vmax.f32 %v345_v34, 0.0  ;;  %v2339_v62 = vmax.f32 %v2307_v40, 0.0  ;;  %v4296_v21 = vld [vmem:[%s6308_s12 + $0x15a] sm:$0xff] }
  0x62   : > { %5350 = vmatprep.mubr.f32.mxu0 %v2333_v57  ;;  %5836 = vmatpush3.bf16.msra.mxu0 %v5833_v44  ;;  %v271_v44 = vld [vmem:[%s6308_s12 + $0x60] sm:$0xff]  ;;  %v6801_v57 = vadd.f32 %v6771_v29, %v308_v37  ;;  %v2340_v6 = vmax.f32 %v2308_v52, 0.0  ;;  %v313_v34 = vmul.f32 %v6777_v36, %v274_v20  ;;  %v2282_v37 = vmul.f32 %v6777_v36, %v4296_v21  ;;  %v277_v52 = vld [vmem:[%s6308_s12 + $0xa8] sm:$0xff] }
  0x63   : > { %5838 = vmatprep.subr.bf16.mxu0 %v5837_v0  ;;  %v310_v59 = vmul.f32 %v6777_v36, %v271_v44  ;;  %v6812_v8 = vadd.f32 %v6771_v29, %v309_v54  ;;  %v4165_v28 = vld [vmem:[%s8106_s3 + $0x140] sm:$0xff]  ;;  %v2342_v40 = vmax.f32 %v2310_v16, 0.0  ;;  %v314_v44 = vmul.f32 %v6777_v36, %v275_v26 }
  0x64   : > { %4975 = vmatmul.mubr.f32.gmra.mrb[30].mxu1 %v548_v1  ;;  %v2279_v1 = vmul.f32 %v6777_v36, %v4293_v49  ;;  %v379_v15 = vmax.f32 %v6801_v57, 0.0  ;;  %v2313_v49 = vadd.f32 %v6771_v29, %v2281_v24  ;;  %v2314_v58 = vadd.f32 %v6771_v29, %v2282_v37  ;;  %v4170_v24 = vld [vmem:[%s8106_s3 + $0x168] sm:$0xff]  ;;  %v4404_v57 = vld [vmem:[%s8106_s3 + $0x3b8] sm:$0xff] }
  0x65   : > { %5351 = vmatmul.mubr.f32.gmra.mrb[14].mxu0 %v2334_v2  ;;  %5009 = vmatprep.mubr.f32.mxu1 %v373_v5  ;;  %v273_v2 = vld [vmem:[%s6308_s12 + $0x78] sm:$0xff]  ;;  %v378_v5 = vmax.f32 %v346_v51, 0.0  ;;  %v6824_v18 = vadd.f32 %v6771_v29, %v310_v59 }
  0x66   : > { %5353 = vmatprep.mubr.f32.mxu0 %v2335_v14  ;;  %5840 = vmatpush3.bf16.msra.mxu0 %v5837_v0  ;;  %v2309_v0 = vadd.f32 %v6771_v29, %v2277_v41  ;;  %v4164_v14 = vld [vmem:[%s8106_s3 + $0x138] sm:$0xff]  ;;  %v312_v19 = vmul.f32 %v6777_v36, %v273_v2  ;;  %v6878_v2 = vadd.f32 %v6771_v29, %v314_v44  ;;  %v2346_v20 = vmax.f32 %v2314_v58, 0.0  ;;  %v282_v58 = vld [vmem:[%s6308_s12 + $0xe0] sm:$0xff] }
  0x67   : > { %5842 = vmatprep.subr.bf16.mxu0 %v6785_v46  ;;  %v5693_v31 = vpack.c.bf16 %v4164_v14, %v4163_v13  ;;  %v381_v41 = vmax.f32 %v6824_v18, 0.0  ;;  %v4298_v51 = vld [vmem:[%s6308_s12 + $0x172] sm:$0xff]  ;;  %v279_v13 = vld [vmem:[%s6308_s12 + $0xc0] sm:$0xff]  ;;  %v317_v14 = vmul.f32 %v6777_v36, %v278_v61 }
  0x68   : > { %5010 = vmatmul.mubr.f32.vlgmr.msra.gmra.mrb[0].mxu1 %v374_v23  ;;  %v2341_v22 = vmax.f32 %v2309_v0, 0.0  ;;  %v2311_v23 = vadd.f32 %v6771_v29, %v2279_v1  ;;  %v6850_v42 = vadd.f32 %v6771_v29, %v312_v19  ;;  %v4168_v0 = vld [vmem:[%s8106_s3 + $0x158] sm:$0xff]  ;;  %v385_v26 = vmax.f32 %v6878_v2, 0.0  ;;  %v4405_v18 = vld [vmem:[%s8106_s3 + $0x3c0] sm:$0xff] }
  0x69   : > { %5354 = vmatmul.mubr.f32.gmra.mrb[16].mxu0 %v2336_v32  ;;  %5684 = vmatpush3.bf16.msra.mxu1 %v6640_v10  ;;  %v311_v10 = vmul.f32 %v6777_v36, %v272_v55  ;;  %v380_v32 = vmax.f32 %v6812_v8, 0.0  ;;  %v4299_v55 = vld [vmem:[%s6308_s12 + $0x182] sm:$0xff]  ;;  %v6914_v44 = vadd.f32 %v6771_v29, %v317_v14 }
  0x6a   : > { %5012 = vmatprep.mubr.f32.mxu1 %v375_v33  ;;  %5356 = vmatprep.mubr.f32.mxu0 %v2337_v38  ;;  %v2312_v33 = vadd.f32 %v6771_v29, %v2280_v9  ;;  %v4166_v38 = vld [vmem:[%s8106_s3 + $0x148] sm:$0xff]  ;;  %v383_v1 = vmax.f32 %v6850_v42, 0.0  ;;  %v2285_v9 = vmul.f32 %v6777_v36, %v4299_v55  ;;  %v4407_v42 = vld [vmem:[%s8106_s3 + $0x3d0] sm:$0xff]  ;;  %v4409_v2 = vld [vmem:[%s8106_s3 + $0x3e0] sm:$0xff] }
  0x6b   : > { %5686 = vmatprep.subr.bf16.mxu1 %v5685_v48  ;;  %v6833_v27 = vadd.f32 %v6771_v29, %v311_v10  ;;  %v5697_v39 = vpack.c.bf16 %v4166_v38, %v4165_v28  ;;  %v2284_v10 = vmul.f32 %v6777_v36, %v4298_v51  ;;  %v2658_v38 = vmul.f32 %v6777_v36, %v6733_v60  ;;  %v4171_v51 = vld [vmem:[%s8106_s3 + $0x170] sm:$0xff]  ;;  %v4206_v14 = vld [vmem:[%s8106_s3 + $0x188] sm:$0xff] }
  0x6c   : > { %5013 = vmatmul.mubr.f32.gmra.mrb[2].mxu1 %v376_v47  ;;  %v276_v47 = vld [vmem:[%s6308_s12 + $0x98] sm:$0xff]  ;;  %v2344_v43 = vmax.f32 %v2312_v33, 0.0  ;;  %v318_v33 = vmul.f32 %v6777_v36, %v279_v13  ;;  %v2317_v28 = vadd.f32 %v6771_v29, %v2285_v9  ;;  %v2659_v60 = vmul.f32 %v6777_v36, %v6744_v11  ;;  %v4205_v13 = vld [vmem:[%s8106_s3 + $0x180] sm:$0xff] }
  0x6d   : > { %5357 = vmatmul.mubr.f32.gmra.mrb[18].mxu0 %v2338_v50  ;;  %5015 = vmatprep.mubr.f32.mxu1 %v377_v56  ;;  %v2283_v50 = vmul.f32 %v6777_v36, %v4297_v30  ;;  %v382_v54 = vmax.f32 %v6833_v27, 0.0  ;;  %v6863_v56 = vadd.f32 %v6771_v29, %v313_v34  ;;  %v315_v59 = vmul.f32 %v6777_v36, %v276_v47  ;;  %v280_v34 = vld [vmem:[%s6308_s12 + $0xc8] sm:$0xff]  ;;  %v284_v9 = vld [vmem:[%s6308_s12 + $0xf8] sm:$0xff] }
  0x6e   : > { %5359 = vmatprep.mubr.f32.mxu0 %v2339_v62  ;;  %5688 = vmatpush3.bf16.msra.mxu1 %v5685_v48  ;;  %v2343_v48 = vmax.f32 %v2311_v23, 0.0  ;;  %v4167_v62 = vld [vmem:[%s8106_s3 + $0x150] sm:$0xff]  ;;  %v4169_v23 = vld [vmem:[%s8106_s3 + $0x160] sm:$0xff]  ;;  %v2316_v30 = vadd.f32 %v6771_v29, %v2284_v10  ;;  %v2690_v61 = vadd.f32 %v6771_v29, %v2658_v38 }
  0x6f   : > { %5690 = vmatprep.subr.bf16.mxu1 %v5689_v3  ;;  %v5701_v16 = vpack.c.bf16 %v4168_v0, %v4167_v62  ;;  %v384_v19 = vmax.f32 %v6863_v56, 0.0  ;;  %v6891_v21 = vadd.f32 %v6771_v29, %v315_v59  ;;  %v5705_v47 = vpack.c.bf16 %v4170_v24, %v4169_v23  ;;  %v283_v62 = vld [vmem:[%s6308_s12 + $0xf0] sm:$0xff]  ;;  %v285_v24 = vld [vmem:[%s6308_s12 + $0x108] sm:$0xff] }
  0x70   : > { %5016 = vmatmul.mubr.f32.gmra.mrb[4].mxu1 %v378_v5  ;;  %v2345_v5 = vmax.f32 %v2313_v49, 0.0  ;;  %v2348_v55 = vmax.f32 %v2316_v30, 0.0  ;;  %v2349_v59 = vmax.f32 %v2317_v28, 0.0  ;;  %v388_v0 = vmax.f32 %v6914_v44, 0.0  ;;  %v4399_v38 = vld [vmem:[%s8106_s3 + $0x390] sm:$0xff] }
  0x71   : > { %5360 = vmatmul.mubr.f32.gmra.mrb[20].mxu0 %v2340_v6  ;;  %5018 = vmatprep.mubr.f32.mxu1 %v379_v15  ;;  %v2315_v6 = vadd.f32 %v6771_v29, %v2283_v50  ;;  %v319_v50 = vmul.f32 %v6777_v36, %v280_v34  ;;  %v2722_v23 = vmax.f32 %v2690_v61, 0.0  ;;  %v323_v30 = vmul.f32 %v6777_v36, %v284_v9  ;;  %v4402_v61 = vld [vmem:[%s8106_s3 + $0x3a8] sm:$0xff] }
  0x72   : > { %5362 = vmatprep.mubr.f32.mxu0 %v2341_v22  ;;  %5692 = vmatpush3.bf16.msra.mxu1 %v5689_v3  ;;  %v316_v3 = vmul.f32 %v6777_v36, %v277_v52  ;;  %v2286_v22 = vmul.f32 %v6777_v36, %v4300_v4  ;;  %v4172_v52 = vld [vmem:[%s8106_s3 + $0x178] sm:$0xff] }
  0x73   : > { %5694 = vmatprep.subr.bf16.mxu1 %v5693_v31  ;;  %v2347_v37 = vmax.f32 %v2315_v6, 0.0  ;;  %v5709_v10 = vpack.c.bf16 %v4172_v52, %v4171_v51  ;;  %v6943_v4 = vadd.f32 %v6771_v29, %v319_v50  ;;  %v321_v6 = vmul.f32 %v6777_v36, %v282_v58  ;;  %v287_v51 = vld [vmem:[%s6308_s12 + $0x120] sm:$0xff] }
  0x74   : > { %5019 = vmatmul.mubr.f32.gmra.mrb[6].mxu1 %v380_v32  ;;  %v2318_v49 = vadd.f32 %v6771_v29, %v2286_v22  ;;  %v322_v22 = vmul.f32 %v6777_v36, %v283_v62  ;;  %v324_v50 = vmul.f32 %v6777_v36, %v285_v24  ;;  %v6987_v52 = vadd.f32 %v6771_v29, %v323_v30 }
  0x75   : > { %5363 = vmatmul.mubr.f32.gmra.mrb[22].mxu0 %v2342_v40  ;;  %5021 = vmatprep.mubr.f32.mxu1 %v381_v41  ;;  %v281_v40 = vld [vmem:[%s6308_s12 + $0xd8] sm:$0xff]  ;;  %v390_v34 = vmax.f32 %v6943_v4, 0.0  ;;  %v6969_v28 = vadd.f32 %v6771_v29, %v321_v6 }
  0x76   : > { %5365 = vmatprep.mubr.f32.mxu0 %v2343_v48  ;;  %5696 = vmatpush3.bf16.msra.mxu1 %v5693_v31  ;;  %v6905_v31 = vadd.f32 %v6771_v29, %v316_v3  ;;  %v386_v48 = vmax.f32 %v6891_v21, 0.0  ;;  %v320_v11 = vmul.f32 %v6777_v36, %v281_v40  ;;  %v2350_v3 = vmax.f32 %v2318_v49, 0.0  ;;  %v4400_v40 = vld [vmem:[%s8106_s3 + $0x398] sm:$0xff] }
  0x77   : > { %5698 = vmatprep.subr.bf16.mxu1 %v5697_v39  ;;  %v6981_v49 = vadd.f32 %v6771_v29, %v322_v22  ;;  %v289_v6 = vld [vmem:[%s6308_s12 + $0x138] sm:$0xff]  ;;  %v394_v9 = vmax.f32 %v6987_v52, 0.0 }
  0x78   : > { %5022 = vmatmul.mubr.f32.gmra.mrb[8].mxu1 %v382_v54  ;;  %v328_v30 = vmul.f32 %v6777_v36, %v289_v6 }
  0x79   : > { %5366 = vmatmul.mubr.f32.gmra.mrb[24].mxu0 %v2344_v43  ;;  %5024 = vmatprep.mubr.f32.mxu1 %v383_v1  ;;  %v6933_v43 = vadd.f32 %v6771_v29, %v318_v33  ;;  %v6963_v33 = vpack.c.bf16 %v4206_v14, %v4205_v13  ;;  %v393_v62 = vmax.f32 %v6981_v49, 0.0  ;;  %v4210_v49 = vld [vmem:[%s8106_s3 + $0x1a8] sm:$0xff] }
  0x7a   : > { %5368 = vmatprep.mubr.f32.mxu0 %v2345_v5  ;;  %5700 = vmatpush3.bf16.msra.mxu1 %v5697_v39  ;;  %v387_v39 = vmax.f32 %v6905_v31, 0.0  ;;  %v2691_v5 = vadd.f32 %v6771_v29, %v2659_v60  ;;  %v286_v60 = vld [vmem:[%s6308_s12 + $0x110] sm:$0xff] }
  0x7b   : > { %5702 = vmatprep.subr.bf16.mxu1 %v5701_v16  ;;  %v325_v58 = vmul.f32 %v6777_v36, %v286_v60  ;;  %v7057_v60 = vadd.f32 %v6771_v29, %v328_v30  ;;  %v4411_v31 = vld [vmem:[%s8106_s3 + $0x3f0] sm:$0xff] }
  0x7c   : > { %5025 = vmatmul.mubr.f32.gmra.mrb[10].mxu1 %v384_v19 }
  0x7d   : > { %5369 = vmatmul.mubr.f32.gmra.mrb[26].mxu0 %v2346_v20  ;;  %5027 = vmatprep.mubr.f32.mxu1 %v385_v26  ;;  %v6958_v20 = vadd.f32 %v6771_v29, %v320_v11  ;;  %v392_v11 = vmax.f32 %v6969_v28, 0.0  ;;  %v7016_v14 = vadd.f32 %v6771_v29, %v325_v58  ;;  %v293_v58 = vld [vmem:[%s6308_s12 + $0x168] sm:$0xff] }
  0x7e   : > { %5371 = vmatprep.mubr.f32.mxu0 %v2347_v37  ;;  %5704 = vmatpush3.bf16.msra.mxu1 %v5701_v16  ;;  %v389_v16 = vmax.f32 %v6933_v43, 0.0  ;;  %v2723_v37 = vmax.f32 %v2691_v5, 0.0  ;;  %v288_v5 = vld [vmem:[%s6308_s12 + $0x128] sm:$0xff]  ;;  %v332_v6 = vmul.f32 %v6777_v36, %v293_v58  ;;  %v4445_v43 = vld [vmem:[%s8106_s3 + $0x400] sm:$0xff] }
  0x7f   : > { %5706 = vmatprep.subr.bf16.mxu1 %v5705_v47  ;;  %v327_v22 = vmul.f32 %v6777_v36, %v288_v5 }
  0x80   : > { %5028 = vmatmul.mubr.f32.gmra.mrb[12].mxu1 %v386_v48  ;;  %v7109_v30 = vadd.f32 %v6771_v29, %v332_v6 }
  0x81   : > { %5372 = vmatmul.mubr.f32.gmra.mrb[28].mxu0 %v2348_v55  ;;  %5030 = vmatprep.mubr.f32.mxu1 %v387_v39  ;;  %v5845_v55 = vpack.c.bf16 %v4400_v40, %v4399_v38  ;;  %v396_v38 = vmax.f32 %v7016_v14, 0.0  ;;  %v7043_v40 = vadd.f32 %v6771_v29, %v327_v22  ;;  %v1016_v22 = vld [vmem:[%s6308_s12 + $0x2] sm:$0xff] }
  0x82   : > { %5374 = vmatprep.mubr.f32.mxu0 %v2349_v59  ;;  %5708 = vmatpush3.bf16.msra.mxu1 %v5705_v47  ;;  %v391_v47 = vmax.f32 %v6958_v20, 0.0  ;;  %v4401_v59 = vld [vmem:[%s8106_s3 + $0x3a0] sm:$0xff]  ;;  %v4207_v20 = vld [vmem:[%s8106_s3 + $0x190] sm:$0xff] }
  0x83   : > { %5710 = vmatprep.subr.bf16.mxu1 %v5709_v10  ;;  %v5849_v13 = vpack.c.bf16 %v4402_v61, %v4401_v59  ;;  %v398_v59 = vmax.f32 %v7043_v40, 0.0  ;;  %v4347_v40 = vld [vmem:[%s6308_s12 + $0x198] sm:$0xff] }
  0x84   : > { %5031 = vmatmul.mubr.f32.gmra.mrb[14].mxu1 %v388_v0 }
  0x85   : > { %5375 = vmatmul.mubr.f32.gmra.mrb[30].mxu0 %v2350_v3  ;;  %5033 = vmatprep.mubr.f32.mxu1 %v389_v16  ;;  %v326_v3 = vmul.f32 %v6777_v36, %v287_v51 }
  0x86   : > { %5409 = vmatprep.mubr.f32.mxu0 %v2722_v23  ;;  %5712 = vmatpush3.bf16.msra.mxu1 %v5709_v10  ;;  %v7004_v10 = vadd.f32 %v6771_v29, %v324_v50  ;;  %v290_v23 = vld [vmem:[%s6308_s12 + $0x140] sm:$0xff] }
  0x87   : > { %5714 = vmatprep.subr.bf16.mxu1 %v6963_v33  ;;  %v7032_v24 = vadd.f32 %v6771_v29, %v326_v3  ;;  %v329_v8 = vmul.f32 %v6777_v36, %v290_v23  ;;  %v399_v3 = vmax.f32 %v7057_v60, 0.0  ;;  %v1031_v60 = vld [vmem:[%s6308_s12 + $0xb2] sm:$0xff] }
  0x88   : > { %5034 = vmatmul.mubr.f32.gmra.mrb[16].mxu1 %v390_v34 }
  0x89   : > { %5410 = vmatmul.mubr.f32.vlgmr.msra.gmra.mrb[0].mxu0 %v2723_v37  ;;  %5036 = vmatprep.mubr.f32.mxu1 %v391_v47  ;;  %v291_v37 = vld [vmem:[%s6308_s12 + $0x150] sm:$0xff]  ;;  %v397_v50 = vmax.f32 %v7032_v24, 0.0  ;;  %v7065_v27 = vadd.f32 %v6771_v29, %v329_v8  ;;  %v4213_v24 = vld [vmem:[%s8106_s3 + $0x1c0] sm:$0xff] }
  0x8a   : > { %5844 = vmatpush3.bf16.msra.mxu0 %v6785_v46  ;;  %5412 = vmatprep.mubr.f32.mxu0 %v379_v15  ;;  %v4403_v46 = vld [vmem:[%s8106_s3 + $0x3b0] sm:$0xff]  ;;  %v395_v15 = vmax.f32 %v7004_v10, 0.0  ;;  %v330_v51 = vmul.f32 %v6777_v36, %v291_v37  ;;  %v1048_v37 = vmul.f32 %v6777_v36, %v1016_v22  ;;  %v1021_v22 = vld [vmem:[%s6308_s12 + $0x3a] sm:$0xff] }
  0x8b   : > { %5846 = vmatprep.subr.bf16.mxu0 %v5845_v55  ;;  %v400_v56 = vmax.f32 %v7065_v27, 0.0  ;;  %v1017_v8 = vld [vmem:[%s6308_s12 + $0xa] sm:$0xff]  ;;  %v4212_v10 = vld [vmem:[%s8106_s3 + $0x1b8] sm:$0xff] }
  0x8c   : > { %5037 = vmatmul.mubr.f32.gmra.mrb[18].mxu1 %v392_v11  ;;  %v7083_v5 = vadd.f32 %v6771_v29, %v330_v51  ;;  %v1019_v51 = vld [vmem:[%s6308_s12 + $0x22] sm:$0xff]  ;;  %v1080_v58 = vadd.f32 %v6771_v29, %v1048_v37  ;;  %v4365_v27 = vld [vmem:[%s6308_s12 + $0x31] sm:$0xff] }
  0x8d   : > { %5413 = vmatmul.mubr.f32.gmra.mrb[2].mxu0 %v380_v32  ;;  %5039 = vmatprep.mubr.f32.mxu1 %v393_v62  ;;  %v5853_v32 = vpack.c.bf16 %v4404_v57, %v4403_v46 }
  0x8e   : > { %5415 = vmatprep.mubr.f32.mxu0 %v381_v41  ;;  %5848 = vmatpush3.bf16.msra.mxu0 %v5845_v55  ;;  %v4406_v41 = vld [vmem:[%s8106_s3 + $0x3c8] sm:$0xff]  ;;  %v292_v55 = vld [vmem:[%s6308_s12 + $0x158] sm:$0xff]  ;;  %v401_v57 = vmax.f32 %v7083_v5, 0.0  ;;  %v1112_v6 = vmax.f32 %v1080_v58, 0.0  ;;  %v4209_v58 = vld [vmem:[%s8106_s3 + $0x1a0] sm:$0xff] }
  0x8f   : > { %5850 = vmatprep.subr.bf16.mxu0 %v5849_v13  ;;  %v331_v61 = vmul.f32 %v6777_v36, %v292_v55  ;;  %v403_v55 = vmax.f32 %v7109_v30, 0.0  ;;  %v7282_v30 = vld [vmem:[%s8105_s2] ss:$0 sm:$0xff] }
  0x90   : > { %5040 = vmatmul.mubr.f32.gmra.mrb[20].mxu1 %v394_v9 }
  0x91   : > { %5416 = vmatmul.mubr.f32.gmra.mrb[4].mxu0 %v382_v54  ;;  %5042 = vmatprep.mubr.f32.mxu1 %v395_v15  ;;  %v5857_v54 = vpack.c.bf16 %v4406_v41, %v4405_v18  ;;  %v7094_v23 = vadd.f32 %v6771_v29, %v331_v61  ;;  %v1049_v41 = vmul.f32 %v6777_v36, %v1017_v8  ;;  %v1020_v61 = vld [vmem:[%s6308_s12 + $0x32] sm:$0xff] }
  0x92   : > { %5418 = vmatprep.mubr.f32.mxu0 %v383_v1  ;;  %5852 = vmatpush3.bf16.msra.mxu0 %v5849_v13  ;;  %v4408_v1 = vld [vmem:[%s8106_s3 + $0x3d8] sm:$0xff]  ;;  %v294_v13 = vld [vmem:[%s6308_s12 + $0x170] sm:$0xff] }
  0x93   : > { %5854 = vmatprep.subr.bf16.mxu0 %v5853_v32  ;;  %v333_v46 = vmul.f32 %v6777_v36, %v294_v13  ;;  %v1052_v13 = vmul.f32 %v6777_v36, %v1020_v61 }
  0x94   : > { %5043 = vmatmul.mubr.f32.gmra.mrb[22].mxu1 %v396_v38 }
  0x95   : > { %5419 = vmatmul.mubr.f32.gmra.mrb[6].mxu0 %v384_v19  ;;  %5045 = vmatprep.mubr.f32.mxu1 %v397_v50  ;;  %v5861_v19 = vpack.c.bf16 %v4408_v1, %v4407_v42  ;;  %v7120_v18 = vadd.f32 %v6771_v29, %v333_v46  ;;  %v1051_v42 = vmul.f32 %v6777_v36, %v1019_v51  ;;  %v1022_v46 = vld [vmem:[%s6308_s12 + $0x4a] sm:$0xff] }
  0x96   : > { %5421 = vmatprep.mubr.f32.mxu0 %v385_v26  ;;  %5856 = vmatpush3.bf16.msra.mxu0 %v5853_v32  ;;  %v4410_v26 = vld [vmem:[%s8106_s3 + $0x3e8] sm:$0xff]  ;;  %v1018_v32 = vld [vmem:[%s6308_s12 + $0x1a] sm:$0xff]  ;;  %v1081_v1 = vadd.f32 %v6771_v29, %v1049_v41  ;;  %v1084_v37 = vadd.f32 %v6771_v29, %v1052_v13  ;;  %v1054_v8 = vmul.f32 %v6777_v36, %v1022_v46  ;;  %v1028_v13 = vld [vmem:[%s6308_s12 + $0x92] sm:$0xff] }
  0x97   : > { %5858 = vmatprep.subr.bf16.mxu0 %v5857_v54  ;;  %v5865_v21 = vpack.c.bf16 %v4410_v26, %v4409_v2  ;;  %v1083_v2 = vadd.f32 %v6771_v29, %v1051_v42  ;;  %v1053_v26 = vmul.f32 %v6777_v36, %v1021_v22  ;;  %v1024_v41 = vld [vmem:[%s6308_s12 + $0x62] sm:$0xff]  ;;  %v1026_v42 = vld [vmem:[%s6308_s12 + $0x7a] sm:$0xff] }
  0x98   : > { %5046 = vmatmul.mubr.f32.gmra.mrb[24].mxu1 %v398_v59  ;;  %v1056_v61 = vmul.f32 %v6777_v36, %v1024_v41 }
  0x99   : > { %5422 = vmatmul.mubr.f32.gmra.mrb[8].mxu0 %v386_v48  ;;  %5048 = vmatprep.mubr.f32.mxu1 %v399_v3  ;;  %v402_v48 = vmax.f32 %v7094_v23, 0.0  ;;  %v1115_v51 = vmax.f32 %v1083_v2, 0.0  ;;  %v1085_v28 = vadd.f32 %v6771_v29, %v1053_v26  ;;  %v1060_v26 = vmul.f32 %v6777_v36, %v1028_v13  ;;  %v4366_v13 = vld [vmem:[%s6308_s12 + $0x39] sm:$0xff] }
  0x9a   : > { %5424 = vmatprep.mubr.f32.mxu0 %v387_v39  ;;  %5860 = vmatpush3.bf16.msra.mxu0 %v5857_v54  ;;  %v4412_v39 = vld [vmem:[%s8106_s3 + $0x3f8] sm:$0xff]  ;;  %v1050_v54 = vmul.f32 %v6777_v36, %v1018_v32 }
  0x9b   : > { %5862 = vmatprep.subr.bf16.mxu0 %v5861_v19  ;;  %v5869_v44 = vpack.c.bf16 %v4412_v39, %v4411_v31  ;;  %v1023_v32 = vld [vmem:[%s6308_s12 + $0x52] sm:$0xff]  ;;  %v1025_v39 = vld [vmem:[%s6308_s12 + $0x6a] sm:$0xff]  ;;  %v1117_v52 = vmax.f32 %v1085_v28, 0.0 }
  0x9c   : > { %5049 = vmatmul.mubr.f32.gmra.mrb[26].mxu1 %v400_v56 }
  0x9d   : > { %5425 = vmatmul.mubr.f32.gmra.mrb[10].mxu0 %v388_v0  ;;  %5051 = vmatprep.mubr.f32.mxu1 %v401_v57  ;;  %v404_v0 = vmax.f32 %v7120_v18, 0.0  ;;  %v7307_v18 = vld [vmem:[%s6308_s12 + $0xf2] sm:$0xff] }
  0x9e   : > { %5427 = vmatprep.mubr.f32.mxu0 %v389_v16  ;;  %5864 = vmatpush3.bf16.msra.mxu0 %v5861_v19  ;;  %v4446_v16 = vld [vmem:[%s8106_s3 + $0x408] sm:$0xff]  ;;  %v1082_v19 = vadd.f32 %v6771_v29, %v1050_v54  ;;  %v1086_v54 = vadd.f32 %v6771_v29, %v1054_v8 }
  0x9f   : > { %5866 = vmatprep.subr.bf16.mxu0 %v5865_v21  ;;  %v7162_v4 = vpack.c.bf16 %v4446_v16, %v4445_v43  ;;  %v1088_v43 = vadd.f32 %v6771_v29, %v1056_v61  ;;  %v1058_v16 = vmul.f32 %v6777_v36, %v1026_v42  ;;  %v1030_v8 = vld [vmem:[%s6308_s12 + $0xaa] sm:$0xff]  ;;  %v1063_v61 = vmul.f32 %v6777_v36, %v1031_v60 }
  0xa0   : > { %5052 = vmatmul.mubr.f32.gmra.mrb[28].mxu1 %v402_v48 }
  0xa1   : > { %5428 = vmatmul.mubr.f32.gmra.mrb[12].mxu0 %v390_v34  ;;  %5054 = vmatprep.mubr.f32.mxu1 %v403_v55  ;;  %v1113_v34 = vmax.f32 %v1081_v1, 0.0  ;;  %v5721_v1 = vpack.c.bf16 %v4210_v49, %v4209_v58  ;;  %v1120_v2 = vmax.f32 %v1088_v43, 0.0  ;;  %v4348_v58 = vld [vmem:[%s6308_s12 + $0x1a0] sm:$0xff]  ;;  %v1095_v23 = vadd.f32 %v6771_v29, %v1063_v61  ;;  %v7324_v61 = vld [vmem:[%s6308_s12 + $0x10a] sm:$0xff] }
  0xa2   : > { %5430 = vmatprep.mubr.f32.mxu0 %v391_v47  ;;  %5868 = vmatpush3.bf16.msra.mxu0 %v5865_v21  ;;  %v4208_v47 = vld [vmem:[%s8106_s3 + $0x198] sm:$0xff]  ;;  %v1114_v21 = vmax.f32 %v1082_v19, 0.0  ;;  %v4345_v19 = vld [vmem:[%s6308_s12 + $0x180] sm:$0xff] }
  0xa3   : > { %5870 = vmatprep.subr.bf16.mxu0 %v5869_v44  ;;  %v5717_v31 = vpack.c.bf16 %v4208_v47, %v4207_v20  ;;  %v1029_v20 = vld [vmem:[%s6308_s12 + $0x9a] sm:$0xff]  ;;  %v4346_v47 = vld [vmem:[%s6308_s12 + $0x188] sm:$0xff] }
  0xa4   : > { %5055 = vmatmul.mubr.f32.gmra.mrb[30].mxu1 %v404_v0  ;;  %v1061_v41 = vmul.f32 %v6777_v36, %v1029_v20  ;;  %v1035_v20 = vld [vmem:[%s6308_s12 + $0xe2] sm:$0xff] }
  0xa5   : > { %5431 = vmatmul.mubr.f32.gmra.mrb[14].mxu0 %v392_v11  ;;  %5089 = vmatprep.mubr.f32.mxu1 %v1112_v6  ;;  %v1055_v11 = vmul.f32 %v6777_v36, %v1023_v32  ;;  %v1027_v6 = vld [vmem:[%s6308_s12 + $0x82] sm:$0xff] }
  0xa6   : > { %5433 = vmatprep.mubr.f32.mxu0 %v393_v62  ;;  %5872 = vmatpush3.bf16.msra.mxu0 %v5869_v44  ;;  %v1116_v62 = vmax.f32 %v1084_v37, 0.0  ;;  %v1057_v44 = vmul.f32 %v6777_v36, %v1025_v39  ;;  %v1059_v46 = vmul.f32 %v6777_v36, %v1027_v6  ;;  %v2686_v37 = vmul.f32 %v6777_v36, %v4345_v19 }
  0xa7   : > { %5874 = vmatprep.subr.bf16.mxu0 %v7162_v4  ;;  %v1062_v39 = vmul.f32 %v6777_v36, %v1030_v8  ;;  %v3060_v6 = vmul.f32 %v6777_v36, %v4365_v27 }
  0xa8   : > { %5090 = vmatmul.mubr.f32.vlgmr.msra.gmra.mrb[0].mxu1 %v1113_v34  ;;  %v1089_v22 = vadd.f32 %v6771_v29, %v1057_v44  ;;  %v1090_v34 = vadd.f32 %v6771_v29, %v1058_v16  ;;  %v2718_v49 = vadd.f32 %v6771_v29, %v2686_v37  ;;  %v1093_v44 = vadd.f32 %v6771_v29, %v1061_v41 }
  0xa9   : > { %5434 = vmatmul.mubr.f32.gmra.mrb[16].mxu0 %v394_v9  ;;  %5716 = vmatpush3.bf16.msra.mxu1 %v6963_v33  ;;  %v1087_v33 = vadd.f32 %v6771_v29, %v1055_v11  ;;  %v4211_v9 = vld [vmem:[%s8106_s3 + $0x1b0] sm:$0xff]  ;;  %v1092_v11 = vadd.f32 %v6771_v29, %v1060_v26  ;;  %v3092_v8 = vadd.f32 %v7282_v30, %v3060_v6 }
  0xaa   : > { %5092 = vmatprep.mubr.f32.mxu1 %v1114_v21  ;;  %5436 = vmatprep.mubr.f32.mxu0 %v395_v15  ;;  %v1118_v15 = vmax.f32 %v1086_v54, 0.0  ;;  %v5725_v14 = vpack.c.bf16 %v4212_v10, %v4211_v9  ;;  %v1121_v32 = vmax.f32 %v1089_v22, 0.0  ;;  %v1091_v21 = vadd.f32 %v6771_v29, %v1059_v46  ;;  %v1032_v54 = vld [vmem:[%s6308_s12 + $0xc2] sm:$0xff]  ;;  %v1034_v22 = vld [vmem:[%s6308_s12 + $0xda] sm:$0xff]  ;;  %v4219_v46 = vld [vmem:[%s8106_s3 + $0x1f0] sm:$0xff] }
  0xab   : > { %5718 = vmatprep.subr.bf16.mxu1 %v5717_v31  ;;  %v1122_v28 = vmax.f32 %v1090_v34, 0.0  ;;  %v1094_v9 = vadd.f32 %v6771_v29, %v1062_v39  ;;  %v1064_v10 = vmul.f32 %v6777_v36, %v1032_v54  ;;  %v2750_v43 = vmax.f32 %v2718_v49, 0.0 }
  0xac   : > { %5093 = vmatmul.mubr.f32.gmra.mrb[2].mxu1 %v1115_v51  ;;  %v2687_v51 = vmul.f32 %v6777_v36, %v4346_v47  ;;  %v1123_v42 = vmax.f32 %v1091_v21, 0.0  ;;  %v4368_v47 = vld [vmem:[%s6308_s12 + $0x51] sm:$0xff]  ;;  %v3124_v49 = vmax.f32 %v3092_v8, 0.0 }
  0xad   : > { %5437 = vmatmul.mubr.f32.gmra.mrb[18].mxu0 %v396_v38  ;;  %5095 = vmatprep.mubr.f32.mxu1 %v1116_v62  ;;  %v1119_v38 = vmax.f32 %v1087_v33, 0.0  ;;  %v2688_v62 = vmul.f32 %v6777_v36, %v4347_v40  ;;  %v1124_v33 = vmax.f32 %v1092_v11, 0.0  ;;  %v4369_v40 = vld [vmem:[%s6308_s12 + $0x61] sm:$0xff] }
  0xae   : > { %5439 = vmatprep.mubr.f32.mxu0 %v397_v50  ;;  %5720 = vmatpush3.bf16.msra.mxu1 %v5717_v31  ;;  %v4214_v50 = vld [vmem:[%s8106_s3 + $0x1c8] sm:$0xff]  ;;  %v4216_v31 = vld [vmem:[%s8106_s3 + $0x1d8] sm:$0xff]  ;;  %v2719_v5 = vadd.f32 %v6771_v29, %v2687_v51 }
  0xaf   : > { %5722 = vmatprep.subr.bf16.mxu1 %v5721_v1  ;;  %v2720_v16 = vadd.f32 %v6771_v29, %v2688_v62 }
  0xb0   : > { %5096 = vmatmul.mubr.f32.gmra.mrb[4].mxu1 %v1117_v52  ;;  %v4218_v52 = vld [vmem:[%s8106_s3 + $0x1e8] sm:$0xff] }
  0xb1   : > { %5440 = vmatmul.mubr.f32.gmra.mrb[20].mxu0 %v398_v59  ;;  %5098 = vmatprep.mubr.f32.mxu1 %v1118_v15  ;;  %v5729_v59 = vpack.c.bf16 %v4214_v50, %v4213_v24  ;;  %v1033_v15 = vld [vmem:[%s6308_s12 + $0xca] sm:$0xff]  ;;  %v4220_v24 = vld [vmem:[%s8106_s3 + $0x1f8] sm:$0xff]  ;;  %v1126_v50 = vmax.f32 %v1094_v9, 0.0  ;;  %v2752_v37 = vmax.f32 %v2720_v16, 0.0 }
  0xb2   : > { %5442 = vmatprep.mubr.f32.mxu0 %v399_v3  ;;  %5724 = vmatpush3.bf16.msra.mxu1 %v5721_v1  ;;  %v4215_v3 = vld [vmem:[%s8106_s3 + $0x1d0] sm:$0xff]  ;;  %v4217_v1 = vld [vmem:[%s8106_s3 + $0x1e0] sm:$0xff] }
  0xb3   : > { %5726 = vmatprep.subr.bf16.mxu1 %v5725_v14  ;;  %v5737_v19 = vpack.c.bf16 %v4218_v52, %v4217_v1  ;;  %v4447_v1 = vld [vmem:[%s8106_s3 + $0x410] sm:$0xff]  ;;  %v4448_v52 = vld [vmem:[%s8106_s3 + $0x418] sm:$0xff] }
  0xb4   : > { %5099 = vmatmul.mubr.f32.gmra.mrb[6].mxu1 %v1119_v38  ;;  %v2751_v38 = vmax.f32 %v2719_v5, 0.0 }
  0xb5   : > { %5443 = vmatmul.mubr.f32.gmra.mrb[22].mxu0 %v400_v56  ;;  %5101 = vmatprep.mubr.f32.mxu1 %v1120_v2  ;;  %v5733_v56 = vpack.c.bf16 %v4216_v31, %v4215_v3  ;;  %v1096_v2 = vadd.f32 %v7282_v30, %v1064_v10  ;;  %v7314_v3 = vld [vmem:[%s6308_s12 + $0xfa] sm:$0xff] }
  0xb6   : > { %5445 = vmatprep.mubr.f32.mxu0 %v401_v57  ;;  %5728 = vmatpush3.bf16.msra.mxu1 %v5725_v14  ;;  %v2689_v57 = vmul.f32 %v6777_v36, %v4348_v58  ;;  %v1125_v14 = vmax.f32 %v1093_v44, 0.0  ;;  %v4370_v58 = vld [vmem:[%s6308_s12 + $0x69] sm:$0xff] }
  0xb7   : > { %5730 = vmatprep.subr.bf16.mxu1 %v5729_v59  ;;  %v1128_v31 = vmax.f32 %v1096_v2, 0.0 }
  0xb8   : > { %5102 = vmatmul.mubr.f32.gmra.mrb[8].mxu1 %v1121_v32  ;;  %v2721_v36 = vadd.f32 %v7282_v30, %v2689_v57 }
  0xb9   : > { %5446 = vmatmul.mubr.f32.gmra.mrb[24].mxu0 %v402_v48  ;;  %5104 = vmatprep.mubr.f32.mxu1 %v1122_v28  ;;  %v4367_v48 = vld [vmem:[%s6308_s12 + $0x49] sm:$0xff] }
  0xba   : > { %5448 = vmatprep.mubr.f32.mxu0 %v403_v55  ;;  %5732 = vmatpush3.bf16.msra.mxu1 %v5729_v59  ;;  %v7288_v55 = vld [vmem:[%s8104_s1] ss:$0 sm:$0xff]  ;;  %v5741_v59 = vpack.c.bf16 %v4220_v24, %v4219_v46  ;;  %v2753_v21 = vmax.f32 %v2721_v36, 0.0 }
  0xbb   : > { %5734 = vmatprep.subr.bf16.mxu1 %v5733_v56  ;;  %v1065_v29 = vmul.f32 %v7288_v55, %v1033_v15  ;;  %v3061_v34 = vmul.f32 %v7288_v55, %v4366_v13  ;;  %v1066_v26 = vmul.f32 %v7288_v55, %v1034_v22  ;;  %v3062_v32 = vmul.f32 %v7288_v55, %v4367_v48  ;;  %v4372_v22 = vld [vmem:[%s6308_s12 + $0x81] sm:$0xff] }
  0xbc   : > { %5105 = vmatmul.mubr.f32.gmra.mrb[10].mxu1 %v1123_v42  ;;  %v1067_v51 = vmul.f32 %v7288_v55, %v1035_v20  ;;  %v3063_v60 = vmul.f32 %v7288_v55, %v4368_v47  ;;  %v1068_v39 = vmul.f32 %v7288_v55, %v7307_v18  ;;  %v3064_v54 = vmul.f32 %v7288_v55, %v4369_v40  ;;  %v4449_v24 = vld [vmem:[%s8106_s3 + $0x420] sm:$0xff]  ;;  %v7367_v47 = vld [vmem:[%s6308_s12 + $0x12a] sm:$0xff] }
  0xbd   : > { %5449 = vmatmul.mubr.f32.gmra.mrb[26].mxu0 %v404_v0  ;;  %5107 = vmatprep.mubr.f32.mxu1 %v1124_v33  ;;  %v1127_v0 = vmax.f32 %v1095_v23, 0.0  ;;  %v1097_v41 = vadd.f32 %v7282_v30, %v1065_v29  ;;  %v3093_v28 = vadd.f32 %v7282_v30, %v3061_v34  ;;  %v1098_v11 = vadd.f32 %v7282_v30, %v1066_v26  ;;  %v7348_v23 = vld [vmem:[%s6308_s12 + $0x122] sm:$0xff]  ;;  %v7374_v40 = vld [vmem:[%s6308_s12 + $0x13a] sm:$0xff] }
  0xbe   : > { %5451 = vmatprep.mubr.f32.mxu0 %v2750_v43  ;;  %5736 = vmatpush3.bf16.msra.mxu1 %v5733_v56  ;;  %v3094_v62 = vadd.f32 %v7282_v30, %v3062_v32  ;;  %v1069_v27 = vmul.f32 %v7288_v55, %v7314_v3  ;;  %v4371_v56 = vld [vmem:[%s6308_s12 + $0x79] sm:$0xff]  ;;  %v1099_v44 = vadd.f32 %v7282_v30, %v1067_v51 }
  0xbf   : > { %5738 = vmatprep.subr.bf16.mxu1 %v5737_v19  ;;  %v1129_v42 = vmax.f32 %v1097_v41, 0.0  ;;  %v3095_v5 = vadd.f32 %v7282_v30, %v3063_v60  ;;  %v3065_v57 = vmul.f32 %v7288_v55, %v4370_v58  ;;  %v3125_v33 = vmax.f32 %v3093_v28, 0.0  ;;  %v7342_v43 = vld [vmem:[%s6308_s12 + $0x112] sm:$0xff]  ;;  %v4375_v41 = vld [vmem:[%s6308_s12 + $0xa9] sm:$0xff] }
  0xc0   : > { %5108 = vmatmul.mubr.f32.gmra.mrb[12].mxu1 %v1125_v14  ;;  %v1130_v9 = vmax.f32 %v1098_v11, 0.0  ;;  %v1100_v10 = vadd.f32 %v7282_v30, %v1068_v39  ;;  %v1070_v15 = vmul.f32 %v7288_v55, %v7324_v61  ;;  %v3126_v16 = vmax.f32 %v3094_v62, 0.0  ;;  %v4373_v14 = vld [vmem:[%s6308_s12 + $0x91] sm:$0xff]  ;;  %v7382_v28 = vld [vmem:[%s6308_s12 + $0x142] sm:$0xff] }
  0xc1   : > { %5452 = vmatmul.mubr.f32.gmra.mrb[28].mxu0 %v2751_v38  ;;  %5110 = vmatprep.mubr.f32.mxu1 %v1126_v50  ;;  %v3096_v6 = vadd.f32 %v7282_v30, %v3064_v54  ;;  %v3066_v13 = vmul.f32 %v7288_v55, %v4371_v56  ;;  %v1101_v48 = vadd.f32 %v7282_v30, %v1069_v27  ;;  %v1131_v38 = vmax.f32 %v1099_v44, 0.0  ;;  %v4450_v50 = vld [vmem:[%s8106_s3 + $0x428] sm:$0xff]  ;;  %v4451_v11 = vld [vmem:[%s8106_s3 + $0x430] sm:$0xff]  ;;  %v4452_v39 = vld [vmem:[%s8106_s3 + $0x438] sm:$0xff] }
  0xc2   : > { %5454 = vmatprep.mubr.f32.mxu0 %v2752_v37  ;;  %5740 = vmatpush3.bf16.msra.mxu1 %v5737_v19  ;;  %v5877_v19 = vpack.c.bf16 %v4448_v52, %v4447_v1  ;;  %v3127_v36 = vmax.f32 %v3095_v5, 0.0  ;;  %v3097_v29 = vadd.f32 %v7282_v30, %v3065_v57  ;;  %v1071_v46 = vmul.f32 %v7288_v55, %v7342_v43  ;;  %v4374_v37 = vld [vmem:[%s6308_s12 + $0x99] sm:$0xff]  ;;  %v4376_v27 = vld [vmem:[%s6308_s12 + $0xb1] sm:$0xff]  ;;  %v4377_v1 = vld [vmem:[%s6308_s12 + $0xc1] sm:$0xff] }
  0xc3   : > { %5742 = vmatprep.subr.bf16.mxu1 %v5741_v59  ;;  %v1132_v2 = vmax.f32 %v1100_v10, 0.0  ;;  %v1102_v34 = vadd.f32 %v7282_v30, %v1070_v15  ;;  %v3067_v26 = vmul.f32 %v7288_v55, %v4372_v22  ;;  %v1072_v20 = vmul.f32 %v7288_v55, %v7348_v23  ;;  %v7398_v5 = vld [vmem:[%s6308_s12 + $0x152] sm:$0xff] }
  0xc4   : > { %5111 = vmatmul.mubr.f32.gmra.mrb[14].mxu1 %v1127_v0  ;;  %v3128_v8 = vmax.f32 %v3096_v6, 0.0  ;;  %v3098_v32 = vadd.f32 %v7282_v30, %v3066_v13  ;;  %v3068_v0 = vmul.f32 %v7288_v55, %v4373_v14  ;;  %v3129_v51 = vmax.f32 %v3097_v29, 0.0  ;;  %v4454_v6 = vld [vmem:[%s8106_s3 + $0x448] sm:$0xff]  ;;  %v7416_v14 = vld [vmem:[%s6308_s12 + $0x15a] sm:$0xff] }
  0xc5   : > { %5455 = vmatmul.mubr.f32.gmra.mrb[30].mxu0 %v2753_v21  ;;  %5113 = vmatprep.mubr.f32.mxu1 %v1128_v31  ;;  %v5881_v21 = vpack.c.bf16 %v4450_v50, %v4449_v24  ;;  %v1103_v60 = vadd.f32 %v7282_v30, %v1071_v46  ;;  %v3069_v31 = vmul.f32 %v7288_v55, %v4374_v37  ;;  %v1134_v58 = vmax.f32 %v1102_v34, 0.0  ;;  %v4378_v46 = vld [vmem:[%s6308_s12 + $0xc9] sm:$0xff] }
  0xc6   : > { %5489 = vmatprep.mubr.f32.mxu0 %v3124_v49  ;;  %5744 = vmatpush3.bf16.msra.mxu1 %v5741_v59  ;;  %v1133_v59 = vmax.f32 %v1101_v48, 0.0  ;;  %v3099_v49 = vadd.f32 %v7282_v30, %v3067_v26  ;;  %v1104_v62 = vadd.f32 %v7282_v30, %v1072_v20  ;;  %v1074_v54 = vmul.f32 %v7288_v55, %v7374_v40  ;;  %v7422_v24 = vld [vmem:[%s6308_s12 + $0x16a] sm:$0xff] }
  0xc7   : > { %5905 = vmatprep.subr.bf16.mxu1 %v6263_v7  ;;  %v3130_v56 = vmax.f32 %v3098_v32, 0.0  ;;  %v3070_v44 = vmul.f32 %v7288_v55, %v4375_v41  ;;  %v1075_v57 = vmul.f32 %v7288_v55, %v7382_v28  ;;  %v5885_v52 = vpack.c.bf16 %v4452_v39, %v4451_v11  ;;  %v4455_v32 = vld [vmem:[%s8106_s3 + $0x450] sm:$0xff] }
  0xc8   : > { %5114 = vmatmul.mubr.f32.gmra.mrb[16].mxu1 %v1129_v42  ;;  %v3100_v42 = vadd.f32 %v7282_v30, %v3068_v0  ;;  %v3101_v10 = vadd.f32 %v7282_v30, %v3069_v31  ;;  %v3071_v15 = vmul.f32 %v7288_v55, %v4376_v27  ;;  %v3131_v13 = vmax.f32 %v3099_v49, 0.0  ;;  %v4456_v0 = vld [vmem:[%s8106_s3 + $0x458] sm:$0xff] }
  0xc9   : > { %5490 = vmatmul.mubr.f32.vlgmr.msra.gmra.mrb[0].mxu0 %v3125_v33  ;;  %5116 = vmatprep.mubr.f32.mxu1 %v1130_v9  ;;  %v1135_v33 = vmax.f32 %v1103_v60, 0.0  ;;  %v1136_v22 = vmax.f32 %v1104_v62, 0.0  ;;  %v1106_v48 = vadd.f32 %v7282_v30, %v1074_v54  ;;  %v3072_v29 = vmul.f32 %v7288_v55, %v4377_v1  ;;  %v7440_v60 = vld [vmem:[%s6308_s12 + $0x172] sm:$0xff]  ;;  %v4458_v1 = vld [vmem:[%s8106_s3 + $0x468] sm:$0xff] }
  0xca   : > { %5876 = vmatpush3.bf16.msra.mxu0 %v7162_v4  ;;  %5492 = vmatprep.mubr.f32.mxu0 %v3126_v16  ;;  %v1073_v4 = vmul.f32 %v7288_v55, %v7367_v47  ;;  %v4453_v16 = vld [vmem:[%s8106_s3 + $0x440] sm:$0xff]  ;;  %v1107_v50 = vadd.f32 %v7282_v30, %v1075_v57  ;;  %v3133_v20 = vmax.f32 %v3101_v10, 0.0  ;;  %v3103_v37 = vadd.f32 %v7282_v30, %v3071_v15  ;;  %v4381_v62 = vld [vmem:[%s6308_s12 + $0xf1] sm:$0xff] }
  0xcb   : > { %5878 = vmatprep.subr.bf16.mxu0 %v5877_v19  ;;  %v5889_v34 = vpack.c.bf16 %v4454_v6, %v4453_v16  ;;  %v3073_v41 = vmul.f32 %v7288_v55, %v4378_v46  ;;  %v3104_v11 = vadd.f32 %v7282_v30, %v3072_v29  ;;  %v5893_v54 = vpack.c.bf16 %v4456_v0, %v4455_v32  ;;  %v4457_v57 = vld [vmem:[%s8106_s3 + $0x460] sm:$0xff]  ;;  %v4176_v32 = vld [vmem:[%s6308_s12 + $0x38] sm:$0xff] }
  0xcc   : > { %5117 = vmatmul.mubr.f32.gmra.mrb[18].mxu1 %v1131_v38  ;;  %v1105_v9 = vadd.f32 %v7282_v30, %v1073_v4  ;;  %v3132_v38 = vmax.f32 %v3100_v42, 0.0  ;;  %v4380_v4 = vld [vmem:[%s6308_s12 + $0xe1] sm:$0xff]  ;;  %v1139_v49 = vmax.f32 %v1107_v50, 0.0  ;;  %v3135_v27 = vmax.f32 %v3103_v37, 0.0  ;;  %v4384_v0 = vld [vmem:[%s6308_s12 + $0x111] sm:$0xff] }
  0xcd   : > { %5493 = vmatmul.mubr.f32.gmra.mrb[2].mxu0 %v3127_v36  ;;  %5119 = vmatprep.mubr.f32.mxu1 %v1132_v2  ;;  %v3102_v36 = vadd.f32 %v7282_v30, %v3070_v44  ;;  %v4379_v2 = vld [vmem:[%s6308_s12 + $0xd9] sm:$0xff]  ;;  %v1079_v42 = vmul.f32 %v7288_v55, %v7440_v60  ;;  %v3075_v44 = vmul.f32 %v7288_v55, %v4380_v4  ;;  %v3136_v16 = vmax.f32 %v3104_v11, 0.0  ;;  %v4177_v4 = vld [vmem:[%s6308_s12 + $0x48] sm:$0xff] }
  0xce   : > { %5495 = vmatprep.mubr.f32.mxu0 %v3128_v8  ;;  %5880 = vmatpush3.bf16.msra.mxu0 %v5877_v19  ;;  %v1076_v19 = vmul.f32 %v7288_v55, %v7398_v5  ;;  %v1137_v26 = vmax.f32 %v1105_v9, 0.0  ;;  %v1077_v8 = vmul.f32 %v7288_v55, %v7416_v14  ;;  %v3074_v39 = vmul.f32 %v7288_v55, %v4379_v2  ;;  %v4174_v15 = vld [vmem:[%s6308_s12 + $0x20] sm:$0xff]  ;;  %v4459_v2 = vld [vmem:[%s8106_s3 + $0x470] sm:$0xff] }
  0xcf   : > { %5882 = vmatprep.subr.bf16.mxu0 %v5881_v21  ;;  %v3134_v31 = vmax.f32 %v3102_v36, 0.0  ;;  %v1111_v29 = vadd.f32 %v7282_v30, %v1079_v42  ;;  %v7470_v46 = vadd.f32 %v7282_v30, %v3075_v44  ;;  %v1452_v50 = vmul.f32 %v7288_v55, %v4174_v15  ;;  %v4178_v44 = vld [vmem:[%s6308_s12 + $0x50] sm:$0xff]  ;;  %v4387_v15 = vld [vmem:[%s6308_s12 + $0x139] sm:$0xff] }
  0xd0   : > { %5120 = vmatmul.mubr.f32.gmra.mrb[20].mxu1 %v1133_v59  ;;  %v1138_v59 = vmax.f32 %v1106_v48, 0.0  ;;  %v7462_v6 = vadd.f32 %v7282_v30, %v3074_v39  ;;  %v4175_v48 = vld [vmem:[%s6308_s12 + $0x30] sm:$0xff]  ;;  %v1455_v42 = vmul.f32 %v7288_v55, %v4177_v4 }
  0xd1   : > { %5496 = vmatmul.mubr.f32.gmra.mrb[4].mxu0 %v3129_v51  ;;  %5122 = vmatprep.mubr.f32.mxu1 %v1134_v58  ;;  %v1078_v51 = vmul.f32 %v7288_v55, %v7422_v24  ;;  %v4173_v58 = vld [vmem:[%s6308_s12 + $0x18] sm:$0xff]  ;;  %v1143_v39 = vmax.f32 %v1111_v29, 0.0 }
  0xd2   : > { %5498 = vmatprep.mubr.f32.mxu0 %v3130_v56  ;;  %5884 = vmatpush3.bf16.msra.mxu0 %v5881_v21  ;;  %v1108_v21 = vadd.f32 %v7282_v30, %v1076_v19  ;;  %v1109_v56 = vadd.f32 %v7282_v30, %v1077_v8  ;;  %v1451_v10 = vmul.f32 %v7288_v55, %v4173_v58  ;;  %v4383_v19 = vld [vmem:[%s6308_s12 + $0x109] sm:$0xff] }
  0xd3   : > { %5886 = vmatprep.subr.bf16.mxu0 %v5885_v52  ;;  %v1110_v9 = vadd.f32 %v7282_v30, %v1078_v51  ;;  %v3078_v51 = vmul.f32 %v7288_v55, %v4383_v19  ;;  %v1484_v58 = vadd.f32 %v7282_v30, %v1452_v50  ;;  %v4180_v19 = vld [vmem:[%s6308_s12 + $0x68] sm:$0xff] }
  0xd4   : > { %5123 = vmatmul.mubr.f32.gmra.mrb[22].mxu1 %v1135_v33  ;;  %v3105_v33 = vadd.f32 %v7282_v30, %v3073_v41  ;;  %v1141_v36 = vmax.f32 %v1109_v56, 0.0  ;;  %v1483_v37 = vadd.f32 %v7282_v30, %v1451_v10  ;;  %v1453_v41 = vmul.f32 %v7288_v55, %v4175_v48  ;;  %v4179_v10 = vld [vmem:[%s6308_s12 + $0x60] sm:$0xff] }
  0xd5   : > { %5499 = vmatmul.mubr.f32.gmra.mrb[6].mxu0 %v3131_v13  ;;  %5125 = vmatprep.mubr.f32.mxu1 %v1136_v22  ;;  %v3076_v13 = vmul.f32 %v7288_v55, %v4381_v62  ;;  %v4382_v22 = vld [vmem:[%s6308_s12 + $0xf9] sm:$0xff]  ;;  %v3079_v62 = vmul.f32 %v7288_v55, %v4384_v0  ;;  %v1456_v48 = vmul.f32 %v7288_v55, %v4178_v44  ;;  %v4389_v0 = vld [vmem:[%s6308_s12 + $0x151] sm:$0xff] }
  0xd6   : > { %5501 = vmatprep.mubr.f32.mxu0 %v3132_v38  ;;  %5888 = vmatpush3.bf16.msra.mxu0 %v5885_v52  ;;  %v1140_v52 = vmax.f32 %v1108_v21, 0.0  ;;  %v5897_v38 = vpack.c.bf16 %v4458_v1, %v4457_v57  ;;  %v3077_v8 = vmul.f32 %v7288_v55, %v4382_v22  ;;  %v1515_v56 = vmax.f32 %v1483_v37, 0.0 }
  0xd7   : > { %5890 = vmatprep.subr.bf16.mxu0 %v5889_v34  ;;  %v7485_v21 = vadd.f32 %v7282_v30, %v3076_v13  ;;  %v1485_v1 = vadd.f32 %v7282_v30, %v1453_v41  ;;  %v7513_v22 = vadd.f32 %v7282_v30, %v3079_v62  ;;  %v1457_v50 = vmul.f32 %v7288_v55, %v4179_v10  ;;  %v4182_v62 = vld [vmem:[%s6308_s12 + $0x80] sm:$0xff] }
  0xd8   : > { %5126 = vmatmul.mubr.f32.gmra.mrb[24].mxu1 %v1137_v26  ;;  %v3137_v26 = vmax.f32 %v3105_v33, 0.0  ;;  %v3082_v37 = vmul.f32 %v7288_v55, %v4387_v15  ;;  %v1488_v4 = vadd.f32 %v7282_v30, %v1456_v48 }
  0xd9   : > { %5502 = vmatmul.mubr.f32.gmra.mrb[8].mxu0 %v3133_v20  ;;  %5128 = vmatprep.mubr.f32.mxu1 %v1138_v59  ;;  %v1142_v20 = vmax.f32 %v1110_v9, 0.0  ;;  %v3138_v59 = vmax.f32 %v7462_v6, 0.0  ;;  %v3140_v57 = vmax.f32 %v7485_v21, 0.0  ;;  %v4386_v9 = vld [vmem:[%s6308_s12 + $0x129] sm:$0xff] }
  0xda   : > { %5504 = vmatprep.mubr.f32.mxu0 %v3134_v31  ;;  %5892 = vmatpush3.bf16.msra.mxu0 %v5889_v34  ;;  %v4460_v34 = vld [vmem:[%s8106_s3 + $0x478] sm:$0xff]  ;;  %v4385_v31 = vld [vmem:[%s6308_s12 + $0x121] sm:$0xff]  ;;  %v3081_v29 = vmul.f32 %v7288_v55, %v4386_v9  ;;  %v7551_v44 = vadd.f32 %v7282_v30, %v3082_v37  ;;  %v4391_v9 = vld [vmem:[%s6308_s12 + $0x169] sm:$0xff]  ;;  %v1520_v10 = vmax.f32 %v1488_v4, 0.0 }
  0xdb   : > { %5894 = vmatprep.subr.bf16.mxu0 %v5893_v54  ;;  %v5901_v11 = vpack.c.bf16 %v4460_v34, %v4459_v2  ;;  %v3080_v33 = vmul.f32 %v7288_v55, %v4385_v31  ;;  %v4388_v2 = vld [vmem:[%s6308_s12 + $0x141] sm:$0xff]  ;;  %v1517_v34 = vmax.f32 %v1485_v1, 0.0  ;;  %v4183_v1 = vld [vmem:[%s6308_s12 + $0x90] sm:$0xff]  ;;  %v3086_v37 = vmul.f32 %v7288_v55, %v4391_v9 }
  0xdc   : > { %5129 = vmatmul.mubr.f32.gmra.mrb[26].mxu1 %v1139_v49  ;;  %v1454_v49 = vmul.f32 %v7288_v55, %v4176_v32  ;;  %v1458_v32 = vmul.f32 %v7288_v55, %v4180_v19  ;;  %v3083_v31 = vmul.f32 %v7288_v55, %v4388_v2  ;;  %v8114_v2 = vmax.f32 %v7551_v44, 0.0 }
  0xdd   : > { %5505 = vmatmul.mubr.f32.gmra.mrb[10].mxu0 %v3135_v27  ;;  %5131 = vmatprep.mubr.f32.mxu1 %v1140_v52  ;;  %v3139_v27 = vmax.f32 %v7470_v46, 0.0  ;;  %v7505_v52 = vadd.f32 %v7282_v30, %v3078_v51  ;;  %v3143_v51 = vmax.f32 %v7513_v22, 0.0  ;;  %v7599_v9 = vadd.f32 %v7282_v30, %v3086_v37  ;;  %v4443_v22 = vld [vmem:[%s6308_s12 + $0x19a] sm:$0xff] }
  0xde   : > { %5507 = vmatprep.mubr.f32.mxu0 %v3136_v16  ;;  %5896 = vmatpush3.bf16.msra.mxu0 %v5893_v54  ;;  %v7496_v54 = vadd.f32 %v7282_v30, %v3077_v8  ;;  %v1516_v16 = vmax.f32 %v1484_v58, 0.0  ;;  %v1486_v13 = vadd.f32 %v7282_v30, %v1454_v49  ;;  %v4181_v8 = vld [vmem:[%s6308_s12 + $0x78] sm:$0xff]  ;;  %v1489_v58 = vadd.f32 %v7282_v30, %v1457_v50 }
  0xdf   : > { %5898 = vmatprep.subr.bf16.mxu0 %v5897_v38  ;;  %v1459_v49 = vmul.f32 %v7288_v55, %v4181_v8  ;;  %v7559_v15 = vadd.f32 %v7282_v30, %v3083_v31  ;;  %v4184_v50 = vld [vmem:[%s6308_s12 + $0x98] sm:$0xff] }
  0xe0   : > { %5132 = vmatmul.mubr.f32.gmra.mrb[28].mxu1 %v1141_v36  ;;  %v1487_v36 = vadd.f32 %v7282_v30, %v1455_v42  ;;  %v1518_v41 = vmax.f32 %v1486_v13, 0.0  ;;  %v1521_v19 = vmax.f32 %v1489_v58, 0.0  ;;  %v4392_v8 = vld [vmem:[%s6308_s12 + $0x171] sm:$0xff] }
  0xe1   : > { %5508 = vmatmul.mubr.f32.gmra.mrb[12].mxu0 %v3137_v26  ;;  %5134 = vmatprep.mubr.f32.mxu1 %v1142_v20  ;;  %v3142_v26 = vmax.f32 %v7505_v52, 0.0  ;;  %v7528_v20 = vadd.f32 %v7282_v30, %v3080_v33  ;;  %v1490_v33 = vadd.f32 %v7282_v30, %v1458_v32  ;;  %v4185_v32 = vld [vmem:[%s6308_s12 + $0xa8] sm:$0xff]  ;;  %v8113_v4 = vmax.f32 %v7559_v15, 0.0  ;;  %v4186_v58 = vld [vmem:[%s6308_s12 + $0xb0] sm:$0xff] }
  0xe2   : > { %5510 = vmatprep.mubr.f32.mxu0 %v3138_v59  ;;  %5900 = vmatpush3.bf16.msra.mxu0 %v5897_v38  ;;  %v3141_v38 = vmax.f32 %v7496_v54, 0.0  ;;  %v4441_v54 = vld [vmem:[%s6308_s12 + $0x182] sm:$0xff] }
  0xe3   : > { %5902 = vmatprep.subr.bf16.mxu0 %v5901_v11  ;;  %v8116_v42 = vmax.f32 %v7528_v20, 0.0  ;;  %v8119_v52 = vmax.f32 %v7528_v20, 0.0  ;;  %v8121_v20 = vmax.f32 %v7551_v44, 0.0 }
  0xe4   : > { %5135 = vmatmul.mubr.f32.gmra.mrb[30].mxu1 %v1143_v39  ;;  %v1519_v39 = vmax.f32 %v1487_v36, 0.0  ;;  %v1491_v36 = vadd.f32 %v7282_v30, %v1459_v49 }
  0xe5   : > { %5511 = vmatmul.mubr.f32.gmra.mrb[14].mxu0 %v3139_v27  ;;  %5169 = vmatprep.mubr.f32.mxu1 %v1515_v56  ;;  %v4390_v56 = vld [vmem:[%s6308_s12 + $0x159] sm:$0xff] }
  0xe6   : > { %5513 = vmatprep.mubr.f32.mxu0 %v3140_v57  ;;  %5904 = vmatpush3.bf16.msra.mxu0 %v5901_v11  ;;  %v7541_v11 = vadd.f32 %v7282_v30, %v3081_v29  ;;  %v3085_v13 = vmul.f32 %v7288_v55, %v4390_v56  ;;  %v1461_v29 = vmul.f32 %v7288_v55, %v4183_v1  ;;  %v1523_v49 = vmax.f32 %v1491_v36, 0.0  ;;  %v4394_v1 = vld [vmem:[%s6308_s12 + $0x189] sm:$0xff] }
  0xe7   : > { %v3087_v56 = vmul.f32 %v7288_v55, %v4392_v8 }
  0xe8   : > { %5170 = vmatmul.mubr.f32.vlgmr.msra.gmra.mrb[0].mxu1 %v1516_v16  ;;  %v1460_v16 = vmul.f32 %v7288_v55, %v4182_v62  ;;  %v8115_v48 = vmax.f32 %v7541_v11, 0.0  ;;  %v1493_v62 = vadd.f32 %v7282_v30, %v1461_v29 }
  0xe9   : > { %5514 = vmatmul.mubr.f32.gmra.mrb[16].mxu0 %v3141_v38  ;;  %5913 = vmatpush3.bf16.msra.mxu1 %v6263_v7  ;;  %v3084_v7 = vmul.f32 %v7288_v55, %v4389_v0  ;;  %v1522_v0 = vmax.f32 %v1490_v33, 0.0  ;;  %v7612_v8 = vadd.f32 %v7282_v30, %v3087_v56 }
  0xea   : > { %5172 = vmatprep.mubr.f32.mxu1 %v1517_v34  ;;  %5516 = vmatprep.mubr.f32.mxu0 %v3142_v26  ;;  %v1492_v31 = vadd.f32 %v7282_v30, %v1460_v16  ;;  %v4187_v16 = vld [vmem:[%s6308_s12 + $0xc0] sm:$0xff]  ;;  %v1525_v37 = vmax.f32 %v1493_v62, 0.0  ;;  %v4189_v62 = vld [vmem:[%s6308_s12 + $0xd8] sm:$0xff] }
  0xeb   : > { %5906 = vmatprep.subr.bf16.mxu1 %v6276_v12  ;;  %v7574_v34 = vadd.f32 %v7282_v30, %v3084_v7  ;;  %v1463_v7 = vmul.f32 %v7288_v55, %v4185_v32 }
  0xec   : > { %5173 = vmatmul.mubr.f32.gmra.mrb[2].mxu1 %v1518_v41  ;;  %v4393_v41 = vld [vmem:[%s6308_s12 + $0x181] sm:$0xff]  ;;  %v1524_v36 = vmax.f32 %v1492_v31, 0.0 }
  0xed   : > { %5517 = vmatmul.mubr.f32.gmra.mrb[18].mxu0 %v3143_v51  ;;  %5175 = vmatprep.mubr.f32.mxu1 %v1519_v39  ;;  %v1462_v39 = vmul.f32 %v7288_v55, %v4184_v50  ;;  %v8110_v33 = vmax.f32 %v7574_v34, 0.0  ;;  %v3089_v50 = vmul.f32 %v7288_v55, %v4394_v1  ;;  %v1495_v32 = vadd.f32 %v7282_v30, %v1463_v7  ;;  %v4396_v31 = vld [vmem:[%s6308_s12 + $0x1a1] sm:$0xff]  ;;  %v4413_v7 = vld [vmem:[%s6308_s12 + $0x32] sm:$0xff] }
  0xee   : > { %5519 = vmatprep.mubr.f32.mxu0 %v8116_v42  ;;  %5914 = vmatpush3.bf16.msra.mxu1 %v6276_v12  ;;  %v7584_v12 = vadd.f32 %v7282_v30, %v3085_v13  ;;  %v1464_v13 = vmul.f32 %v7288_v55, %v4186_v58  ;;  %v4193_v42 = vld [vmem:[%s6308_s12 + $0x108] sm:$0xff] }
  0xef   : > { %5907 = vmatprep.subr.bf16.mxu1 %v6291_v17 }
  0xf0   : > { %5176 = vmatmul.mubr.f32.gmra.mrb[4].mxu1 %v1520_v10  ;;  %v3088_v10 = vmul.f32 %v7288_v55, %v4393_v41  ;;  %v8111_v29 = vmax.f32 %v7584_v12, 0.0  ;;  %v4188_v41 = vld [vmem:[%s6308_s12 + $0xc8] sm:$0xff]  ;;  %v1496_v56 = vadd.f32 %v7282_v30, %v1464_v13  ;;  %v3151_v13 = vmax.f32 %v7612_v8, 0.0 }
  0xf1   : > { %5520 = vmatmul.mubr.f32.gmra.mrb[20].mxu0 %v8115_v48  ;;  %5178 = vmatprep.mubr.f32.mxu1 %v1521_v19  ;;  %v4395_v19 = vld [vmem:[%s6308_s12 + $0x199] sm:$0xff] }
  0xf2   : > { %5522 = vmatprep.mubr.f32.mxu0 %v8114_v2  ;;  %5915 = vmatpush3.bf16.msra.mxu1 %v6291_v17  ;;  %v1494_v17 = vadd.f32 %v7282_v30, %v1462_v39  ;;  %v8112_v39 = vmax.f32 %v7599_v9, 0.0  ;;  %v7622_v58 = vadd.f32 %v7282_v30, %v3088_v10  ;;  %v1466_v10 = vmul.f32 %v7288_v55, %v4188_v41  ;;  %v4416_v48 = vld [vmem:[%s6308_s12 + $0x52] sm:$0xff] }
  0xf3   : > { %5908 = vmatprep.subr.bf16.mxu1 %v6318_v25 }
  0xf4   : > { %5179 = vmatmul.mubr.f32.gmra.mrb[6].mxu1 %v1522_v0  ;;  %v1465_v0 = vmul.f32 %v7288_v55, %v4187_v16  ;;  %v1526_v1 = vmax.f32 %v1494_v17, 0.0  ;;  %v7631_v16 = vadd.f32 %v7282_v30, %v3089_v50  ;;  %v1467_v17 = vmul.f32 %v7288_v55, %v4189_v62 }
  0xf5   : > { %5523 = vmatmul.mubr.f32.gmra.mrb[22].mxu0 %v8113_v4  ;;  %5181 = vmatprep.mubr.f32.mxu1 %v1523_v49  ;;  %v3090_v49 = vmul.f32 %v7288_v55, %v4395_v19  ;;  %v1527_v19 = vmax.f32 %v1495_v32, 0.0  ;;  %v8117_v50 = vmax.f32 %v7622_v58, 0.0  ;;  %v1528_v32 = vmax.f32 %v1496_v56, 0.0 }
  0xf6   : > { %5525 = vmatprep.mubr.f32.mxu0 %v8110_v33  ;;  %5916 = vmatpush3.bf16.msra.mxu1 %v6318_v25  ;;  %v3091_v25 = vmul.f32 %v7288_v55, %v4396_v31  ;;  %v4190_v33 = vld [vmem:[%s6308_s12 + $0xe0] sm:$0xff]  ;;  %v3462_v31 = vmul.f32 %v7288_v55, %v4413_v7  ;;  %v8118_v62 = vmax.f32 %v7631_v16, 0.0  ;;  %v4192_v7 = vld [vmem:[%s6308_s12 + $0xf8] sm:$0xff]  ;;  %v1499_v56 = vadd.f32 %v7282_v30, %v1467_v17 }
  0xf7   : > { %5909 = vmatprep.subr.bf16.mxu1 %v6342_v35  ;;  %v3122_v41 = vadd.f32 %v7282_v30, %v3090_v49  ;;  %v1468_v49 = vmul.f32 %v7288_v55, %v4190_v33 }
  0xf8   : > { %5182 = vmatmul.mubr.f32.gmra.mrb[8].mxu1 %v1524_v36  ;;  %v1497_v36 = vadd.f32 %v7282_v30, %v1465_v0  ;;  %v4415_v0 = vld [vmem:[%s6308_s12 + $0x4a] sm:$0xff]  ;;  %v3123_v4 = vadd.f32 %v7282_v30, %v3091_v25  ;;  %v3494_v33 = vadd.f32 %v7282_v30, %v3462_v31  ;;  %v3465_v31 = vmul.f32 %v7288_v55, %v4416_v48 }
  0xf9   : > { %5526 = vmatmul.mubr.f32.gmra.mrb[24].mxu0 %v8111_v29  ;;  %5184 = vmatprep.mubr.f32.mxu1 %v1525_v37  ;;  %v4414_v29 = vld [vmem:[%s6308_s12 + $0x3a] sm:$0xff]  ;;  %v4191_v37 = vld [vmem:[%s6308_s12 + $0xf0] sm:$0xff]  ;;  %v3464_v25 = vmul.f32 %v7288_v55, %v4415_v0 }
  0xfa   : > { %5528 = vmatprep.mubr.f32.mxu0 %v8112_v39  ;;  %5917 = vmatpush3.bf16.msra.mxu1 %v6342_v35  ;;  %v1498_v39 = vadd.f32 %v7282_v30, %v1466_v10  ;;  %v1529_v35 = vmax.f32 %v1497_v36, 0.0  ;;  %v1469_v2 = vmul.f32 %v7288_v55, %v4191_v37  ;;  %v3154_v10 = vmax.f32 %v3122_v41, 0.0  ;;  %v4417_v36 = vld [vmem:[%s6308_s12 + $0x62] sm:$0xff] }
  0xfb   : > { %5910 = vmatprep.subr.bf16.mxu1 %v6363_v45  ;;  %v3155_v17 = vmax.f32 %v3123_v4, 0.0  ;;  %v1500_v41 = vadd.f32 %v7282_v30, %v1468_v49  ;;  %v3526_v4 = vmax.f32 %v3494_v33, 0.0  ;;  %v3496_v49 = vadd.f32 %v7282_v30, %v3464_v25 }
  0xfc   : > { %5185 = vmatmul.mubr.f32.gmra.mrb[10].mxu1 %v1526_v1  ;;  %v3463_v1 = vmul.f32 %v7288_v55, %v4414_v29  ;;  %v1530_v29 = vmax.f32 %v1498_v39, 0.0  ;;  %v1501_v0 = vadd.f32 %v7282_v30, %v1469_v2  ;;  %v4418_v39 = vld [vmem:[%s6308_s12 + $0x6a] sm:$0xff]  ;;  %v3466_v48 = vmul.f32 %v7288_v55, %v4417_v36 }
  0xfd   : > { %5529 = vmatmul.mubr.f32.gmra.mrb[26].mxu0 %v3151_v13  ;;  %5187 = vmatprep.mubr.f32.mxu1 %v1527_v19  ;;  %v1470_v19 = vmul.f32 %v7288_v55, %v4192_v7  ;;  %v1471_v7 = vmul.f32 %v7288_v55, %v4193_v42  ;;  %v1532_v42 = vmax.f32 %v1500_v41, 0.0  ;;  %v3497_v2 = vadd.f32 %v7282_v30, %v3465_v31  ;;  %v4196_v36 = vld [vmem:[%s6308_s12 + $0x128] sm:$0xff] }
  0xfe   : > { %5531 = vmatprep.mubr.f32.mxu0 %v8117_v50  ;;  %5918 = vmatpush3.bf16.msra.mxu1 %v6363_v45  ;;  %v1531_v45 = vmax.f32 %v1499_v56, 0.0  ;;  %v3495_v37 = vadd.f32 %v7282_v30, %v3463_v1  ;;  %v4195_v50 = vld [vmem:[%s6308_s12 + $0x120] sm:$0xff]  ;;  %v3498_v41 = vadd.f32 %v7282_v30, %v3466_v48 }
  0xff   : > { %5911 = vmatprep.subr.bf16.mxu1 %v6383_v53  ;;  %v4419_v56 = vld [vmem:[%s6308_s12 + $0x7a] sm:$0xff]  ;;  %v1503_v25 = vadd.f32 %v7282_v30, %v1471_v7  ;;  %v1474_v7 = vmul.f32 %v7288_v55, %v4196_v36 }
 0x100   : > { %5188 = vmatmul.mubr.f32.gmra.mrb[12].mxu1 %v1528_v32  ;;  %v4194_v32 = vld [vmem:[%s6308_s12 + $0x110] sm:$0xff]  ;;  %v3527_v33 = vmax.f32 %v3495_v37, 0.0  ;;  %v3468_v31 = vmul.f32 %v7288_v55, %v4419_v56  ;;  %v3529_v37 = vmax.f32 %v3497_v2, 0.0  ;;  %v3530_v56 = vmax.f32 %v3498_v41, 0.0 }
 0x101   : > { %5532 = vmatmul.mubr.f32.gmra.mrb[28].mxu0 %v8118_v62  ;;  %5190 = vmatprep.mubr.f32.mxu1 %v1529_v35  ;;  %v1502_v35 = vadd.f32 %v7282_v30, %v1470_v19  ;;  %v1472_v1 = vmul.f32 %v7288_v55, %v4194_v32  ;;  %v1473_v19 = vmul.f32 %v7288_v55, %v4195_v50  ;;  %v4420_v32 = vld [vmem:[%s6308_s12 + $0x82] sm:$0xff]  ;;  %v4197_v62 = vld [vmem:[%s6308_s12 + $0x138] sm:$0xff] }
 0x102   : > { %5534 = vmatprep.mubr.f32.mxu0 %v3154_v10  ;;  %5919 = vmatpush3.bf16.msra.mxu1 %v6383_v53  ;;  %v3467_v10 = vmul.f32 %v7288_v55, %v4418_v39  ;;  %v1533_v53 = vmax.f32 %v1501_v0, 0.0  ;;  %v4198_v39 = vld [vmem:[%s6308_s12 + $0x140] sm:$0xff]  ;;  %v1475_v48 = vmul.f32 %v7288_v55, %v4197_v62 }
 0x103   : > { %5912 = vmatprep.subr.bf16.mxu1 %v6403_v63  ;;  %v1504_v50 = vadd.f32 %v7282_v30, %v1472_v1  ;;  %v4199_v1 = vld [vmem:[%s6308_s12 + $0x150] sm:$0xff] }
 0x104   : > { %5191 = vmatmul.mubr.f32.gmra.mrb[14].mxu1 %v1530_v29  ;;  %v3528_v29 = vmax.f32 %v3496_v49, 0.0  ;;  %v3499_v0 = vadd.f32 %v7282_v30, %v3467_v10  ;;  %v1505_v49 = vadd.f32 %v7282_v30, %v1473_v19  ;;  %v1476_v10 = vmul.f32 %v7288_v55, %v4198_v39  ;;  %v4425_v39 = vld [vmem:[%s6308_s12 + $0xc2] sm:$0xff] }
 0x105   : > { %5535 = vmatmul.mubr.f32.gmra.mrb[30].mxu0 %v3155_v17  ;;  %5193 = vmatprep.mubr.f32.mxu1 %v1531_v45  ;;  %v1534_v17 = vmax.f32 %v1502_v35, 0.0  ;;  %v4421_v45 = vld [vmem:[%s6308_s12 + $0x92] sm:$0xff]  ;;  %v4422_v35 = vld [vmem:[%s6308_s12 + $0x9a] sm:$0xff]  ;;  %v1506_v19 = vadd.f32 %v7282_v30, %v1474_v7  ;;  %v1507_v41 = vadd.f32 %v7282_v30, %v1475_v48  ;;  %v4201_v7 = vld [vmem:[%s6308_s12 + $0x168] sm:$0xff] }
 0x106   : > { %5569 = vmatprep.mubr.f32.mxu0 %v3526_v4  ;;  %5920 = vmatpush3.bf16.msra.mxu1 %v6403_v63  ;;  %v1535_v4 = vmax.f32 %v1503_v25, 0.0  ;;  %v3469_v63 = vmul.f32 %v7288_v55, %v4420_v32  ;;  %v3470_v2 = vmul.f32 %v7288_v55, %v4421_v45  ;;  %v3531_v25 = vmax.f32 %v3499_v0, 0.0  ;;  %v4200_v32 = vld [vmem:[%s6308_s12 + $0x158] sm:$0xff] }
 0x107   : > { %v3471_v62 = vmul.f32 %v7288_v55, %v4422_v35  ;;  %v1537_v36 = vmax.f32 %v1505_v49, 0.0  ;;  %v4424_v45 = vld [vmem:[%s6308_s12 + $0xb2] sm:$0xff] }
 0x108   : > { %5194 = vmatmul.mubr.f32.gmra.mrb[16].mxu1 %v1532_v42  ;;  %v3500_v42 = vadd.f32 %v7282_v30, %v3468_v31  ;;  %v1477_v31 = vmul.f32 %v7288_v55, %v4199_v1  ;;  %v3473_v48 = vmul.f32 %v7288_v55, %v4424_v45  ;;  %v4202_v1 = vld [vmem:[%s6308_s12 + $0x170] sm:$0xff] }
 0x109   : > { %5570 = vmatmul.mubr.f32.vlgmr.msra.gmra.mrb[0].mxu0 %v3527_v33  ;;  %5196 = vmatprep.mubr.f32.mxu1 %v1533_v53  ;;  %v4423_v33 = vld [vmem:[%s6308_s12 + $0xaa] sm:$0xff]  ;;  %v1536_v53 = vmax.f32 %v1504_v50, 0.0  ;;  %v3502_v50 = vadd.f32 %v7282_v30, %v3470_v2  ;;  %v3503_v49 = vadd.f32 %v7282_v30, %v3471_v62  ;;  %v1479_v2 = vmul.f32 %v7288_v55, %v4201_v7  ;;  %v4203_v62 = vld [vmem:[%s6308_s12 + $0x180] sm:$0xff] }
 0x10a   : > { %5572 = vmatprep.mubr.f32.mxu0 %v3528_v29  ;;  %v3501_v29 = vadd.f32 %v7282_v30, %v3469_v63  ;;  %v3472_v0 = vmul.f32 %v7288_v55, %v4423_v33  ;;  %v1478_v63 = vmul.f32 %v7288_v55, %v4200_v32 }
 0x10b   : > { %v1511_v45 = vadd.f32 %v7282_v30, %v1479_v2 }
 0x10c   : > { %5197 = vmatmul.mubr.f32.gmra.mrb[18].mxu1 %v1534_v17  ;;  %v3532_v17 = vmax.f32 %v3500_v42, 0.0  ;;  %v3533_v35 = vmax.f32 %v3501_v29, 0.0  ;;  %v1509_v42 = vadd.f32 %v7282_v30, %v1477_v31  ;;  %v3504_v33 = vadd.f32 %v7282_v30, %v3472_v0  ;;  %v4204_v0 = vld [vmem:[%s6308_s12 + $0x188] sm:$0xff] }
 0x10d   : > { %5573 = vmatmul.mubr.f32.gmra.mrb[2].mxu0 %v3529_v37  ;;  %5199 = vmatprep.mubr.f32.mxu1 %v1535_v4  ;;  %v1508_v37 = vadd.f32 %v7282_v30, %v1476_v10  ;;  %v1538_v4 = vmax.f32 %v1506_v19, 0.0  ;;  %v3534_v10 = vmax.f32 %v3502_v50, 0.0  ;;  %v4426_v19 = vld [vmem:[%s6308_s12 + $0xca] sm:$0xff]  ;;  %v3505_v29 = vadd.f32 %v7282_v30, %v3473_v48  ;;  %v7747_v48 = vld [vmem:[%s8105_s2] ss:$0 sm:$0xff] }
 0x10e   : > { %5575 = vmatprep.mubr.f32.mxu0 %v3530_v56  ;;  %v1539_v56 = vmax.f32 %v1507_v41, 0.0  ;;  %v1480_v41 = vmul.f32 %v7288_v55, %v4202_v1  ;;  %v1541_v31 = vmax.f32 %v1509_v42, 0.0  ;;  %v1481_v50 = vmul.f32 %v7288_v55, %v4203_v62  ;;  %v6193_v1 = vld [vmem:[%s6308_s12 + $0xe2] sm:$0xff] }
 0x10f   : > { %v1540_v32 = vmax.f32 %v1508_v37, 0.0  ;;  %v3536_v7 = vmax.f32 %v3504_v33, 0.0 }
 0x110   : > { %5200 = vmatmul.mubr.f32.gmra.mrb[20].mxu1 %v1536_v53  ;;  %v3474_v53 = vmul.f32 %v7288_v55, %v4425_v39  ;;  %v6190_v39 = vld [vmem:[%s6308_s12 + $0xda] sm:$0xff]  ;;  %v1513_v2 = vadd.f32 %v7747_v48, %v1481_v50 }
 0x111   : > { %5576 = vmatmul.mubr.f32.gmra.mrb[4].mxu0 %v3531_v25  ;;  %5202 = vmatprep.mubr.f32.mxu1 %v1537_v36  ;;  %v3535_v25 = vmax.f32 %v3503_v49, 0.0  ;;  %v1510_v36 = vadd.f32 %v7282_v30, %v1478_v63  ;;  %v3537_v63 = vmax.f32 %v3505_v29, 0.0 }
 0x112   : > { %5578 = vmatprep.mubr.f32.mxu0 %v3532_v17  ;;  %v3475_v17 = vmul.f32 %v7288_v55, %v4426_v19  ;;  %v3506_v37 = vadd.f32 %v7282_v30, %v3474_v53 }
 0x113   : > { %v1542_v49 = vmax.f32 %v1510_v36, 0.0  ;;  %v1545_v36 = vmax.f32 %v1513_v2, 0.0  ;;  %v4442_v2 = vld [vmem:[%s6308_s12 + $0x18a] sm:$0xff] }
 0x114   : > { %5203 = vmatmul.mubr.f32.gmra.mrb[22].mxu1 %v1538_v4  ;;  %v3476_v4 = vmul.f32 %v6190_v39, %v7288_v55  ;;  %v1543_v55 = vmax.f32 %v1511_v45, 0.0  ;;  %v3507_v42 = vadd.f32 %v7747_v48, %v3475_v17  ;;  %v3538_v33 = vmax.f32 %v3506_v37, 0.0 }
 0x115   : > { %5579 = vmatmul.mubr.f32.gmra.mrb[6].mxu0 %v3533_v35  ;;  %5205 = vmatprep.mubr.f32.mxu1 %v1539_v56  ;;  %v1512_v35 = vadd.f32 %v7747_v48, %v1480_v41  ;;  %v7753_v56 = vld [vmem:[%s8104_s1] ss:$0 sm:$0xff] }
 0x116   : > { %5581 = vmatprep.mubr.f32.mxu0 %v3534_v10  ;;  %v1482_v30 = vmul.f32 %v7753_v56, %v4204_v0  ;;  %v3477_v10 = vmul.f32 %v6193_v1, %v7753_v56  ;;  %v3508_v53 = vadd.f32 %v7747_v48, %v3476_v4  ;;  %v3478_v19 = vmul.f32 %v7753_v56, %v7307_v18 }
 0x117   : > { %v1544_v62 = vmax.f32 %v1512_v35, 0.0  ;;  %v3479_v41 = vmul.f32 %v7753_v56, %v7314_v3  ;;  %v3480_v18 = vmul.f32 %v7753_v56, %v7324_v61  ;;  %v3482_v39 = vmul.f32 %v7753_v56, %v7348_v23 }
 0x118   : > { %5206 = vmatmul.mubr.f32.gmra.mrb[24].mxu1 %v1540_v32  ;;  %v1514_v32 = vadd.f32 %v7747_v48, %v1482_v30  ;;  %v3509_v29 = vadd.f32 %v7747_v48, %v3477_v10  ;;  %v3510_v45 = vadd.f32 %v7747_v48, %v3478_v19  ;;  %v3484_v35 = vmul.f32 %v7753_v56, %v7374_v40 }
 0x119   : > { %5582 = vmatmul.mubr.f32.gmra.mrb[8].mxu0 %v3535_v25  ;;  %5208 = vmatprep.mubr.f32.mxu1 %v1541_v31  ;;  %v3539_v25 = vmax.f32 %v3507_v42, 0.0  ;;  %v3540_v31 = vmax.f32 %v3508_v53, 0.0  ;;  %v3511_v0 = vadd.f32 %v7747_v48, %v3479_v41  ;;  %v3512_v3 = vadd.f32 %v7747_v48, %v3480_v18 }
 0x11a   : > { %5584 = vmatprep.mubr.f32.mxu0 %v3536_v7  ;;  %v1546_v17 = vmax.f32 %v1514_v32, 0.0  ;;  %v3541_v50 = vmax.f32 %v3509_v29, 0.0  ;;  %v3481_v7 = vmul.f32 %v7753_v56, %v7342_v43  ;;  %v3542_v37 = vmax.f32 %v3510_v45, 0.0 }
 0x11b   : > { %v3543_v61 = vmax.f32 %v3511_v0, 0.0  ;;  %v3544_v43 = vmax.f32 %v3512_v3, 0.0  ;;  %v3516_v30 = vadd.f32 %v7747_v48, %v3484_v35  ;;  %v3486_v40 = vmul.f32 %v7753_v56, %v7398_v5  ;;  %v7855_v35 = vld [vmem:[%s8107_s4] ss:$0 sm:$0xff] }
 0x11c   : > { %5209 = vmatmul.mubr.f32.gmra.mrb[26].mxu1 %v1542_v49  ;;  %v3513_v4 = vadd.f32 %v7747_v48, %v3481_v7  ;;  %v3483_v49 = vmul.f32 %v7753_v56, %v7367_v47  ;;  %v3485_v47 = vmul.f32 %v7753_v56, %v7382_v28  ;;  %v3487_v28 = vmul.f32 %v7753_v56, %v7416_v14 }
 0x11d   : > { %5585 = vmatmul.mubr.f32.gmra.mrb[10].mxu0 %v3537_v63  ;;  %5211 = vmatprep.mubr.f32.mxu1 %v1543_v55  ;;  %v3514_v63 = vadd.f32 %v7747_v48, %v3482_v39  ;;  %v3488_v5 = vmul.f32 %v7753_v56, %v7422_v24  ;;  %v3490_v24 = vmul.f32 %v7753_v56, %v4441_v54  ;;  %v8122_v32 = vmax.f32 %v7559_v15, 0.0 }
 0x11e   : > { %5587 = vmatprep.mubr.f32.mxu0 %v3538_v33  ;;  %v3545_v23 = vmax.f32 %v3513_v4, 0.0  ;;  %v3515_v6 = vadd.f32 %v7747_v48, %v3483_v49  ;;  %v3517_v21 = vadd.f32 %v7747_v48, %v3485_v47  ;;  %v3519_v14 = vadd.f32 %v7747_v48, %v3487_v28 }
 0x11f   : > { %v3520_v42 = vadd.f32 %v7747_v48, %v3488_v5  ;;  %v3522_v53 = vadd.f32 %v7747_v48, %v3490_v24  ;;  %v3492_v19 = vmul.f32 %v7753_v56, %v4443_v22  ;;  %v8125_v15 = vmax.f32 %v7599_v9, 0.0 }
 0x120   : > { %5212 = vmatmul.mubr.f32.gmra.mrb[28].mxu1 %v1544_v62  ;;  %v3547_v46 = vmax.f32 %v3515_v6, 0.0  ;;  %v3551_v1 = vmax.f32 %v3519_v14, 0.0  ;;  %v4444_v62 = vld [vmem:[%s6308_s12 + $0x1a2] sm:$0xff]  ;;  %s4464_s12 = sshll.u32 %s8129_s22, 8 }
 0x121   : > { %5588 = vmatmul.mubr.f32.gmra.mrb[12].mxu0 %v3539_v25  ;;  %5214 = vmatprep.mubr.f32.mxu1 %v1545_v36  ;;  %v3552_v33 = vmax.f32 %v3520_v42, 0.0  ;;  %v3493_v36 = vmul.f32 %v7753_v56, %v4444_v62  ;;  %v3554_v29 = vmax.f32 %v3522_v53, 0.0  ;;  %v3524_v41 = vadd.f32 %v7747_v48, %v3492_v19  ;;  %s7860_s16 = scalar_lea.vmem %s8108_s5, %s4464_s12 }
 0x122   : > { %5590 = vmatprep.mubr.f32.mxu0 %v3540_v31  ;;  %v8124_v31 = vmax.f32 %v7584_v12, 0.0  ;;  %v8127_v12 = vmax.f32 %v7631_v16, 0.0 }
 0x123   : > { %v3556_v18 = vmax.f32 %v3524_v41, 0.0 }
 0x124   : > { %5215 = vmatmul.mubr.f32.gmra.mrb[30].mxu1 %v1546_v17 }
 0x125   : > { %5591 = vmatmul.mubr.f32.gmra.mrb[14].mxu0 %v3541_v50  ;;  %5273 = vmatprep.mubr.f32.mxu1 %v3138_v59  ;;  %v3546_v59 = vmax.f32 %v3514_v63, 0.0 }
 0x126   : > { %5593 = vmatprep.mubr.f32.mxu0 %v3542_v37 }
 0x128   : > { %5274 = vmatmul.mubr.f32.vlgmr.msra.gmra.mrb[16].mxu1 %v3139_v27  ;;  %v3548_v27 = vmax.f32 %v3516_v30, 0.0 }
 0x129   : > { %5594 = vmatmul.mubr.f32.gmra.mrb[16].mxu0 %v3543_v61  ;;  %5276 = vmatprep.mubr.f32.mxu1 %v3140_v57  ;;  %v3518_v57 = vadd.f32 %v7747_v48, %v3486_v40 }
 0x12a   : > { %5596 = vmatprep.mubr.f32.mxu0 %v3544_v43 }
 0x12b   : > { %v3550_v55 = vmax.f32 %v3518_v57, 0.0 }
 0x12c   : > { %5277 = vmatmul.mubr.f32.gmra.mrb[18].mxu1 %v3141_v38  ;;  %v3549_v38 = vmax.f32 %v3517_v21, 0.0 }
 0x12d   : > { %5597 = vmatmul.mubr.f32.gmra.mrb[18].mxu0 %v3545_v23  ;;  %5279 = vmatprep.mubr.f32.mxu1 %v3142_v26  ;;  %v3489_v26 = vmul.f32 %v7753_v56, %v7440_v60  ;;  %v3491_v60 = vmul.f32 %v7753_v56, %v4442_v2  ;;  %v8126_v56 = vmax.f32 %v7622_v58, 0.0 }
 0x12e   : > { %5599 = vmatprep.mubr.f32.mxu0 %v3546_v59 }
 0x12f   : > { %v3521_v10 = vadd.f32 %v7747_v48, %v3489_v26  ;;  %v3523_v25 = vadd.f32 %v7747_v48, %v3491_v60 }
 0x130   : > { %5280 = vmatmul.mubr.f32.gmra.mrb[20].mxu1 %v3143_v51  ;;  %v8120_v51 = vmax.f32 %v7541_v11, 0.0  ;;  %v8123_v11 = vmax.f32 %v7574_v34, 0.0  ;;  %v3525_v34 = vadd.f32 %v7747_v48, %v3493_v36 }
 0x131   : > { %5600 = vmatmul.mubr.f32.gmra.mrb[20].mxu0 %v3547_v46  ;;  %5282 = vmatprep.mubr.f32.mxu1 %v8119_v52  ;;  %v3553_v44 = vmax.f32 %v3521_v10, 0.0  ;;  %v3555_v45 = vmax.f32 %v3523_v25, 0.0 }
 0x132   : > { %5602 = vmatprep.mubr.f32.mxu0 %v3548_v27  ;;  %v3557_v17 = vmax.f32 %v3525_v34, 0.0 }
 0x134   : > { %5283 = vmatmul.mubr.f32.gmra.mrb[22].mxu1 %v8120_v51 }
 0x135   : > { %5603 = vmatmul.mubr.f32.gmra.mrb[22].mxu0 %v3549_v38  ;;  %5285 = vmatprep.mubr.f32.mxu1 %v8121_v20 }
 0x136   : > { %5605 = vmatprep.mubr.f32.mxu0 %v3550_v55 }
 0x138   : > { %5286 = vmatmul.mubr.f32.gmra.mrb[24].mxu1 %v8122_v32 }
 0x139   : > { %5606 = vmatmul.mubr.f32.gmra.mrb[24].mxu0 %v3551_v1  ;;  %5288 = vmatprep.mubr.f32.mxu1 %v8123_v11 }
 0x13a   : > { %5608 = vmatprep.mubr.f32.mxu0 %v3552_v33 }
 0x13c   : > { %5289 = vmatmul.mubr.f32.gmra.mrb[26].mxu1 %v8124_v31 }
 0x13d   : > { %5609 = vmatmul.mubr.f32.gmra.mrb[26].mxu0 %v3553_v44  ;;  %5291 = vmatprep.mubr.f32.mxu1 %v8125_v15 }
 0x13e   : > { %5611 = vmatprep.mubr.f32.mxu0 %v3554_v29 }
 0x140   : > { %5292 = vmatmul.mubr.f32.gmra.mrb[28].mxu1 %v3151_v13 }
 0x141   : > { %5612 = vmatmul.mubr.f32.gmra.mrb[28].mxu0 %v3555_v45  ;;  %5294 = vmatprep.mubr.f32.mxu1 %v8126_v56 }
 0x142   : > { %5614 = vmatprep.mubr.f32.mxu0 %v3556_v18 }
 0x144   : > { %5295 = vmatmul.mubr.f32.gmra.mrb[30].mxu1 %v8127_v12 }
 0x145   : > { %5615 = vmatmul.mubr.f32.gmra.mrb[30].mxu0 %v3557_v17 }
 0x1bb   : > { %v5171_v9 = vpop.f32.mrb[0].mxu1 }
 0x1bc   : > { %v1630_v50 = vpop.f32.mrb[1].mxu1 }
 0x1bf   : > { %v5174_v0 = vpop.f32.mrb[2].mxu1 }
 0x1c0   : > { %v1640_v48 = vpop.f32.mrb[3].mxu1 }
 0x1c3   : > { %v5177_v7 = vpop.f32.mrb[4].mxu1 }
 0x1c4   : > { %v1650_v37 = vpop.f32.mrb[5].mxu1 }
 0x1c7   : > { %v5180_v3 = vpop.f32.mrb[6].mxu1 }
 0x1c8   : > { %v1660_v8 = vpop.f32.mrb[7].mxu1 }
 0x1cb   : > { %v5183_v13 = vpop.f32.mrb[8].mxu1 }
 0x1cc   : > { %v1670_v39 = vpop.f32.mrb[9].mxu1 }
 0x1cf   : > { %v5186_v61 = vpop.f32.mrb[10].mxu1 }
 0x1d0   : > { %v1680_v58 = vpop.f32.mrb[11].mxu1 }
 0x1d3   : > { %v7843_v4 = vpop.f32.mrb[12].mxu1 }
 0x1d4   : > { %v7845_v49 = vpop.f32.mrb[13].mxu1 }
 0x1d7   : > { %v7847_v16 = vpop.f32.mrb[14].mxu1 }
 0x1d8   : > { %v7849_v43 = vpop.f32.mrb[15].mxu1 }
 0x1dc   : > { %v5571_v63 = vpop.f32.mrb[0].mxu0 }
 0x1dd   : > { %v5921_v23 = vadd.f32 %v5571_v63, %v5171_v9  ;;  %v3641_v6 = vpop.f32.mrb[1].mxu0 }
 0x1de   : > { %v5922_v47 = vadd.f32 %v3641_v6, %v1630_v50 }
 0x1df   : > { %v7863_v59 = vadd.f32 %v5921_v23, %v7855_v35 }
 0x1e0   : > { %v7866_v30 = vadd.f32 %v5922_v47, %v7855_v35  ;;  %v5574_v40 = vpop.f32.mrb[2].mxu0 }
 0x1e1   : > { %4013 = vst [vmem:[%s7860_s16 + $0x8] sm:$0xff] %v7863_v59  ;;  %v5923_v46 = vadd.f32 %v5574_v40, %v5174_v0  ;;  %v3651_v21 = vpop.f32.mrb[3].mxu0 }
 0x1e2   : > { %4012 = vst [vmem:[%s7860_s16] sm:$0xff] %v7866_v30  ;;  %v5924_v28 = vadd.f32 %v3651_v21, %v1640_v48  ;;  %v3871_v57 = vadd.f32 %v7863_v59, %v7866_v30 }
 0x1e3   : > { %v7873_v27 = vadd.f32 %v5923_v46, %v7855_v35 }
 0x1e4   : > { %v7878_v5 = vadd.f32 %v5924_v28, %v7855_v35  ;;  %v5577_v54 = vpop.f32.mrb[4].mxu0 }
 0x1e5   : > { %4015 = vst [vmem:[%s7860_s16 + $0x18] sm:$0xff] %v7873_v27  ;;  %v5925_v52 = vadd.f32 %v5577_v54, %v5177_v7  ;;  %v3661_v38 = vpop.f32.mrb[5].mxu0 }
 0x1e6   : > { %v3872_v14 = vadd.f32 %v3871_v57, %v7878_v5  ;;  %4014 = vst [vmem:[%s7860_s16 + $0x10] sm:$0xff] %v7878_v5  ;;  %v5926_v26 = vadd.f32 %v3661_v38, %v1650_v37 }
 0x1e7   : > { %v7886_v55 = vadd.f32 %v5925_v52, %v7855_v35 }
 0x1e8   : > { %v7889_v42 = vadd.f32 %v5926_v26, %v7855_v35  ;;  %v3873_v24 = vadd.f32 %v3872_v14, %v7873_v27  ;;  %v5580_v2 = vpop.f32.mrb[6].mxu0 }
 0x1e9   : > { %4017 = vst [vmem:[%s7860_s16 + $0x28] sm:$0xff] %v7886_v55  ;;  %v5927_v22 = vadd.f32 %v5580_v2, %v5180_v3  ;;  %v3671_v51 = vpop.f32.mrb[7].mxu0 }
 0x1ea   : > { %v3874_v20 = vadd.f32 %v3873_v24, %v7889_v42  ;;  %4016 = vst [vmem:[%s7860_s16 + $0x20] sm:$0xff] %v7889_v42  ;;  %v5928_v1 = vadd.f32 %v3671_v51, %v1660_v8 }
 0x1eb   : > { %v7898_v10 = vadd.f32 %v5927_v22, %v7855_v35 }
 0x1ec   : > { %v7901_v60 = vadd.f32 %v5928_v1, %v7855_v35  ;;  %v3875_v33 = vadd.f32 %v3874_v20, %v7886_v55  ;;  %v5583_v53 = vpop.f32.mrb[8].mxu0 }
 0x1ed   : > { %4019 = vst [vmem:[%s7860_s16 + $0x38] sm:$0xff] %v7898_v10  ;;  %v5929_v19 = vadd.f32 %v5583_v53, %v5183_v13  ;;  %v3681_v62 = vpop.f32.mrb[9].mxu0 }
 0x1ee   : > { %v3876_v32 = vadd.f32 %v3875_v33, %v7901_v60  ;;  %4018 = vst [vmem:[%s7860_s16 + $0x30] sm:$0xff] %v7901_v60  ;;  %v5930_v11 = vadd.f32 %v3681_v62, %v1670_v39 }
 0x1ef   : > { %v7910_v44 = vadd.f32 %v5929_v19, %v7855_v35 }
 0x1f0   : > { %v7913_v25 = vadd.f32 %v5930_v11, %v7855_v35  ;;  %v3877_v36 = vadd.f32 %v3876_v32, %v7898_v10  ;;  %v5586_v29 = vpop.f32.mrb[10].mxu0 }
 0x1f1   : > { %4021 = vst [vmem:[%s7860_s16 + $0x48] sm:$0xff] %v7910_v44  ;;  %v5931_v41 = vadd.f32 %v5586_v29, %v5186_v61  ;;  %v3691_v31 = vpop.f32.mrb[11].mxu0 }
 0x1f2   : > { %v3878_v15 = vadd.f32 %v3877_v36, %v7913_v25  ;;  %4020 = vst [vmem:[%s7860_s16 + $0x40] sm:$0xff] %v7913_v25  ;;  %v5932_v45 = vadd.f32 %v3691_v31, %v1680_v58 }
 0x1f3   : > { %v7922_v34 = vadd.f32 %v5931_v41, %v7855_v35 }
 0x1f4   : > { %v7925_v18 = vadd.f32 %v5932_v45, %v7855_v35  ;;  %v3879_v56 = vadd.f32 %v3878_v15, %v7910_v44  ;;  %v5589_v17 = vpop.f32.mrb[12].mxu0 }
 0x1f5   : > { %4023 = vst [vmem:[%s7860_s16 + $0x58] sm:$0xff] %v7922_v34  ;;  %v5933_v12 = vadd.f32 %v5589_v17, %v7843_v4  ;;  %v3701_v9 = vpop.f32.mrb[13].mxu0 }
 0x1f6   : > { %v3880_v50 = vadd.f32 %v3879_v56, %v7925_v18  ;;  %4022 = vst [vmem:[%s7860_s16 + $0x50] sm:$0xff] %v7925_v18  ;;  %v5934_v0 = vadd.f32 %v3701_v9, %v7845_v49 }
 0x1f7   : > { %v7936_v48 = vadd.f32 %v5933_v12, %v7855_v35 }
 0x1f8   : > { %v7939_v7 = vadd.f32 %v5934_v0, %v7855_v35  ;;  %v3881_v37 = vadd.f32 %v3880_v50, %v7922_v34  ;;  %v5592_v3 = vpop.f32.mrb[14].mxu0 }
 0x1f9   : > { %4025 = vst [vmem:[%s7860_s16 + $0x68] sm:$0xff] %v7936_v48  ;;  %v5935_v8 = vadd.f32 %v5592_v3, %v7847_v16  ;;  %v3711_v13 = vpop.f32.mrb[15].mxu0 }
 0x1fa   : > { %v3882_v39 = vadd.f32 %v3881_v37, %v7939_v7  ;;  %4024 = vst [vmem:[%s7860_s16 + $0x60] sm:$0xff] %v7939_v7  ;;  %v5936_v61 = vadd.f32 %v3711_v13, %v7849_v43 }
 0x1fb   : > { %v7950_v58 = vadd.f32 %v5935_v8, %v7855_v35  ;;  %v5275_v4 = vpop.f32.mrb[16].mxu1 }
 0x1fc   : > { %v7953_v49 = vadd.f32 %v5936_v61, %v7855_v35  ;;  %v3883_v63 = vadd.f32 %v3882_v39, %v7936_v48  ;;  %v5595_v23 = vpop.f32.mrb[16].mxu0  ;;  %v2112_v6 = vpop.f32.mrb[17].mxu1 }
 0x1fd   : > { %4027 = vst [vmem:[%s7860_s16 + $0x78] sm:$0xff] %v7950_v58  ;;  %v5937_v16 = vadd.f32 %v5595_v23, %v5275_v4  ;;  %v3721_v47 = vpop.f32.mrb[17].mxu0 }
 0x1fe   : > { %v3884_v40 = vadd.f32 %v3883_v63, %v7953_v49  ;;  %4026 = vst [vmem:[%s7860_s16 + $0x70] sm:$0xff] %v7953_v49  ;;  %v5938_v43 = vadd.f32 %v3721_v47, %v2112_v6 }
 0x1ff   : > { %v7962_v46 = vadd.f32 %v5937_v16, %v7855_v35  ;;  %v5278_v21 = vpop.f32.mrb[18].mxu1 }
 0x200   : > { %v7965_v28 = vadd.f32 %v5938_v43, %v7855_v35  ;;  %v3885_v57 = vadd.f32 %v3884_v40, %v7950_v58  ;;  %v5598_v54 = vpop.f32.mrb[18].mxu0  ;;  %v2122_v52 = vpop.f32.mrb[19].mxu1 }
 0x201   : > { %4029 = vst [vmem:[%s7860_s16 + $0x88] sm:$0xff] %v7962_v46  ;;  %v5939_v38 = vadd.f32 %v5598_v54, %v5278_v21  ;;  %v3731_v14 = vpop.f32.mrb[19].mxu0 }
 0x202   : > { %v3886_v26 = vadd.f32 %v3885_v57, %v7965_v28  ;;  %4028 = vst [vmem:[%s7860_s16 + $0x80] sm:$0xff] %v7965_v28  ;;  %v5940_v24 = vadd.f32 %v3731_v14, %v2122_v52 }
 0x203   : > { %v7974_v2 = vadd.f32 %v5939_v38, %v7855_v35  ;;  %v5281_v22 = vpop.f32.mrb[20].mxu1 }
 0x204   : > { %v7977_v51 = vadd.f32 %v5940_v24, %v7855_v35  ;;  %v3887_v20 = vadd.f32 %v3886_v26, %v7962_v46  ;;  %v5601_v1 = vpop.f32.mrb[20].mxu0  ;;  %v2132_v33 = vpop.f32.mrb[21].mxu1 }
 0x205   : > { %4031 = vst [vmem:[%s7860_s16 + $0x98] sm:$0xff] %v7974_v2  ;;  %v5941_v53 = vadd.f32 %v5601_v1, %v5281_v22  ;;  %v3741_v19 = vpop.f32.mrb[21].mxu0 }
 0x206   : > { %v3888_v62 = vadd.f32 %v3887_v20, %v7977_v51  ;;  %4030 = vst [vmem:[%s7860_s16 + $0x90] sm:$0xff] %v7977_v51  ;;  %v5942_v32 = vadd.f32 %v3741_v19, %v2132_v33 }
 0x207   : > { %v7986_v11 = vadd.f32 %v5941_v53, %v7855_v35  ;;  %v5284_v36 = vpop.f32.mrb[22].mxu1 }
 0x208   : > { %v7989_v29 = vadd.f32 %v5942_v32, %v7855_v35  ;;  %v3889_v41 = vadd.f32 %v3888_v62, %v7974_v2  ;;  %v5604_v31 = vpop.f32.mrb[22].mxu0  ;;  %v2142_v15 = vpop.f32.mrb[23].mxu1 }
 0x209   : > { %4033 = vst [vmem:[%s7860_s16 + $0xa8] sm:$0xff] %v7986_v11  ;;  %v5943_v45 = vadd.f32 %v5604_v31, %v5284_v36  ;;  %v3751_v56 = vpop.f32.mrb[23].mxu0 }
 0x20a   : > { %v3890_v17 = vadd.f32 %v3889_v41, %v7989_v29  ;;  %4032 = vst [vmem:[%s7860_s16 + $0xa0] sm:$0xff] %v7989_v29  ;;  %v5944_v12 = vadd.f32 %v3751_v56, %v2142_v15 }
 0x20b   : > { %v7998_v9 = vadd.f32 %v5943_v45, %v7855_v35  ;;  %v5287_v50 = vpop.f32.mrb[24].mxu1 }
 0x20c   : > { %v8001_v0 = vadd.f32 %v5944_v12, %v7855_v35  ;;  %v3891_v37 = vadd.f32 %v3890_v17, %v7986_v11  ;;  %v5607_v3 = vpop.f32.mrb[24].mxu0  ;;  %v2152_v8 = vpop.f32.mrb[25].mxu1 }
 0x20d   : > { %4035 = vst [vmem:[%s7860_s16 + $0xb8] sm:$0xff] %v7998_v9  ;;  %v5945_v13 = vadd.f32 %v5607_v3, %v5287_v50  ;;  %v3761_v39 = vpop.f32.mrb[25].mxu0 }
 0x20e   : > { %v3892_v61 = vadd.f32 %v3891_v37, %v8001_v0  ;;  %4034 = vst [vmem:[%s7860_s16 + $0xb0] sm:$0xff] %v8001_v0  ;;  %v5946_v4 = vadd.f32 %v3761_v39, %v2152_v8 }
 0x20f   : > { %v8010_v63 = vadd.f32 %v5945_v13, %v7855_v35  ;;  %v5290_v23 = vpop.f32.mrb[26].mxu1 }
 0x210   : > { %v8013_v6 = vadd.f32 %v5946_v4, %v7855_v35  ;;  %v3893_v16 = vadd.f32 %v3892_v61, %v7998_v9  ;;  %v5610_v47 = vpop.f32.mrb[26].mxu0  ;;  %v2162_v40 = vpop.f32.mrb[27].mxu1 }
 0x211   : > { %4037 = vst [vmem:[%s7860_s16 + $0xc8] sm:$0xff] %v8010_v63  ;;  %v5947_v43 = vadd.f32 %v5610_v47, %v5290_v23  ;;  %v3771_v21 = vpop.f32.mrb[27].mxu0 }
 0x212   : > { %v3894_v57 = vadd.f32 %v3893_v16, %v8013_v6  ;;  %4036 = vst [vmem:[%s7860_s16 + $0xc0] sm:$0xff] %v8013_v6  ;;  %v5948_v54 = vadd.f32 %v3771_v21, %v2162_v40 }
 0x213   : > { %v3866_v52 = vadd.f32 %v5947_v43, %v7855_v35  ;;  %v5293_v38 = vpop.f32.mrb[28].mxu1 }
 0x214   : > { %v3865_v14 = vadd.f32 %v5948_v54, %v7855_v35  ;;  %v3895_v26 = vadd.f32 %v3894_v57, %v8010_v63  ;;  %v5613_v24 = vpop.f32.mrb[28].mxu0  ;;  %v2172_v22 = vpop.f32.mrb[29].mxu1 }
 0x215   : > { %4039 = vst [vmem:[%s7860_s16 + $0xd8] sm:$0xff] %v3866_v52  ;;  %v5949_v20 = vadd.f32 %v5613_v24, %v5293_v38  ;;  %v3781_v1 = vpop.f32.mrb[29].mxu0 }
 0x216   : > { %v3896_v33 = vadd.f32 %v3895_v26, %v3865_v14  ;;  %4038 = vst [vmem:[%s7860_s16 + $0xd0] sm:$0xff] %v3865_v14  ;;  %v5950_v53 = vadd.f32 %v3781_v1, %v2172_v22 }
 0x217   : > { %v3868_v19 = vadd.f32 %v5949_v20, %v7855_v35  ;;  %v5296_v62 = vpop.f32.mrb[30].mxu1 }
 0x218   : > { %v3867_v32 = vadd.f32 %v5950_v53, %v7855_v35  ;;  %v3897_v36 = vadd.f32 %v3896_v33, %v3866_v52  ;;  %v5616_v41 = vpop.f32.mrb[30].mxu0  ;;  %v2182_v31 = vpop.f32.mrb[31].mxu1 }
 0x219   : > { %4041 = vst [vmem:[%s7860_s16 + $0xe8] sm:$0xff] %v3868_v19  ;;  %v5951_v15 = vadd.f32 %v5616_v41, %v5296_v62  ;;  %v3791_v45 = vpop.f32.mrb[31].mxu0 }
 0x21a   : > { %v3898_v56 = vadd.f32 %v3897_v36, %v3867_v32  ;;  %4040 = vst [vmem:[%s7860_s16 + $0xe0] sm:$0xff] %v3867_v32  ;;  %v5952_v17 = vadd.f32 %v3791_v45, %v2182_v31 }
 0x21b   : > { %v3870_v12 = vadd.f32 %v5951_v15, %v7855_v35 }
 0x21c   : > { %v3869_v50 = vadd.f32 %v5952_v17, %v7855_v35  ;;  %v3899_v37 = vadd.f32 %v3898_v56, %v3868_v19 }
 0x21d   : > { %4043 = vst [vmem:[%s7860_s16 + $0xf8] sm:$0xff] %v3870_v12 }
 0x21e   : > { %v3900_v3 = vadd.f32 %v3899_v37, %v3869_v50  ;;  %4042 = vst [vmem:[%s7860_s16 + $0xf0] sm:$0xff] %v3869_v50 }
 0x220   : > { %v3901_v8 = vadd.f32 %v3900_v3, %v3870_v12 }
 0x222   : > { %v3902_v13 = vrot.slane %v3901_v8, 4 }
 0x224   : > { %v3903_v39 = vadd.f32 %v3902_v13, %v3901_v8 }
 0x226   : > { %v3904_v61 = vrot.slane %v3903_v39, 2 }
 0x228   : > { %v3905_v4 = vadd.f32 %v3904_v61, %v3903_v39 }
 0x22a   : > { %v3906_v23 = vrot.slane %v3905_v4, 1 }
 0x22c   : > { %v3907_v16 = vadd.f32 %v3906_v23, %v3905_v4 }
 0x22e   : > { %v3908_v47 = vmul.f32 0.00390625, %v3907_v16  ;;  %4010 = vst [vmem:[%s8038_s20] sm:$0x1] %v3907_v16 }
 0x230   : > { %v3917_v35 = vsub.f32 %v7913_v25, %v3908_v47  ;;  %v3919_v40 = vsub.f32 %v7925_v18, %v3908_v47  ;;  %v3920_v43 = vsub.f32 %v7922_v34, %v3908_v47  ;;  %v3921_v21 = vsub.f32 %v7939_v7, %v3908_v47 }
 0x231   : > { %v3922_v57 = vsub.f32 %v7936_v48, %v3908_v47  ;;  %v3923_v54 = vsub.f32 %v7953_v49, %v3908_v47  ;;  %v3924_v38 = vsub.f32 %v7950_v58, %v3908_v47  ;;  %v3925_v26 = vsub.f32 %v7965_v28, %v3908_v47 }
 0x232   : > { %v3926_v24 = vsub.f32 %v7962_v46, %v3908_v47  ;;  %v3927_v22 = vsub.f32 %v7977_v51, %v3908_v47  ;;  %v3928_v25 = vsub.f32 %v7974_v2, %v3908_v47  ;;  %v3929_v18 = vsub.f32 %v7989_v29, %v3908_v47 }
 0x233   : > { %v3930_v34 = vsub.f32 %v7986_v11, %v3908_v47  ;;  %v3931_v7 = vsub.f32 %v8001_v0, %v3908_v47  ;;  %v3932_v48 = vsub.f32 %v7998_v9, %v3908_v47  ;;  %v8057_v49 = vsub.f32 %v8013_v6, %v3908_v47 }
 0x234   : > { %v8060_v58 = vsub.f32 %v8010_v63, %v3908_v47  ;;  %v8062_v28 = vsub.f32 %v3865_v14, %v3908_v47  ;;  %v8064_v46 = vsub.f32 %v3866_v52, %v3908_v47  ;;  %v8066_v51 = vsub.f32 %v3867_v32, %v3908_v47 }
 0x235   : > { %v8068_v2 = vsub.f32 %v3868_v19, %v3908_v47  ;;  %v8070_v29 = vsub.f32 %v3869_v50, %v3908_v47  ;;  %v8072_v11 = vsub.f32 %v3870_v12, %v3908_v47  ;;  %v3909_v9 = vsub.f32 %v7866_v30, %v3908_v47 }
 0x236   : > { %v3910_v0 = vsub.f32 %v7863_v59, %v3908_v47  ;;  %v3911_v6 = vsub.f32 %v7878_v5, %v3908_v47  ;;  %v3912_v14 = vsub.f32 %v7873_v27, %v3908_v47  ;;  %v3913_v52 = vsub.f32 %v7889_v42, %v3908_v47 }
 0x237   : > { %v3941_v63 = vmul.f32 %v3909_v9, %v3909_v9  ;;  %v3914_v53 = vsub.f32 %v7886_v55, %v3908_v47  ;;  %v3915_v32 = vsub.f32 %v7901_v60, %v3908_v47  ;;  %v3916_v59 = vsub.f32 %v7898_v10, %v3908_v47 }
 0x238   : > { %v3942_v20 = vmul.f32 %v3910_v0, %v3910_v0  ;;  %v3943_v1 = vmul.f32 %v3911_v6, %v3911_v6  ;;  %v3944_v19 = vmul.f32 %v3912_v14, %v3912_v14  ;;  %v3945_v36 = vmul.f32 %v3913_v52, %v3913_v52 }
 0x239   : > { %v3946_v41 = vmul.f32 %v3914_v53, %v3914_v53  ;;  %v3947_v31 = vmul.f32 %v3915_v32, %v3915_v32  ;;  %v3918_v27 = vsub.f32 %v7910_v44, %v3908_v47  ;;  %v3948_v45 = vmul.f32 %v3916_v59, %v3916_v59 }
 0x23a   : > { %v3973_v33 = vadd.f32 %v3942_v20, %v3941_v63  ;;  %v3949_v56 = vmul.f32 %v3917_v35, %v3917_v35  ;;  %v3951_v50 = vmul.f32 %v3919_v40, %v3919_v40  ;;  %v3952_v3 = vmul.f32 %v3920_v43, %v3920_v43 }
 0x23b   : > { %v3950_v12 = vmul.f32 %v3918_v27, %v3918_v27  ;;  %v3953_v8 = vmul.f32 %v3921_v21, %v3921_v21  ;;  %v3954_v39 = vmul.f32 %v3922_v57, %v3922_v57  ;;  %v3955_v61 = vmul.f32 %v3923_v54, %v3923_v54 }
 0x23c   : > { %v3974_v62 = vadd.f32 %v3973_v33, %v3943_v1  ;;  %v3956_v23 = vmul.f32 %v3924_v38, %v3924_v38  ;;  %v3957_v9 = vmul.f32 %v3925_v26, %v3925_v26  ;;  %v3958_v47 = vmul.f32 %v3926_v24, %v3926_v24 }
 0x23d   : > { %v3959_v35 = vmul.f32 %v3927_v22, %v3927_v22  ;;  %v3960_v63 = vmul.f32 %v3928_v25, %v3928_v25  ;;  %v3961_v40 = vmul.f32 %v3929_v18, %v3929_v18  ;;  %v3962_v43 = vmul.f32 %v3930_v34, %v3930_v34 }
 0x23e   : > { %v3975_v30 = vadd.f32 %v3974_v62, %v3944_v19  ;;  %v3963_v21 = vmul.f32 %v3931_v7, %v3931_v7  ;;  %v3964_v57 = vmul.f32 %v3932_v48, %v3932_v48  ;;  %v3965_v54 = vmul.f32 %v8057_v49, %v8057_v49 }
 0x23f   : > { %v3966_v26 = vmul.f32 %v8060_v58, %v8060_v58  ;;  %v3967_v22 = vmul.f32 %v8062_v28, %v8062_v28  ;;  %v3968_v18 = vmul.f32 %v8064_v46, %v8064_v46  ;;  %v3969_v7 = vmul.f32 %v8066_v51, %v8066_v51 }
 0x240   : > { %v3976_v5 = vadd.f32 %v3975_v30, %v3945_v36  ;;  %v3970_v49 = vmul.f32 %v8068_v2, %v8068_v2  ;;  %v3971_v58 = vmul.f32 %v8070_v29, %v8070_v29  ;;  %v3972_v28 = vmul.f32 %v8072_v11, %v8072_v11 }
 0x242   : > { %v3977_v15 = vadd.f32 %v3976_v5, %v3946_v41 }
 0x244   : > { %v3978_v42 = vadd.f32 %v3977_v15, %v3947_v31 }
 0x246   : > { %v3979_v17 = vadd.f32 %v3978_v42, %v3948_v45 }
 0x248   : > { %v3980_v55 = vadd.f32 %v3979_v17, %v3949_v56 }
 0x24a   : > { %v3981_v37 = vadd.f32 %v3980_v55, %v3950_v12 }
 0x24c   : > { %v3982_v60 = vadd.f32 %v3981_v37, %v3951_v50 }
 0x24e   : > { %v3983_v13 = vadd.f32 %v3982_v60, %v3952_v3 }
 0x250   : > { %v3984_v10 = vadd.f32 %v3983_v13, %v3953_v8 }
 0x252   : > { %v3985_v4 = vadd.f32 %v3984_v10, %v3954_v39 }
 0x254   : > { %v3986_v16 = vadd.f32 %v3985_v4, %v3955_v61 }
 0x256   : > { %v3987_v44 = vadd.f32 %v3986_v16, %v3956_v23 }
 0x258   : > { %v3988_v0 = vadd.f32 %v3987_v44, %v3957_v9 }
 0x25a   : > { %v3989_v6 = vadd.f32 %v3988_v0, %v3958_v47 }
 0x25c   : > { %v3990_v20 = vadd.f32 %v3989_v6, %v3959_v35 }
 0x25e   : > { %v3991_v14 = vadd.f32 %v3990_v20, %v3960_v63 }
 0x260   : > { %v3992_v52 = vadd.f32 %v3991_v14, %v3961_v40 }
 0x262   : > { %v3993_v1 = vadd.f32 %v3992_v52, %v3962_v43 }
 0x264   : > { %v3994_v33 = vadd.f32 %v3993_v1, %v3963_v21 }
 0x266   : > { %v3995_v38 = vadd.f32 %v3994_v33, %v3964_v57 }
 0x268   : > { %v3996_v24 = vadd.f32 %v3995_v38, %v3965_v54 }
 0x26a   : > { %v3997_v25 = vadd.f32 %v3996_v24, %v3966_v26 }
 0x26c   : > { %v3998_v34 = vadd.f32 %v3997_v25, %v3967_v22 }
 0x26e   : > { %v3999_v48 = vadd.f32 %v3998_v34, %v3968_v18 }
 0x270   : > { %v4000_v53 = vadd.f32 %v3999_v48, %v3969_v7 }
 0x272   : > { %v4001_v19 = vadd.f32 %v4000_v53, %v3970_v49 }
 0x274   : > { %v4002_v62 = vadd.f32 %v4001_v19, %v3971_v58 }
 0x276   : > { %v4003_v32 = vadd.f32 %v4002_v62, %v3972_v28 }
 0x278   : > { %v4004_v46 = vrot.slane %v4003_v32, 4 }
 0x27a   : > { %v4005_v36 = vadd.f32 %v4004_v46, %v4003_v32 }
 0x27c   : > { %v4006_v30 = vrot.slane %v4005_v36, 2 }
 0x27e   : > { %v4007_v59 = vadd.f32 %v4006_v30, %v4005_v36 }
 0x280   : > { %v4008_v41 = vrot.slane %v4007_v59, 1 }
 0x282   : > { %v4009_v51 = vadd.f32 %v4008_v41, %v4007_v59 }
 0x284   : > { %4011 = vst [vmem:[%s8038_s20 + $0x1] sm:$0x1] %v4009_v51 }
 0x285 PF: > { %s17_s21 = sadd.s32 1, %s6200_s21  }
 0x286   : > { %p14_p4 = scmp.ge.s32.totalorder %s17_s21, 4  }
 0x288   :  { %16 = sbr.rel (!%p14_p4) target bundleno = 1 (0x1), region = 92 }

</bundles_post_ra>
